<compile_context>
chip_gen: v7x
topology: tpu7x:2x2x1
jax: 0.10.0
libtpu: 0.0.40
codegen_flags: <defaults>
</compile_context>

<pallas_src>
import functools

import jax
import jax.numpy as jnp
from jax.experimental import pallas as pl
from jax.experimental.pallas import tpu as pltpu


# ----------------------------------------------------------------------------
# Kernel 1: one fused RegularBlock.
#   Activation layout in-kernel: (C*m, m)  with row = channel*m + i, col = j.
#   1x1 conv:  y = relu(K @ h + b_rep)   where K = kron(W^T, I_m)  (2D matmul)
#   Pairwise:  mult[c] = h1[c] @ h2[c]   via static sublane slices of scratch
#   Skip conv: out = Kx @ x + Km @ mult + b_rep   (concat folded into 2 matmuls)
# ----------------------------------------------------------------------------
def _regular_block_kernel(*args, depth, m, cmid):
    n = 2 * depth
    x_ref = args[0]
    mlp1_refs = args[1:1 + n]
    mlp2_refs = args[1 + n:1 + 2 * n]
    kx_ref, km_ref, bskip_ref = args[1 + 2 * n:4 + 2 * n]
    o_ref = args[4 + 2 * n]
    h1_s, h2_s, mult_s = args[5 + 2 * n:8 + 2 * n]

    x = x_ref[0]                                   # (Cin*m, m), f32

    def run_mlp(refs, h):
        for d in range(depth):
            k = refs[2 * d][...]                   # (Cmid*m, Cin*m)
            b = refs[2 * d + 1][...]               # (Cmid*m, 1)
            h = jnp.dot(k, h, preferred_element_type=jnp.float32) + b
            h = jnp.maximum(h, 0.0)
        return h

    h1_s[...] = run_mlp(mlp1_refs, x)              # (Cmid*m, m)
    h2_s[...] = run_mlp(mlp2_refs, x)

    # Per-channel (m, m) @ (m, m) pairwise matmuls (static, tile-aligned slices).
    for c in range(cmid):
        r0 = c * m
        mult_s[r0:r0 + m, :] = jnp.dot(
            h1_s[r0:r0 + m, :], h2_s[r0:r0 + m, :],
            preferred_element_type=jnp.float32)

    out = (jnp.dot(kx_ref[...], x, preferred_element_type=jnp.float32)
           + jnp.dot(km_ref[...], mult_s[...],
                     preferred_element_type=jnp.float32)
           + bskip_ref[...])                       # skip conv: no activation
    o_ref[0] = out.astype(o_ref.dtype)


def regular_block(x, block_p, *, m):
    """x: (B, Cin*m, m) f32  ->  (B, Cout*m, m) f32."""
    B, cin_m, m_ = x.shape
    assert m_ == m
    kx, km, bskip = block_p["skip"]
    cout_m = kx.shape[0]
    cmid_m = km.shape[1]
    depth = len(block_p["mlp1"])

    inputs = [x]
    in_specs = [pl.BlockSpec((1, cin_m, m), lambda b: (b, 0, 0))]

    def add_param(arr):
        inputs.append(arr)
        in_specs.append(pl.BlockSpec(arr.shape, lambda b: (0, 0)))

    for k, bb in block_p["mlp1"]:
        add_param(k)
        add_param(bb)
    for k, bb in block_p["mlp2"]:
        add_param(k)
        add_param(bb)
    add_param(kx)
    add_param(km)
    add_param(bskip)

    kernel = functools.partial(_regular_block_kernel,
                               depth=depth, m=m, cmid=cmid_m // m)
    return pl.pallas_call(
        kernel,
        out_shape=jax.ShapeDtypeStruct((B, cout_m, m), x.dtype),
        grid_spec=pltpu.PrefetchScalarGridSpec(
            num_scalar_prefetch=0,
            grid=(B,),
            in_specs=in_specs,
            out_specs=pl.BlockSpec((1, cout_m, m), lambda b: (b, 0, 0)),
            scratch_shapes=[pltpu.VMEM((cmid_m, m), jnp.float32),
                            pltpu.VMEM((cmid_m, m), jnp.float32),
                            pltpu.VMEM((cmid_m, m), jnp.float32)]),
        compiler_params=pltpu.CompilerParams(
            dimension_semantics=("parallel",)),
    )(*inputs)


# ----------------------------------------------------------------------------
# Kernel 2: fused diag_offdiag_maxpool + 3 fully-connected layers.
# ----------------------------------------------------------------------------
def _pool_fc_kernel(x_ref, w1_ref, b1_ref, w2_ref, b2_ref, w3_ref, b3_ref,
                    o_ref):
    x = x_ref[...]                                 # (B, S, m, m) f32
    m = x.shape[-1]
    row = jax.lax.broadcasted_iota(jnp.int32, (m, m), 0)
    col = jax.lax.broadcasted_iota(jnp.int32, (m, m), 1)
    eye = (row == col)[None, None]                 # (1, 1, m, m)

    neg_inf = jnp.float32(-jnp.inf)
    max_diag = jnp.max(jnp.max(jnp.where(eye, x, neg_inf), axis=3), axis=2)

    max_val = jnp.max(max_diag)                    # global scalar
    min_val = jnp.max(-x)                          # global scalar
    val = jnp.abs(max_val + min_val)
    min_mat = jnp.where(eye, val, jnp.float32(0.0))
    max_offdiag = jnp.max(jnp.max(x - min_mat, axis=3), axis=2)

    h = jnp.concatenate([max_diag, max_offdiag], axis=1)        # (B, 2S)

    h = jnp.maximum(
        jnp.dot(h, w1_ref[...], preferred_element_type=jnp.float32)
        + b1_ref[...], 0.0)
    h = jnp.maximum(
        jnp.dot(h, w2_ref[...], preferred_element_type=jnp.float32)
        + b2_ref[...], 0.0)
    h = (jnp.dot(h, w3_ref[...], preferred_element_type=jnp.float32)
         + b3_ref[...])
    o_ref[...] = h.astype(o_ref.dtype)


def pool_and_fc(x4, fc_params):
    # x4: (B, S, m, m).
    # TODO(synk): tile over B/S with a two-pass global max/min if B*S*m*m ever
    # outgrows a single VMEM block (relevant for v7x's 64 MiB VMEM at large m).
    (w1, b1), (w2, b2), (w3, b3) = fc_params
    B = x4.shape[0]
    nc = w3.shape[1]
    return pl.pallas_call(
        _pool_fc_kernel,
        out_shape=jax.ShapeDtypeStruct((B, nc), jnp.float32),
    )(x4, w1, b1, w2, b2, w3, b3)


# ----------------------------------------------------------------------------
# Model glue (only free metadata reshapes between kernels).
# ----------------------------------------------------------------------------
def net_forward(kparams, graph, *, num_node):
    B = graph.shape[0]
    m = num_node
    x = graph.astype(jnp.float32)                  # (B, 1*m, m) layout (C=1)
    for block_p in kparams["blocks"]:
        x = regular_block(x, block_p, m=m)
    s = x.shape[1] // m
    x4 = x.reshape(B, s, m, m)                     # contiguous -> free reshape
    scores = pool_and_fc(x4, kparams["fc"])
    return scores.reshape(-1)


# ----------------------------------------------------------------------------
# Deterministic parameter construction (synthetic weights, not a checkpoint).
# ----------------------------------------------------------------------------
def _dense_init(key, cin, cout, scale=0.1):
    kw, kb = jax.random.split(key)
    w = scale * jax.random.normal(kw, (cin, cout), jnp.float32)
    b = scale * jax.random.normal(kb, (cout,), jnp.float32)
    return (w, b)


def make_params(key, *, original_features, block_features, depth_of_mlp,
                num_classes):
    params = {"blocks": [], "fc": []}
    last = original_features
    for next_f in block_features:
        block = {"mlp1": [], "mlp2": [], "skip": None}
        for name in ("mlp1", "mlp2"):
            cin = last
            for _ in range(depth_of_mlp):
                key, sub = jax.random.split(key)
                block[name].append(_dense_init(sub, cin, next_f))
                cin = next_f
        key, sub = jax.random.split(key)
        block["skip"] = _dense_init(sub, last + next_f, next_f)
        params["blocks"].append(block)
        last = next_f
    # suffix: FC(2*last, 512), FC(512, 256), FC(256, num_classes)
    for cin, cout in ((2 * last, 512), (512, 256), (256, num_classes)):
        key, sub = jax.random.split(key)
        params["fc"].append(_dense_init(sub, cin, cout))
    return params


def prepare_params(params, m):
    """Kron-expand 1x1 conv weights so each conv is one 2D matmul on the
    (C*m, m) activation slab, and split the skip weight to kill the concat."""
    eye = jnp.eye(m, dtype=jnp.float32)

    def expand(w, b):
        k = jnp.kron(w.T, eye)                     # (cout*m, cin*m)
        brep = jnp.repeat(b, m).reshape(-1, 1)     # (cout*m, 1)
        return k, brep

    blocks = []
    for blk in params["blocks"]:
        c_prev = blk["mlp1"][0][0].shape[0]
        mlp1 = [expand(w, b) for (w, b) in blk["mlp1"]]
        mlp2 = [expand(w, b) for (w, b) in blk["mlp2"]]
        w_skip, b_skip = blk["skip"]
        kx, brep = expand(w_skip[:c_prev], b_skip)
        km, _ = expand(w_skip[c_prev:], jnp.zeros_like(b_skip))
        blocks.append({"mlp1": mlp1, "mlp2": mlp2, "skip": (kx, km, brep)})
    fc = [(w, b.reshape(1, -1)) for (w, b) in params["fc"]]
    return {"blocks": blocks, "fc": fc}


# ----------------------------------------------------------------------------
# Pure-JAX reference (NCHW, literal translation of the PyTorch forward).
# ----------------------------------------------------------------------------
def reference_forward(params, graph, num_node):
    B = graph.shape[0]
    m = num_node
    x = graph.reshape(B, 1, m, m).astype(jnp.float32)

    def mlp(convs, h):
        for w, b in convs:
            h = jnp.einsum("bcij,co->boij", h, w) + b[None, :, None, None]
            h = jnp.maximum(h, 0.0)
        return h

    for blk in params["blocks"]:
        m1 = mlp(blk["mlp1"], x)
        m2 = mlp(blk["mlp2"], x)
        mult = jnp.einsum("bcik,bckj->bcij", m1, m2)
        cat = jnp.concatenate([x, mult], axis=1)
        w, b = blk["skip"]
        x = jnp.einsum("bcij,co->boij", cat, w) + b[None, :, None, None]

    eye = jnp.eye(m, dtype=bool)[None, None]
    max_diag = jnp.max(jnp.where(eye, x, -jnp.inf), axis=(2, 3))
    max_val = jnp.max(max_diag)
    min_val = jnp.max(-x)
    val = jnp.abs(max_val + min_val)
    max_offdiag = jnp.max(x - jnp.where(eye, val, 0.0), axis=(2, 3))
    h = jnp.concatenate([max_diag, max_offdiag], axis=1)
    for i, (w, b) in enumerate(params["fc"]):
        h = h @ w + b[None]
        if i < len(params["fc"]) - 1:
            h = jnp.maximum(h, 0.0)
    return h.reshape(-1)


if __name__ == "__main__":
    # Small synthetic config (mirrors k_regular_config.json structure):
    #   node_labels = 0 -> original_features_num = 1, block_features = [16, 16],
    #   depth_of_mlp = 2, num_classes = 2, new_suffix = False
    num_node = 16
    batch = 2
    block_features = [16, 16]
    depth_of_mlp = 2
    num_classes = 2

    key = jax.random.PRNGKey(0)
    kp, kx = jax.random.split(key)
    params = make_params(kp,
                         original_features=1,
                         block_features=block_features,
                         depth_of_mlp=depth_of_mlp,
                         num_classes=num_classes)
    kparams = prepare_params(params, num_node)

    graph = jax.random.normal(kx, (batch, num_node, num_node), jnp.float32)

    fwd = jax.jit(functools.partial(net_forward, num_node=num_node))
    scores = jax.block_until_ready(fwd(kparams, graph))

    assert scores.shape == (batch * num_classes,)
    assert bool(jnp.all(jnp.isfinite(scores)))

    ref = reference_forward(params, graph, num_node)
    assert bool(jnp.allclose(scores, ref, rtol=2e-3, atol=2e-3)), (
        "mismatch vs reference: %s vs %s" % (scores, ref))

    print("KERNEL_OK")
</pallas_src>

<mosaic_0001>
module attributes {stable_mosaic.version = 11 : i64} {
  func.func @_regular_block_kernel(%arg0: i32, %arg1: memref<1x16x16xf32, #tpu.memory_space<vmem>>, %arg2: memref<256x16xf32, #tpu.memory_space<vmem>>, %arg3: memref<256x1xf32, #tpu.memory_space<vmem>>, %arg4: memref<256x256xf32, #tpu.memory_space<vmem>>, %arg5: memref<256x1xf32, #tpu.memory_space<vmem>>, %arg6: memref<256x16xf32, #tpu.memory_space<vmem>>, %arg7: memref<256x1xf32, #tpu.memory_space<vmem>>, %arg8: memref<256x256xf32, #tpu.memory_space<vmem>>, %arg9: memref<256x1xf32, #tpu.memory_space<vmem>>, %arg10: memref<256x16xf32, #tpu.memory_space<vmem>>, %arg11: memref<256x256xf32, #tpu.memory_space<vmem>>, %arg12: memref<256x1xf32, #tpu.memory_space<vmem>>, %arg13: memref<1x256x16xf32, #tpu.memory_space<vmem>>, %arg14: memref<256x16xf32, #tpu.memory_space<vmem>>, %arg15: memref<256x16xf32, #tpu.memory_space<vmem>>, %arg16: memref<256x16xf32, #tpu.memory_space<vmem>>) attributes {dimension_semantics = [#tpu.dimension_semantics<parallel>], iteration_bounds = array<i64: 2>, scalar_prefetch = 0 : i64, scratch_operands = 3 : i64, tpu.core_type = #tpu.core_type<tc>, window_params = [{transform_indices = @transform_0, window_bounds = array<i64: 1, 16, 16>}, {pipeline_mode = #tpu.pipeline_mode<synchronous>, transform_indices = @transform_1, window_bounds = array<i64: 256, 16>}, {pipeline_mode = #tpu.pipeline_mode<synchronous>, transform_indices = @transform_2, window_bounds = array<i64: 256, 1>}, {pipeline_mode = #tpu.pipeline_mode<synchronous>, transform_indices = @transform_3, window_bounds = array<i64: 256, 256>}, {pipeline_mode = #tpu.pipeline_mode<synchronous>, transform_indices = @transform_4, window_bounds = array<i64: 256, 1>}, {pipeline_mode = #tpu.pipeline_mode<synchronous>, transform_indices = @transform_5, window_bounds = array<i64: 256, 16>}, {pipeline_mode = #tpu.pipeline_mode<synchronous>, transform_indices = @transform_6, window_bounds = array<i64: 256, 1>}, {pipeline_mode = #tpu.pipeline_mode<synchronous>, transform_indices = @transform_7, window_bounds = array<i64: 256, 256>}, {pipeline_mode = #tpu.pipeline_mode<synchronous>, transform_indices = @transform_8, window_bounds = array<i64: 256, 1>}, {pipeline_mode = #tpu.pipeline_mode<synchronous>, transform_indices = @transform_9, window_bounds = array<i64: 256, 16>}, {pipeline_mode = #tpu.pipeline_mode<synchronous>, transform_indices = @transform_10, window_bounds = array<i64: 256, 256>}, {pipeline_mode = #tpu.pipeline_mode<synchronous>, transform_indices = @transform_11, window_bounds = array<i64: 256, 1>}, {transform_indices = @transform_12, window_bounds = array<i64: 1, 256, 16>}]} {
    %c0 = arith.constant 0 : index
    %c0_0 = arith.constant 0 : index
    %c0_1 = arith.constant 0 : index
    %0 = vector.load %arg1[%c0, %c0_0, %c0_1] : memref<1x16x16xf32, #tpu.memory_space<vmem>>, vector<1x16x16xf32>
    %1 = vector.shape_cast %0 : vector<1x16x16xf32> to vector<16x16xf32>
    %c0_2 = arith.constant 0 : index
    %c0_3 = arith.constant 0 : index
    %2 = vector.load %arg2[%c0_2, %c0_3] : memref<256x16xf32, #tpu.memory_space<vmem>>, vector<256x16xf32>
    %c0_4 = arith.constant 0 : index
    %c0_5 = arith.constant 0 : index
    %3 = vector.load %arg3[%c0_4, %c0_5] : memref<256x1xf32, #tpu.memory_space<vmem>>, vector<256x1xf32>
    %cst = arith.constant dense<0.000000e+00> : vector<256x16xf32>
    %4 = tpu.matmul %2, %1, %cst {dimension_numbers = #tpu.dot_dimension_numbers<[1], [0], [0], [1], [0, 0, 1, 1], [], []>} : vector<256x16xf32>, vector<16x16xf32>, vector<256x16xf32> -> vector<256x16xf32>
    %5 = vector.broadcast %3 : vector<256x1xf32> to vector<256x16xf32>
    %6 = arith.addf %4, %5 : vector<256x16xf32>
    %cst_6 = arith.constant 0.000000e+00 : f32
    %7 = vector.broadcast %cst_6 : f32 to vector<256x16xf32>
    %8 = arith.maximumf %6, %7 : vector<256x16xf32>
    %c0_7 = arith.constant 0 : index
    %c0_8 = arith.constant 0 : index
    %9 = vector.load %arg4[%c0_7, %c0_8] : memref<256x256xf32, #tpu.memory_space<vmem>>, vector<256x256xf32>
    %c0_9 = arith.constant 0 : index
    %c0_10 = arith.constant 0 : index
    %10 = vector.load %arg5[%c0_9, %c0_10] : memref<256x1xf32, #tpu.memory_space<vmem>>, vector<256x1xf32>
    %cst_11 = arith.constant dense<0.000000e+00> : vector<256x16xf32>
    %11 = tpu.matmul %9, %8, %cst_11 {dimension_numbers = #tpu.dot_dimension_numbers<[1], [0], [0], [1], [0, 0, 1, 1], [], []>} : vector<256x256xf32>, vector<256x16xf32>, vector<256x16xf32> -> vector<256x16xf32>
    %12 = vector.broadcast %10 : vector<256x1xf32> to vector<256x16xf32>
    %13 = arith.addf %11, %12 : vector<256x16xf32>
    %cst_12 = arith.constant 0.000000e+00 : f32
    %14 = vector.broadcast %cst_12 : f32 to vector<256x16xf32>
    %15 = arith.maximumf %13, %14 : vector<256x16xf32>
    %c0_13 = arith.constant 0 : index
    %c0_14 = arith.constant 0 : index
    %16 = vector.load %arg14[%c0_13, %c0_14] : memref<256x16xf32, #tpu.memory_space<vmem>>, vector<256x16xf32>
    tpu.vector_store %arg14[%c0_13, %c0_14], %15 {strides = array<i32>} : memref<256x16xf32, #tpu.memory_space<vmem>>, vector<256x16xf32>,
    %c0_15 = arith.constant 0 : index
    %c0_16 = arith.constant 0 : index
    %17 = vector.load %arg6[%c0_15, %c0_16] : memref<256x16xf32, #tpu.memory_space<vmem>>, vector<256x16xf32>
    %c0_17 = arith.constant 0 : index
    %c0_18 = arith.constant 0 : index
    %18 = vector.load %arg7[%c0_17, %c0_18] : memref<256x1xf32, #tpu.memory_space<vmem>>, vector<256x1xf32>
    %cst_19 = arith.constant dense<0.000000e+00> : vector<256x16xf32>
    %19 = tpu.matmul %17, %1, %cst_19 {dimension_numbers = #tpu.dot_dimension_numbers<[1], [0], [0], [1], [0, 0, 1, 1], [], []>} : vector<256x16xf32>, vector<16x16xf32>, vector<256x16xf32> -> vector<256x16xf32>
    %20 = vector.broadcast %18 : vector<256x1xf32> to vector<256x16xf32>
    %21 = arith.addf %19, %20 : vector<256x16xf32>
    %cst_20 = arith.constant 0.000000e+00 : f32
    %22 = vector.broadcast %cst_20 : f32 to vector<256x16xf32>
    %23 = arith.maximumf %21, %22 : vector<256x16xf32>
    %c0_21 = arith.constant 0 : index
    %c0_22 = arith.constant 0 : index
    %24 = vector.load %arg8[%c0_21, %c0_22] : memref<256x256xf32, #tpu.memory_space<vmem>>, vector<256x256xf32>
    %c0_23 = arith.constant 0 : index
    %c0_24 = arith.constant 0 : index
    %25 = vector.load %arg9[%c0_23, %c0_24] : memref<256x1xf32, #tpu.memory_space<vmem>>, vector<256x1xf32>
    %cst_25 = arith.constant dense<0.000000e+00> : vector<256x16xf32>
    %26 = tpu.matmul %24, %23, %cst_25 {dimension_numbers = #tpu.dot_dimension_numbers<[1], [0], [0], [1], [0, 0, 1, 1], [], []>} : vector<256x256xf32>, vector<256x16xf32>, vector<256x16xf32> -> vector<256x16xf32>
    %27 = vector.broadcast %25 : vector<256x1xf32> to vector<256x16xf32>
    %28 = arith.addf %26, %27 : vector<256x16xf32>
    %cst_26 = arith.constant 0.000000e+00 : f32
    %29 = vector.broadcast %cst_26 : f32 to vector<256x16xf32>
    %30 = arith.maximumf %28, %29 : vector<256x16xf32>
    %c0_27 = arith.constant 0 : index
    %c0_28 = arith.constant 0 : index
    %31 = vector.load %arg15[%c0_27, %c0_28] : memref<256x16xf32, #tpu.memory_space<vmem>>, vector<256x16xf32>
    tpu.vector_store %arg15[%c0_27, %c0_28], %30 {strides = array<i32>} : memref<256x16xf32, #tpu.memory_space<vmem>>, vector<256x16xf32>,
    %c0_29 = arith.constant 0 : index
    %c0_30 = arith.constant 0 : index
    %32 = vector.load %arg14[%c0_29, %c0_30] : memref<256x16xf32, #tpu.memory_space<vmem>>, vector<16x16xf32>
    %c0_31 = arith.constant 0 : index
    %c0_32 = arith.constant 0 : index
    %33 = vector.load %arg15[%c0_31, %c0_32] : memref<256x16xf32, #tpu.memory_space<vmem>>, vector<16x16xf32>
    %cst_33 = arith.constant dense<0.000000e+00> : vector<16x16xf32>
    %34 = tpu.matmul %32, %33, %cst_33 {dimension_numbers = #tpu.dot_dimension_numbers<[1], [0], [0], [1], [0, 0, 1, 1], [], []>} : vector<16x16xf32>, vector<16x16xf32>, vector<16x16xf32> -> vector<16x16xf32>
    %c0_34 = arith.constant 0 : index
    %c0_35 = arith.constant 0 : index
    %35 = vector.load %arg16[%c0_34, %c0_35] : memref<256x16xf32, #tpu.memory_space<vmem>>, vector<16x16xf32>
    tpu.vector_store %arg16[%c0_34, %c0_35], %34 {strides = array<i32>} : memref<256x16xf32, #tpu.memory_space<vmem>>, vector<16x16xf32>,
    %c16 = arith.constant 16 : index
    %c0_36 = arith.constant 0 : index
    %36 = vector.load %arg14[%c16, %c0_36] : memref<256x16xf32, #tpu.memory_space<vmem>>, vector<16x16xf32>
    %c16_37 = arith.constant 16 : index
    %c0_38 = arith.constant 0 : index
    %37 = vector.load %arg15[%c16_37, %c0_38] : memref<256x16xf32, #tpu.memory_space<vmem>>, vector<16x16xf32>
    %cst_39 = arith.constant dense<0.000000e+00> : vector<16x16xf32>
    %38 = tpu.matmul %36, %37, %cst_39 {dimension_numbers = #tpu.dot_dimension_numbers<[1], [0], [0], [1], [0, 0, 1, 1], [], []>} : vector<16x16xf32>, vector<16x16xf32>, vector<16x16xf32> -> vector<16x16xf32>
    %c16_40 = arith.constant 16 : index
    %c0_41 = arith.constant 0 : index
    %39 = vector.load %arg16[%c16_40, %c0_41] : memref<256x16xf32, #tpu.memory_space<vmem>>, vector<16x16xf32>
    tpu.vector_store %arg16[%c16_40, %c0_41], %38 {strides = array<i32>} : memref<256x16xf32, #tpu.memory_space<vmem>>, vector<16x16xf32>,
    %c32 = arith.constant 32 : index
    %c0_42 = arith.constant 0 : index
    %40 = vector.load %arg14[%c32, %c0_42] : memref<256x16xf32, #tpu.memory_space<vmem>>, vector<16x16xf32>
    %c32_43 = arith.constant 32 : index
    %c0_44 = arith.constant 0 : index
    %41 = vector.load %arg15[%c32_43, %c0_44] : memref<256x16xf32, #tpu.memory_space<vmem>>, vector<16x16xf32>
    %cst_45 = arith.constant dense<0.000000e+00> : vector<16x16xf32>
    %42 = tpu.matmul %40, %41, %cst_45 {dimension_numbers = #tpu.dot_dimension_numbers<[1], [0], [0], [1], [0, 0, 1, 1], [], []>} : vector<16x16xf32>, vector<16x16xf32>, vector<16x16xf32> -> vector<16x16xf32>
    %c32_46 = arith.constant 32 : index
    %c0_47 = arith.constant 0 : index
    %43 = vector.load %arg16[%c32_46, %c0_47] : memref<256x16xf32, #tpu.memory_space<vmem>>, vector<16x16xf32>
    tpu.vector_store %arg16[%c32_46, %c0_47], %42 {strides = array<i32>} : memref<256x16xf32, #tpu.memory_space<vmem>>, vector<16x16xf32>,
    %c48 = arith.constant 48 : index
    %c0_48 = arith.constant 0 : index
    %44 = vector.load %arg14[%c48, %c0_48] : memref<256x16xf32, #tpu.memory_space<vmem>>, vector<16x16xf32>
    %c48_49 = arith.constant 48 : index
    %c0_50 = arith.constant 0 : index
    %45 = vector.load %arg15[%c48_49, %c0_50] : memref<256x16xf32, #tpu.memory_space<vmem>>, vector<16x16xf32>
    %cst_51 = arith.constant dense<0.000000e+00> : vector<16x16xf32>
    %46 = tpu.matmul %44, %45, %cst_51 {dimension_numbers = #tpu.dot_dimension_numbers<[1], [0], [0], [1], [0, 0, 1, 1], [], []>} : vector<16x16xf32>, vector<16x16xf32>, vector<16x16xf32> -> vector<16x16xf32>
    %c48_52 = arith.constant 48 : index
    %c0_53 = arith.constant 0 : index
    %47 = vector.load %arg16[%c48_52, %c0_53] : memref<256x16xf32, #tpu.memory_space<vmem>>, vector<16x16xf32>
    tpu.vector_store %arg16[%c48_52, %c0_53], %46 {strides = array<i32>} : memref<256x16xf32, #tpu.memory_space<vmem>>, vector<16x16xf32>,
    %c64 = arith.constant 64 : index
    %c0_54 = arith.constant 0 : index
    %48 = vector.load %arg14[%c64, %c0_54] : memref<256x16xf32, #tpu.memory_space<vmem>>, vector<16x16xf32>
    %c64_55 = arith.constant 64 : index
    %c0_56 = arith.constant 0 : index
    %49 = vector.load %arg15[%c64_55, %c0_56] : memref<256x16xf32, #tpu.memory_space<vmem>>, vector<16x16xf32>
    %cst_57 = arith.constant dense<0.000000e+00> : vector<16x16xf32>
    %50 = tpu.matmul %48, %49, %cst_57 {dimension_numbers = #tpu.dot_dimension_numbers<[1], [0], [0], [1], [0, 0, 1, 1], [], []>} : vector<16x16xf32>, vector<16x16xf32>, vector<16x16xf32> -> vector<16x16xf32>
    %c64_58 = arith.constant 64 : index
    %c0_59 = arith.constant 0 : index
    %51 = vector.load %arg16[%c64_58, %c0_59] : memref<256x16xf32, #tpu.memory_space<vmem>>, vector<16x16xf32>
    tpu.vector_store %arg16[%c64_58, %c0_59], %50 {strides = array<i32>} : memref<256x16xf32, #tpu.memory_space<vmem>>, vector<16x16xf32>,
    %c80 = arith.constant 80 : index
    %c0_60 = arith.constant 0 : index
    %52 = vector.load %arg14[%c80, %c0_60] : memref<256x16xf32, #tpu.memory_space<vmem>>, vector<16x16xf32>
    %c80_61 = arith.constant 80 : index
    %c0_62 = arith.constant 0 : index
    %53 = vector.load %arg15[%c80_61, %c0_62] : memref<256x16xf32, #tpu.memory_space<vmem>>, vector<16x16xf32>
    %cst_63 = arith.constant dense<0.000000e+00> : vector<16x16xf32>
    %54 = tpu.matmul %52, %53, %cst_63 {dimension_numbers = #tpu.dot_dimension_numbers<[1], [0], [0], [1], [0, 0, 1, 1], [], []>} : vector<16x16xf32>, vector<16x16xf32>, vector<16x16xf32> -> vector<16x16xf32>
    %c80_64 = arith.constant 80 : index
    %c0_65 = arith.constant 0 : index
    %55 = vector.load %arg16[%c80_64, %c0_65] : memref<256x16xf32, #tpu.memory_space<vmem>>, vector<16x16xf32>
    tpu.vector_store %arg16[%c80_64, %c0_65], %54 {strides = array<i32>} : memref<256x16xf32, #tpu.memory_space<vmem>>, vector<16x16xf32>,
    %c96 = arith.constant 96 : index
    %c0_66 = arith.constant 0 : index
    %56 = vector.load %arg14[%c96, %c0_66] : memref<256x16xf32, #tpu.memory_space<vmem>>, vector<16x16xf32>
    %c96_67 = arith.constant 96 : index
    %c0_68 = arith.constant 0 : index
    %57 = vector.load %arg15[%c96_67, %c0_68] : memref<256x16xf32, #tpu.memory_space<vmem>>, vector<16x16xf32>
    %cst_69 = arith.constant dense<0.000000e+00> : vector<16x16xf32>
    %58 = tpu.matmul %56, %57, %cst_69 {dimension_numbers = #tpu.dot_dimension_numbers<[1], [0], [0], [1], [0, 0, 1, 1], [], []>} : vector<16x16xf32>, vector<16x16xf32>, vector<16x16xf32> -> vector<16x16xf32>
    %c96_70 = arith.constant 96 : index
    %c0_71 = arith.constant 0 : index
    %59 = vector.load %arg16[%c96_70, %c0_71] : memref<256x16xf32, #tpu.memory_space<vmem>>, vector<16x16xf32>
    tpu.vector_store %arg16[%c96_70, %c0_71], %58 {strides = array<i32>} : memref<256x16xf32, #tpu.memory_space<vmem>>, vector<16x16xf32>,
    %c112 = arith.constant 112 : index
    %c0_72 = arith.constant 0 : index
    %60 = vector.load %arg14[%c112, %c0_72] : memref<256x16xf32, #tpu.memory_space<vmem>>, vector<16x16xf32>
    %c112_73 = arith.constant 112 : index
    %c0_74 = arith.constant 0 : index
    %61 = vector.load %arg15[%c112_73, %c0_74] : memref<256x16xf32, #tpu.memory_space<vmem>>, vector<16x16xf32>
    %cst_75 = arith.constant dense<0.000000e+00> : vector<16x16xf32>
    %62 = tpu.matmul %60, %61, %cst_75 {dimension_numbers = #tpu.dot_dimension_numbers<[1], [0], [0], [1], [0, 0, 1, 1], [], []>} : vector<16x16xf32>, vector<16x16xf32>, vector<16x16xf32> -> vector<16x16xf32>
    %c112_76 = arith.constant 112 : index
    %c0_77 = arith.constant 0 : index
    %63 = vector.load %arg16[%c112_76, %c0_77] : memref<256x16xf32, #tpu.memory_space<vmem>>, vector<16x16xf32>
    tpu.vector_store %arg16[%c112_76, %c0_77], %62 {strides = array<i32>} : memref<256x16xf32, #tpu.memory_space<vmem>>, vector<16x16xf32>,
    %c128 = arith.constant 128 : index
    %c0_78 = arith.constant 0 : index
    %64 = vector.load %arg14[%c128, %c0_78] : memref<256x16xf32, #tpu.memory_space<vmem>>, vector<16x16xf32>
    %c128_79 = arith.constant 128 : index
    %c0_80 = arith.constant 0 : index
    %65 = vector.load %arg15[%c128_79, %c0_80] : memref<256x16xf32, #tpu.memory_space<vmem>>, vector<16x16xf32>
    %cst_81 = arith.constant dense<0.000000e+00> : vector<16x16xf32>
    %66 = tpu.matmul %64, %65, %cst_81 {dimension_numbers = #tpu.dot_dimension_numbers<[1], [0], [0], [1], [0, 0, 1, 1], [], []>} : vector<16x16xf32>, vector<16x16xf32>, vector<16x16xf32> -> vector<16x16xf32>
    %c128_82 = arith.constant 128 : index
    %c0_83 = arith.constant 0 : index
    %67 = vector.load %arg16[%c128_82, %c0_83] : memref<256x16xf32, #tpu.memory_space<vmem>>, vector<16x16xf32>
    tpu.vector_store %arg16[%c128_82, %c0_83], %66 {strides = array<i32>} : memref<256x16xf32, #tpu.memory_space<vmem>>, vector<16x16xf32>,
    %c144 = arith.constant 144 : index
    %c0_84 = arith.constant 0 : index
    %68 = vector.load %arg14[%c144, %c0_84] : memref<256x16xf32, #tpu.memory_space<vmem>>, vector<16x16xf32>
    %c144_85 = arith.constant 144 : index
    %c0_86 = arith.constant 0 : index
    %69 = vector.load %arg15[%c144_85, %c0_86] : memref<256x16xf32, #tpu.memory_space<vmem>>, vector<16x16xf32>
    %cst_87 = arith.constant dense<0.000000e+00> : vector<16x16xf32>
    %70 = tpu.matmul %68, %69, %cst_87 {dimension_numbers = #tpu.dot_dimension_numbers<[1], [0], [0], [1], [0, 0, 1, 1], [], []>} : vector<16x16xf32>, vector<16x16xf32>, vector<16x16xf32> -> vector<16x16xf32>
    %c144_88 = arith.constant 144 : index
    %c0_89 = arith.constant 0 : index
    %71 = vector.load %arg16[%c144_88, %c0_89] : memref<256x16xf32, #tpu.memory_space<vmem>>, vector<16x16xf32>
    tpu.vector_store %arg16[%c144_88, %c0_89], %70 {strides = array<i32>} : memref<256x16xf32, #tpu.memory_space<vmem>>, vector<16x16xf32>,
    %c160 = arith.constant 160 : index
    %c0_90 = arith.constant 0 : index
    %72 = vector.load %arg14[%c160, %c0_90] : memref<256x16xf32, #tpu.memory_space<vmem>>, vector<16x16xf32>
    %c160_91 = arith.constant 160 : index
    %c0_92 = arith.constant 0 : index
    %73 = vector.load %arg15[%c160_91, %c0_92] : memref<256x16xf32, #tpu.memory_space<vmem>>, vector<16x16xf32>
    %cst_93 = arith.constant dense<0.000000e+00> : vector<16x16xf32>
    %74 = tpu.matmul %72, %73, %cst_93 {dimension_numbers = #tpu.dot_dimension_numbers<[1], [0], [0], [1], [0, 0, 1, 1], [], []>} : vector<16x16xf32>, vector<16x16xf32>, vector<16x16xf32> -> vector<16x16xf32>
    %c160_94 = arith.constant 160 : index
    %c0_95 = arith.constant 0 : index
    %75 = vector.load %arg16[%c160_94, %c0_95] : memref<256x16xf32, #tpu.memory_space<vmem>>, vector<16x16xf32>
    tpu.vector_store %arg16[%c160_94, %c0_95], %74 {strides = array<i32>} : memref<256x16xf32, #tpu.memory_space<vmem>>, vector<16x16xf32>,
    %c176 = arith.constant 176 : index
    %c0_96 = arith.constant 0 : index
    %76 = vector.load %arg14[%c176, %c0_96] : memref<256x16xf32, #tpu.memory_space<vmem>>, vector<16x16xf32>
    %c176_97 = arith.constant 176 : index
    %c0_98 = arith.constant 0 : index
    %77 = vector.load %arg15[%c176_97, %c0_98] : memref<256x16xf32, #tpu.memory_space<vmem>>, vector<16x16xf32>
    %cst_99 = arith.constant dense<0.000000e+00> : vector<16x16xf32>
    %78 = tpu.matmul %76, %77, %cst_99 {dimension_numbers = #tpu.dot_dimension_numbers<[1], [0], [0], [1], [0, 0, 1, 1], [], []>} : vector<16x16xf32>, vector<16x16xf32>, vector<16x16xf32> -> vector<16x16xf32>
    %c176_100 = arith.constant 176 : index
    %c0_101 = arith.constant 0 : index
    %79 = vector.load %arg16[%c176_100, %c0_101] : memref<256x16xf32, #tpu.memory_space<vmem>>, vector<16x16xf32>
    tpu.vector_store %arg16[%c176_100, %c0_101], %78 {strides = array<i32>} : memref<256x16xf32, #tpu.memory_space<vmem>>, vector<16x16xf32>,
    %c192 = arith.constant 192 : index
    %c0_102 = arith.constant 0 : index
    %80 = vector.load %arg14[%c192, %c0_102] : memref<256x16xf32, #tpu.memory_space<vmem>>, vector<16x16xf32>
    %c192_103 = arith.constant 192 : index
    %c0_104 = arith.constant 0 : index
    %81 = vector.load %arg15[%c192_103, %c0_104] : memref<256x16xf32, #tpu.memory_space<vmem>>, vector<16x16xf32>
    %cst_105 = arith.constant dense<0.000000e+00> : vector<16x16xf32>
    %82 = tpu.matmul %80, %81, %cst_105 {dimension_numbers = #tpu.dot_dimension_numbers<[1], [0], [0], [1], [0, 0, 1, 1], [], []>} : vector<16x16xf32>, vector<16x16xf32>, vector<16x16xf32> -> vector<16x16xf32>
    %c192_106 = arith.constant 192 : index
    %c0_107 = arith.constant 0 : index
    %83 = vector.load %arg16[%c192_106, %c0_107] : memref<256x16xf32, #tpu.memory_space<vmem>>, vector<16x16xf32>
    tpu.vector_store %arg16[%c192_106, %c0_107], %82 {strides = array<i32>} : memref<256x16xf32, #tpu.memory_space<vmem>>, vector<16x16xf32>,
    %c208 = arith.constant 208 : index
    %c0_108 = arith.constant 0 : index
    %84 = vector.load %arg14[%c208, %c0_108] : memref<256x16xf32, #tpu.memory_space<vmem>>, vector<16x16xf32>
    %c208_109 = arith.constant 208 : index
    %c0_110 = arith.constant 0 : index
    %85 = vector.load %arg15[%c208_109, %c0_110] : memref<256x16xf32, #tpu.memory_space<vmem>>, vector<16x16xf32>
    %cst_111 = arith.constant dense<0.000000e+00> : vector<16x16xf32>
    %86 = tpu.matmul %84, %85, %cst_111 {dimension_numbers = #tpu.dot_dimension_numbers<[1], [0], [0], [1], [0, 0, 1, 1], [], []>} : vector<16x16xf32>, vector<16x16xf32>, vector<16x16xf32> -> vector<16x16xf32>
    %c208_112 = arith.constant 208 : index
    %c0_113 = arith.constant 0 : index
    %87 = vector.load %arg16[%c208_112, %c0_113] : memref<256x16xf32, #tpu.memory_space<vmem>>, vector<16x16xf32>
    tpu.vector_store %arg16[%c208_112, %c0_113], %86 {strides = array<i32>} : memref<256x16xf32, #tpu.memory_space<vmem>>, vector<16x16xf32>,
    %c224 = arith.constant 224 : index
    %c0_114 = arith.constant 0 : index
    %88 = vector.load %arg14[%c224, %c0_114] : memref<256x16xf32, #tpu.memory_space<vmem>>, vector<16x16xf32>
    %c224_115 = arith.constant 224 : index
    %c0_116 = arith.constant 0 : index
    %89 = vector.load %arg15[%c224_115, %c0_116] : memref<256x16xf32, #tpu.memory_space<vmem>>, vector<16x16xf32>
    %cst_117 = arith.constant dense<0.000000e+00> : vector<16x16xf32>
    %90 = tpu.matmul %88, %89, %cst_117 {dimension_numbers = #tpu.dot_dimension_numbers<[1], [0], [0], [1], [0, 0, 1, 1], [], []>} : vector<16x16xf32>, vector<16x16xf32>, vector<16x16xf32> -> vector<16x16xf32>
    %c224_118 = arith.constant 224 : index
    %c0_119 = arith.constant 0 : index
    %91 = vector.load %arg16[%c224_118, %c0_119] : memref<256x16xf32, #tpu.memory_space<vmem>>, vector<16x16xf32>
    tpu.vector_store %arg16[%c224_118, %c0_119], %90 {strides = array<i32>} : memref<256x16xf32, #tpu.memory_space<vmem>>, vector<16x16xf32>,
    %c240 = arith.constant 240 : index
    %c0_120 = arith.constant 0 : index
    %92 = vector.load %arg14[%c240, %c0_120] : memref<256x16xf32, #tpu.memory_space<vmem>>, vector<16x16xf32>
    %c240_121 = arith.constant 240 : index
    %c0_122 = arith.constant 0 : index
    %93 = vector.load %arg15[%c240_121, %c0_122] : memref<256x16xf32, #tpu.memory_space<vmem>>, vector<16x16xf32>
    %cst_123 = arith.constant dense<0.000000e+00> : vector<16x16xf32>
    %94 = tpu.matmul %92, %93, %cst_123 {dimension_numbers = #tpu.dot_dimension_numbers<[1], [0], [0], [1], [0, 0, 1, 1], [], []>} : vector<16x16xf32>, vector<16x16xf32>, vector<16x16xf32> -> vector<16x16xf32>
    %c240_124 = arith.constant 240 : index
    %c0_125 = arith.constant 0 : index
    %95 = vector.load %arg16[%c240_124, %c0_125] : memref<256x16xf32, #tpu.memory_space<vmem>>, vector<16x16xf32>
    tpu.vector_store %arg16[%c240_124, %c0_125], %94 {strides = array<i32>} : memref<256x16xf32, #tpu.memory_space<vmem>>, vector<16x16xf32>,
    %c0_126 = arith.constant 0 : index
    %c0_127 = arith.constant 0 : index
    %96 = vector.load %arg10[%c0_126, %c0_127] : memref<256x16xf32, #tpu.memory_space<vmem>>, vector<256x16xf32>
    %cst_128 = arith.constant dense<0.000000e+00> : vector<256x16xf32>
    %97 = tpu.matmul %96, %1, %cst_128 {dimension_numbers = #tpu.dot_dimension_numbers<[1], [0], [0], [1], [0, 0, 1, 1], [], []>} : vector<256x16xf32>, vector<16x16xf32>, vector<256x16xf32> -> vector<256x16xf32>
    %c0_129 = arith.constant 0 : index
    %c0_130 = arith.constant 0 : index
    %98 = vector.load %arg11[%c0_129, %c0_130] : memref<256x256xf32, #tpu.memory_space<vmem>>, vector<256x256xf32>
    %c0_131 = arith.constant 0 : index
    %c0_132 = arith.constant 0 : index
    %99 = vector.load %arg16[%c0_131, %c0_132] : memref<256x16xf32, #tpu.memory_space<vmem>>, vector<256x16xf32>
    %cst_133 = arith.constant dense<0.000000e+00> : vector<256x16xf32>
    %100 = tpu.matmul %98, %99, %cst_133 {dimension_numbers = #tpu.dot_dimension_numbers<[1], [0], [0], [1], [0, 0, 1, 1], [], []>} : vector<256x256xf32>, vector<256x16xf32>, vector<256x16xf32> -> vector<256x16xf32>
    %101 = arith.addf %97, %100 : vector<256x16xf32>
    %c0_134 = arith.constant 0 : index
    %c0_135 = arith.constant 0 : index
    %102 = vector.load %arg12[%c0_134, %c0_135] : memref<256x1xf32, #tpu.memory_space<vmem>>, vector<256x1xf32>
    %103 = vector.broadcast %102 : vector<256x1xf32> to vector<256x16xf32>
    %104 = arith.addf %101, %103 : vector<256x16xf32>
    %c0_136 = arith.constant 0 : index
    %c0_137 = arith.constant 0 : index
    %c0_138 = arith.constant 0 : index
    %105 = vector.load %arg13[%c0_136, %c0_137, %c0_138] : memref<1x256x16xf32, #tpu.memory_space<vmem>>, vector<1x256x16xf32>
    %106 = vector.shape_cast %105 : vector<1x256x16xf32> to vector<256x16xf32>
    %107 = vector.shape_cast %104 : vector<256x16xf32> to vector<1x256x16xf32>
    tpu.vector_store %arg13[%c0_136, %c0_137, %c0_138], %107 {strides = array<i32>} : memref<1x256x16xf32, #tpu.memory_space<vmem>>, vector<1x256x16xf32>,
    return
  }
  func.func @transform_0(%arg0: i32) -> (i32, i32, i32) {
    %c0_i32 = arith.constant 0 : i32
    %c0_i32_0 = arith.constant 0 : i32
    %c0_i32_1 = arith.constant 0 : i32
    return %arg0, %c0_i32, %c0_i32_0 : i32, i32, i32
  }
  func.func @transform_1(%arg0: i32) -> (i32, i32) {
    %c0_i32 = arith.constant 0 : i32
    %c0_i32_0 = arith.constant 0 : i32
    %c0_i32_1 = arith.constant 0 : i32
    return %c0_i32, %c0_i32_0 : i32, i32
  }
  func.func @transform_2(%arg0: i32) -> (i32, i32) {
    %c0_i32 = arith.constant 0 : i32
    %c0_i32_0 = arith.constant 0 : i32
    %c0_i32_1 = arith.constant 0 : i32
    return %c0_i32, %c0_i32_0 : i32, i32
  }
  func.func @transform_3(%arg0: i32) -> (i32, i32) {
    %c0_i32 = arith.constant 0 : i32
    %c0_i32_0 = arith.constant 0 : i32
    %c0_i32_1 = arith.constant 0 : i32
    return %c0_i32, %c0_i32_0 : i32, i32
  }
  func.func @transform_4(%arg0: i32) -> (i32, i32) {
    %c0_i32 = arith.constant 0 : i32
    %c0_i32_0 = arith.constant 0 : i32
    %c0_i32_1 = arith.constant 0 : i32
    return %c0_i32, %c0_i32_0 : i32, i32
  }
  func.func @transform_5(%arg0: i32) -> (i32, i32) {
    %c0_i32 = arith.constant 0 : i32
    %c0_i32_0 = arith.constant 0 : i32
    %c0_i32_1 = arith.constant 0 : i32
    return %c0_i32, %c0_i32_0 : i32, i32
  }
  func.func @transform_6(%arg0: i32) -> (i32, i32) {
    %c0_i32 = arith.constant 0 : i32
    %c0_i32_0 = arith.constant 0 : i32
    %c0_i32_1 = arith.constant 0 : i32
    return %c0_i32, %c0_i32_0 : i32, i32
  }
  func.func @transform_7(%arg0: i32) -> (i32, i32) {
    %c0_i32 = arith.constant 0 : i32
    %c0_i32_0 = arith.constant 0 : i32
    %c0_i32_1 = arith.constant 0 : i32
    return %c0_i32, %c0_i32_0 : i32, i32
  }
  func.func @transform_8(%arg0: i32) -> (i32, i32) {
    %c0_i32 = arith.constant 0 : i32
    %c0_i32_0 = arith.constant 0 : i32
    %c0_i32_1 = arith.constant 0 : i32
    return %c0_i32, %c0_i32_0 : i32, i32
  }
  func.func @transform_9(%arg0: i32) -> (i32, i32) {
    %c0_i32 = arith.constant 0 : i32
    %c0_i32_0 = arith.constant 0 : i32
    %c0_i32_1 = arith.constant 0 : i32
    return %c0_i32, %c0_i32_0 : i32, i32
  }
  func.func @transform_10(%arg0: i32) -> (i32, i32) {
    %c0_i32 = arith.constant 0 : i32
    %c0_i32_0 = arith.constant 0 : i32
    %c0_i32_1 = arith.constant 0 : i32
    return %c0_i32, %c0_i32_0 : i32, i32
  }
  func.func @transform_11(%arg0: i32) -> (i32, i32) {
    %c0_i32 = arith.constant 0 : i32
    %c0_i32_0 = arith.constant 0 : i32
    %c0_i32_1 = arith.constant 0 : i32
    return %c0_i32, %c0_i32_0 : i32, i32
  }
  func.func @transform_12(%arg0: i32) -> (i32, i32, i32) {
    %c0_i32 = arith.constant 0 : i32
    %c0_i32_0 = arith.constant 0 : i32
    %c0_i32_1 = arith.constant 0 : i32
    return %arg0, %c0_i32, %c0_i32_0 : i32, i32, i32
  }
}

module attributes {stable_mosaic.version = 11 : i64} {
  func.func @_pool_fc_kernel(%arg0: memref<2x16x16x16xf32, #tpu.memory_space<vmem>>, %arg1: memref<32x512xf32, #tpu.memory_space<vmem>>, %arg2: memref<1x512xf32, #tpu.memory_space<vmem>>, %arg3: memref<512x256xf32, #tpu.memory_space<vmem>>, %arg4: memref<1x256xf32, #tpu.memory_space<vmem>>, %arg5: memref<256x2xf32, #tpu.memory_space<vmem>>, %arg6: memref<1x2xf32, #tpu.memory_space<vmem>>, %arg7: memref<2x2xf32, #tpu.memory_space<vmem>>) attributes {dimension_semantics = [], scalar_prefetch = 0 : i64, scratch_operands = 0 : i64, tpu.core_type = #tpu.core_type<tc>} {
    %c0 = arith.constant 0 : index
    %c0_0 = arith.constant 0 : index
    %c0_1 = arith.constant 0 : index
    %c0_2 = arith.constant 0 : index
    %0 = vector.load %arg0[%c0, %c0_0, %c0_1, %c0_2] : memref<2x16x16x16xf32, #tpu.memory_space<vmem>>, vector<2x16x16x16xf32>
    %1 = tpu.iota {dimensions = array<i32: 0>} : vector<16x16xi32>
    %2 = tpu.iota {dimensions = array<i32: 1>} : vector<16x16xi32>
    %3 = arith.cmpi eq, %1, %2 : vector<16x16xi32>
    %4 = vector.shape_cast %3 : vector<16x16xi1> to vector<1x1x16x16xi1>
    %cst = arith.constant 0xFF800000 : f32
    %5 = vector.shape_cast %4 : vector<1x1x16x16xi1> to vector<1x1x16x16xi1>
    %6 = vector.broadcast %5 : vector<1x1x16x16xi1> to vector<2x16x16x16xi1>
    %7 = vector.broadcast %cst : f32 to vector<2x16x16x16xf32>
    %8 = arith.select %6, %0, %7 : vector<2x16x16x16xi1>, vector<2x16x16x16xf32>
    %cst_3 = arith.constant dense<0xFF800000> : vector<2x16x16xf32>
    %9 = vector.multi_reduction <maximumf>, %8, %cst_3 [3] : vector<2x16x16x16xf32> to vector<2x16x16xf32>
    %cst_4 = arith.constant dense<0xFF800000> : vector<2x16xf32>
    %10 = vector.multi_reduction <maximumf>, %9, %cst_4 [2] : vector<2x16x16xf32> to vector<2x16xf32>
    %11 = vector.shape_cast %10 : vector<2x16xf32> to vector<1x2x16xf32>
    %cst_5 = arith.constant dense<0xFF800000> : vector<1xf32>
    %12 = vector.multi_reduction <maximumf>, %11, %cst_5 [1, 2] : vector<1x2x16xf32> to vector<1xf32>
    %13 = vector.shape_cast %12 : vector<1xf32> to vector<1x1x1xf32>
    %14 = vector.extract %13[0, 0, 0] : f32 from vector<1x1x1xf32>
    %cst_6 = arith.constant 0.000000e+00 : f32
    %15 = vector.broadcast %cst_6 : f32 to vector<2x16x16x16xf32>
    %16 = arith.subf %15, %0 : vector<2x16x16x16xf32>
    %17 = vector.shape_cast %16 : vector<2x16x16x16xf32> to vector<1x2x16x16x16xf32>
    %cst_7 = arith.constant dense<0xFF800000> : vector<1xf32>
    %18 = vector.multi_reduction <maximumf>, %17, %cst_7 [1, 2, 3, 4] : vector<1x2x16x16x16xf32> to vector<1xf32>
    %19 = vector.shape_cast %18 : vector<1xf32> to vector<1x1x1x1x1xf32>
    %20 = vector.extract %19[0, 0, 0, 0, 0] : f32 from vector<1x1x1x1x1xf32>
    %21 = arith.addf %14, %20 : f32
    %22 = math.absf %21 : f32
    %cst_8 = arith.constant 0.000000e+00 : f32
    %23 = vector.broadcast %22 : f32 to vector<1x1x16x16xf32>
    %24 = vector.broadcast %cst_8 : f32 to vector<1x1x16x16xf32>
    %25 = arith.select %4, %23, %24 : vector<1x1x16x16xi1>, vector<1x1x16x16xf32>
    %26 = vector.broadcast %25 : vector<1x1x16x16xf32> to vector<2x16x16x16xf32>
    %27 = arith.subf %0, %26 : vector<2x16x16x16xf32>
    %cst_9 = arith.constant dense<0xFF800000> : vector<2x16x16xf32>
    %28 = vector.multi_reduction <maximumf>, %27, %cst_9 [3] : vector<2x16x16x16xf32> to vector<2x16x16xf32>
    %cst_10 = arith.constant dense<0xFF800000> : vector<2x16xf32>
    %29 = vector.multi_reduction <maximumf>, %28, %cst_10 [2] : vector<2x16x16xf32> to vector<2x16xf32>
    %30 = tpu.concatenate %10, %29 in 1 : vector<2x16xf32>, vector<2x16xf32> -> vector<2x32xf32>
    %c0_11 = arith.constant 0 : index
    %c0_12 = arith.constant 0 : index
    %31 = vector.load %arg1[%c0_11, %c0_12] : memref<32x512xf32, #tpu.memory_space<vmem>>, vector<32x512xf32>
    %cst_13 = arith.constant dense<0.000000e+00> : vector<2x512xf32>
    %32 = tpu.matmul %30, %31, %cst_13 {dimension_numbers = #tpu.dot_dimension_numbers<[1], [0], [0], [1], [0, 0, 1, 1], [], []>} : vector<2x32xf32>, vector<32x512xf32>, vector<2x512xf32> -> vector<2x512xf32>
    %c0_14 = arith.constant 0 : index
    %c0_15 = arith.constant 0 : index
    %33 = vector.load %arg2[%c0_14, %c0_15] : memref<1x512xf32, #tpu.memory_space<vmem>>, vector<1x512xf32>
    %34 = vector.broadcast %33 : vector<1x512xf32> to vector<2x512xf32>
    %35 = arith.addf %32, %34 : vector<2x512xf32>
    %cst_16 = arith.constant 0.000000e+00 : f32
    %36 = vector.broadcast %cst_16 : f32 to vector<2x512xf32>
    %37 = arith.maximumf %35, %36 : vector<2x512xf32>
    %c0_17 = arith.constant 0 : index
    %c0_18 = arith.constant 0 : index
    %38 = vector.load %arg3[%c0_17, %c0_18] : memref<512x256xf32, #tpu.memory_space<vmem>>, vector<512x256xf32>
    %cst_19 = arith.constant dense<0.000000e+00> : vector<2x256xf32>
    %39 = tpu.matmul %37, %38, %cst_19 {dimension_numbers = #tpu.dot_dimension_numbers<[1], [0], [0], [1], [0, 0, 1, 1], [], []>} : vector<2x512xf32>, vector<512x256xf32>, vector<2x256xf32> -> vector<2x256xf32>
    %c0_20 = arith.constant 0 : index
    %c0_21 = arith.constant 0 : index
    %40 = vector.load %arg4[%c0_20, %c0_21] : memref<1x256xf32, #tpu.memory_space<vmem>>, vector<1x256xf32>
    %41 = vector.broadcast %40 : vector<1x256xf32> to vector<2x256xf32>
    %42 = arith.addf %39, %41 : vector<2x256xf32>
    %cst_22 = arith.constant 0.000000e+00 : f32
    %43 = vector.broadcast %cst_22 : f32 to vector<2x256xf32>
    %44 = arith.maximumf %42, %43 : vector<2x256xf32>
    %c0_23 = arith.constant 0 : index
    %c0_24 = arith.constant 0 : index
    %45 = vector.load %arg5[%c0_23, %c0_24] : memref<256x2xf32, #tpu.memory_space<vmem>>, vector<256x2xf32>
    %cst_25 = arith.constant dense<0.000000e+00> : vector<2x2xf32>
    %46 = tpu.matmul %44, %45, %cst_25 {dimension_numbers = #tpu.dot_dimension_numbers<[1], [0], [0], [1], [0, 0, 1, 1], [], []>} : vector<2x256xf32>, vector<256x2xf32>, vector<2x2xf32> -> vector<2x2xf32>
    %c0_26 = arith.constant 0 : index
    %c0_27 = arith.constant 0 : index
    %47 = vector.load %arg6[%c0_26, %c0_27] : memref<1x2xf32, #tpu.memory_space<vmem>>, vector<1x2xf32>
    %48 = vector.broadcast %47 : vector<1x2xf32> to vector<2x2xf32>
    %49 = arith.addf %46, %48 : vector<2x2xf32>
    %c0_28 = arith.constant 0 : index
    %c0_29 = arith.constant 0 : index
    %50 = vector.load %arg7[%c0_28, %c0_29] : memref<2x2xf32, #tpu.memory_space<vmem>>, vector<2x2xf32>
    tpu.vector_store %arg7[%c0_28, %c0_29], %49 {strides = array<i32>} : memref<2x2xf32, #tpu.memory_space<vmem>>, vector<2x2xf32>,
    return
  }
}

module attributes {stable_mosaic.version = 11 : i64} {
  func.func @_regular_block_kernel(%arg0: i32, %arg1: memref<1x256x16xf32, #tpu.memory_space<vmem>>, %arg2: memref<256x256xf32, #tpu.memory_space<vmem>>, %arg3: memref<256x1xf32, #tpu.memory_space<vmem>>, %arg4: memref<256x256xf32, #tpu.memory_space<vmem>>, %arg5: memref<256x1xf32, #tpu.memory_space<vmem>>, %arg6: memref<256x256xf32, #tpu.memory_space<vmem>>, %arg7: memref<256x1xf32, #tpu.memory_space<vmem>>, %arg8: memref<256x256xf32, #tpu.memory_space<vmem>>, %arg9: memref<256x1xf32, #tpu.memory_space<vmem>>, %arg10: memref<256x256xf32, #tpu.memory_space<vmem>>, %arg11: memref<256x256xf32, #tpu.memory_space<vmem>>, %arg12: memref<256x1xf32, #tpu.memory_space<vmem>>, %arg13: memref<1x256x16xf32, #tpu.memory_space<vmem>>, %arg14: memref<256x16xf32, #tpu.memory_space<vmem>>, %arg15: memref<256x16xf32, #tpu.memory_space<vmem>>, %arg16: memref<256x16xf32, #tpu.memory_space<vmem>>) attributes {dimension_semantics = [#tpu.dimension_semantics<parallel>], iteration_bounds = array<i64: 2>, scalar_prefetch = 0 : i64, scratch_operands = 3 : i64, tpu.core_type = #tpu.core_type<tc>, window_params = [{transform_indices = @transform_0, window_bounds = array<i64: 1, 256, 16>}, {pipeline_mode = #tpu.pipeline_mode<synchronous>, transform_indices = @transform_1, window_bounds = array<i64: 256, 256>}, {pipeline_mode = #tpu.pipeline_mode<synchronous>, transform_indices = @transform_2, window_bounds = array<i64: 256, 1>}, {pipeline_mode = #tpu.pipeline_mode<synchronous>, transform_indices = @transform_3, window_bounds = array<i64: 256, 256>}, {pipeline_mode = #tpu.pipeline_mode<synchronous>, transform_indices = @transform_4, window_bounds = array<i64: 256, 1>}, {pipeline_mode = #tpu.pipeline_mode<synchronous>, transform_indices = @transform_5, window_bounds = array<i64: 256, 256>}, {pipeline_mode = #tpu.pipeline_mode<synchronous>, transform_indices = @transform_6, window_bounds = array<i64: 256, 1>}, {pipeline_mode = #tpu.pipeline_mode<synchronous>, transform_indices = @transform_7, window_bounds = array<i64: 256, 256>}, {pipeline_mode = #tpu.pipeline_mode<synchronous>, transform_indices = @transform_8, window_bounds = array<i64: 256, 1>}, {pipeline_mode = #tpu.pipeline_mode<synchronous>, transform_indices = @transform_9, window_bounds = array<i64: 256, 256>}, {pipeline_mode = #tpu.pipeline_mode<synchronous>, transform_indices = @transform_10, window_bounds = array<i64: 256, 256>}, {pipeline_mode = #tpu.pipeline_mode<synchronous>, transform_indices = @transform_11, window_bounds = array<i64: 256, 1>}, {transform_indices = @transform_12, window_bounds = array<i64: 1, 256, 16>}]} {
    %c0 = arith.constant 0 : index
    %c0_0 = arith.constant 0 : index
    %c0_1 = arith.constant 0 : index
    %0 = vector.load %arg1[%c0, %c0_0, %c0_1] : memref<1x256x16xf32, #tpu.memory_space<vmem>>, vector<1x256x16xf32>
    %1 = vector.shape_cast %0 : vector<1x256x16xf32> to vector<256x16xf32>
    %c0_2 = arith.constant 0 : index
    %c0_3 = arith.constant 0 : index
    %2 = vector.load %arg2[%c0_2, %c0_3] : memref<256x256xf32, #tpu.memory_space<vmem>>, vector<256x256xf32>
    %c0_4 = arith.constant 0 : index
    %c0_5 = arith.constant 0 : index
    %3 = vector.load %arg3[%c0_4, %c0_5] : memref<256x1xf32, #tpu.memory_space<vmem>>, vector<256x1xf32>
    %cst = arith.constant dense<0.000000e+00> : vector<256x16xf32>
    %4 = tpu.matmul %2, %1, %cst {dimension_numbers = #tpu.dot_dimension_numbers<[1], [0], [0], [1], [0, 0, 1, 1], [], []>} : vector<256x256xf32>, vector<256x16xf32>, vector<256x16xf32> -> vector<256x16xf32>
    %5 = vector.broadcast %3 : vector<256x1xf32> to vector<256x16xf32>
    %6 = arith.addf %4, %5 : vector<256x16xf32>
    %cst_6 = arith.constant 0.000000e+00 : f32
    %7 = vector.broadcast %cst_6 : f32 to vector<256x16xf32>
    %8 = arith.maximumf %6, %7 : vector<256x16xf32>
    %c0_7 = arith.constant 0 : index
    %c0_8 = arith.constant 0 : index
    %9 = vector.load %arg4[%c0_7, %c0_8] : memref<256x256xf32, #tpu.memory_space<vmem>>, vector<256x256xf32>
    %c0_9 = arith.constant 0 : index
    %c0_10 = arith.constant 0 : index
    %10 = vector.load %arg5[%c0_9, %c0_10] : memref<256x1xf32, #tpu.memory_space<vmem>>, vector<256x1xf32>
    %cst_11 = arith.constant dense<0.000000e+00> : vector<256x16xf32>
    %11 = tpu.matmul %9, %8, %cst_11 {dimension_numbers = #tpu.dot_dimension_numbers<[1], [0], [0], [1], [0, 0, 1, 1], [], []>} : vector<256x256xf32>, vector<256x16xf32>, vector<256x16xf32> -> vector<256x16xf32>
    %12 = vector.broadcast %10 : vector<256x1xf32> to vector<256x16xf32>
    %13 = arith.addf %11, %12 : vector<256x16xf32>
    %cst_12 = arith.constant 0.000000e+00 : f32
    %14 = vector.broadcast %cst_12 : f32 to vector<256x16xf32>
    %15 = arith.maximumf %13, %14 : vector<256x16xf32>
    %c0_13 = arith.constant 0 : index
    %c0_14 = arith.constant 0 : index
    %16 = vector.load %arg14[%c0_13, %c0_14] : memref<256x16xf32, #tpu.memory_space<vmem>>, vector<256x16xf32>
    tpu.vector_store %arg14[%c0_13, %c0_14], %15 {strides = array<i32>} : memref<256x16xf32, #tpu.memory_space<vmem>>, vector<256x16xf32>,
    %c0_15 = arith.constant 0 : index
    %c0_16 = arith.constant 0 : index
    %17 = vector.load %arg6[%c0_15, %c0_16] : memref<256x256xf32, #tpu.memory_space<vmem>>, vector<256x256xf32>
    %c0_17 = arith.constant 0 : index
    %c0_18 = arith.constant 0 : index
    %18 = vector.load %arg7[%c0_17, %c0_18] : memref<256x1xf32, #tpu.memory_space<vmem>>, vector<256x1xf32>
    %cst_19 = arith.constant dense<0.000000e+00> : vector<256x16xf32>
    %19 = tpu.matmul %17, %1, %cst_19 {dimension_numbers = #tpu.dot_dimension_numbers<[1], [0], [0], [1], [0, 0, 1, 1], [], []>} : vector<256x256xf32>, vector<256x16xf32>, vector<256x16xf32> -> vector<256x16xf32>
    %20 = vector.broadcast %18 : vector<256x1xf32> to vector<256x16xf32>
    %21 = arith.addf %19, %20 : vector<256x16xf32>
    %cst_20 = arith.constant 0.000000e+00 : f32
    %22 = vector.broadcast %cst_20 : f32 to vector<256x16xf32>
    %23 = arith.maximumf %21, %22 : vector<256x16xf32>
    %c0_21 = arith.constant 0 : index
    %c0_22 = arith.constant 0 : index
    %24 = vector.load %arg8[%c0_21, %c0_22] : memref<256x256xf32, #tpu.memory_space<vmem>>, vector<256x256xf32>
    %c0_23 = arith.constant 0 : index
    %c0_24 = arith.constant 0 : index
    %25 = vector.load %arg9[%c0_23, %c0_24] : memref<256x1xf32, #tpu.memory_space<vmem>>, vector<256x1xf32>
    %cst_25 = arith.constant dense<0.000000e+00> : vector<256x16xf32>
    %26 = tpu.matmul %24, %23, %cst_25 {dimension_numbers = #tpu.dot_dimension_numbers<[1], [0], [0], [1], [0, 0, 1, 1], [], []>} : vector<256x256xf32>, vector<256x16xf32>, vector<256x16xf32> -> vector<256x16xf32>
    %27 = vector.broadcast %25 : vector<256x1xf32> to vector<256x16xf32>
    %28 = arith.addf %26, %27 : vector<256x16xf32>
    %cst_26 = arith.constant 0.000000e+00 : f32
    %29 = vector.broadcast %cst_26 : f32 to vector<256x16xf32>
    %30 = arith.maximumf %28, %29 : vector<256x16xf32>
    %c0_27 = arith.constant 0 : index
    %c0_28 = arith.constant 0 : index
    %31 = vector.load %arg15[%c0_27, %c0_28] : memref<256x16xf32, #tpu.memory_space<vmem>>, vector<256x16xf32>
    tpu.vector_store %arg15[%c0_27, %c0_28], %30 {strides = array<i32>} : memref<256x16xf32, #tpu.memory_space<vmem>>, vector<256x16xf32>,
    %c0_29 = arith.constant 0 : index
    %c0_30 = arith.constant 0 : index
    %32 = vector.load %arg14[%c0_29, %c0_30] : memref<256x16xf32, #tpu.memory_space<vmem>>, vector<16x16xf32>
    %c0_31 = arith.constant 0 : index
    %c0_32 = arith.constant 0 : index
    %33 = vector.load %arg15[%c0_31, %c0_32] : memref<256x16xf32, #tpu.memory_space<vmem>>, vector<16x16xf32>
    %cst_33 = arith.constant dense<0.000000e+00> : vector<16x16xf32>
    %34 = tpu.matmul %32, %33, %cst_33 {dimension_numbers = #tpu.dot_dimension_numbers<[1], [0], [0], [1], [0, 0, 1, 1], [], []>} : vector<16x16xf32>, vector<16x16xf32>, vector<16x16xf32> -> vector<16x16xf32>
    %c0_34 = arith.constant 0 : index
    %c0_35 = arith.constant 0 : index
    %35 = vector.load %arg16[%c0_34, %c0_35] : memref<256x16xf32, #tpu.memory_space<vmem>>, vector<16x16xf32>
    tpu.vector_store %arg16[%c0_34, %c0_35], %34 {strides = array<i32>} : memref<256x16xf32, #tpu.memory_space<vmem>>, vector<16x16xf32>,
    %c16 = arith.constant 16 : index
    %c0_36 = arith.constant 0 : index
    %36 = vector.load %arg14[%c16, %c0_36] : memref<256x16xf32, #tpu.memory_space<vmem>>, vector<16x16xf32>
    %c16_37 = arith.constant 16 : index
    %c0_38 = arith.constant 0 : index
    %37 = vector.load %arg15[%c16_37, %c0_38] : memref<256x16xf32, #tpu.memory_space<vmem>>, vector<16x16xf32>
    %cst_39 = arith.constant dense<0.000000e+00> : vector<16x16xf32>
    %38 = tpu.matmul %36, %37, %cst_39 {dimension_numbers = #tpu.dot_dimension_numbers<[1], [0], [0], [1], [0, 0, 1, 1], [], []>} : vector<16x16xf32>, vector<16x16xf32>, vector<16x16xf32> -> vector<16x16xf32>
    %c16_40 = arith.constant 16 : index
    %c0_41 = arith.constant 0 : index
    %39 = vector.load %arg16[%c16_40, %c0_41] : memref<256x16xf32, #tpu.memory_space<vmem>>, vector<16x16xf32>
    tpu.vector_store %arg16[%c16_40, %c0_41], %38 {strides = array<i32>} : memref<256x16xf32, #tpu.memory_space<vmem>>, vector<16x16xf32>,
    %c32 = arith.constant 32 : index
    %c0_42 = arith.constant 0 : index
    %40 = vector.load %arg14[%c32, %c0_42] : memref<256x16xf32, #tpu.memory_space<vmem>>, vector<16x16xf32>
    %c32_43 = arith.constant 32 : index
    %c0_44 = arith.constant 0 : index
    %41 = vector.load %arg15[%c32_43, %c0_44] : memref<256x16xf32, #tpu.memory_space<vmem>>, vector<16x16xf32>
    %cst_45 = arith.constant dense<0.000000e+00> : vector<16x16xf32>
    %42 = tpu.matmul %40, %41, %cst_45 {dimension_numbers = #tpu.dot_dimension_numbers<[1], [0], [0], [1], [0, 0, 1, 1], [], []>} : vector<16x16xf32>, vector<16x16xf32>, vector<16x16xf32> -> vector<16x16xf32>
    %c32_46 = arith.constant 32 : index
    %c0_47 = arith.constant 0 : index
    %43 = vector.load %arg16[%c32_46, %c0_47] : memref<256x16xf32, #tpu.memory_space<vmem>>, vector<16x16xf32>
    tpu.vector_store %arg16[%c32_46, %c0_47], %42 {strides = array<i32>} : memref<256x16xf32, #tpu.memory_space<vmem>>, vector<16x16xf32>,
    %c48 = arith.constant 48 : index
    %c0_48 = arith.constant 0 : index
    %44 = vector.load %arg14[%c48, %c0_48] : memref<256x16xf32, #tpu.memory_space<vmem>>, vector<16x16xf32>
    %c48_49 = arith.constant 48 : index
    %c0_50 = arith.constant 0 : index
    %45 = vector.load %arg15[%c48_49, %c0_50] : memref<256x16xf32, #tpu.memory_space<vmem>>, vector<16x16xf32>
    %cst_51 = arith.constant dense<0.000000e+00> : vector<16x16xf32>
    %46 = tpu.matmul %44, %45, %cst_51 {dimension_numbers = #tpu.dot_dimension_numbers<[1], [0], [0], [1], [0, 0, 1, 1], [], []>} : vector<16x16xf32>, vector<16x16xf32>, vector<16x16xf32> -> vector<16x16xf32>
    %c48_52 = arith.constant 48 : index
    %c0_53 = arith.constant 0 : index
    %47 = vector.load %arg16[%c48_52, %c0_53] : memref<256x16xf32, #tpu.memory_space<vmem>>, vector<16x16xf32>
    tpu.vector_store %arg16[%c48_52, %c0_53], %46 {strides = array<i32>} : memref<256x16xf32, #tpu.memory_space<vmem>>, vector<16x16xf32>,
    %c64 = arith.constant 64 : index
    %c0_54 = arith.constant 0 : index
    %48 = vector.load %arg14[%c64, %c0_54] : memref<256x16xf32, #tpu.memory_space<vmem>>, vector<16x16xf32>
    %c64_55 = arith.constant 64 : index
    %c0_56 = arith.constant 0 : index
    %49 = vector.load %arg15[%c64_55, %c0_56] : memref<256x16xf32, #tpu.memory_space<vmem>>, vector<16x16xf32>
    %cst_57 = arith.constant dense<0.000000e+00> : vector<16x16xf32>
    %50 = tpu.matmul %48, %49, %cst_57 {dimension_numbers = #tpu.dot_dimension_numbers<[1], [0], [0], [1], [0, 0, 1, 1], [], []>} : vector<16x16xf32>, vector<16x16xf32>, vector<16x16xf32> -> vector<16x16xf32>
    %c64_58 = arith.constant 64 : index
    %c0_59 = arith.constant 0 : index
    %51 = vector.load %arg16[%c64_58, %c0_59] : memref<256x16xf32, #tpu.memory_space<vmem>>, vector<16x16xf32>
    tpu.vector_store %arg16[%c64_58, %c0_59], %50 {strides = array<i32>} : memref<256x16xf32, #tpu.memory_space<vmem>>, vector<16x16xf32>,
    %c80 = arith.constant 80 : index
    %c0_60 = arith.constant 0 : index
    %52 = vector.load %arg14[%c80, %c0_60] : memref<256x16xf32, #tpu.memory_space<vmem>>, vector<16x16xf32>
    %c80_61 = arith.constant 80 : index
    %c0_62 = arith.constant 0 : index
    %53 = vector.load %arg15[%c80_61, %c0_62] : memref<256x16xf32, #tpu.memory_space<vmem>>, vector<16x16xf32>
    %cst_63 = arith.constant dense<0.000000e+00> : vector<16x16xf32>
    %54 = tpu.matmul %52, %53, %cst_63 {dimension_numbers = #tpu.dot_dimension_numbers<[1], [0], [0], [1], [0, 0, 1, 1], [], []>} : vector<16x16xf32>, vector<16x16xf32>, vector<16x16xf32> -> vector<16x16xf32>
    %c80_64 = arith.constant 80 : index
    %c0_65 = arith.constant 0 : index
    %55 = vector.load %arg16[%c80_64, %c0_65] : memref<256x16xf32, #tpu.memory_space<vmem>>, vector<16x16xf32>
    tpu.vector_store %arg16[%c80_64, %c0_65], %54 {strides = array<i32>} : memref<256x16xf32, #tpu.memory_space<vmem>>, vector<16x16xf32>,
    %c96 = arith.constant 96 : index
    %c0_66 = arith.constant 0 : index
    %56 = vector.load %arg14[%c96, %c0_66] : memref<256x16xf32, #tpu.memory_space<vmem>>, vector<16x16xf32>
    %c96_67 = arith.constant 96 : index
    %c0_68 = arith.constant 0 : index
    %57 = vector.load %arg15[%c96_67, %c0_68] : memref<256x16xf32, #tpu.memory_space<vmem>>, vector<16x16xf32>
    %cst_69 = arith.constant dense<0.000000e+00> : vector<16x16xf32>
    %58 = tpu.matmul %56, %57, %cst_69 {dimension_numbers = #tpu.dot_dimension_numbers<[1], [0], [0], [1], [0, 0, 1, 1], [], []>} : vector<16x16xf32>, vector<16x16xf32>, vector<16x16xf32> -> vector<16x16xf32>
    %c96_70 = arith.constant 96 : index
    %c0_71 = arith.constant 0 : index
    %59 = vector.load %arg16[%c96_70, %c0_71] : memref<256x16xf32, #tpu.memory_space<vmem>>, vector<16x16xf32>
    tpu.vector_store %arg16[%c96_70, %c0_71], %58 {strides = array<i32>} : memref<256x16xf32, #tpu.memory_space<vmem>>, vector<16x16xf32>,
    %c112 = arith.constant 112 : index
    %c0_72 = arith.constant 0 : index
    %60 = vector.load %arg14[%c112, %c0_72] : memref<256x16xf32, #tpu.memory_space<vmem>>, vector<16x16xf32>
    %c112_73 = arith.constant 112 : index
    %c0_74 = arith.constant 0 : index
    %61 = vector.load %arg15[%c112_73, %c0_74] : memref<256x16xf32, #tpu.memory_space<vmem>>, vector<16x16xf32>
    %cst_75 = arith.constant dense<0.000000e+00> : vector<16x16xf32>
    %62 = tpu.matmul %60, %61, %cst_75 {dimension_numbers = #tpu.dot_dimension_numbers<[1], [0], [0], [1], [0, 0, 1, 1], [], []>} : vector<16x16xf32>, vector<16x16xf32>, vector<16x16xf32> -> vector<16x16xf32>
    %c112_76 = arith.constant 112 : index
    %c0_77 = arith.constant 0 : index
    %63 = vector.load %arg16[%c112_76, %c0_77] : memref<256x16xf32, #tpu.memory_space<vmem>>, vector<16x16xf32>
    tpu.vector_store %arg16[%c112_76, %c0_77], %62 {strides = array<i32>} : memref<256x16xf32, #tpu.memory_space<vmem>>, vector<16x16xf32>,
    %c128 = arith.constant 128 : index
    %c0_78 = arith.constant 0 : index
    %64 = vector.load %arg14[%c128, %c0_78] : memref<256x16xf32, #tpu.memory_space<vmem>>, vector<16x16xf32>
    %c128_79 = arith.constant 128 : index
    %c0_80 = arith.constant 0 : index
    %65 = vector.load %arg15[%c128_79, %c0_80] : memref<256x16xf32, #tpu.memory_space<vmem>>, vector<16x16xf32>
    %cst_81 = arith.constant dense<0.000000e+00> : vector<16x16xf32>
    %66 = tpu.matmul %64, %65, %cst_81 {dimension_numbers = #tpu.dot_dimension_numbers<[1], [0], [0], [1], [0, 0, 1, 1], [], []>} : vector<16x16xf32>, vector<16x16xf32>, vector<16x16xf32> -> vector<16x16xf32>
    %c128_82 = arith.constant 128 : index
    %c0_83 = arith.constant 0 : index
    %67 = vector.load %arg16[%c128_82, %c0_83] : memref<256x16xf32, #tpu.memory_space<vmem>>, vector<16x16xf32>
    tpu.vector_store %arg16[%c128_82, %c0_83], %66 {strides = array<i32>} : memref<256x16xf32, #tpu.memory_space<vmem>>, vector<16x16xf32>,
    %c144 = arith.constant 144 : index
    %c0_84 = arith.constant 0 : index
    %68 = vector.load %arg14[%c144, %c0_84] : memref<256x16xf32, #tpu.memory_space<vmem>>, vector<16x16xf32>
    %c144_85 = arith.constant 144 : index
    %c0_86 = arith.constant 0 : index
    %69 = vector.load %arg15[%c144_85, %c0_86] : memref<256x16xf32, #tpu.memory_space<vmem>>, vector<16x16xf32>
    %cst_87 = arith.constant dense<0.000000e+00> : vector<16x16xf32>
    %70 = tpu.matmul %68, %69, %cst_87 {dimension_numbers = #tpu.dot_dimension_numbers<[1], [0], [0], [1], [0, 0, 1, 1], [], []>} : vector<16x16xf32>, vector<16x16xf32>, vector<16x16xf32> -> vector<16x16xf32>
    %c144_88 = arith.constant 144 : index
    %c0_89 = arith.constant 0 : index
    %71 = vector.load %arg16[%c144_88, %c0_89] : memref<256x16xf32, #tpu.memory_space<vmem>>, vector<16x16xf32>
    tpu.vector_store %arg16[%c144_88, %c0_89], %70 {strides = array<i32>} : memref<256x16xf32, #tpu.memory_space<vmem>>, vector<16x16xf32>,
    %c160 = arith.constant 160 : index
    %c0_90 = arith.constant 0 : index
    %72 = vector.load %arg14[%c160, %c0_90] : memref<256x16xf32, #tpu.memory_space<vmem>>, vector<16x16xf32>
    %c160_91 = arith.constant 160 : index
    %c0_92 = arith.constant 0 : index
    %73 = vector.load %arg15[%c160_91, %c0_92] : memref<256x16xf32, #tpu.memory_space<vmem>>, vector<16x16xf32>
    %cst_93 = arith.constant dense<0.000000e+00> : vector<16x16xf32>
    %74 = tpu.matmul %72, %73, %cst_93 {dimension_numbers = #tpu.dot_dimension_numbers<[1], [0], [0], [1], [0, 0, 1, 1], [], []>} : vector<16x16xf32>, vector<16x16xf32>, vector<16x16xf32> -> vector<16x16xf32>
    %c160_94 = arith.constant 160 : index
    %c0_95 = arith.constant 0 : index
    %75 = vector.load %arg16[%c160_94, %c0_95] : memref<256x16xf32, #tpu.memory_space<vmem>>, vector<16x16xf32>
    tpu.vector_store %arg16[%c160_94, %c0_95], %74 {strides = array<i32>} : memref<256x16xf32, #tpu.memory_space<vmem>>, vector<16x16xf32>,
    %c176 = arith.constant 176 : index
    %c0_96 = arith.constant 0 : index
    %76 = vector.load %arg14[%c176, %c0_96] : memref<256x16xf32, #tpu.memory_space<vmem>>, vector<16x16xf32>
    %c176_97 = arith.constant 176 : index
    %c0_98 = arith.constant 0 : index
    %77 = vector.load %arg15[%c176_97, %c0_98] : memref<256x16xf32, #tpu.memory_space<vmem>>, vector<16x16xf32>
    %cst_99 = arith.constant dense<0.000000e+00> : vector<16x16xf32>
    %78 = tpu.matmul %76, %77, %cst_99 {dimension_numbers = #tpu.dot_dimension_numbers<[1], [0], [0], [1], [0, 0, 1, 1], [], []>} : vector<16x16xf32>, vector<16x16xf32>, vector<16x16xf32> -> vector<16x16xf32>
    %c176_100 = arith.constant 176 : index
    %c0_101 = arith.constant 0 : index
    %79 = vector.load %arg16[%c176_100, %c0_101] : memref<256x16xf32, #tpu.memory_space<vmem>>, vector<16x16xf32>
    tpu.vector_store %arg16[%c176_100, %c0_101], %78 {strides = array<i32>} : memref<256x16xf32, #tpu.memory_space<vmem>>, vector<16x16xf32>,
    %c192 = arith.constant 192 : index
    %c0_102 = arith.constant 0 : index
    %80 = vector.load %arg14[%c192, %c0_102] : memref<256x16xf32, #tpu.memory_space<vmem>>, vector<16x16xf32>
    %c192_103 = arith.constant 192 : index
    %c0_104 = arith.constant 0 : index
    %81 = vector.load %arg15[%c192_103, %c0_104] : memref<256x16xf32, #tpu.memory_space<vmem>>, vector<16x16xf32>
    %cst_105 = arith.constant dense<0.000000e+00> : vector<16x16xf32>
    %82 = tpu.matmul %80, %81, %cst_105 {dimension_numbers = #tpu.dot_dimension_numbers<[1], [0], [0], [1], [0, 0, 1, 1], [], []>} : vector<16x16xf32>, vector<16x16xf32>, vector<16x16xf32> -> vector<16x16xf32>
    %c192_106 = arith.constant 192 : index
    %c0_107 = arith.constant 0 : index
    %83 = vector.load %arg16[%c192_106, %c0_107] : memref<256x16xf32, #tpu.memory_space<vmem>>, vector<16x16xf32>
    tpu.vector_store %arg16[%c192_106, %c0_107], %82 {strides = array<i32>} : memref<256x16xf32, #tpu.memory_space<vmem>>, vector<16x16xf32>,
    %c208 = arith.constant 208 : index
    %c0_108 = arith.constant 0 : index
    %84 = vector.load %arg14[%c208, %c0_108] : memref<256x16xf32, #tpu.memory_space<vmem>>, vector<16x16xf32>
    %c208_109 = arith.constant 208 : index
    %c0_110 = arith.constant 0 : index
    %85 = vector.load %arg15[%c208_109, %c0_110] : memref<256x16xf32, #tpu.memory_space<vmem>>, vector<16x16xf32>
    %cst_111 = arith.constant dense<0.000000e+00> : vector<16x16xf32>
    %86 = tpu.matmul %84, %85, %cst_111 {dimension_numbers = #tpu.dot_dimension_numbers<[1], [0], [0], [1], [0, 0, 1, 1], [], []>} : vector<16x16xf32>, vector<16x16xf32>, vector<16x16xf32> -> vector<16x16xf32>
    %c208_112 = arith.constant 208 : index
    %c0_113 = arith.constant 0 : index
    %87 = vector.load %arg16[%c208_112, %c0_113] : memref<256x16xf32, #tpu.memory_space<vmem>>, vector<16x16xf32>
    tpu.vector_store %arg16[%c208_112, %c0_113], %86 {strides = array<i32>} : memref<256x16xf32, #tpu.memory_space<vmem>>, vector<16x16xf32>,
    %c224 = arith.constant 224 : index
    %c0_114 = arith.constant 0 : index
    %88 = vector.load %arg14[%c224, %c0_114] : memref<256x16xf32, #tpu.memory_space<vmem>>, vector<16x16xf32>
    %c224_115 = arith.constant 224 : index
    %c0_116 = arith.constant 0 : index
    %89 = vector.load %arg15[%c224_115, %c0_116] : memref<256x16xf32, #tpu.memory_space<vmem>>, vector<16x16xf32>
    %cst_117 = arith.constant dense<0.000000e+00> : vector<16x16xf32>
    %90 = tpu.matmul %88, %89, %cst_117 {dimension_numbers = #tpu.dot_dimension_numbers<[1], [0], [0], [1], [0, 0, 1, 1], [], []>} : vector<16x16xf32>, vector<16x16xf32>, vector<16x16xf32> -> vector<16x16xf32>
    %c224_118 = arith.constant 224 : index
    %c0_119 = arith.constant 0 : index
    %91 = vector.load %arg16[%c224_118, %c0_119] : memref<256x16xf32, #tpu.memory_space<vmem>>, vector<16x16xf32>
    tpu.vector_store %arg16[%c224_118, %c0_119], %90 {strides = array<i32>} : memref<256x16xf32, #tpu.memory_space<vmem>>, vector<16x16xf32>,
    %c240 = arith.constant 240 : index
    %c0_120 = arith.constant 0 : index
    %92 = vector.load %arg14[%c240, %c0_120] : memref<256x16xf32, #tpu.memory_space<vmem>>, vector<16x16xf32>
    %c240_121 = arith.constant 240 : index
    %c0_122 = arith.constant 0 : index
    %93 = vector.load %arg15[%c240_121, %c0_122] : memref<256x16xf32, #tpu.memory_space<vmem>>, vector<16x16xf32>
    %cst_123 = arith.constant dense<0.000000e+00> : vector<16x16xf32>
    %94 = tpu.matmul %92, %93, %cst_123 {dimension_numbers = #tpu.dot_dimension_numbers<[1], [0], [0], [1], [0, 0, 1, 1], [], []>} : vector<16x16xf32>, vector<16x16xf32>, vector<16x16xf32> -> vector<16x16xf32>
    %c240_124 = arith.constant 240 : index
    %c0_125 = arith.constant 0 : index
    %95 = vector.load %arg16[%c240_124, %c0_125] : memref<256x16xf32, #tpu.memory_space<vmem>>, vector<16x16xf32>
    tpu.vector_store %arg16[%c240_124, %c0_125], %94 {strides = array<i32>} : memref<256x16xf32, #tpu.memory_space<vmem>>, vector<16x16xf32>,
    %c0_126 = arith.constant 0 : index
    %c0_127 = arith.constant 0 : index
    %96 = vector.load %arg10[%c0_126, %c0_127] : memref<256x256xf32, #tpu.memory_space<vmem>>, vector<256x256xf32>
    %cst_128 = arith.constant dense<0.000000e+00> : vector<256x16xf32>
    %97 = tpu.matmul %96, %1, %cst_128 {dimension_numbers = #tpu.dot_dimension_numbers<[1], [0], [0], [1], [0, 0, 1, 1], [], []>} : vector<256x256xf32>, vector<256x16xf32>, vector<256x16xf32> -> vector<256x16xf32>
    %c0_129 = arith.constant 0 : index
    %c0_130 = arith.constant 0 : index
    %98 = vector.load %arg11[%c0_129, %c0_130] : memref<256x256xf32, #tpu.memory_space<vmem>>, vector<256x256xf32>
    %c0_131 = arith.constant 0 : index
    %c0_132 = arith.constant 0 : index
    %99 = vector.load %arg16[%c0_131, %c0_132] : memref<256x16xf32, #tpu.memory_space<vmem>>, vector<256x16xf32>
    %cst_133 = arith.constant dense<0.000000e+00> : vector<256x16xf32>
    %100 = tpu.matmul %98, %99, %cst_133 {dimension_numbers = #tpu.dot_dimension_numbers<[1], [0], [0], [1], [0, 0, 1, 1], [], []>} : vector<256x256xf32>, vector<256x16xf32>, vector<256x16xf32> -> vector<256x16xf32>
    %101 = arith.addf %97, %100 : vector<256x16xf32>
    %c0_134 = arith.constant 0 : index
    %c0_135 = arith.constant 0 : index
    %102 = vector.load %arg12[%c0_134, %c0_135] : memref<256x1xf32, #tpu.memory_space<vmem>>, vector<256x1xf32>
    %103 = vector.broadcast %102 : vector<256x1xf32> to vector<256x16xf32>
    %104 = arith.addf %101, %103 : vector<256x16xf32>
    %c0_136 = arith.constant 0 : index
    %c0_137 = arith.constant 0 : index
    %c0_138 = arith.constant 0 : index
    %105 = vector.load %arg13[%c0_136, %c0_137, %c0_138] : memref<1x256x16xf32, #tpu.memory_space<vmem>>, vector<1x256x16xf32>
    %106 = vector.shape_cast %105 : vector<1x256x16xf32> to vector<256x16xf32>
    %107 = vector.shape_cast %104 : vector<256x16xf32> to vector<1x256x16xf32>
    tpu.vector_store %arg13[%c0_136, %c0_137, %c0_138], %107 {strides = array<i32>} : memref<1x256x16xf32, #tpu.memory_space<vmem>>, vector<1x256x16xf32>,
    return
  }
  func.func @transform_0(%arg0: i32) -> (i32, i32, i32) {
    %c0_i32 = arith.constant 0 : i32
    %c0_i32_0 = arith.constant 0 : i32
    %c0_i32_1 = arith.constant 0 : i32
    return %arg0, %c0_i32, %c0_i32_0 : i32, i32, i32
  }
  func.func @transform_1(%arg0: i32) -> (i32, i32) {
    %c0_i32 = arith.constant 0 : i32
    %c0_i32_0 = arith.constant 0 : i32
    %c0_i32_1 = arith.constant 0 : i32
    return %c0_i32, %c0_i32_0 : i32, i32
  }
  func.func @transform_2(%arg0: i32) -> (i32, i32) {
    %c0_i32 = arith.constant 0 : i32
    %c0_i32_0 = arith.constant 0 : i32
    %c0_i32_1 = arith.constant 0 : i32
    return %c0_i32, %c0_i32_0 : i32, i32
  }
  func.func @transform_3(%arg0: i32) -> (i32, i32) {
    %c0_i32 = arith.constant 0 : i32
    %c0_i32_0 = arith.constant 0 : i32
    %c0_i32_1 = arith.constant 0 : i32
    return %c0_i32, %c0_i32_0 : i32, i32
  }
  func.func @transform_4(%arg0: i32) -> (i32, i32) {
    %c0_i32 = arith.constant 0 : i32
    %c0_i32_0 = arith.constant 0 : i32
    %c0_i32_1 = arith.constant 0 : i32
    return %c0_i32, %c0_i32_0 : i32, i32
  }
  func.func @transform_5(%arg0: i32) -> (i32, i32) {
    %c0_i32 = arith.constant 0 : i32
    %c0_i32_0 = arith.constant 0 : i32
    %c0_i32_1 = arith.constant 0 : i32
    return %c0_i32, %c0_i32_0 : i32, i32
  }
  func.func @transform_6(%arg0: i32) -> (i32, i32) {
    %c0_i32 = arith.constant 0 : i32
    %c0_i32_0 = arith.constant 0 : i32
    %c0_i32_1 = arith.constant 0 : i32
    return %c0_i32, %c0_i32_0 : i32, i32
  }
  func.func @transform_7(%arg0: i32) -> (i32, i32) {
    %c0_i32 = arith.constant 0 : i32
    %c0_i32_0 = arith.constant 0 : i32
    %c0_i32_1 = arith.constant 0 : i32
    return %c0_i32, %c0_i32_0 : i32, i32
  }
  func.func @transform_8(%arg0: i32) -> (i32, i32) {
    %c0_i32 = arith.constant 0 : i32
    %c0_i32_0 = arith.constant 0 : i32
    %c0_i32_1 = arith.constant 0 : i32
    return %c0_i32, %c0_i32_0 : i32, i32
  }
  func.func @transform_9(%arg0: i32) -> (i32, i32) {
    %c0_i32 = arith.constant 0 : i32
    %c0_i32_0 = arith.constant 0 : i32
    %c0_i32_1 = arith.constant 0 : i32
    return %c0_i32, %c0_i32_0 : i32, i32
  }
  func.func @transform_10(%arg0: i32) -> (i32, i32) {
    %c0_i32 = arith.constant 0 : i32
    %c0_i32_0 = arith.constant 0 : i32
    %c0_i32_1 = arith.constant 0 : i32
    return %c0_i32, %c0_i32_0 : i32, i32
  }
  func.func @transform_11(%arg0: i32) -> (i32, i32) {
    %c0_i32 = arith.constant 0 : i32
    %c0_i32_0 = arith.constant 0 : i32
    %c0_i32_1 = arith.constant 0 : i32
    return %c0_i32, %c0_i32_0 : i32, i32
  }
  func.func @transform_12(%arg0: i32) -> (i32, i32, i32) {
    %c0_i32 = arith.constant 0 : i32
    %c0_i32_0 = arith.constant 0 : i32
    %c0_i32_1 = arith.constant 0 : i32
    return %arg0, %c0_i32, %c0_i32_0 : i32, i32, i32
  }
}

</mosaic_0001>

<bundles_post_ra>
// kernel: net_forward.5
= control target key start
LH: loop header
LB: loop body
LE: loop exit
PB: predicated region body
PF: predicated region fallthrough
CT: control target
= control target key end

     0   :  { %v90_v0 = vlaneseq  ;;  %vm165_vm0 = vcmask 130048   ;;  %v4672_v11 = vmov 0  ;;  %v4675_v23 = vmov 0  ;;  %s4656_s0 = inlined_call_operand.vmem [shape: f32[2,16,16,16], index: 0, kind: input, shape index: {}]   ;;  %s4657_s1 = inlined_call_operand.vmem [shape: f32[32,512], index: 1, kind: input, shape index: {}]   ;;  %s4658_s3 = inlined_call_operand.vmem [shape: f32[512,256], index: 3, kind: input, shape index: {}]   ;;  %s4659_s5 = inlined_call_operand.vmem [shape: f32[256,2], index: 5, kind: input, shape index: {}]   ;;  %s4660_s2 = inlined_call_operand.vmem [shape: f32[1,512], index: 2, kind: input, shape index: {}]   ;;  %s4661_s4 = inlined_call_operand.vmem [shape: f32[1,256], index: 4, kind: input, shape index: {}]   ;;  %s4662_s6 = inlined_call_operand.vmem [shape: f32[1,2], index: 6, kind: input, shape index: {}]   ;;  %s4663_s7 = inlined_call_operand.vmem [shape: f32[2,2], index: 7, kind: output, shape index: {}]  }
   0x1   :  { %v28_v1 = vld [vmem:[%s4656_s0 + $0x10] sm:$0xff]  ;;  %v26_v2 = vld [vmem:[%s4656_s0] sm:$0xff]  ;;  %v29_v7 = vld [vmem:[%s4656_s0 + $0x18] sm:$0xff]  ;;  %vm431_vm3 = vcmask 130112   ;;  %vm712_vm4 = vcmask 1041409   ;;  %vm714_vm5 = vcmask 1042434  }
   0x2   :  { %v2603_v3 = vshrl.u32 %v90_v0, 7  ;;  %v2605_v4 = vand.u32 127, %v90_v0  ;;  %v775_v5 = vsub.f32 0.0, %v28_v1  ;;  %v773_v6 = vsub.f32 0.0, %v26_v2  ;;  %v42_v8 = vld [vmem:[%s4656_s0 + $0x80] sm:$0xff]  ;;  %v43_v17 = vld [vmem:[%s4656_s0 + $0x88] sm:$0xff] }
   0x3   :  { %v776_v9 = vsub.f32 0.0, %v29_v7  ;;  %v789_v10 = vsub.f32 0.0, %v42_v8  ;;  %v790_v21 = vsub.f32 0.0, %v43_v17  ;;  %v27_v22 = vld [vmem:[%s4656_s0 + $0x8] sm:$0xff]  ;;  %v45_v36 = vld [vmem:[%s4656_s0 + $0x98] sm:$0xff]  ;;  %v44_v37 = vld [vmem:[%s4656_s0 + $0x90] sm:$0xff] }
   0x4   :  { %4670 = vst [vmem:[#allocation2_spill] sm:$0xff] %v2603_v3  ;;  %4671 = vst [vmem:[#allocation3_spill] sm:$0xff] %v2605_v4  ;;  %vm2615_vm1 = vcmp.eq.s32.totalorder %v2603_v3, %v2605_v4  ;;  %v839_v12 = vsel %vm165_vm0, %v775_v5, -inf  ;;  %v837_v15 = vsel %vm165_vm0, %v773_v6, -inf  ;;  %v92_v16 = vadd.s32 8, %v2603_v3  ;;  %v59_v45 = vld [vmem:[%s4656_s0 + $0x108] sm:$0xff] }
   0x5   :  { %v4673_v11 = vsel %vm2615_vm1, 4294967295, %v4672_v11  ;;  %v103_v13 = vsel %vm2615_vm1, %v28_v1, -inf  ;;  %v101_v14 = vsel %vm2615_vm1, %v26_v2, -inf  ;;  %v844_v20 = vmax.f32 %v837_v15, %v839_v12  ;;  %v58_v46 = vld [vmem:[%s4656_s0 + $0x100] sm:$0xff]  ;;  %v61_v54 = vld [vmem:[%s4656_s0 + $0x118] sm:$0xff]  ;;  %v60_v55 = vld [vmem:[%s4656_s0 + $0x110] sm:$0xff] }
   0x6   :  { %4674 = vst [vmem:[#allocation4_spill] sm:$0xff] %v4673_v11  ;;  %v172_v18 = vsel %vm165_vm0, %v103_v13, -inf  ;;  %v166_v19 = vsel %vm165_vm0, %v101_v14, -inf  ;;  %vm2635_vm2 = vcmp.eq.s32.totalorder %v92_v16, %v2605_v4  ;;  %v840_v24 = vsel %vm165_vm0, %v776_v9, -inf  ;;  %v75_v63 = vld [vmem:[%s4656_s0 + $0x188] sm:$0xff]  ;;  %v2697_v0 = vld [vmem:[%s4656_s0 + $0x180] sm:$0xff] }
   0x7   :  { %173 = vmax.xlane.f32.xlu1 %v172_v18  ;;  %167 = vmax.xlane.f32.xlu0 %v166_v19  ;;  %v4676_v23 = vsel %vm2635_vm2, 4294967295, %v4675_v23  ;;  %v117_v25 = vsel %vm2615_vm1, %v42_v8, -inf  ;;  %v865_v26 = vsel %vm165_vm0, %v789_v10, -inf  ;;  %v104_v27 = vsel %vm2635_vm2, %v29_v7, -inf  ;;  %v2710_v10 = vld [vmem:[%s4656_s0 + $0x198] sm:$0xff]  ;;  %v2715_v12 = vld [vmem:[%s4656_s0 + $0x190] sm:$0xff] }
   0x8   :  { %4677 = vst [vmem:[#allocation5_spill] sm:$0xff] %v4676_v23  ;;  %v842_v28 = vmax.f32 %v840_v24, %v844_v20  ;;  %v214_v29 = vsel %vm165_vm0, %v117_v25, -inf  ;;  %v175_v30 = vsel %vm165_vm0, %v104_v27, -inf  ;;  %v118_v31 = vsel %vm2635_vm2, %v43_v17, -inf  ;;  %v2729_v20 = vld [vmem:[%s4656_s0 + $0x28] sm:$0xff] }
   0x9   :  { %v102_v32 = vsel %vm2635_vm2, %v27_v22, -inf  ;;  %v867_v34 = vsel %vm165_vm0, %v790_v21, -inf  ;;  %v774_v35 = vsub.f32 0.0, %v27_v22  ;;  %v217_v38 = vsel %vm165_vm0, %v118_v31, -inf  ;;  %v2734_v21 = vld [vmem:[%s4656_s0 + $0x20] sm:$0xff] }
   0xa   :  { %v848_v33 = vmax.f32 %v865_v26, %v842_v28  ;;  %v169_v39 = vsel %vm165_vm0, %v102_v32, -inf  ;;  %v120_v41 = vsel %vm2635_vm2, %v45_v36, -inf  ;;  %v119_v42 = vsel %vm2615_vm1, %v44_v37, -inf  ;;  %v2753_v31 = vld [vmem:[%s4656_s0 + $0xa0] sm:$0xff] }
   0xb   :  { %176 = vmax.xlane.f32.xlu1 %v175_v30  ;;  %215 = vmax.xlane.f32.xlu0 %v214_v29  ;;  %v838_v43 = vsel %vm165_vm0, %v774_v35, -inf  ;;  %v792_v44 = vsub.f32 0.0, %v45_v36  ;;  %v223_v47 = vsel %vm165_vm0, %v120_v41, -inf  ;;  %v220_v48 = vsel %vm165_vm0, %v119_v42, -inf  ;;  %v2748_v30 = vld [vmem:[%s4656_s0 + $0xa8] sm:$0xff] }
   0xc   :  { %v846_v40 = vmax.f32 %v867_v34, %v848_v33  ;;  %v134_v50 = vsel %vm2635_vm2, %v59_v45, -inf  ;;  %v133_v51 = vsel %vm2615_vm1, %v58_v46, -inf  ;;  %v791_v53 = vsub.f32 0.0, %v44_v37 }
   0xd   :  { %v871_v52 = vsel %vm165_vm0, %v792_v44, -inf  ;;  %v265_v56 = vsel %vm165_vm0, %v134_v50, -inf  ;;  %v262_v57 = vsel %vm165_vm0, %v133_v51, -inf  ;;  %v136_v59 = vsel %vm2635_vm2, %v61_v54, -inf }
   0xe   :  { %v852_v49 = vmax.f32 %v838_v43, %v846_v40  ;;  %v135_v60 = vsel %vm2615_vm1, %v60_v55, -inf  ;;  %v869_v61 = vsel %vm165_vm0, %v791_v53, -inf  ;;  %v806_v62 = vsub.f32 0.0, %v59_v45  ;;  %v2772_v40 = vld [vmem:[%s4656_s0 + $0x120] sm:$0xff] }
   0xf   :  { %218 = vmax.xlane.f32.xlu1 %v217_v38  ;;  %170 = vmax.xlane.f32.xlu0 %v169_v39  ;;  %v271_v1 = vsel %vm165_vm0, %v136_v59, -inf  ;;  %v268_v2 = vsel %vm165_vm0, %v135_v60, -inf  ;;  %v150_v6 = vsel %vm2635_vm2, %v75_v63, -inf  ;;  %v149_v7 = vsel %vm2615_vm1, %v2697_v0, -inf  ;;  %v2767_v39 = vld [vmem:[%s4656_s0 + $0x128] sm:$0xff] }
  0x10   :  { %v850_v58 = vmax.f32 %v871_v52, %v852_v49  ;;  %v899_v8 = vsel %vm165_vm0, %v806_v62, -inf  ;;  %v805_v9 = vsub.f32 0.0, %v58_v46  ;;  %v313_v13 = vsel %vm165_vm0, %v150_v6, -inf  ;;  %v2792_v49 = vld [vmem:[%s4656_s0 + $0x1a0] sm:$0xff] }
  0x11   :  { %v310_v14 = vsel %vm165_vm0, %v149_v7, -inf  ;;  %v152_v16 = vsel %vm2635_vm2, %v2710_v10, -inf  ;;  %v151_v17 = vsel %vm2615_vm1, %v2715_v12, -inf  ;;  %v808_v19 = vsub.f32 0.0, %v61_v54 }
  0x12   :  { %v856_v5 = vmax.f32 %v869_v61, %v850_v58  ;;  %v897_v18 = vsel %vm165_vm0, %v805_v9, -inf  ;;  %v319_v22 = vsel %vm165_vm0, %v152_v16, -inf  ;;  %v316_v24 = vsel %vm165_vm0, %v151_v17, -inf  ;;  %v2812_v58 = vld [vmem:[%s4656_s0 + $0x30] sm:$0xff] }
  0x13   :  { %224 = vmax.xlane.f32.xlu1 %v223_v47  ;;  %221 = vmax.xlane.f32.xlu0 %v220_v48  ;;  %v106_v26 = vsel %vm2635_vm2, %v2729_v20, -inf  ;;  %v105_v27 = vsel %vm2615_vm1, %v2734_v21, -inf  ;;  %v903_v28 = vsel %vm165_vm0, %v808_v19, -inf  ;;  %v807_v29 = vsub.f32 0.0, %v60_v55  ;;  %v2787_v48 = vld [vmem:[%s4656_s0 + $0x1a8] sm:$0xff] }
  0x14   :  { %v854_v15 = vmax.f32 %v899_v8, %v856_v5  ;;  %v181_v32 = vsel %vm165_vm0, %v106_v26, -inf  ;;  %v178_v33 = vsel %vm165_vm0, %v105_v27, -inf  ;;  %v122_v35 = vsel %vm2635_vm2, %v2748_v30, -inf  ;;  %v2832_v5 = vld [vmem:[%s4656_s0 + $0xb0] sm:$0xff] }
  0x15   :  { %v121_v36 = vsel %vm2615_vm1, %v2753_v31, -inf  ;;  %v901_v37 = vsel %vm165_vm0, %v807_v29, -inf  ;;  %v822_v38 = vsub.f32 0.0, %v75_v63  ;;  %v229_v41 = vsel %vm165_vm0, %v122_v35, -inf  ;;  %v2872_v26 = vld [vmem:[%s4656_s0 + $0x1b0] sm:$0xff]  ;;  %v2887_v35 = vld [vmem:[%s4656_s0 + $0x48] sm:$0xff] }
  0x16   :  { %v860_v25 = vmax.f32 %v897_v18, %v854_v15  ;;  %v226_v42 = vsel %vm165_vm0, %v121_v36, -inf  ;;  %v138_v44 = vsel %vm2635_vm2, %v2767_v39, -inf  ;;  %v137_v45 = vsel %vm2615_vm1, %v2772_v40, -inf  ;;  %v2852_v15 = vld [vmem:[%s4656_s0 + $0x130] sm:$0xff]  ;;  %v2892_v36 = vld [vmem:[%s4656_s0 + $0x40] sm:$0xff] }
  0x17   :  { %266 = vmax.xlane.f32.xlu1 %v265_v56  ;;  %263 = vmax.xlane.f32.xlu0 %v262_v57  ;;  %v931_v46 = vsel %vm165_vm0, %v822_v38, -inf  ;;  %v821_v47 = vsub.f32 0.0, %v2697_v0  ;;  %v277_v50 = vsel %vm165_vm0, %v138_v44, -inf  ;;  %v274_v51 = vsel %vm165_vm0, %v137_v45, -inf  ;;  %v2807_v57 = vld [vmem:[%s4656_s0 + $0x38] sm:$0xff]  ;;  %v2907_v45 = vld [vmem:[%s4656_s0 + $0xc8] sm:$0xff] }
  0x18   :  { %v868_v34 = vmax.f32 %v860_v25, %v903_v28  ;;  %v154_v53 = vsel %vm2635_vm2, %v2787_v48, -inf  ;;  %v153_v54 = vsel %vm2615_vm1, %v2792_v49, -inf  ;;  %v824_v56 = vsub.f32 0.0, %v2710_v10  ;;  %v2867_v25 = vld [vmem:[%s4656_s0 + $0x1b8] sm:$0xff] }
  0x19   :  { %v929_v55 = vsel %vm165_vm0, %v821_v47, -inf  ;;  %v325_v59 = vsel %vm165_vm0, %v154_v53, -inf  ;;  %v322_v60 = vsel %vm165_vm0, %v153_v54, -inf  ;;  %v108_v62 = vsel %vm2635_vm2, %v2807_v57, -inf }
  0x1a   :  { %v858_v43 = vmax.f32 %v901_v37, %v868_v34  ;;  %v107_v63 = vsel %vm2615_vm1, %v2812_v58, -inf  ;;  %v935_v0 = vsel %vm165_vm0, %v824_v56, -inf  ;;  %v187_v6 = vsel %vm165_vm0, %v108_v62, -inf  ;;  %v2932_v56 = vld [vmem:[%s4656_s0 + $0x140] sm:$0xff] }
  0x1b   :  { %272 = vmax.xlane.f32.xlu1 %v271_v1  ;;  %269 = vmax.xlane.f32.xlu0 %v268_v2  ;;  %v823_v1 = vsub.f32 0.0, %v2715_v12  ;;  %v2827_v2 = vld [vmem:[%s4656_s0 + $0xb8] sm:$0xff]  ;;  %v184_v7 = vsel %vm165_vm0, %v107_v63, -inf  ;;  %v123_v10 = vsel %vm2615_vm1, %v2832_v5, -inf  ;;  %v794_v34 = vsub.f32 0.0, %v2748_v30 }
  0x1c   :  { %v866_v52 = vmax.f32 %v858_v43, %v931_v46  ;;  %v124_v9 = vsel %vm2635_vm2, %v2827_v2, -inf  ;;  %v232_v17 = vsel %vm165_vm0, %v123_v10, -inf  ;;  %v110_v30 = vsel %vm2635_vm2, %v2887_v35, -inf  ;;  %v2912_v46 = vld [vmem:[%s4656_s0 + $0xc0] sm:$0xff] }
  0x1d   :  { %v933_v12 = vsel %vm165_vm0, %v823_v1, -inf  ;;  %v235_v16 = vsel %vm165_vm0, %v124_v9, -inf  ;;  %v875_v43 = vsel %vm165_vm0, %v794_v34, -inf  ;;  %v793_v44 = vsub.f32 0.0, %v2753_v31  ;;  %v2947_v1 = vld [vmem:[%s4656_s0 + $0x1c8] sm:$0xff] }
  0x1e   :  { %v876_v61 = vmax.f32 %v929_v55, %v866_v52  ;;  %v193_v47 = vsel %vm165_vm0, %v110_v30, -inf  ;;  %v126_v31 = vsel %vm2635_vm2, %v2907_v45, -inf  ;;  %v125_v52 = vsel %vm2615_vm1, %v2912_v46, -inf  ;;  %v2927_v55 = vld [vmem:[%s4656_s0 + $0x148] sm:$0xff]  ;;  %v3012_v30 = vld [vmem:[%s4656_s0 + $0x150] sm:$0xff] }
  0x1f   :  { %314 = vmax.xlane.f32.xlu1 %v313_v13  ;;  %311 = vmax.xlane.f32.xlu0 %v310_v14  ;;  %v778_v13 = vsub.f32 0.0, %v2729_v20  ;;  %v2847_v14 = vld [vmem:[%s4656_s0 + $0x138] sm:$0xff]  ;;  %v139_v20 = vsel %vm2615_vm1, %v2852_v15, -inf  ;;  %v873_v53 = vsel %vm165_vm0, %v793_v44, -inf  ;;  %v810_v54 = vsub.f32 0.0, %v2767_v39 }
  0x20   :  { %v884_v8 = vmax.f32 %v876_v61, %v935_v0  ;;  %v140_v19 = vsel %vm2635_vm2, %v2847_v14, -inf  ;;  %v280_v28 = vsel %vm165_vm0, %v139_v20, -inf  ;;  %v142_v39 = vsel %vm2635_vm2, %v2927_v55, -inf }
  0x21   :  { %v283_v27 = vsel %vm165_vm0, %v140_v19, -inf  ;;  %v141_v62 = vsel %vm2615_vm1, %v2932_v56, -inf  ;;  %v907_v63 = vsel %vm165_vm0, %v810_v54, -inf  ;;  %v809_v0 = vsub.f32 0.0, %v2772_v40 }
  0x22   :  { %v892_v18 = vmax.f32 %v884_v8, %v933_v12  ;;  %v286_v8 = vsel %vm165_vm0, %v141_v62, -inf  ;;  %v158_v40 = vsel %vm2635_vm2, %v2947_v1, -inf  ;;  %v3047_v62 = vld [vmem:[%s4656_s0 + $0x68] sm:$0xff]  ;;  %vm716_vm6 = vcmask 1043459  }
  0x23   :  { %320 = vmax.xlane.f32.xlu1 %v319_v22  ;;  %317 = vmax.xlane.f32.xlu0 %v316_v24  ;;  %v843_v22 = vsel %vm165_vm0, %v778_v13, -inf  ;;  %v777_v24 = vsub.f32 0.0, %v2734_v21  ;;  %v156_v21 = vsel %vm2635_vm2, %v2867_v25, -inf  ;;  %v905_v12 = vsel %vm165_vm0, %v809_v0, -inf }
  0x24   :  { %v900_v29 = vmax.f32 %v892_v18, %v843_v22  ;;  %v331_v37 = vsel %vm165_vm0, %v156_v21, -inf  ;;  %v826_v13 = vsub.f32 0.0, %v2787_v48  ;;  %v337_v18 = vsel %vm165_vm0, %v158_v40, -inf }
  0x25   :  { %vm718_vm7 = vcmask 1044484   ;;  %vm720_vm8 = vcmask 1045509   ;;  %vm722_vm9 = vcmask 1046534   ;;  %vm724_vm10 = vcmask 1047559  }
  0x26   :  { %vm1668_vm11 = vcmask 261312   ;;  %vm1720_vm12 = vcmask 261120   ;;  %vm2263_vm13 = vcmask 9216  }
  0x27   :  { %182 = vmax.xlane.f32.xlu1 %v181_v32  ;;  %179 = vmax.xlane.f32.xlu0 %v178_v33  ;;  %v155_v32 = vsel %vm2615_vm1, %v2872_v26, -inf  ;;  %v841_v33 = vsel %vm165_vm0, %v777_v24, -inf  ;;  %v939_v24 = vsel %vm165_vm0, %v826_v13, -inf  ;;  %v3072_v13 = vld [vmem:[%s4656_s0 + $0xe0] sm:$0xff] }
  0x28   :  { %v328_v38 = vsel %vm165_vm0, %v155_v32, -inf }
  0x2b   :  { %230 = vmax.xlane.f32.xlu1 %v229_v41  ;;  %227 = vmax.xlane.f32.xlu0 %v226_v42  ;;  %v874_v41 = vmax.f32 %v841_v33, %v900_v29  ;;  %v109_v42 = vsel %vm2615_vm1, %v2892_v36, -inf  ;;  %v2992_v29 = vld [vmem:[%s4656_s0 + $0xd0] sm:$0xff] }
  0x2c   :  { %v127_v34 = vsel %vm2615_vm1, %v2992_v29, -inf }
  0x2f   :  { %278 = vmax.xlane.f32.xlu1 %v277_v50  ;;  %275 = vmax.xlane.f32.xlu0 %v274_v51  ;;  %v190_v50 = vsel %vm165_vm0, %v109_v42, -inf  ;;  %v882_v51 = vmax.f32 %v874_v41, %v875_v43  ;;  %v3007_v41 = vld [vmem:[%s4656_s0 + $0x158] sm:$0xff]  ;;  %v244_v43 = vsel %vm165_vm0, %v127_v34, -inf }
  0x31   :  { %v890_v61 = vmax.f32 %v882_v51, %v873_v53  ;;  %v779_v51 = vsub.f32 0.0, %v2812_v58 }
  0x33   :  { %326 = vmax.xlane.f32.xlu1 %v325_v59  ;;  %323 = vmax.xlane.f32.xlu0 %v322_v60  ;;  %v241_v59 = vsel %vm165_vm0, %v126_v31, -inf  ;;  %v238_v60 = vsel %vm165_vm0, %v125_v52, -inf  ;;  %v898_v9 = vmax.f32 %v890_v61, %v907_v63  ;;  %v3027_v31 = vld [vmem:[%s4656_s0 + $0x1d8] sm:$0xff]  ;;  %v3032_v52 = vld [vmem:[%s4656_s0 + $0x1d0] sm:$0xff]  ;;  %v845_v61 = vsel %vm165_vm0, %v779_v51, -inf  ;;  %v3052_v63 = vld [vmem:[%s4656_s0 + $0x60] sm:$0xff] }
  0x34   :  { %v160_v58 = vsel %vm2635_vm2, %v3027_v31, -inf }
  0x35   :  { %v908_v20 = vmax.f32 %v905_v12, %v898_v9  ;;  %v343_v0 = vsel %vm165_vm0, %v160_v58, -inf  ;;  %v113_v9 = vsel %vm2615_vm1, %v3052_v63, -inf  ;;  %v3067_v12 = vld [vmem:[%s4656_s0 + $0xe8] sm:$0xff] }
  0x37   :  { %188 = vmax.xlane.f32.xlu1 %v187_v6  ;;  %185 = vmax.xlane.f32.xlu0 %v184_v7  ;;  %v2952_v6 = vld [vmem:[%s4656_s0 + $0x1c0] sm:$0xff]  ;;  %v289_v7 = vsel %vm165_vm0, %v142_v39, -inf  ;;  %v916_v33 = vmax.f32 %v908_v20, %v939_v24  ;;  %v796_v39 = vsub.f32 0.0, %v2827_v2  ;;  %v114_v2 = vsel %vm2635_vm2, %v3047_v62, -inf }
  0x38   :  { %v157_v10 = vsel %vm2615_vm1, %v2952_v6, -inf  ;;  %v812_v24 = vsub.f32 0.0, %v2847_v14 }
  0x39   :  { %v334_v19 = vsel %vm165_vm0, %v157_v10, -inf  ;;  %v879_v40 = vsel %vm165_vm0, %v796_v39, -inf  ;;  %v795_v10 = vsub.f32 0.0, %v2832_v5  ;;  %v130_v5 = vsel %vm2635_vm2, %v3067_v12, -inf }
  0x3b   :  { %236 = vmax.xlane.f32.xlu1 %v235_v16  ;;  %233 = vmax.xlane.f32.xlu0 %v232_v17  ;;  %v2967_v16 = vld [vmem:[%s4656_s0 + $0x58] sm:$0xff]  ;;  %v2972_v17 = vld [vmem:[%s4656_s0 + $0x50] sm:$0xff] }
  0x3c   :  { %v112_v48 = vsel %vm2635_vm2, %v2967_v16, -inf  ;;  %v111_v22 = vsel %vm2615_vm1, %v2972_v17, -inf }
  0x3d   :  { %v199_v21 = vsel %vm165_vm0, %v112_v48, -inf  ;;  %v196_v32 = vsel %vm165_vm0, %v111_v22, -inf  ;;  %v129_v48 = vsel %vm2615_vm1, %v3072_v13, -inf  ;;  %v877_v22 = vsel %vm165_vm0, %v795_v10, -inf }
  0x3f   :  { %284 = vmax.xlane.f32.xlu1 %v283_v27  ;;  %281 = vmax.xlane.f32.xlu0 %v280_v28  ;;  %v825_v27 = vsub.f32 0.0, %v2792_v49  ;;  %v2987_v28 = vld [vmem:[%s4656_s0 + $0xd8] sm:$0xff] }
  0x40   :  { %v128_v49 = vsel %vm2635_vm2, %v2987_v28, -inf }
  0x41   :  { %v247_v42 = vsel %vm165_vm0, %v128_v49, -inf }
  0x43   :  { %332 = vmax.xlane.f32.xlu1 %v331_v37  ;;  %329 = vmax.xlane.f32.xlu0 %v328_v38  ;;  %v937_v37 = vsel %vm165_vm0, %v825_v27, -inf  ;;  %v780_v38 = vsub.f32 0.0, %v2807_v57  ;;  %v144_v57 = vsel %vm2635_vm2, %v3007_v41, -inf  ;;  %v3087_v27 = vld [vmem:[%s4656_s0 + $0x168] sm:$0xff] }
  0x44   :  { %v924_v44 = vmax.f32 %v916_v33, %v937_v37  ;;  %v295_v53 = vsel %vm165_vm0, %v144_v57, -inf  ;;  %v250_v33 = vsel %vm165_vm0, %v129_v48, -inf  ;;  %v146_v14 = vsel %vm2635_vm2, %v3087_v27, -inf  ;;  %v3172_v48 = vld [vmem:[%s4656_s0 + $0x170] sm:$0xff] }
  0x45   :  { %v911_v37 = vsel %vm165_vm0, %v812_v24, -inf }
  0x47   :  { %194 = vmax.xlane.f32.xlu1 %v193_v47  ;;  %191 = vmax.xlane.f32.xlu0 %v190_v50  ;;  %v143_v47 = vsel %vm2615_vm1, %v3012_v30, -inf  ;;  %v847_v50 = vsel %vm165_vm0, %v780_v38, -inf  ;;  %v811_v38 = vsub.f32 0.0, %v2852_v15 }
  0x48   :  { %v292_v54 = vsel %vm165_vm0, %v143_v47, -inf }
  0x49   :  { %v909_v51 = vsel %vm165_vm0, %v811_v38, -inf }
  0x4b   :  { %242 = vmax.xlane.f32.xlu1 %v241_v59  ;;  %239 = vmax.xlane.f32.xlu0 %v238_v60  ;;  %v932_v59 = vmax.f32 %v924_v44, %v847_v50  ;;  %v159_v60 = vsel %vm2615_vm1, %v3032_v52, -inf  ;;  %v301_v44 = vsel %vm165_vm0, %v146_v14, -inf  ;;  %v781_v14 = vsub.f32 0.0, %v2892_v36 }
  0x4f   :  { %290 = vmax.xlane.f32.xlu1 %v289_v7  ;;  %287 = vmax.xlane.f32.xlu0 %v286_v8  ;;  %v340_v7 = vsel %vm165_vm0, %v159_v60, -inf  ;;  %v906_v8 = vmax.f32 %v845_v61, %v932_v59  ;;  %v3132_v59 = vld [vmem:[%s4656_s0 + $0x70] sm:$0xff] }
  0x50   :  { %v115_v39 = vsel %vm2615_vm1, %v3132_v59, -inf }
  0x51   :  { %v914_v20 = vmax.f32 %v906_v8, %v879_v40  ;;  %v3147_v8 = vld [vmem:[%s4656_s0 + $0xf8] sm:$0xff]  ;;  %v208_v40 = vsel %vm165_vm0, %v115_v39, -inf }
  0x53   :  { %338 = vmax.xlane.f32.xlu1 %v337_v18  ;;  %335 = vmax.xlane.f32.xlu0 %v334_v19  ;;  %v205_v18 = vsel %vm165_vm0, %v114_v2, -inf  ;;  %v202_v19 = vsel %vm165_vm0, %v113_v9, -inf  ;;  %v922_v49 = vmax.f32 %v914_v20, %v877_v22  ;;  %v3152_v2 = vld [vmem:[%s4656_s0 + $0xf0] sm:$0xff]  ;;  %v782_v20 = vsub.f32 0.0, %v2887_v35 }
  0x55   :  { %v930_v47 = vmax.f32 %v922_v49, %v911_v37  ;;  %v851_v49 = vsel %vm165_vm0, %v782_v20, -inf  ;;  %v3192_v37 = vld [vmem:[%s4656_s0 + $0x1f0] sm:$0xff] }
  0x57   :  { %200 = vmax.xlane.f32.xlu1 %v199_v21  ;;  %197 = vmax.xlane.f32.xlu0 %v196_v32  ;;  %v3092_v21 = vld [vmem:[%s4656_s0 + $0x160] sm:$0xff]  ;;  %v253_v32 = vsel %vm165_vm0, %v130_v5, -inf  ;;  %v864_v61 = vmax.f32 %v909_v51, %v930_v47  ;;  %v3167_v5 = vld [vmem:[%s4656_s0 + $0x178] sm:$0xff]  ;;  %v163_v47 = vsel %vm2615_vm1, %v3192_v37, -inf }
  0x58   :  { %v145_v34 = vsel %vm2615_vm1, %v3092_v21, -inf  ;;  %v148_v35 = vsel %vm2635_vm2, %v3167_v5, -inf }
  0x59   :  { %v298_v57 = vsel %vm165_vm0, %v145_v34, -inf  ;;  %v3187_v34 = vld [vmem:[%s4656_s0 + $0x1f8] sm:$0xff]  ;;  %v307_v38 = vsel %vm165_vm0, %v148_v35, -inf }
  0x5a   :  { %v164_v36 = vsel %vm2635_vm2, %v3187_v34, -inf }
  0x5b   :  { %248 = vmax.xlane.f32.xlu1 %v247_v42  ;;  %245 = vmax.xlane.f32.xlu0 %v244_v43  ;;  %v3107_v42 = vld [vmem:[%s4656_s0 + $0x1e8] sm:$0xff]  ;;  %v3112_v43 = vld [vmem:[%s4656_s0 + $0x1e0] sm:$0xff]  ;;  %v355_v51 = vsel %vm165_vm0, %v164_v36, -inf }
  0x5c   :  { %v162_v15 = vsel %vm2635_vm2, %v3107_v42, -inf  ;;  %v161_v50 = vsel %vm2615_vm1, %v3112_v43, -inf }
  0x5d   :  { %v349_v58 = vsel %vm165_vm0, %v162_v15, -inf  ;;  %v346_v60 = vsel %vm165_vm0, %v161_v50, -inf  ;;  %v849_v15 = vsel %vm165_vm0, %v781_v14, -inf  ;;  %v798_v50 = vsub.f32 0.0, %v2907_v45 }
  0x5f   :  { %296 = vmax.xlane.f32.xlu1 %v295_v53  ;;  %293 = vmax.xlane.f32.xlu0 %v292_v54  ;;  %v828_v53 = vsub.f32 0.0, %v2867_v25  ;;  %v3127_v54 = vld [vmem:[%s4656_s0 + $0x78] sm:$0xff] }
  0x60   :  { %v116_v25 = vsel %vm2635_vm2, %v3127_v54, -inf }
  0x61   :  { %v211_v9 = vsel %vm165_vm0, %v116_v25, -inf }
  0x63   :  { %344 = vmax.xlane.f32.xlu1 %v343_v0  ;;  %341 = vmax.xlane.f32.xlu0 %v340_v7  ;;  %v943_v0 = vsel %vm165_vm0, %v828_v53, -inf  ;;  %v827_v7 = vsub.f32 0.0, %v2872_v26  ;;  %v132_v26 = vsel %vm2635_vm2, %v3147_v8, -inf  ;;  %v352_v53 = vsel %vm165_vm0, %v163_v47, -inf }
  0x64   :  { %v872_v10 = vmax.f32 %v864_v61, %v943_v0  ;;  %v259_v22 = vsel %vm165_vm0, %v132_v26, -inf  ;;  %v797_v61 = vsub.f32 0.0, %v2912_v46  ;;  %v814_v0 = vsub.f32 0.0, %v2927_v55 }
  0x65   :  { %v830_v26 = vsub.f32 0.0, %v2947_v1 }
  0x66   :  { %v881_v39 = vsel %vm165_vm0, %v797_v61, -inf  ;;  %v915_v45 = vsel %vm165_vm0, %v814_v0, -inf  ;;  %v815_v0 = vsub.f32 0.0, %v3012_v30 }
  0x67   :  { %206 = vmax.xlane.f32.xlu1 %v205_v18  ;;  %203 = vmax.xlane.f32.xlu0 %v202_v19  ;;  %v131_v18 = vsel %vm2615_vm1, %v3152_v2, -inf  ;;  %v941_v19 = vsel %vm165_vm0, %v827_v7, -inf  ;;  %v947_v46 = vsel %vm165_vm0, %v830_v26, -inf }
  0x68   :  { %v256_v24 = vsel %vm165_vm0, %v131_v18, -inf }
  0x6b   :  { %254 = vmax.xlane.f32.xlu1 %v253_v32  ;;  %251 = vmax.xlane.f32.xlu0 %v250_v33  ;;  %v862_v32 = vmax.f32 %v941_v19, %v872_v10  ;;  %v147_v33 = vsel %vm2615_vm1, %v3172_v48, -inf  ;;  %v829_v19 = vsub.f32 0.0, %v2952_v6 }
  0x6f   :  { %302 = vmax.xlane.f32.xlu1 %v301_v44  ;;  %299 = vmax.xlane.f32.xlu0 %v298_v57  ;;  %v304_v44 = vsel %vm165_vm0, %v147_v33, -inf  ;;  %v870_v57 = vmax.f32 %v862_v32, %v851_v49  ;;  %v784_v32 = vsub.f32 0.0, %v2967_v16  ;;  %v783_v49 = vsub.f32 0.0, %v2972_v17 }
  0x71   :  { %v855_v1 = vsel %vm165_vm0, %v784_v32, -inf  ;;  %v786_v32 = vsub.f32 0.0, %v3047_v62 }
  0x73   :  { %350 = vmax.xlane.f32.xlu1 %v349_v58  ;;  %347 = vmax.xlane.f32.xlu0 %v346_v60  ;;  %v880_v58 = vmax.f32 %v849_v15, %v870_v57  ;;  %v883_v60 = vsel %vm165_vm0, %v798_v50, -inf  ;;  %v800_v57 = vsub.f32 0.0, %v2987_v28  ;;  %v799_v50 = vsub.f32 0.0, %v2992_v29 }
  0x75   :  { %v888_v25 = vmax.f32 %v880_v58, %v883_v60  ;;  %v887_v15 = vsel %vm165_vm0, %v800_v57, -inf  ;;  %v885_v58 = vsel %vm165_vm0, %v799_v50, -inf  ;;  %v816_v60 = vsub.f32 0.0, %v3007_v41 }
  0x77   :  { %212 = vmax.xlane.f32.xlu1 %v211_v9  ;;  %209 = vmax.xlane.f32.xlu0 %v208_v40  ;;  %v896_v7 = vmax.f32 %v888_v25, %v881_v39  ;;  %v813_v9 = vsub.f32 0.0, %v2932_v56  ;;  %v919_v39 = vsel %vm165_vm0, %v816_v60, -inf  ;;  %v801_v60 = vsub.f32 0.0, %v3072_v13 }
  0x79   :  { %v904_v40 = vmax.f32 %v896_v7, %v915_v45  ;;  %v913_v10 = vsel %vm165_vm0, %v813_v9, -inf  ;;  %v917_v9 = vsel %vm165_vm0, %v815_v0, -inf  ;;  %v889_v0 = vsel %vm165_vm0, %v801_v60, -inf }
  0x7b   :  { %260 = vmax.xlane.f32.xlu1 %v259_v22  ;;  %257 = vmax.xlane.f32.xlu0 %v256_v24  ;;  %v878_v18 = vmax.f32 %v913_v10, %v904_v40  ;;  %v945_v24 = vsel %vm165_vm0, %v829_v19, -inf  ;;  %v832_v40 = vsub.f32 0.0, %v3027_v31 }
  0x7d   :  { %v886_v55 = vmax.f32 %v878_v18, %v947_v46  ;;  %v951_v18 = vsel %vm165_vm0, %v832_v40, -inf  ;;  %v831_v46 = vsub.f32 0.0, %v3032_v52 }
  0x7f   :  { %308 = vmax.xlane.f32.xlu1 %v307_v38  ;;  %305 = vmax.xlane.f32.xlu0 %v304_v44  ;;  %v894_v33 = vmax.f32 %v886_v55, %v945_v24  ;;  %v853_v44 = vsel %vm165_vm0, %v783_v49, -inf  ;;  %v949_v24 = vsel %vm165_vm0, %v831_v46, -inf  ;;  %v859_v49 = vsel %vm165_vm0, %v786_v32, -inf }
  0x80   :  { %v788_v32 = vsub.f32 0.0, %v3127_v54 }
  0x81   :  { %v902_v38 = vmax.f32 %v894_v33, %v855_v1 }
  0x83   :  { %356 = vmax.xlane.f32.xlu1 %v355_v51  ;;  %353 = vmax.xlane.f32.xlu0 %v352_v53  ;;  %v912_v47 = vmax.f32 %v853_v44, %v902_v38  ;;  %v785_v38 = vsub.f32 0.0, %v3052_v63 }
  0x85   :  { %v920_v53 = vmax.f32 %v912_v47, %v887_v15  ;;  %v857_v47 = vsel %vm165_vm0, %v785_v38, -inf  ;;  %v802_v15 = vsub.f32 0.0, %v3067_v12  ;;  %v863_v38 = vsel %vm165_vm0, %v788_v32, -inf }
  0x87   :  { %v928_v25 = vmax.f32 %v920_v53, %v885_v58  ;;  %v891_v58 = vsel %vm165_vm0, %v802_v15, -inf }
  0x89   :  { %v936_v45 = vmax.f32 %v928_v25, %v919_v39 }
  0x8b   :  { %v910_v26 = vmax.f32 %v917_v9, %v936_v45  ;;  %v818_v45 = vsub.f32 0.0, %v3087_v27 }
  0x8d   :  { %v918_v55 = vmax.f32 %v910_v26, %v951_v18  ;;  %v923_v26 = vsel %vm165_vm0, %v818_v45, -inf  ;;  %v817_v18 = vsub.f32 0.0, %v3092_v21  ;;  %v803_v45 = vsub.f32 0.0, %v3152_v2 }
  0x8f   :  { %v926_v1 = vmax.f32 %v918_v55, %v949_v24  ;;  %v921_v24 = vsel %vm165_vm0, %v817_v18, -inf  ;;  %v893_v18 = vsel %vm165_vm0, %v803_v45, -inf }
  0x91   :  { %v934_v57 = vmax.f32 %v926_v1, %v859_v49 }
  0x93   :  { %v938_v53 = vmax.f32 %v857_v47, %v934_v57  ;;  %v787_v57 = vsub.f32 0.0, %v3132_v59 }
  0x94   :  { %v3216_v20 = vpop.xlane.xlu1 %173  ;;  %v3218_v22 = vpop.xlane.xlu0 %167 }
  0x95   :  { %v940_v39 = vmax.f32 %v891_v58, %v938_v53  ;;  %v861_v53 = vsel %vm165_vm0, %v787_v57, -inf  ;;  %v804_v58 = vsub.f32 0.0, %v3147_v8 }
  0x97   :  { %v942_v40 = vmax.f32 %v889_v0, %v940_v39  ;;  %v895_v0 = vsel %vm165_vm0, %v804_v58, -inf }
  0x98   :  { %v3222_v56 = vpop.xlane.xlu1 %176  ;;  %v3224_v35 = vpop.xlane.xlu0 %215 }
  0x99   :  { %v944_v55 = vmax.f32 %v923_v26, %v942_v40 }
  0x9b   :  { %v946_v49 = vmax.f32 %v921_v24, %v944_v55  ;;  %v820_v55 = vsub.f32 0.0, %v3167_v5 }
  0x9c   :  { %v3228_v14 = vpop.xlane.xlu1 %218  ;;  %v3230_v6 = vpop.xlane.xlu0 %170 }
  0x9d   :  { %v948_v15 = vmax.f32 %v863_v38, %v946_v49  ;;  %v927_v49 = vsel %vm165_vm0, %v820_v55, -inf  ;;  %v819_v38 = vsub.f32 0.0, %v3172_v48 }
  0x9f   :  { %v950_v39 = vmax.f32 %v861_v53, %v948_v15  ;;  %v833_v53 = vsub.f32 0.0, %v3112_v43  ;;  %v925_v58 = vsel %vm165_vm0, %v819_v38, -inf  ;;  %v3355_v43 = vsub.s32 %v2605_v4, %v2603_v3 }
  0xa0   :  { %v3234_v36 = vpop.xlane.xlu1 %224  ;;  %v3236_v16 = vpop.xlane.xlu0 %221 }
  0xa1   :  { %v952_v26 = vmax.f32 %v895_v0, %v950_v39  ;;  %v426_v0 = vadd.s32 4294967288, %v2605_v4  ;;  %v953_v48 = vsel %vm165_vm0, %v833_v53, -inf }
  0xa3   :  { %v954_v32 = vmax.f32 %v893_v18, %v952_v26  ;;  %v834_v26 = vsub.f32 0.0, %v3107_v42 }
  0xa4   :  { %v3240_v51 = vpop.xlane.xlu1 %266  ;;  %v3242_v17 = vpop.xlane.xlu0 %263 }
  0xa5   :  { %v956_v15 = vmax.f32 %v927_v49, %v954_v32  ;;  %v3358_v32 = vsub.s32 %v426_v0, %v2603_v3  ;;  %v835_v49 = vsub.f32 0.0, %v3192_v37 }
  0xa7   :  { %v958_v45 = vmax.f32 %v925_v58, %v956_v15  ;;  %v955_v15 = vsel %vm165_vm0, %v834_v26, -inf  ;;  %v436_v58 = vrot.slane %v3216_v20, %v3355_v43  ;;  %v440_v4 = vrot.slane %v3222_v56, %v3358_v32 }
  0xa8   :  { %v3246_v61 = vpop.xlane.xlu1 %272  ;;  %v3248_v28 = vpop.xlane.xlu0 %269  ;;  %v957_v0 = vsel %vm165_vm0, %v835_v49, -inf  ;;  %v503_v37 = vrot.slane %v3228_v14, %v3358_v32  ;;  %v512_v26 = vrot.slane %v3234_v36, %v3358_v32  ;;  %v575_v20 = vrot.slane %v3240_v51, %v3358_v32 }
  0xa9   :  { %v960_v38 = vmax.f32 %v953_v48, %v958_v45  ;;  %v430_v45 = vrot.slane %v3230_v6, %v3358_v32  ;;  %v508_v48 = vrot.slane %v3236_v16, %v3355_v43  ;;  %v571_v56 = vrot.slane %v3242_v17, %v3355_v43 }
  0xaa   :  { %v584_v49 = vrot.slane %v3246_v61, %v3358_v32  ;;  %v580_v14 = vrot.slane %v3248_v28, %v3355_v43  ;;  %v425_v6 = vrot.slane %v3218_v22, %v3355_v43  ;;  %v499_v36 = vrot.slane %v3224_v35, %v3355_v43 }
  0xab   :  { %v961_v23 = vmax.f32 %v955_v15, %v960_v38  ;;  %v441_v28 = vsel %vm431_vm3, %v440_v4, %v436_v58 }
  0xac   :  { %v3252_v7 = vpop.xlane.xlu1 %314  ;;  %v3254_v29 = vpop.xlane.xlu0 %311  ;;  %v504_v22 = vsel %vm431_vm3, %v503_v37, %v499_v36  ;;  %v432_v35 = vsel %vm431_vm3, %v430_v45, %v425_v6  ;;  %v585_v3 = vsel %vm431_vm3, %v584_v49, %v580_v14 }
  0xad   :  { %v3403_v15 = vmax.f32 %v957_v0, %v961_v23  ;;  %v647_v61 = vrot.slane %v3252_v7, %v3358_v32  ;;  %v643_v11 = vrot.slane %v3254_v29, %v3355_v43 }
  0xb0   :  { %v3258_v10 = vpop.xlane.xlu1 %320  ;;  %v3260_v41 = vpop.xlane.xlu0 %317 }
  0xb1   :  { %v656_v4 = vrot.slane %v3258_v10, %v3358_v32  ;;  %v652_v58 = vrot.slane %v3260_v41, %v3355_v43 }
  0xb4   :  { %v3264_v19 = vpop.xlane.xlu1 %182  ;;  %v3266_v30 = vpop.xlane.xlu0 %179 }
  0xb5   :  { %v449_v16 = vrot.slane %v3264_v19, %v3358_v32  ;;  %v445_v51 = vrot.slane %v3266_v30, %v3355_v43  ;;  %v513_v19 = vsel %vm431_vm3, %v512_v26, %v508_v48  ;;  %v576_v30 = vsel %vm431_vm3, %v575_v20, %v571_v56 }
  0xb6   :  { %v733_v20 = vsel %vm712_vm4, %v585_v3, %v576_v30 }
  0xb7   :  { %v450_v23 = vsel %vm431_vm3, %v449_v16, %v445_v51 }
  0xb8   :  { %v3270_v33 = vpop.xlane.xlu1 %230  ;;  %v3272_v31 = vpop.xlane.xlu0 %227 }
  0xb9   :  { %v521_v45 = vrot.slane %v3270_v33, %v3358_v32  ;;  %v517_v7 = vrot.slane %v3272_v31, %v3355_v43 }
  0xbb   :  { %v522_v3 = vsel %vm431_vm3, %v521_v45, %v517_v7 }
  0xbc   :  { %v3276_v44 = vpop.xlane.xlu1 %278  ;;  %v3278_v52 = vpop.xlane.xlu0 %275 }
  0xbd   :  { %v593_v29 = vrot.slane %v3276_v44, %v3358_v32  ;;  %v589_v10 = vrot.slane %v3278_v52, %v3355_v43 }
  0xc0   :  { %v3282_v50 = vpop.xlane.xlu1 %326  ;;  %v3284_v62 = vpop.xlane.xlu0 %323 }
  0xc1   :  { %v661_v49 = vrot.slane %v3284_v62, %v3355_v43 }
  0xc4   :  { %v3288_v25 = vpop.xlane.xlu1 %188  ;;  %v3290_v63 = vpop.xlane.xlu0 %185 }
  0xc5   :  { %v458_v41 = vrot.slane %v3288_v25, %v3358_v32  ;;  %v454_v26 = vrot.slane %v3290_v63, %v3355_v43  ;;  %v713_v63 = vsel %vm712_vm4, %v441_v28, %v432_v35 }
  0xc7   :  { %v459_v14 = vsel %vm431_vm3, %v458_v41, %v454_v26 }
  0xc8   :  { %v3294_v9 = vpop.xlane.xlu1 %236  ;;  %v3296_v12 = vpop.xlane.xlu0 %233 }
  0xc9   :  { %v530_v48 = vrot.slane %v3294_v9, %v3358_v32  ;;  %v526_v33 = vrot.slane %v3296_v12, %v3355_v43  ;;  %v726_v9 = vsel %vm712_vm4, %v513_v19, %v504_v22  ;;  %v3449_v12 = vsel %vm431_vm3, %v647_v61, %v643_v11 }
  0xca   :  { %v594_v11 = vsel %vm431_vm3, %v593_v29, %v589_v10 }
  0xcb   :  { %v531_v6 = vsel %vm431_vm3, %v530_v48, %v526_v33 }
  0xcc   :  { %v3300_v46 = vpop.xlane.xlu1 %284  ;;  %v3302_v13 = vpop.xlane.xlu0 %281 }
  0xcd   :  { %v602_v31 = vrot.slane %v3300_v46, %v3358_v32  ;;  %v598_v44 = vrot.slane %v3302_v13, %v3355_v43  ;;  %v3456_v13 = vsel %vm431_vm3, %v656_v4, %v652_v58 }
  0xcf   :  { %v603_v36 = vsel %vm431_vm3, %v602_v31, %v598_v44 }
  0xd0   :  { %v3306_v1 = vpop.xlane.xlu1 %332  ;;  %v3308_v27 = vpop.xlane.xlu0 %329 }
  0xd1   :  { %v670_v4 = vrot.slane %v3308_v27, %v3355_v43 }
  0xd4   :  { %v3312_v47 = vpop.xlane.xlu1 %194  ;;  %v3314_v21 = vpop.xlane.xlu0 %191 }
  0xd5   :  { %v467_v52 = vrot.slane %v3312_v47, %v3358_v32  ;;  %v463_v25 = vrot.slane %v3314_v21, %v3355_v43  ;;  %v715_v47 = vsel %vm714_vm5, %v450_v23, %v713_v63  ;;  %v665_v21 = vrot.slane %v3282_v50, %v3358_v32 }
  0xd7   :  { %v468_v16 = vsel %vm431_vm3, %v467_v52, %v463_v25  ;;  %v3488_v30 = vsel %vm431_vm3, %v665_v21, %v661_v49 }
  0xd8   :  { %v3318_v60 = vpop.xlane.xlu1 %242  ;;  %v3320_v54 = vpop.xlane.xlu0 %239 }
  0xd9   :  { %v539_v62 = vrot.slane %v3318_v60, %v3358_v32  ;;  %v535_v61 = vrot.slane %v3320_v54, %v3355_v43  ;;  %v717_v60 = vsel %vm716_vm6, %v459_v14, %v715_v47 }
  0xda   :  { %v719_v7 = vsel %vm718_vm7, %v468_v16, %v717_v60  ;;  %v740_v60 = vsel %vm712_vm4, %v3456_v13, %v3449_v12 }
  0xdb   :  { %v540_v29 = vsel %vm431_vm3, %v539_v62, %v535_v61 }
  0xdc   :  { %v3324_v40 = vpop.xlane.xlu1 %290  ;;  %v3326_v59 = vpop.xlane.xlu0 %287 }
  0xe0   :  { %v3330_v24 = vpop.xlane.xlu1 %338  ;;  %v3332_v8 = vpop.xlane.xlu0 %335 }
  0xe1   :  { %v683_v14 = vrot.slane %v3330_v24, %v3358_v32 }
  0xe4   :  { %v3336_v57 = vpop.xlane.xlu1 %200  ;;  %v3338_v2 = vpop.xlane.xlu0 %197 }
  0xe5   :  { %v476_v51 = vrot.slane %v3336_v57, %v3358_v32  ;;  %v472_v50 = vrot.slane %v3338_v2, %v3355_v43  ;;  %v727_v57 = vsel %vm714_vm5, %v522_v3, %v726_v9  ;;  %v734_v2 = vsel %vm714_vm5, %v594_v11, %v733_v20 }
  0xe6   :  { %v728_v54 = vsel %vm716_vm6, %v531_v6, %v727_v57 }
  0xe7   :  { %v477_v58 = vsel %vm431_vm3, %v476_v51, %v472_v50  ;;  %v729_v25 = vsel %vm718_vm7, %v540_v29, %v728_v54  ;;  %v4678_v54 = vsub.f32 0.0, %v3187_v34 }
  0xe8   :  { %v3342_v39 = vpop.xlane.xlu1 %248  ;;  %v3344_v5 = vpop.xlane.xlu0 %245  ;;  %v721_v44 = vsel %vm720_vm8, %v477_v58, %v719_v7 }
  0xe9   :  { %v548_v23 = vrot.slane %v3342_v39, %v3358_v32  ;;  %v544_v45 = vrot.slane %v3344_v5, %v3355_v43  ;;  %v611_v39 = vrot.slane %v3324_v40, %v3358_v32  ;;  %v607_v5 = vrot.slane %v3326_v59, %v3355_v43 }
  0xeb   :  { %v549_v52 = vsel %vm431_vm3, %v548_v23, %v544_v45  ;;  %v612_v21 = vsel %vm431_vm3, %v611_v39, %v607_v5 }
  0xec   :  { %v3349_v18 = vpop.xlane.xlu1 %296  ;;  %v3351_v55 = vpop.xlane.xlu0 %293  ;;  %v730_v6 = vsel %vm720_vm8, %v549_v52, %v729_v25 }
  0xf0   :  { %v3362_v42 = vpop.xlane.xlu1 %344  ;;  %v3364_v53 = vpop.xlane.xlu0 %341 }
  0xf1   :  { %v688_v16 = vrot.slane %v3364_v53, %v3355_v43 }
  0xf4   :  { %v3395_v38 = vpop.xlane.xlu1 %206  ;;  %v3397_v17 = vpop.xlane.xlu0 %203 }
  0xf5   :  { %v485_v28 = vrot.slane %v3395_v38, %v3358_v32  ;;  %v481_v22 = vrot.slane %v3397_v17, %v3355_v43  ;;  %v735_v38 = vsel %vm716_vm6, %v603_v36, %v734_v2  ;;  %v674_v17 = vrot.slane %v3306_v1, %v3358_v32 }
  0xf6   :  { %v692_v36 = vrot.slane %v3362_v42, %v3358_v32  ;;  %v736_v2 = vsel %vm718_vm7, %v612_v21, %v735_v38 }
  0xf7   :  { %v486_v10 = vsel %vm431_vm3, %v485_v28, %v481_v22  ;;  %v675_v31 = vsel %vm431_vm3, %v674_v17, %v670_v4  ;;  %v959_v17 = vsel %vm165_vm0, %v4678_v54, -inf  ;;  %v741_v4 = vsel %vm714_vm5, %v3488_v30, %v740_v60  ;;  %v2494_v60 = vld [vmem:[%s4656_s0 + $0x18] sm:$0xff] }
  0xf8   :  { %v3417_v0 = vpop.xlane.xlu1 %254  ;;  %v3419_v37 = vpop.xlane.xlu0 %251  ;;  %v723_v59 = vsel %vm722_vm9, %v486_v10, %v721_v44  ;;  %v693_v58 = vsel %vm431_vm3, %v692_v36, %v688_v16  ;;  %v742_v12 = vsel %vm716_vm6, %v675_v31, %v741_v4 }
  0xf9   :  { %v557_v1 = vrot.slane %v3417_v0, %v3358_v32  ;;  %v553_v27 = vrot.slane %v3419_v37, %v3355_v43  ;;  %v620_v0 = vrot.slane %v3349_v18, %v3358_v32  ;;  %v616_v37 = vrot.slane %v3351_v55, %v3355_v43 }
  0xfb   :  { %v558_v63 = vsel %vm431_vm3, %v557_v1, %v553_v27  ;;  %v963_v27 = vmax.f32 %v959_v17, %v3403_v15 }
  0xfc   :  { %v3451_v46 = vpop.xlane.xlu1 %302  ;;  %v3453_v56 = vpop.xlane.xlu0 %299  ;;  %v731_v50 = vsel %vm722_vm9, %v558_v63, %v730_v6 }
  0xfd   :  { %v629_v9 = vrot.slane %v3451_v46, %v3358_v32  ;;  %v625_v18 = vrot.slane %v3453_v56, %v3355_v43  ;;  %v679_v46 = vrot.slane %v3332_v8, %v3355_v43  ;;  %v621_v56 = vsel %vm431_vm3, %v620_v0, %v616_v37 }
  0xff   :  { %v630_v24 = vsel %vm431_vm3, %v629_v9, %v625_v18 }
 0x100   :  { %v3481_v35 = vpop.xlane.xlu1 %350  ;;  %v3483_v19 = vpop.xlane.xlu0 %347 }
 0x101   :  { %v701_v8 = vrot.slane %v3481_v35, %v3358_v32  ;;  %v697_v62 = vrot.slane %v3483_v19, %v3355_v43  ;;  %v684_v35 = vsel %vm431_vm3, %v683_v14, %v679_v46  ;;  %v737_v19 = vsel %vm720_vm8, %v621_v56, %v736_v2 }
 0x102   :  { %v738_v23 = vsel %vm722_vm9, %v630_v24, %v737_v19  ;;  %v743_v1 = vsel %vm718_vm7, %v684_v35, %v742_v12  ;;  %v2495_v19 = vld [vmem:[%s4656_s0 + $0x10] sm:$0xff] }
 0x103   :  { %v702_v13 = vsel %vm431_vm3, %v701_v8, %v697_v62 }
 0x104   :  { %v213_v41 = vpop.xlane.xlu1 %212  ;;  %v210_v26 = vpop.xlane.xlu0 %209 }
 0x105   :  { %v494_v48 = vrot.slane %v213_v41, %v3358_v32  ;;  %v490_v33 = vrot.slane %v210_v26, %v3355_v43  ;;  %v744_v41 = vsel %vm720_vm8, %v693_v58, %v743_v1  ;;  %v2496_v58 = vld [vmem:[%s4656_s0 + $0x88] sm:$0xff] }
 0x106   :  { %v745_v39 = vsel %vm722_vm9, %v702_v13, %v744_v41 }
 0x107   :  { %v495_v40 = vsel %vm431_vm3, %v494_v48, %v490_v33 }
 0x108   :  { %v261_v20 = vpop.xlane.xlu1 %260  ;;  %v258_v55 = vpop.xlane.xlu0 %257  ;;  %v725_v47 = vsel %vm724_vm10, %v495_v40, %v723_v59 }
 0x109   :  { %v566_v49 = vrot.slane %v261_v20, %v3358_v32  ;;  %v562_v3 = vrot.slane %v258_v55, %v3355_v43  ;;  %v751_v11 = vsel %vm165_vm0, %v725_v47, -inf }
 0x10a   :  { %752 = vmax.xlane.f32.xlu0 %v751_v11 }
 0x10b   :  { %v567_v51 = vsel %vm431_vm3, %v566_v49, %v562_v3 }
 0x10c   :  { %v309_v61 = vpop.xlane.xlu1 %308  ;;  %v306_v28 = vpop.xlane.xlu0 %305  ;;  %v732_v22 = vsel %vm724_vm10, %v567_v51, %v731_v50 }
 0x10d   :  { %v638_v42 = vrot.slane %v309_v61, %v3358_v32  ;;  %v634_v53 = vrot.slane %v306_v28, %v3355_v43  ;;  %v754_v57 = vsel %vm165_vm0, %v732_v22, -inf  ;;  %v2492_v28 = vld [vmem:[%s4656_s0 + $0x8] sm:$0xff] }
 0x10e   :  { %755 = vmax.xlane.f32.xlu1 %v754_v57 }
 0x10f   :  { %v639_v38 = vsel %vm431_vm3, %v638_v42, %v634_v53  ;;  %v2493_v42 = vld [vmem:[%s4656_s0] sm:$0xff] }
 0x110   :  { %v357_v45 = vpop.xlane.xlu1 %356  ;;  %v354_v7 = vpop.xlane.xlu0 %353  ;;  %v739_v29 = vsel %vm724_vm10, %v639_v38, %v738_v23  ;;  %v2497_v23 = vld [vmem:[%s4656_s0 + $0x80] sm:$0xff] }
 0x111   :  { %v710_v34 = vrot.slane %v357_v45, %v3358_v32  ;;  %v706_v10 = vrot.slane %v354_v7, %v3355_v43  ;;  %v757_v30 = vsel %vm165_vm0, %v739_v29, -inf  ;;  %v2498_v7 = vld [vmem:[%s4656_s0 + $0x98] sm:$0xff] }
 0x112   :  { %758 = vmax.xlane.f32.xlu0 %v757_v30 }
 0x113   :  { %v711_v26 = vsel %vm431_vm3, %v710_v34, %v706_v10  ;;  %v2499_v34 = vld [vmem:[%s4656_s0 + $0x90] sm:$0xff] }
 0x114   :  { %v746_v5 = vsel %vm724_vm10, %v711_v26, %v745_v39  ;;  %v2501_v26 = vld [vmem:[%s4656_s0 + $0x100] sm:$0xff] }
 0x115   :  { %v760_v48 = vsel %vm165_vm0, %v746_v5, -inf }
 0x116   :  { %964 = vmax.xlane.f32.xlu0 %v963_v27  ;;  %761 = vmax.xlane.f32.xlu1 %v760_v48  ;;  %v2500_v27 = vld [vmem:[%s4656_s0 + $0x108] sm:$0xff] }
 0x197   :  { %v753_v33 = vpop.xlane.xlu0 %752 }
 0x198   :  { %v1637_v0 = vrot.slane %v753_v33, %v3355_v43 }
 0x19b   :  { %v756_v31 = vpop.xlane.xlu1 %755 }
 0x19c   :  { %v1641_v37 = vrot.slane %v756_v31, %v3358_v32  ;;  %v763_v52 = vmax.f32 %v753_v33, %v756_v31  ;;  %v2502_v33 = vld [vmem:[%s4656_s0 + $0x118] sm:$0xff] }
 0x19e   :  { %v1642_v15 = vsel %vm431_vm3, %v1641_v37, %v1637_v0  ;;  %v2503_v0 = vld [vmem:[%s4656_s0 + $0x110] sm:$0xff] }
 0x19f   :  { %v759_v44 = vpop.xlane.xlu0 %758 }
 0x1a0   :  { %v1646_v25 = vrot.slane %v759_v44, %v3355_v43 }
 0x1a3   :  { %v762_v40 = vpop.xlane.xlu1 %761  ;;  %v965_v59 = vpop.xlane.xlu0 %964 }
 0x1a4   :  { %v764_v63 = vmax.f32 %v759_v44, %v762_v40  ;;  %v1650_v9 = vrot.slane %v762_v40, %v3358_v32  ;;  %v966_v18 = vrot.slane %v965_v59, 4 }
 0x1a6   :  { %v765_v20 = vmax.f32 %v763_v52, %v764_v63  ;;  %v1651_v55 = vsel %vm431_vm3, %v1650_v9, %v1646_v25  ;;  %v967_v47 = vmax.f32 %v965_v59, %v966_v18  ;;  %v2504_v52 = vld [vmem:[%s4656_s0 + $0x188] sm:$0xff]  ;;  %v2505_v59 = vld [vmem:[%s4656_s0 + $0x180] sm:$0xff]  ;;  %v2506_v18 = vld [vmem:[%s4656_s0 + $0x198] sm:$0xff] }
 0x1a7   :  { %v3590_v21 = vsel %vm712_vm4, %v1651_v55, %v1642_v15  ;;  %v2507_v55 = vld [vmem:[%s4656_s0 + $0x190] sm:$0xff] }
 0x1a8   :  { %v766_v49 = vrot.slane %v765_v20, 4  ;;  %v968_v3 = vrot.slane %v967_v47, 2 }
 0x1aa   :  { %v767_v11 = vmax.f32 %v765_v20, %v766_v49  ;;  %v969_v14 = vmax.f32 %v967_v47, %v968_v3 }
 0x1ac   :  { %v768_v46 = vrot.slane %v767_v11, 2  ;;  %v970_v6 = vrot.slane %v969_v14, 1 }
 0x1ae   :  { %v769_v56 = vmax.f32 %v767_v11, %v768_v46  ;;  %v971_v51 = vmax.f32 %v969_v14, %v970_v6  ;;  %v2508_v11 = vld [vmem:[%s4656_s0 + $0x28] sm:$0xff]  ;;  %v2509_v46 = vld [vmem:[%s4656_s0 + $0x20] sm:$0xff] }
 0x1b0   :  { %v770_v36 = vrot.slane %v769_v56, 1 }
 0x1b2   :  { %v771_v16 = vmax.f32 %v769_v56, %v770_v36 }
 0x1b4   :  { %2487 = vpush %v771_v16  ;;  %v2510_v16 = vld [vmem:[%s4656_s0 + $0xa8] sm:$0xff] }
 0x1b5   :  { %2489 = vpush %v971_v51 }
 0x1e5   :  { %s2488_s14 = spop %2487 }
 0x1e6   :  { %s2490_s15 = spop %2489 }
 0x1e7   :  { %s973_s16 = sadd.f32 %s2490_s15, %s2488_s14 }
 0x1e9   :  { %s974_s17 = sand.u32 2147483647, %s973_s16 }
 0x1ea   :  { %v975_v50 = vstv %s974_s17 }
 0x1eb   :  { %v3594_v8 = vsel %vm2615_vm1, %v975_v50, 0.0  ;;  %v3598_v61 = vsel %vm2635_vm2, %v975_v50, 0.0  ;;  %v2511_v50 = vld [vmem:[%s4656_s0 + $0xa0] sm:$0xff] }
 0x1ec   :  { %v979_v22 = vsub.f32 %v2492_v28, %v3598_v61  ;;  %v978_v53 = vsub.f32 %v2493_v42, %v3594_v8  ;;  %v981_v35 = vsub.f32 %v2494_v60, %v3598_v61  ;;  %v980_v54 = vsub.f32 %v2495_v19, %v3594_v8 }
 0x1ed   :  { %v995_v38 = vsub.f32 %v2496_v58, %v3598_v61  ;;  %v994_v12 = vsub.f32 %v2497_v23, %v3594_v8  ;;  %v997_v29 = vsub.f32 %v2498_v7, %v3598_v61  ;;  %v996_v10 = vsub.f32 %v2499_v34, %v3594_v8 }
 0x1ee   :  { %v1045_v57 = vsel %vm165_vm0, %v979_v22, -inf  ;;  %v1042_v2 = vsel %vm165_vm0, %v978_v53, -inf  ;;  %v1051_v17 = vsel %vm165_vm0, %v981_v35, -inf  ;;  %v1048_v4 = vsel %vm165_vm0, %v980_v54, -inf  ;;  %v2512_v22 = vld [vmem:[%s4656_s0 + $0x128] sm:$0xff]  ;;  %v2513_v53 = vld [vmem:[%s4656_s0 + $0x120] sm:$0xff] }
 0x1ef   :  { %1046 = vmax.xlane.f32.xlu0 %v1045_v57  ;;  %1043 = vmax.xlane.f32.xlu1 %v1042_v2  ;;  %v1093_v13 = vsel %vm165_vm0, %v995_v38, -inf  ;;  %v1090_v45 = vsel %vm165_vm0, %v994_v12, -inf  ;;  %v1099_v30 = vsel %vm165_vm0, %v997_v29, -inf  ;;  %v1096_v1 = vsel %vm165_vm0, %v996_v10, -inf  ;;  %v2514_v35 = vld [vmem:[%s4656_s0 + $0x1a8] sm:$0xff]  ;;  %v2515_v54 = vld [vmem:[%s4656_s0 + $0x1a0] sm:$0xff] }
 0x1f0   :  { %v1011_v41 = vsub.f32 %v2500_v27, %v3598_v61  ;;  %v1010_v39 = vsub.f32 %v2501_v26, %v3594_v8  ;;  %v1013_v31 = vsub.f32 %v2502_v33, %v3598_v61  ;;  %v1012_v37 = vsub.f32 %v2503_v0, %v3594_v8  ;;  %v2516_v38 = vld [vmem:[%s4656_s0 + $0x38] sm:$0xff]  ;;  %v2517_v12 = vld [vmem:[%s4656_s0 + $0x30] sm:$0xff] }
 0x1f1   :  { %v1027_v40 = vsub.f32 %v2504_v52, %v3598_v61  ;;  %v1026_v25 = vsub.f32 %v2505_v59, %v3594_v8  ;;  %v1029_v20 = vsub.f32 %v2506_v18, %v3598_v61  ;;  %v1028_v47 = vsub.f32 %v2507_v55, %v3594_v8  ;;  %v2518_v29 = vld [vmem:[%s4656_s0 + $0xb8] sm:$0xff]  ;;  %v2519_v10 = vld [vmem:[%s4656_s0 + $0xb0] sm:$0xff] }
 0x1f2   :  { %v1141_v5 = vsel %vm165_vm0, %v1011_v41, -inf  ;;  %v1138_v48 = vsel %vm165_vm0, %v1010_v39, -inf  ;;  %v1147_v15 = vsel %vm165_vm0, %v1013_v31, -inf  ;;  %v1144_v44 = vsel %vm165_vm0, %v1012_v37, -inf  ;;  %v2520_v41 = vld [vmem:[%s4656_s0 + $0x138] sm:$0xff]  ;;  %v2521_v39 = vld [vmem:[%s4656_s0 + $0x130] sm:$0xff] }
 0x1f3   :  { %1052 = vmax.xlane.f32.xlu0 %v1051_v17  ;;  %1049 = vmax.xlane.f32.xlu1 %v1048_v4  ;;  %v1189_v63 = vsel %vm165_vm0, %v1027_v40, -inf  ;;  %v1186_v9 = vsel %vm165_vm0, %v1026_v25, -inf  ;;  %v1195_v49 = vsel %vm165_vm0, %v1029_v20, -inf  ;;  %v1192_v3 = vsel %vm165_vm0, %v1028_v47, -inf  ;;  %v2522_v31 = vld [vmem:[%s4656_s0 + $0x1b8] sm:$0xff]  ;;  %v2523_v37 = vld [vmem:[%s4656_s0 + $0x1b0] sm:$0xff] }
 0x1f4   :  { %v983_v14 = vsub.f32 %v2508_v11, %v3598_v61  ;;  %v982_v56 = vsub.f32 %v2509_v46, %v3594_v8  ;;  %v999_v51 = vsub.f32 %v2510_v16, %v3598_v61  ;;  %v998_v24 = vsub.f32 %v2511_v50, %v3594_v8  ;;  %v2524_v40 = vld [vmem:[%s4656_s0 + $0x48] sm:$0xff]  ;;  %v2525_v25 = vld [vmem:[%s4656_s0 + $0x40] sm:$0xff] }
 0x1f5   :  { %v1015_v42 = vsub.f32 %v2512_v22, %v3598_v61  ;;  %v1014_v57 = vsub.f32 %v2513_v53, %v3594_v8  ;;  %v1031_v19 = vsub.f32 %v2514_v35, %v3598_v61  ;;  %v1030_v17 = vsub.f32 %v2515_v54, %v3594_v8  ;;  %v2526_v20 = vld [vmem:[%s4656_s0 + $0xc8] sm:$0xff]  ;;  %v2527_v47 = vld [vmem:[%s4656_s0 + $0xc0] sm:$0xff] }
 0x1f6   :  { %v1057_v6 = vsel %vm165_vm0, %v983_v14, -inf  ;;  %v1054_v36 = vsel %vm165_vm0, %v982_v56, -inf  ;;  %v1105_v62 = vsel %vm165_vm0, %v999_v51, -inf  ;;  %v1102_v28 = vsel %vm165_vm0, %v998_v24, -inf  ;;  %v2528_v14 = vld [vmem:[%s4656_s0 + $0x148] sm:$0xff]  ;;  %v2529_v56 = vld [vmem:[%s4656_s0 + $0x140] sm:$0xff] }
 0x1f7   :  { %1094 = vmax.xlane.f32.xlu0 %v1093_v13  ;;  %1091 = vmax.xlane.f32.xlu1 %v1090_v45  ;;  %v1153_v2 = vsel %vm165_vm0, %v1015_v42, -inf  ;;  %v1150_v60 = vsel %vm165_vm0, %v1014_v57, -inf  ;;  %v1201_v4 = vsel %vm165_vm0, %v1031_v19, -inf  ;;  %v1198_v58 = vsel %vm165_vm0, %v1030_v17, -inf  ;;  %v2530_v51 = vld [vmem:[%s4656_s0 + $0x1c8] sm:$0xff]  ;;  %v2531_v24 = vld [vmem:[%s4656_s0 + $0x1c0] sm:$0xff] }
 0x1f8   :  { %v985_v23 = vsub.f32 %v2516_v38, %v3598_v61  ;;  %v984_v13 = vsub.f32 %v2517_v12, %v3594_v8  ;;  %v1001_v34 = vsub.f32 %v2518_v29, %v3598_v61  ;;  %v1017_v26 = vsub.f32 %v2520_v41, %v3598_v61  ;;  %v2532_v42 = vld [vmem:[%s4656_s0 + $0x58] sm:$0xff]  ;;  %v2533_v57 = vld [vmem:[%s4656_s0 + $0x50] sm:$0xff] }
 0x1f9   :  { %v1033_v0 = vsub.f32 %v2522_v31, %v3598_v61  ;;  %v987_v59 = vsub.f32 %v2524_v40, %v3598_v61  ;;  %v1003_v55 = vsub.f32 %v2526_v20, %v3598_v61  ;;  %v1019_v46 = vsub.f32 %v2528_v14, %v3598_v61  ;;  %v2534_v19 = vld [vmem:[%s4656_s0 + $0xd8] sm:$0xff]  ;;  %v2535_v17 = vld [vmem:[%s4656_s0 + $0xd0] sm:$0xff] }
 0x1fa   :  { %v1063_v45 = vsel %vm165_vm0, %v985_v23, -inf  ;;  %v1060_v7 = vsel %vm165_vm0, %v984_v13, -inf  ;;  %v1035_v50 = vsub.f32 %v2530_v51, %v3598_v61  ;;  %v989_v53 = vsub.f32 %v2532_v42, %v3598_v61  ;;  %v2536_v23 = vld [vmem:[%s4656_s0 + $0x158] sm:$0xff]  ;;  %v2537_v13 = vld [vmem:[%s4656_s0 + $0x150] sm:$0xff] }
 0x1fb   :  { %1100 = vmax.xlane.f32.xlu0 %v1099_v30  ;;  %1097 = vmax.xlane.f32.xlu1 %v1096_v1  ;;  %v1000_v30 = vsub.f32 %v2519_v10, %v3594_v8  ;;  %v1111_v1 = vsel %vm165_vm0, %v1001_v34, -inf  ;;  %v1005_v54 = vsub.f32 %v2534_v19, %v3598_v61  ;;  %v1021_v12 = vsub.f32 %v2536_v23, %v3598_v61  ;;  %v2538_v34 = vld [vmem:[%s4656_s0 + $0x1d8] sm:$0xff] }
 0x1fc   :  { %v1037_v10 = vsub.f32 %v2538_v34, %v3598_v61 }
 0x1fd   :  { %v1108_v27 = vsel %vm165_vm0, %v1000_v30, -inf  ;;  %v2539_v30 = vld [vmem:[%s4656_s0 + $0x1d0] sm:$0xff] }
 0x1ff   :  { %1142 = vmax.xlane.f32.xlu0 %v1141_v5  ;;  %1139 = vmax.xlane.f32.xlu1 %v1138_v48  ;;  %v1016_v5 = vsub.f32 %v2521_v39, %v3594_v8  ;;  %v1159_v48 = vsel %vm165_vm0, %v1017_v26, -inf  ;;  %v2540_v26 = vld [vmem:[%s4656_s0 + $0x68] sm:$0xff] }
 0x200   :  { %v991_v39 = vsub.f32 %v2540_v26, %v3598_v61 }
 0x201   :  { %v1156_v33 = vsel %vm165_vm0, %v1016_v5, -inf  ;;  %v2541_v5 = vld [vmem:[%s4656_s0 + $0x60] sm:$0xff] }
 0x203   :  { %1148 = vmax.xlane.f32.xlu0 %v1147_v15  ;;  %1145 = vmax.xlane.f32.xlu1 %v1144_v44  ;;  %v1032_v15 = vsub.f32 %v2523_v37, %v3594_v8  ;;  %v1207_v44 = vsel %vm165_vm0, %v1033_v0, -inf  ;;  %v2542_v0 = vld [vmem:[%s4656_s0 + $0xe8] sm:$0xff] }
 0x204   :  { %v1007_v37 = vsub.f32 %v2542_v0, %v3598_v61 }
 0x205   :  { %v1204_v52 = vsel %vm165_vm0, %v1032_v15, -inf  ;;  %v2543_v15 = vld [vmem:[%s4656_s0 + $0xe0] sm:$0xff] }
 0x207   :  { %1190 = vmax.xlane.f32.xlu0 %v1189_v63  ;;  %1187 = vmax.xlane.f32.xlu1 %v1186_v9  ;;  %v986_v63 = vsub.f32 %v2525_v25, %v3594_v8  ;;  %v1069_v9 = vsel %vm165_vm0, %v987_v59, -inf  ;;  %v2544_v59 = vld [vmem:[%s4656_s0 + $0x168] sm:$0xff] }
 0x208   :  { %v1023_v25 = vsub.f32 %v2544_v59, %v3598_v61 }
 0x209   :  { %v1066_v18 = vsel %vm165_vm0, %v986_v63, -inf  ;;  %v2545_v63 = vld [vmem:[%s4656_s0 + $0x160] sm:$0xff] }
 0x20b   :  { %1196 = vmax.xlane.f32.xlu0 %v1195_v49  ;;  %1193 = vmax.xlane.f32.xlu1 %v1192_v3  ;;  %v1002_v49 = vsub.f32 %v2527_v47, %v3594_v8  ;;  %v1117_v3 = vsel %vm165_vm0, %v1003_v55, -inf  ;;  %v2546_v55 = vld [vmem:[%s4656_s0 + $0x1e8] sm:$0xff] }
 0x20c   :  { %v1039_v47 = vsub.f32 %v2546_v55, %v3598_v61 }
 0x20d   :  { %v1114_v11 = vsel %vm165_vm0, %v1002_v49, -inf  ;;  %v2547_v49 = vld [vmem:[%s4656_s0 + $0x1e0] sm:$0xff] }
 0x20f   :  { %1058 = vmax.xlane.f32.xlu0 %v1057_v6  ;;  %1055 = vmax.xlane.f32.xlu1 %v1054_v36  ;;  %v1018_v6 = vsub.f32 %v2529_v56, %v3594_v8  ;;  %v1165_v36 = vsel %vm165_vm0, %v1019_v46, -inf  ;;  %v2548_v46 = vld [vmem:[%s4656_s0 + $0x78] sm:$0xff] }
 0x210   :  { %v993_v56 = vsub.f32 %v2548_v46, %v3598_v61 }
 0x211   :  { %v1162_v16 = vsel %vm165_vm0, %v1018_v6, -inf  ;;  %v2549_v6 = vld [vmem:[%s4656_s0 + $0x70] sm:$0xff] }
 0x213   :  { %1106 = vmax.xlane.f32.xlu0 %v1105_v62  ;;  %1103 = vmax.xlane.f32.xlu1 %v1102_v28  ;;  %v1034_v62 = vsub.f32 %v2531_v24, %v3594_v8  ;;  %v1213_v28 = vsel %vm165_vm0, %v1035_v50, -inf  ;;  %v2550_v50 = vld [vmem:[%s4656_s0 + $0xf8] sm:$0xff] }
 0x214   :  { %v1009_v24 = vsub.f32 %v2550_v50, %v3598_v61 }
 0x215   :  { %v1210_v22 = vsel %vm165_vm0, %v1034_v62, -inf  ;;  %v2551_v62 = vld [vmem:[%s4656_s0 + $0xf0] sm:$0xff] }
 0x217   :  { %1154 = vmax.xlane.f32.xlu0 %v1153_v2  ;;  %1151 = vmax.xlane.f32.xlu1 %v1150_v60  ;;  %v988_v2 = vsub.f32 %v2533_v57, %v3594_v8  ;;  %v1075_v60 = vsel %vm165_vm0, %v989_v53, -inf  ;;  %v2552_v53 = vld [vmem:[%s4656_s0 + $0x178] sm:$0xff] }
 0x218   :  { %v1025_v57 = vsub.f32 %v2552_v53, %v3598_v61 }
 0x219   :  { %v1072_v35 = vsel %vm165_vm0, %v988_v2, -inf  ;;  %v2553_v2 = vld [vmem:[%s4656_s0 + $0x170] sm:$0xff] }
 0x21b   :  { %1202 = vmax.xlane.f32.xlu0 %v1201_v4  ;;  %1199 = vmax.xlane.f32.xlu1 %v1198_v58  ;;  %v1004_v4 = vsub.f32 %v2535_v17, %v3594_v8  ;;  %v1123_v58 = vsel %vm165_vm0, %v1005_v54, -inf  ;;  %v2554_v54 = vld [vmem:[%s4656_s0 + $0x1f8] sm:$0xff] }
 0x21c   :  { %v1041_v17 = vsub.f32 %v2554_v54, %v3598_v61 }
 0x21d   :  { %v1120_v38 = vsel %vm165_vm0, %v1004_v4, -inf  ;;  %v2555_v4 = vld [vmem:[%s4656_s0 + $0x1f0] sm:$0xff] }
 0x21f   :  { %1064 = vmax.xlane.f32.xlu0 %v1063_v45  ;;  %1061 = vmax.xlane.f32.xlu1 %v1060_v7  ;;  %v1020_v45 = vsub.f32 %v2537_v13, %v3594_v8  ;;  %v1171_v7 = vsel %vm165_vm0, %v1021_v12, -inf }
 0x221   :  { %v1168_v29 = vsel %vm165_vm0, %v1020_v45, -inf }
 0x223   :  { %1112 = vmax.xlane.f32.xlu0 %v1111_v1  ;;  %1109 = vmax.xlane.f32.xlu1 %v1108_v27  ;;  %v1036_v1 = vsub.f32 %v2539_v30, %v3594_v8  ;;  %v1219_v27 = vsel %vm165_vm0, %v1037_v10, -inf }
 0x225   :  { %v1216_v41 = vsel %vm165_vm0, %v1036_v1, -inf }
 0x227   :  { %1160 = vmax.xlane.f32.xlu0 %v1159_v48  ;;  %1157 = vmax.xlane.f32.xlu1 %v1156_v33  ;;  %v990_v48 = vsub.f32 %v2541_v5, %v3594_v8  ;;  %v1081_v33 = vsel %vm165_vm0, %v991_v39, -inf }
 0x229   :  { %v1078_v31 = vsel %vm165_vm0, %v990_v48, -inf }
 0x22b   :  { %1208 = vmax.xlane.f32.xlu0 %v1207_v44  ;;  %1205 = vmax.xlane.f32.xlu1 %v1204_v52  ;;  %v1006_v44 = vsub.f32 %v2543_v15, %v3594_v8  ;;  %v1129_v52 = vsel %vm165_vm0, %v1007_v37, -inf }
 0x22d   :  { %v1126_v40 = vsel %vm165_vm0, %v1006_v44, -inf }
 0x22f   :  { %1070 = vmax.xlane.f32.xlu0 %v1069_v9  ;;  %1067 = vmax.xlane.f32.xlu1 %v1066_v18  ;;  %v1022_v9 = vsub.f32 %v2545_v63, %v3594_v8  ;;  %v1177_v18 = vsel %vm165_vm0, %v1023_v25, -inf }
 0x231   :  { %v1174_v20 = vsel %vm165_vm0, %v1022_v9, -inf }
 0x233   :  { %1118 = vmax.xlane.f32.xlu0 %v1117_v3  ;;  %1115 = vmax.xlane.f32.xlu1 %v1114_v11  ;;  %v1038_v3 = vsub.f32 %v2547_v49, %v3594_v8  ;;  %v1225_v11 = vsel %vm165_vm0, %v1039_v47, -inf }
 0x235   :  { %v1222_v14 = vsel %vm165_vm0, %v1038_v3, -inf }
 0x237   :  { %1166 = vmax.xlane.f32.xlu0 %v1165_v36  ;;  %1163 = vmax.xlane.f32.xlu1 %v1162_v16  ;;  %v992_v36 = vsub.f32 %v2549_v6, %v3594_v8  ;;  %v1087_v16 = vsel %vm165_vm0, %v993_v56, -inf }
 0x239   :  { %v1084_v51 = vsel %vm165_vm0, %v992_v36, -inf }
 0x23b   :  { %1214 = vmax.xlane.f32.xlu0 %v1213_v28  ;;  %1211 = vmax.xlane.f32.xlu1 %v1210_v22  ;;  %v1008_v28 = vsub.f32 %v2551_v62, %v3594_v8  ;;  %v1135_v22 = vsel %vm165_vm0, %v1009_v24, -inf }
 0x23d   :  { %v1132_v42 = vsel %vm165_vm0, %v1008_v28, -inf }
 0x23f   :  { %1076 = vmax.xlane.f32.xlu0 %v1075_v60  ;;  %1073 = vmax.xlane.f32.xlu1 %v1072_v35  ;;  %v1024_v60 = vsub.f32 %v2553_v2, %v3594_v8  ;;  %v1183_v35 = vsel %vm165_vm0, %v1025_v57, -inf }
 0x241   :  { %v1180_v19 = vsel %vm165_vm0, %v1024_v60, -inf }
 0x243   :  { %1124 = vmax.xlane.f32.xlu0 %v1123_v58  ;;  %1121 = vmax.xlane.f32.xlu1 %v1120_v38  ;;  %v1040_v58 = vsub.f32 %v2555_v4, %v3594_v8  ;;  %v1231_v38 = vsel %vm165_vm0, %v1041_v17, -inf }
 0x245   :  { %v1228_v23 = vsel %vm165_vm0, %v1040_v58, -inf }
 0x247   :  { %1172 = vmax.xlane.f32.xlu0 %v1171_v7  ;;  %1169 = vmax.xlane.f32.xlu1 %v1168_v29 }
 0x24b   :  { %1220 = vmax.xlane.f32.xlu0 %v1219_v27  ;;  %1217 = vmax.xlane.f32.xlu1 %v1216_v41 }
 0x24f   :  { %1082 = vmax.xlane.f32.xlu0 %v1081_v33  ;;  %1079 = vmax.xlane.f32.xlu1 %v1078_v31 }
 0x253   :  { %1130 = vmax.xlane.f32.xlu0 %v1129_v52  ;;  %1127 = vmax.xlane.f32.xlu1 %v1126_v40 }
 0x257   :  { %1178 = vmax.xlane.f32.xlu0 %v1177_v18  ;;  %1175 = vmax.xlane.f32.xlu1 %v1174_v20 }
 0x25b   :  { %1226 = vmax.xlane.f32.xlu0 %v1225_v11  ;;  %1223 = vmax.xlane.f32.xlu1 %v1222_v14 }
 0x25f   :  { %1088 = vmax.xlane.f32.xlu0 %v1087_v16  ;;  %1085 = vmax.xlane.f32.xlu1 %v1084_v51 }
 0x263   :  { %1136 = vmax.xlane.f32.xlu0 %v1135_v22  ;;  %1133 = vmax.xlane.f32.xlu1 %v1132_v42 }
 0x267   :  { %1184 = vmax.xlane.f32.xlu0 %v1183_v35  ;;  %1181 = vmax.xlane.f32.xlu1 %v1180_v19 }
 0x26b   :  { %1232 = vmax.xlane.f32.xlu0 %v1231_v38  ;;  %1229 = vmax.xlane.f32.xlu1 %v1228_v23 }
 0x27c   :  { %v1047_v12 = vpop.xlane.xlu0 %1046  ;;  %v1044_v13 = vpop.xlane.xlu1 %1043 }
 0x27d   :  { %v1305_v45 = vrot.slane %v1047_v12, %v3358_v32  ;;  %v1301_v61 = vrot.slane %v1044_v13, %v3355_v43 }
 0x27f   :  { %v1306_v7 = vsel %vm431_vm3, %v1305_v45, %v1301_v61 }
 0x280   :  { %v1053_v29 = vpop.xlane.xlu0 %1052  ;;  %v1050_v34 = vpop.xlane.xlu1 %1049 }
 0x281   :  { %v1314_v8 = vrot.slane %v1053_v29, %v3358_v32  ;;  %v1310_v10 = vrot.slane %v1050_v34, %v3355_v43 }
 0x283   :  { %v1315_v30 = vsel %vm431_vm3, %v1314_v8, %v1310_v10 }
 0x284   :  { %v1586_v1 = vsel %vm712_vm4, %v1315_v30, %v1306_v7  ;;  %v1095_v27 = vpop.xlane.xlu0 %1094  ;;  %v1092_v41 = vpop.xlane.xlu1 %1091 }
 0x285   :  { %v1377_v26 = vrot.slane %v1095_v27, %v3358_v32  ;;  %v1373_v39 = vrot.slane %v1092_v41, %v3355_v43 }
 0x287   :  { %v1378_v5 = vsel %vm431_vm3, %v1377_v26, %v1373_v39 }
 0x288   :  { %v1101_v48 = vpop.xlane.xlu0 %1100  ;;  %v1098_v33 = vpop.xlane.xlu1 %1097 }
 0x289   :  { %v1386_v31 = vrot.slane %v1101_v48, %v3358_v32  ;;  %v1382_v0 = vrot.slane %v1098_v33, %v3355_v43 }
 0x28b   :  { %v1387_v37 = vsel %vm431_vm3, %v1386_v31, %v1382_v0 }
 0x28c   :  { %v1593_v15 = vsel %vm712_vm4, %v1387_v37, %v1378_v5  ;;  %v1143_v44 = vpop.xlane.xlu0 %1142  ;;  %v1140_v52 = vpop.xlane.xlu1 %1139 }
 0x28d   :  { %v1449_v40 = vrot.slane %v1143_v44, %v3358_v32  ;;  %v1445_v59 = vrot.slane %v1140_v52, %v3355_v43 }
 0x28f   :  { %v1450_v25 = vsel %vm431_vm3, %v1449_v40, %v1445_v59 }
 0x290   :  { %v1149_v63 = vpop.xlane.xlu0 %1148  ;;  %v1146_v9 = vpop.xlane.xlu1 %1145 }
 0x291   :  { %v1458_v18 = vrot.slane %v1149_v63, %v3358_v32  ;;  %v1454_v20 = vrot.slane %v1146_v9, %v3355_v43 }
 0x293   :  { %v1459_v55 = vsel %vm431_vm3, %v1458_v18, %v1454_v20 }
 0x294   :  { %v1600_v47 = vsel %vm712_vm4, %v1459_v55, %v1450_v25  ;;  %v1191_v49 = vpop.xlane.xlu0 %1190  ;;  %v1188_v3 = vpop.xlane.xlu1 %1187 }
 0x295   :  { %v1521_v11 = vrot.slane %v1191_v49, %v3358_v32  ;;  %v1517_v14 = vrot.slane %v1188_v3, %v3355_v43 }
 0x297   :  { %v1522_v46 = vsel %vm431_vm3, %v1521_v11, %v1517_v14 }
 0x298   :  { %v1197_v56 = vpop.xlane.xlu0 %1196  ;;  %v1194_v6 = vpop.xlane.xlu1 %1193 }
 0x299   :  { %v1530_v36 = vrot.slane %v1197_v56, %v3358_v32  ;;  %v1526_v16 = vrot.slane %v1194_v6, %v3355_v43 }
 0x29b   :  { %v1531_v51 = vsel %vm431_vm3, %v1530_v36, %v1526_v16 }
 0x29c   :  { %v1607_v50 = vsel %vm712_vm4, %v1531_v51, %v1522_v46  ;;  %v1059_v24 = vpop.xlane.xlu0 %1058  ;;  %v1056_v62 = vpop.xlane.xlu1 %1055 }
 0x29d   :  { %v1323_v28 = vrot.slane %v1059_v24, %v3358_v32  ;;  %v1319_v22 = vrot.slane %v1056_v62, %v3355_v43 }
 0x29f   :  { %v1324_v42 = vsel %vm431_vm3, %v1323_v28, %v1319_v22 }
 0x2a0   :  { %v3952_v53 = vsel %vm714_vm5, %v1324_v42, %v1586_v1  ;;  %v1107_v57 = vpop.xlane.xlu0 %1106  ;;  %v1104_v2 = vpop.xlane.xlu1 %1103 }
 0x2a1   :  { %v1395_v60 = vrot.slane %v1107_v57, %v3358_v32  ;;  %v1391_v35 = vrot.slane %v1104_v2, %v3355_v43 }
 0x2a3   :  { %v1396_v19 = vsel %vm431_vm3, %v1395_v60, %v1391_v35 }
 0x2a4   :  { %v3958_v54 = vsel %vm714_vm5, %v1396_v19, %v1593_v15  ;;  %v1155_v17 = vpop.xlane.xlu0 %1154  ;;  %v1152_v4 = vpop.xlane.xlu1 %1151 }
 0x2a5   :  { %v1467_v58 = vrot.slane %v1155_v17, %v3358_v32  ;;  %v1463_v38 = vrot.slane %v1152_v4, %v3355_v43 }
 0x2a7   :  { %v1468_v23 = vsel %vm431_vm3, %v1467_v58, %v1463_v38 }
 0x2a8   :  { %v1601_v12 = vsel %vm714_vm5, %v1468_v23, %v1600_v47  ;;  %v1203_v13 = vpop.xlane.xlu0 %1202  ;;  %v1200_v45 = vpop.xlane.xlu1 %1199 }
 0x2a9   :  { %v1539_v61 = vrot.slane %v1203_v13, %v3358_v32  ;;  %v1535_v7 = vrot.slane %v1200_v45, %v3355_v43 }
 0x2ab   :  { %v1540_v29 = vsel %vm431_vm3, %v1539_v61, %v1535_v7 }
 0x2ac   :  { %v3968_v34 = vsel %vm714_vm5, %v1540_v29, %v1607_v50  ;;  %v1065_v8 = vpop.xlane.xlu0 %1064  ;;  %v1062_v10 = vpop.xlane.xlu1 %1061 }
 0x2ad   :  { %v1332_v11 = vrot.slane %v1065_v8, %v3358_v32  ;;  %v1328_v14 = vrot.slane %v1062_v10, %v3355_v43 }
 0x2af   :  { %v1333_v62 = vsel %vm431_vm3, %v1332_v11, %v1328_v14 }
 0x2b0   :  { %v1113_v30 = vpop.xlane.xlu0 %1112  ;;  %v1110_v1 = vpop.xlane.xlu1 %1109  ;;  %v1588_v38 = vsel %vm716_vm6, %v1333_v62, %v3952_v53 }
 0x2b1   :  { %v1404_v46 = vrot.slane %v1113_v30, %v3358_v32  ;;  %v1400_v56 = vrot.slane %v1110_v1, %v3355_v43 }
 0x2b3   :  { %v1405_v28 = vsel %vm431_vm3, %v1404_v46, %v1400_v56 }
 0x2b4   :  { %v1161_v27 = vpop.xlane.xlu0 %1160  ;;  %v1158_v41 = vpop.xlane.xlu1 %1157  ;;  %v1595_v23 = vsel %vm716_vm6, %v1405_v28, %v3958_v54 }
 0x2b5   :  { %v1476_v6 = vrot.slane %v1161_v27, %v3358_v32  ;;  %v1472_v36 = vrot.slane %v1158_v41, %v3355_v43 }
 0x2b7   :  { %v1477_v22 = vsel %vm431_vm3, %v1476_v6, %v1472_v36 }
 0x2b8   :  { %v3970_v26 = vpop.xlane.xlu0 %1208  ;;  %v3972_v39 = vpop.xlane.xlu1 %1205  ;;  %v1602_v13 = vsel %vm716_vm6, %v1477_v22, %v1601_v12 }
 0x2b9   :  { %v1548_v45 = vrot.slane %v3970_v26, %v3358_v32  ;;  %v1544_v61 = vrot.slane %v3972_v39, %v3355_v43 }
 0x2bc   :  { %v1071_v5 = vpop.xlane.xlu0 %1070  ;;  %v1068_v48 = vpop.xlane.xlu1 %1067 }
 0x2bd   :  { %v1341_v16 = vrot.slane %v1071_v5, %v3358_v32  ;;  %v1337_v51 = vrot.slane %v1068_v48, %v3355_v43  ;;  %v1549_v48 = vsel %vm431_vm3, %v1548_v45, %v1544_v61 }
 0x2bf   :  { %v1342_v42 = vsel %vm431_vm3, %v1341_v16, %v1337_v51 }
 0x2c0   :  { %v1119_v33 = vpop.xlane.xlu0 %1118  ;;  %v1116_v31 = vpop.xlane.xlu1 %1115  ;;  %v1589_v7 = vsel %vm718_vm7, %v1342_v42, %v1588_v38  ;;  %v1609_v38 = vsel %vm716_vm6, %v1549_v48, %v3968_v34  ;;  %v1690_v48 = vld [vmem:[%s4657_s1 + $0x40] sm:$0xff] }
 0x2c1   :  { %v1413_v60 = vrot.slane %v1119_v33, %v3358_v32  ;;  %v1409_v35 = vrot.slane %v1116_v31, %v3355_v43 }
 0x2c3   :  { %v1414_v53 = vsel %vm431_vm3, %v1413_v60, %v1409_v35 }
 0x2c4   :  { %v3974_v0 = vpop.xlane.xlu0 %1166  ;;  %v3976_v37 = vpop.xlane.xlu1 %1163 }
 0x2c5   :  { %v1485_v41 = vrot.slane %v3974_v0, %v3358_v32  ;;  %v1481_v26 = vrot.slane %v3976_v37, %v3355_v43 }
 0x2c8   :  { %v3978_v15 = vpop.xlane.xlu0 %1214  ;;  %v3980_v44 = vpop.xlane.xlu1 %1211 }
 0x2c9   :  { %v1557_v56 = vrot.slane %v3978_v15, %v3358_v32  ;;  %v1553_v6 = vrot.slane %v3980_v44, %v3355_v43 }
 0x2cb   :  { %v1558_v35 = vsel %vm431_vm3, %v1557_v56, %v1553_v6  ;;  %v1876_v56 = vld [vmem:[%s4658_s3 + $0x30] sm:$0xff]  ;;  %v1879_v6 = vld [vmem:[%s4658_s3 + $0x48] sm:$0xff] }
 0x2cc   :  { %v1077_v52 = vpop.xlane.xlu0 %1076  ;;  %v1074_v40 = vpop.xlane.xlu1 %1073 }
 0x2cd   :  { %v1350_v57 = vrot.slane %v1077_v52, %v3358_v32  ;;  %v1346_v2 = vrot.slane %v1074_v40, %v3355_v43  ;;  %v1596_v40 = vsel %vm718_vm7, %v1414_v53, %v1595_v23 }
 0x2cf   :  { %v1351_v29 = vsel %vm431_vm3, %v1350_v57, %v1346_v2 }
 0x2d0   :  { %v1125_v59 = vpop.xlane.xlu0 %1124  ;;  %v1122_v25 = vpop.xlane.xlu1 %1121  ;;  %v1590_v52 = vsel %vm720_vm8, %v1351_v29, %v1589_v7  ;;  %v1610_v7 = vsel %vm718_vm7, %v1558_v35, %v1609_v38  ;;  %v1888_v35 = vld [vmem:[%s4658_s3 + $0x90] sm:$0xff]  ;;  %v1890_v38 = vld [vmem:[%s4658_s3 + $0xa0] sm:$0xff] }
 0x2d1   :  { %v1422_v8 = vrot.slane %v1125_v59, %v3358_v32  ;;  %v1418_v10 = vrot.slane %v1122_v25, %v3355_v43 }
 0x2d3   :  { %v1423_v0 = vsel %vm431_vm3, %v1422_v8, %v1418_v10 }
 0x2d4   :  { %v3982_v63 = vpop.xlane.xlu0 %1172  ;;  %v3984_v9 = vpop.xlane.xlu1 %1169  ;;  %v1597_v16 = vsel %vm720_vm8, %v1423_v0, %v1596_v40  ;;  %v1685_v40 = vld [vmem:[%s4657_s1 + $0x18] sm:$0xff] }
 0x2d5   :  { %v1494_v33 = vrot.slane %v3982_v63, %v3358_v32  ;;  %v1490_v31 = vrot.slane %v3984_v9, %v3355_v43  ;;  %v1689_v0 = vld [vmem:[%s4657_s1 + $0x38] sm:$0xff] }
 0x2d7   :  { %v1495_v36 = vsel %vm431_vm3, %v1494_v33, %v1490_v31  ;;  %v1694_v31 = vld [vmem:[%s4657_s1 + $0x60] sm:$0xff] }
 0x2d8   :  { %v3986_v18 = vpop.xlane.xlu0 %1220  ;;  %v3988_v20 = vpop.xlane.xlu1 %1217 }
 0x2d9   :  { %v1566_v51 = vrot.slane %v3986_v18, %v3358_v32 }
 0x2dc   :  { %v1083_v55 = vpop.xlane.xlu0 %1082  ;;  %v1080_v47 = vpop.xlane.xlu1 %1079 }
 0x2dd   :  { %v1359_v19 = vrot.slane %v1083_v55, %v3358_v32  ;;  %v1355_v17 = vrot.slane %v1080_v47, %v3355_v43 }
 0x2df   :  { %v1360_v54 = vsel %vm431_vm3, %v1359_v19, %v1355_v17 }
 0x2e0   :  { %v1131_v49 = vpop.xlane.xlu0 %1130  ;;  %v1128_v3 = vpop.xlane.xlu1 %1127  ;;  %v1591_v59 = vsel %vm722_vm9, %v1360_v54, %v1590_v52  ;;  %v2556_v52 = vmov 0.0  }
 0x2e1   :  { %v1431_v12 = vrot.slane %v1131_v49, %v3358_v32  ;;  %v1427_v30 = vrot.slane %v1128_v3, %v3355_v43  ;;  %v1486_v3 = vsel %vm431_vm3, %v1485_v41, %v1481_v26  ;;  %v1686_v41 = vld [vmem:[%s4657_s1 + $0x20] sm:$0xff]  ;;  %1788 = vmatprep.mubr.f32.mxu0 %v2556_v52 }
 0x2e2   :  { %v1603_v18 = vsel %vm718_vm7, %v1486_v3, %v1602_v13  ;;  %v1877_v3 = vld [vmem:[%s4658_s3 + $0x38] sm:$0xff] }
 0x2e3   :  { %v1432_v25 = vsel %vm431_vm3, %v1431_v12, %v1427_v30  ;;  %v1604_v19 = vsel %vm720_vm8, %v1495_v36, %v1603_v18  ;;  %v1881_v36 = vld [vmem:[%s4658_s3 + $0x58] sm:$0xff] }
 0x2e4   :  { %v1179_v50 = vpop.xlane.xlu0 %1178  ;;  %v1176_v24 = vpop.xlane.xlu1 %1175  ;;  %v1598_v62 = vsel %vm722_vm9, %v1432_v25, %v1597_v16  ;;  %v1871_v25 = vld [vmem:[%s4658_s3 + $0x8] sm:$0xff]  ;;  %v1889_v18 = vld [vmem:[%s4658_s3 + $0x98] sm:$0xff] }
 0x2e5   :  { %v1503_v55 = vrot.slane %v1179_v50, %v3358_v32  ;;  %v1499_v47 = vrot.slane %v1176_v24, %v3355_v43  ;;  %v1562_v50 = vrot.slane %v3988_v20, %v3355_v43 }
 0x2e7   :  { %v1504_v15 = vsel %vm431_vm3, %v1503_v55, %v1499_v47  ;;  %v1567_v17 = vsel %vm431_vm3, %v1566_v51, %v1562_v50  ;;  %v1873_v55 = vld [vmem:[%s4658_s3 + $0x18] sm:$0xff]  ;;  %v1870_v47 = vld [vmem:[%s4658_s3] sm:$0xff]  ;;  %v2331_v51 = vpack.c.bf16 %v1881_v36, %v1879_v6 }
 0x2e8   :  { %v4008_v4 = vpop.xlane.xlu0 %1226  ;;  %v4010_v58 = vpop.xlane.xlu1 %1223  ;;  %v1611_v53 = vsel %vm720_vm8, %v1567_v17, %v1610_v7  ;;  %v1878_v50 = vld [vmem:[%s4658_s3 + $0x40] sm:$0xff]  ;;  %v1893_v17 = vld [vmem:[%s4658_s3 + $0xb8] sm:$0xff] }
 0x2e9   :  { %v1575_v44 = vrot.slane %v4008_v4, %v3358_v32  ;;  %v1571_v28 = vrot.slane %v4010_v58, %v3355_v43  ;;  %v1605_v58 = vsel %vm722_vm9, %v1504_v15, %v1604_v19  ;;  %v1885_v15 = vld [vmem:[%s4658_s3 + $0x78] sm:$0xff]  ;;  %v1891_v19 = vld [vmem:[%s4658_s3 + $0xa8] sm:$0xff] }
 0x2eb   :  { %v1576_v23 = vsel %vm431_vm3, %v1575_v44, %v1571_v28 }
 0x2ec   :  { %v1089_v1 = vpop.xlane.xlu0 %1088  ;;  %v1086_v27 = vpop.xlane.xlu1 %1085  ;;  %v1612_v34 = vsel %vm722_vm9, %v1576_v23, %v1611_v53  ;;  %v1892_v23 = vld [vmem:[%s4658_s3 + $0xb0] sm:$0xff]  ;;  %v1901_v53 = vld [vmem:[%s4658_s3 + $0xf8] sm:$0xff] }
 0x2ed   :  { %v1368_v39 = vrot.slane %v1089_v1, %v3358_v32  ;;  %v1364_v5 = vrot.slane %v1086_v27, %v3355_v43  ;;  %v1682_v1 = vld [vmem:[%s4657_s1] sm:$0xff] }
 0x2ee   :  { %v2309_v26 = vpack.c.bf16 %v1686_v41, %v1682_v1  ;;  %v1902_v41 = vld [vmem:[%s4658_s3 + $0x100] sm:$0xff] }
 0x2ef   :  { %v1369_v37 = vsel %vm431_vm3, %v1368_v39, %v1364_v5  ;;  %v1691_v39 = vld [vmem:[%s4657_s1 + $0x48] sm:$0xff] }
 0x2f0   :  { %v1137_v63 = vpop.xlane.xlu0 %1136  ;;  %v1134_v49 = vpop.xlane.xlu1 %1133  ;;  %v1592_v9 = vsel %vm724_vm10, %v1369_v37, %v1591_v59  ;;  %v1695_v5 = vld [vmem:[%s4657_s1 + $0x68] sm:$0xff]  ;;  %v2313_v37 = vpack.c.bf16 %v1694_v31, %v1690_v48  ;;  %v2315_v59 = vpack.c.bf16 %v1689_v0, %v1685_v40  ;;  %v1906_v31 = vld [vmem:[%s4658_s3 + $0x120] sm:$0xff]  ;;  %v1908_v40 = vld [vmem:[%s4658_s3 + $0x130] sm:$0xff] }
 0x2f1   :  { %v1440_v11 = vrot.slane %v1137_v63, %v3358_v32  ;;  %v1436_v14 = vrot.slane %v1134_v49, %v3355_v43  ;;  %v1618_v46 = vsel %vm165_vm0, %v1592_v9, -inf  ;;  %v2311_v33 = vpack.c.bf16 %v1695_v5, %v1691_v39  ;;  %v1872_v49 = vld [vmem:[%s4658_s3 + $0x10] sm:$0xff]  ;;  %v1875_v9 = vld [vmem:[%s4658_s3 + $0x28] sm:$0xff]  ;;  %v1909_v5 = vld [vmem:[%s4658_s3 + $0x138] sm:$0xff] }
 0x2f2   :  { %1619 = vmax.xlane.f32.xlu1 %v1618_v46  ;;  %v2323_v63 = vpack.c.bf16 %v1873_v55, %v1871_v25  ;;  %v1874_v46 = vld [vmem:[%s4658_s3 + $0x20] sm:$0xff]  ;;  %v1907_v39 = vld [vmem:[%s4658_s3 + $0x128] sm:$0xff] }
 0x2f3   :  { %v1441_v24 = vsel %vm431_vm3, %v1440_v11, %v1436_v14  ;;  %v2325_v11 = vpack.c.bf16 %v1872_v49, %v1870_v47  ;;  %v2327_v14 = vpack.c.bf16 %v1877_v3, %v1875_v9  ;;  %v2329_v16 = vpack.c.bf16 %v1876_v56, %v1874_v46  ;;  %v1911_v0 = vld [vmem:[%s4658_s3 + $0x148] sm:$0xff]  ;;  %v1910_v55 = vld [vmem:[%s4658_s3 + $0x140] sm:$0xff]  ;;  %v1912_v47 = vld [vmem:[%s4658_s3 + $0x150] sm:$0xff] }
 0x2f4   :  { %v1185_v22 = vpop.xlane.xlu0 %1184  ;;  %v1182_v42 = vpop.xlane.xlu1 %1181  ;;  %v1599_v57 = vsel %vm724_vm10, %v1441_v24, %v1598_v62  ;;  %2324 = vmatprep.subr.bf16.mxu1 %v2323_v63  ;;  %v1880_v24 = vld [vmem:[%s4658_s3 + $0x50] sm:$0xff]  ;;  %v1883_v62 = vld [vmem:[%s4658_s3 + $0x68] sm:$0xff]  ;;  %v1917_v49 = vld [vmem:[%s4658_s3 + $0x178] sm:$0xff]  ;;  %v2365_v9 = vpack.c.bf16 %v1912_v47, %v1910_v55 }
 0x2f5   :  { %v1512_v20 = vrot.slane %v1185_v22, %v3358_v32  ;;  %v1508_v2 = vrot.slane %v1182_v42, %v3355_v43  ;;  %v1621_v60 = vsel %vm165_vm0, %v1599_v57, -inf  ;;  %2326 = vmatpush1.bf16.msra.mxu1 %v2325_v11  ;;  %v2333_v44 = vpack.c.bf16 %v1880_v24, %v1878_v50  ;;  %v1882_v22 = vld [vmem:[%s4658_s3 + $0x60] sm:$0xff]  ;;  %v1884_v42 = vld [vmem:[%s4658_s3 + $0x70] sm:$0xff]  ;;  %v1887_v57 = vld [vmem:[%s4658_s3 + $0x88] sm:$0xff] }
 0x2f6   :  { %1622 = vmax.xlane.f32.xlu0 %v1621_v60  ;;  %2328 = vmatprep.subr.bf16.mxu1 %v2327_v14  ;;  %v2335_v28 = vpack.c.bf16 %v1885_v15, %v1883_v62  ;;  %v1886_v60 = vld [vmem:[%s4658_s3 + $0x80] sm:$0xff]  ;;  %v1915_v63 = vld [vmem:[%s4658_s3 + $0x168] sm:$0xff]  ;;  %v1916_v14 = vld [vmem:[%s4658_s3 + $0x170] sm:$0xff] }
 0x2f7   :  { %v1513_v4 = vsel %vm431_vm3, %v1512_v20, %v1508_v2  ;;  %v2337_v20 = vpack.c.bf16 %v1884_v42, %v1882_v22  ;;  %v2339_v2 = vpack.c.bf16 %v1889_v18, %v1887_v57  ;;  %v2367_v3 = vpack.c.bf16 %v1917_v49, %v1915_v63  ;;  %v1914_v11 = vld [vmem:[%s4658_s3 + $0x160] sm:$0xff]  ;;  %v1919_v46 = vld [vmem:[%s4658_s3 + $0x188] sm:$0xff]  ;;  %v1921_v56 = vld [vmem:[%s4658_s3 + $0x198] sm:$0xff] }
 0x2f8   :  { %v1233_v13 = vpop.xlane.xlu0 %1232  ;;  %v1230_v45 = vpop.xlane.xlu1 %1229  ;;  %v1606_v61 = vsel %vm724_vm10, %v1513_v4, %v1605_v58  ;;  %v2341_v4 = vpack.c.bf16 %v1888_v35, %v1886_v60  ;;  %v2343_v58 = vpack.c.bf16 %v1893_v17, %v1891_v19  ;;  %v2369_v6 = vpack.c.bf16 %v1916_v14, %v1914_v11  ;;  %v1923_v50 = vld [vmem:[%s4658_s3 + $0x1a8] sm:$0xff]  ;;  %v1925_v24 = vld [vmem:[%s4658_s3 + $0x1b8] sm:$0xff]  ;;  %v4682_v19 = vld [vmem:[#allocation2_spill] sm:$0xff] }
 0x2f9   :  { %v1584_v29 = vrot.slane %v1233_v13, %v3358_v32  ;;  %v1580_v8 = vrot.slane %v1230_v45, %v3355_v43  ;;  %v1624_v10 = vsel %vm165_vm0, %v1606_v61, -inf  ;;  %v1683_v32 = vld [vmem:[%s4657_s1 + $0x8] sm:$0xff]  ;;  %2330 = vmatpush1.bf16.msra.mxu1 %v2329_v16  ;;  %v1897_v45 = vld [vmem:[%s4658_s3 + $0xd8] sm:$0xff]  ;;  %v2345_v61 = vpack.c.bf16 %v1892_v23, %v1890_v38  ;;  %v1918_v16 = vld [vmem:[%s4658_s3 + $0x180] sm:$0xff] }
 0x2fa   :  { %1625 = vmax.xlane.f32.xlu1 %v1624_v10  ;;  %v1687_v43 = vld [vmem:[%s4657_s1 + $0x28] sm:$0xff]  ;;  %2332 = vmatprep.subr.bf16.mxu1 %v2331_v51  ;;  %v2371_v36 = vpack.c.bf16 %v1921_v56, %v1919_v46  ;;  %v1920_v51 = vld [vmem:[%s4658_s3 + $0x190] sm:$0xff]  ;;  %v2375_v15 = vpack.c.bf16 %v1925_v24, %v1923_v50  ;;  %v1929_v42 = vld [vmem:[%s4658_s3 + $0x1d8] sm:$0xff] }
 0x2fb   :  { %v1585_v54 = vsel %vm431_vm3, %v1584_v29, %v1580_v8  ;;  %v2307_v27 = vpack.c.bf16 %v1687_v43, %v1683_v32  ;;  %v1895_v13 = vld [vmem:[%s4658_s3 + $0xc8] sm:$0xff]  ;;  %v1894_v29 = vld [vmem:[%s4658_s3 + $0xc0] sm:$0xff]  ;;  %v1896_v8 = vld [vmem:[%s4658_s3 + $0xd0] sm:$0xff]  ;;  %v2373_v62 = vpack.c.bf16 %v1920_v51, %v1918_v16 }
 0x2fc   :  { %v1613_v12 = vsel %vm724_vm10, %v1585_v54, %v1612_v34  ;;  %v2347_v7 = vpack.c.bf16 %v1897_v45, %v1895_v13  ;;  %v1899_v10 = vld [vmem:[%s4658_s3 + $0xe8] sm:$0xff]  ;;  %v2349_v54 = vpack.c.bf16 %v1896_v8, %v1894_v29  ;;  %v1905_v43 = vld [vmem:[%s4658_s3 + $0x118] sm:$0xff]  ;;  %v1684_v45 = vld [vmem:[%s4657_s1 + $0x10] sm:$0xff] }
 0x2fd   :  { %v1627_v30 = vsel %vm165_vm0, %v1613_v12, -inf  ;;  %2308 = vmatprep.subr.bf16.mxu0 %v2307_v27  ;;  %2334 = vmatpush1.bf16.msra.mxu1 %v2333_v44  ;;  %v2351_v34 = vpack.c.bf16 %v1901_v53, %v1899_v10  ;;  %v1898_v12 = vld [vmem:[%s4658_s3 + $0xe0] sm:$0xff]  ;;  %v1903_v32 = vld [vmem:[%s4658_s3 + $0x108] sm:$0xff]  ;;  %v1693_v10 = vld [vmem:[%s4657_s1 + $0x58] sm:$0xff] }
 0x2fe   :  { %1628 = vmax.xlane.f32.xlu0 %v1627_v30  ;;  %2310 = vmatpush1.bf16.msra.mxu0 %v2309_v26  ;;  %v1900_v30 = vld [vmem:[%s4658_s3 + $0xf0] sm:$0xff]  ;;  %v2355_v27 = vpack.c.bf16 %v1905_v43, %v1903_v32  ;;  %v1922_v44 = vld [vmem:[%s4658_s3 + $0x1a0] sm:$0xff]  ;;  %v1927_v22 = vld [vmem:[%s4658_s3 + $0x1c8] sm:$0xff] }
 0x2ff   :  { %2312 = vmatprep.subr.bf16.mxu0 %v2311_v33  ;;  %2336 = vmatprep.subr.bf16.mxu1 %v2335_v28  ;;  %v2353_v1 = vpack.c.bf16 %v1900_v30, %v1898_v12  ;;  %v1904_v26 = vld [vmem:[%s4658_s3 + $0x110] sm:$0xff]  ;;  %v2359_v33 = vpack.c.bf16 %v1909_v5, %v1907_v39  ;;  %v2379_v18 = vpack.c.bf16 %v1929_v42, %v1927_v22  ;;  %v1697_v53 = vld [vmem:[%s4657_s1 + $0x78] sm:$0xff]  ;;  %v1942_v63 = vld [vmem:[%s4658_s3 + $0x240] sm:$0xff] }
 0x300   :  { %v2357_v48 = vpack.c.bf16 %v1904_v26, %v1902_v41  ;;  %v1924_v28 = vld [vmem:[%s4658_s3 + $0x1b0] sm:$0xff]  ;;  %v2319_v32 = vpack.c.bf16 %v1697_v53, %v1693_v10  ;;  %v1935_v41 = vld [vmem:[%s4658_s3 + $0x208] sm:$0xff]  ;;  %v1937_v26 = vld [vmem:[%s4658_s3 + $0x218] sm:$0xff] }
 0x301   :  { %2338 = vmatpush1.bf16.msra.mxu1 %v2337_v20  ;;  %v2377_v57 = vpack.c.bf16 %v1924_v28, %v1922_v44  ;;  %v4681_v20 = vld [vmem:[#allocation3_spill] sm:$0xff]  ;;  %v1692_v43 = vld [vmem:[%s4657_s1 + $0x50] sm:$0xff]  ;;  %v2387_v5 = vpack.c.bf16 %v1937_v26, %v1935_v41  ;;  %v1946_v46 = vld [vmem:[%s4658_s3 + $0x260] sm:$0xff] }
 0x302   :  { %2314 = vmatpush1.bf16.msra.mxu0 %v2313_v37  ;;  %2340 = vmatprep.subr.bf16.mxu1 %v2339_v2  ;;  %v1913_v37 = vld [vmem:[%s4658_s3 + $0x158] sm:$0xff]  ;;  %v1663_v2 = vadd.s32 4294967272, %v4681_v20  ;;  %v1658_v60 = vadd.s32 4294967280, %v4681_v20  ;;  %v1944_v49 = vld [vmem:[%s4658_s3 + $0x250] sm:$0xff]  ;;  %v1950_v50 = vld [vmem:[%s4658_s3 + $0x280] sm:$0xff] }
 0x303   :  { %2316 = vmatprep.subr.bf16.mxu0 %v2315_v59  ;;  %v2361_v59 = vpack.c.bf16 %v1908_v40, %v1906_v31  ;;  %v2363_v25 = vpack.c.bf16 %v1913_v37, %v1911_v0  ;;  %v1941_v31 = vld [vmem:[%s4658_s3 + $0x238] sm:$0xff]  ;;  %v1938_v0 = vld [vmem:[%s4658_s3 + $0x220] sm:$0xff]  ;;  %v1940_v37 = vld [vmem:[%s4658_s3 + $0x230] sm:$0xff]  ;;  %v2397_v11 = vpack.c.bf16 %v1944_v49, %v1942_v63 }
 0x304   :  { %v1666_v17 = vsub.s32 %v1663_v2, %v4682_v19  ;;  %v2393_v55 = vpack.c.bf16 %v1940_v37, %v1938_v0  ;;  %v1948_v56 = vld [vmem:[%s4658_s3 + $0x270] sm:$0xff]  ;;  %v1954_v22 = vld [vmem:[%s4658_s3 + $0x2a0] sm:$0xff]  ;;  %v1971_v53 = vld [vmem:[%s4658_s3 + $0x328] sm:$0xff] }
 0x305   :  { %2342 = vmatpush1.bf16.msra.mxu1 %v2341_v4  ;;  %v2401_v16 = vpack.c.bf16 %v1948_v56, %v1946_v46  ;;  %v1952_v24 = vld [vmem:[%s4658_s3 + $0x290] sm:$0xff]  ;;  %v1974_v26 = vld [vmem:[%s4658_s3 + $0x340] sm:$0xff]  ;;  %v1985_v0 = vld [vmem:[%s4658_s3 + $0x398] sm:$0xff] }
 0x306   :  { %2344 = vmatprep.subr.bf16.mxu1 %v2343_v58  ;;  %v1661_v58 = vsub.s32 %v1658_v60, %v4682_v19  ;;  %v2405_v44 = vpack.c.bf16 %v1952_v24, %v1950_v50  ;;  %v1956_v42 = vld [vmem:[%s4658_s3 + $0x2b0] sm:$0xff]  ;;  %v1958_v60 = vld [vmem:[%s4658_s3 + $0x2c0] sm:$0xff]  ;;  %v1933_v46 = vld [vmem:[%s4658_s3 + $0x1f8] sm:$0xff] }
 0x307   :  { %v2409_v20 = vpack.c.bf16 %v1956_v42, %v1954_v22  ;;  %v1968_v10 = vld [vmem:[%s4658_s3 + $0x310] sm:$0xff]  ;;  %v1926_v63 = vld [vmem:[%s4658_s3 + $0x1c0] sm:$0xff] }
 0x308   :  { %v1928_v49 = vld [vmem:[%s4658_s3 + $0x1d0] sm:$0xff]  ;;  %v1990_v22 = vld [vmem:[%s4658_s3 + $0x3c0] sm:$0xff] }
 0x309   :  { %2346 = vmatpush1.bf16.msra.mxu1 %v2345_v61  ;;  %v1688_v61 = vld [vmem:[%s4657_s1 + $0x30] sm:$0xff] }
 0x30a   :  { %2348 = vmatprep.subr.bf16.mxu1 %v2347_v7  ;;  %v2317_v12 = vpack.c.bf16 %v1688_v61, %v1684_v45  ;;  %v1967_v45 = vld [vmem:[%s4658_s3 + $0x308] sm:$0xff]  ;;  %v1969_v61 = vld [vmem:[%s4658_s3 + $0x318] sm:$0xff]  ;;  %v1932_v24 = vld [vmem:[%s4658_s3 + $0x1f0] sm:$0xff] }
 0x30b   :  { %v1992_v42 = vld [vmem:[%s4658_s3 + $0x3d0] sm:$0xff] }
 0x30d   :  { %2350 = vmatpush1.bf16.msra.mxu1 %v2349_v54 }
 0x30e   :  { %2352 = vmatprep.subr.bf16.mxu1 %v2351_v34 }
 0x311   :  { %2354 = vmatpush1.bf16.msra.mxu1 %v2353_v1  ;;  %v1696_v1 = vld [vmem:[%s4657_s1 + $0x70] sm:$0xff] }
 0x312   :  { %2356 = vmatprep.subr.bf16.mxu1 %v2355_v27  ;;  %v2321_v39 = vpack.c.bf16 %v1696_v1, %v1692_v43  ;;  %v1975_v43 = vld [vmem:[%s4658_s3 + $0x348] sm:$0xff]  ;;  %v1977_v1 = vld [vmem:[%s4658_s3 + $0x358] sm:$0xff] }
 0x313   :  { %v2427_v41 = vpack.c.bf16 %v1977_v1, %v1975_v43  ;;  %v2173_v43 = vld [vmem:[%s4659_s5 + $0x98] sm:$0xff] }
 0x315   :  { %2358 = vmatpush1.bf16.msra.mxu1 %v2357_v48  ;;  %v1936_v48 = vld [vmem:[%s4658_s3 + $0x210] sm:$0xff] }
 0x316   :  { %2360 = vmatprep.subr.bf16.mxu1 %v2359_v33  ;;  %v1939_v33 = vld [vmem:[%s4658_s3 + $0x228] sm:$0xff] }
 0x317   :  { %v2391_v40 = vpack.c.bf16 %v1941_v31, %v1939_v33  ;;  %v1978_v31 = vld [vmem:[%s4658_s3 + $0x360] sm:$0xff] }
 0x319   :  { %2362 = vmatpush1.bf16.msra.mxu1 %v2361_v59  ;;  %v1943_v59 = vld [vmem:[%s4658_s3 + $0x248] sm:$0xff] }
 0x31a   :  { %2364 = vmatprep.subr.bf16.mxu1 %v2363_v25  ;;  %v1945_v25 = vld [vmem:[%s4658_s3 + $0x258] sm:$0xff] }
 0x31b   :  { %v2395_v47 = vpack.c.bf16 %v1945_v25, %v1943_v59  ;;  %v1982_v25 = vld [vmem:[%s4658_s3 + $0x380] sm:$0xff] }
 0x31d   :  { %2366 = vmatpush1.bf16.msra.mxu1 %v2365_v9  ;;  %v1947_v9 = vld [vmem:[%s4658_s3 + $0x268] sm:$0xff] }
 0x31e   :  { %2368 = vmatprep.subr.bf16.mxu1 %v2367_v3  ;;  %v1949_v3 = vld [vmem:[%s4658_s3 + $0x278] sm:$0xff] }
 0x31f   :  { %v2399_v14 = vpack.c.bf16 %v1949_v3, %v1947_v9  ;;  %v1987_v9 = vld [vmem:[%s4658_s3 + $0x3a8] sm:$0xff]  ;;  %v2381_v3 = vpack.c.bf16 %v1928_v49, %v1926_v63  ;;  %v2176_v63 = vld [vmem:[%s4659_s5 + $0xb0] sm:$0xff]  ;;  %v2177_v49 = vld [vmem:[%s4659_s5 + $0xb8] sm:$0xff] }
 0x321   :  { %2370 = vmatpush1.bf16.msra.mxu1 %v2369_v6  ;;  %v1951_v6 = vld [vmem:[%s4658_s3 + $0x288] sm:$0xff] }
 0x322   :  { %2372 = vmatprep.subr.bf16.mxu1 %v2371_v36  ;;  %v1953_v36 = vld [vmem:[%s4658_s3 + $0x298] sm:$0xff] }
 0x323   :  { %v2403_v51 = vpack.c.bf16 %v1953_v36, %v1951_v6  ;;  %v1986_v36 = vld [vmem:[%s4658_s3 + $0x3a0] sm:$0xff] }
 0x325   :  { %2374 = vmatpush1.bf16.msra.mxu1 %v2373_v62  ;;  %v1955_v62 = vld [vmem:[%s4658_s3 + $0x2a8] sm:$0xff] }
 0x326   :  { %2376 = vmatprep.subr.bf16.mxu1 %v2375_v15  ;;  %v1957_v15 = vld [vmem:[%s4658_s3 + $0x2b8] sm:$0xff] }
 0x327   :  { %v2407_v28 = vpack.c.bf16 %v1957_v15, %v1955_v62  ;;  %v1991_v62 = vld [vmem:[%s4658_s3 + $0x3c8] sm:$0xff]  ;;  %v1993_v15 = vld [vmem:[%s4658_s3 + $0x3d8] sm:$0xff] }
 0x329   :  { %2378 = vmatpush1.bf16.msra.mxu1 %v2377_v57  ;;  %v1959_v57 = vld [vmem:[%s4658_s3 + $0x2c8] sm:$0xff] }
 0x32a   :  { %2380 = vmatprep.subr.bf16.mxu1 %v2379_v18  ;;  %v1961_v18 = vld [vmem:[%s4658_s3 + $0x2d8] sm:$0xff] }
 0x32b   :  { %v2411_v2 = vpack.c.bf16 %v1961_v18, %v1959_v57  ;;  %v2445_v57 = vpack.c.bf16 %v1992_v42, %v1990_v22  ;;  %v1995_v18 = vld [vmem:[%s4658_s3 + $0x3e8] sm:$0xff]  ;;  %v2165_v42 = vld [vmem:[%s4659_s5 + $0x58] sm:$0xff] }
 0x32d   :  { %2382 = vmatpush1.bf16.msra.mxu1 %v2381_v3 }
 0x37f   :  { %v1620_v35 = vpop.xlane.xlu1 %1619 }
 0x380   :  { %v1662_v7 = vrot.slane %v1620_v35, %v1661_v58  ;;  %v1960_v35 = vld [vmem:[%s4658_s3 + $0x2d0] sm:$0xff] }
 0x383   :  { %v1623_v4 = vpop.xlane.xlu0 %1622 }
 0x384   :  { %v1667_v23 = vrot.slane %v1623_v4, %v1666_v17  ;;  %v1965_v4 = vld [vmem:[%s4658_s3 + $0x2f8] sm:$0xff] }
 0x386   :  { %v1669_v54 = vsel %vm1668_vm11, %v1667_v23, %v1662_v7  ;;  %v1962_v23 = vld [vmem:[%s4658_s3 + $0x2e0] sm:$0xff] }
 0x387   :  { %v1626_v38 = vpop.xlane.xlu1 %1625 }
 0x388   :  { %v1673_v29 = vrot.slane %v1626_v38, %v1661_v58  ;;  %v2413_v58 = vpack.c.bf16 %v1960_v35, %v1958_v60  ;;  %v1996_v35 = vld [vmem:[%s4658_s3 + $0x3f0] sm:$0xff] }
 0x38b   :  { %v1629_v13 = vpop.xlane.xlu0 %1628 }
 0x38c   :  { %v1677_v8 = vrot.slane %v1629_v13, %v1666_v17  ;;  %v1963_v17 = vld [vmem:[%s4658_s3 + $0x2e8] sm:$0xff]  ;;  %v1964_v13 = vld [vmem:[%s4658_s3 + $0x2f0] sm:$0xff] }
 0x38d   :  { %v2415_v38 = vpack.c.bf16 %v1965_v4, %v1963_v17  ;;  %v2417_v7 = vpack.c.bf16 %v1964_v13, %v1962_v23  ;;  %v2170_v4 = vld [vmem:[%s4659_s5 + $0x80] sm:$0xff]  ;;  %v1702_v23 = vsub.s32 0, %v4682_v19 }
 0x38e   :  { %v1678_v34 = vsel %vm1668_vm11, %v1677_v8, %v1673_v29  ;;  %v2419_v29 = vpack.c.bf16 %v1969_v61, %v1967_v45  ;;  %v1966_v8 = vld [vmem:[%s4658_s3 + $0x300] sm:$0xff]  ;;  %v1706_v45 = vsub.s32 1, %v4682_v19 }
 0x38f   :  { %v1679_v30 = vsel %vm712_vm4, %v1678_v34, %v1669_v54  ;;  %v1973_v54 = vld [vmem:[%s4658_s3 + $0x338] sm:$0xff]  ;;  %v2421_v34 = vpack.c.bf16 %v1968_v10, %v1966_v8  ;;  %v1698_v13 = vld [vmem:[%s4660_s2] sm:$0xf] }
 0x390   :  { %v1681_v27 = vsel %vm165_vm0, %v3590_v21, %v1679_v30  ;;  %v1934_v21 = vld [vmem:[%s4658_s3 + $0x200] sm:$0xff]  ;;  %v1703_v61 = vrot.slane %v1698_v13, %v1702_v23 }
 0x391   :  { %2269 = vmatmul.mubr.msk.f32.vlgmr.msra.gmra.mrb[0].mxu0 %vm1720_vm12, %v1681_v27  ;;  %v1970_v30 = vld [vmem:[%s4658_s3 + $0x320] sm:$0xff] }
 0x392   :  { %2318 = vmatpush1.bf16.msra.mxu0 %v2317_v12  ;;  %1859 = vmatprep.mubr.f32.mxu0 %v2556_v52  ;;  %v2389_v52 = vpack.c.bf16 %v1936_v48, %v1934_v21  ;;  %v2423_v12 = vpack.c.bf16 %v1973_v54, %v1971_v53  ;;  %v1981_v21 = vld [vmem:[%s4658_s3 + $0x378] sm:$0xff]  ;;  %v1710_v53 = vsub.s32 2, %v4682_v19  ;;  %v2154_v54 = vld [vmem:[%s4659_s5] sm:$0xff] }
 0x393   :  { %2320 = vmatprep.subr.bf16.mxu0 %v2319_v32  ;;  %v1972_v32 = vld [vmem:[%s4658_s3 + $0x330] sm:$0xff] }
 0x396   :  { %2322 = vmatpush1.bf16.msra.mxu0 %v2321_v39  ;;  %v1976_v39 = vld [vmem:[%s4658_s3 + $0x350] sm:$0xff] }
 0x397   :  { %2388 = vmatprep.subr.bf16.mxu0 %v2387_v5  ;;  %v1979_v5 = vld [vmem:[%s4658_s3 + $0x368] sm:$0xff]  ;;  %v2429_v48 = vpack.c.bf16 %v1976_v39, %v1974_v26  ;;  %v1711_v26 = vrot.slane %v1698_v13, %v1710_v53 }
 0x398   :  { %v2431_v33 = vpack.c.bf16 %v1981_v21, %v1979_v5  ;;  %v2156_v5 = vld [vmem:[%s4659_s5 + $0x10] sm:$0xff]  ;;  %v2157_v21 = vld [vmem:[%s4659_s5 + $0x18] sm:$0xff] }
 0x399   :  { %2270 = vmatmul.mubr.msk.f32.vlgmr.msra.gmra.mrb[2].mxu0 %vm1720_vm12, %v1681_v27  ;;  %v2425_v27 = vpack.c.bf16 %v1972_v32, %v1970_v30  ;;  %v1714_v30 = vsub.s32 3, %v4682_v19  ;;  %v2172_v32 = vld [vmem:[%s4659_s5 + $0x90] sm:$0xff] }
 0x39a   :  { %2390 = vmatpush1.bf16.msra.mxu0 %v2389_v52  ;;  %v1980_v52 = vld [vmem:[%s4658_s3 + $0x370] sm:$0xff]  ;;  %v2455_v39 = vpack.c.bf16 %v2173_v43, %v2172_v32 }
 0x39b   :  { %2392 = vmatprep.subr.bf16.mxu0 %v2391_v40  ;;  %v1983_v40 = vld [vmem:[%s4658_s3 + $0x388] sm:$0xff]  ;;  %v2433_v37 = vpack.c.bf16 %v1980_v52, %v1978_v31 }
 0x39c   :  { %v2435_v59 = vpack.c.bf16 %v1985_v0, %v1983_v40  ;;  %v2175_v31 = vld [vmem:[%s4659_s5 + $0xa8] sm:$0xff]  ;;  %v2457_v40 = vpack.c.bf16 %v2157_v21, %v2156_v5 }
 0x39e   :  { %2394 = vmatpush1.bf16.msra.mxu0 %v2393_v55  ;;  %v1984_v55 = vld [vmem:[%s4658_s3 + $0x390] sm:$0xff] }
 0x39f   :  { %2396 = vmatprep.subr.bf16.mxu0 %v2395_v47  ;;  %v2437_v47 = vpack.c.bf16 %v1984_v55, %v1982_v25  ;;  %v2158_v25 = vld [vmem:[%s4659_s5 + $0x20] sm:$0xff]  ;;  %v2159_v55 = vld [vmem:[%s4659_s5 + $0x28] sm:$0xff] }
 0x3a0   :  { %v2461_v3 = vpack.c.bf16 %v2159_v55, %v2158_v25 }
 0x3a2   :  { %2398 = vmatpush1.bf16.msra.mxu0 %v2397_v11  ;;  %v1989_v11 = vld [vmem:[%s4658_s3 + $0x3b8] sm:$0xff] }
 0x3a3   :  { %2400 = vmatprep.subr.bf16.mxu0 %v2399_v14  ;;  %v1931_v14 = vld [vmem:[%s4658_s3 + $0x1e8] sm:$0xff]  ;;  %v2439_v56 = vpack.c.bf16 %v1989_v11, %v1987_v9 }
 0x3a4   :  { %v2383_v6 = vpack.c.bf16 %v1933_v46, %v1931_v14  ;;  %v2463_v14 = vpack.c.bf16 %v2177_v49, %v2176_v63  ;;  %v2160_v46 = vld [vmem:[%s4659_s5 + $0x30] sm:$0xff] }
 0x3a6   :  { %2402 = vmatpush1.bf16.msra.mxu0 %v2401_v16  ;;  %v1988_v16 = vld [vmem:[%s4658_s3 + $0x3b0] sm:$0xff]  ;;  %2384 = vmatprep.subr.bf16.mxu1 %v2383_v6  ;;  %v2178_v6 = vld [vmem:[%s4659_s5 + $0xc0] sm:$0xff] }
 0x3a7   :  { %2404 = vmatprep.subr.bf16.mxu0 %v2403_v51  ;;  %v1930_v51 = vld [vmem:[%s4658_s3 + $0x1e0] sm:$0xff]  ;;  %v2441_v50 = vpack.c.bf16 %v1988_v16, %v1986_v36  ;;  %v2179_v36 = vld [vmem:[%s4659_s5 + $0xc8] sm:$0xff] }
 0x3aa   :  { %2406 = vmatpush1.bf16.msra.mxu0 %v2405_v44  ;;  %v2385_v44 = vpack.c.bf16 %v1932_v24, %v1930_v51  ;;  %v2467_v51 = vpack.c.bf16 %v2179_v36, %v2178_v6  ;;  %v2163_v24 = vld [vmem:[%s4659_s5 + $0x48] sm:$0xff] }
 0x3ab   :  { %2408 = vmatprep.subr.bf16.mxu0 %v2407_v28  ;;  %v2443_v28 = vpack.c.bf16 %v1993_v15, %v1991_v62  ;;  %v2180_v15 = vld [vmem:[%s4659_s5 + $0xd0] sm:$0xff] }
 0x3ac   :  { %2386 = vmatpush1.bf16.msra.mxu1 %v2385_v44  ;;  %v2181_v44 = vld [vmem:[%s4659_s5 + $0xd8] sm:$0xff] }
 0x3ad   :  { %v2471_v22 = vpack.c.bf16 %v2181_v44, %v2180_v15 }
 0x3ae   :  { %2410 = vmatpush1.bf16.msra.mxu0 %v2409_v20  ;;  %v1997_v20 = vld [vmem:[%s4658_s3 + $0x3f8] sm:$0xff] }
 0x3af   :  { %2412 = vmatprep.subr.bf16.mxu0 %v2411_v2  ;;  %v1994_v2 = vld [vmem:[%s4658_s3 + $0x3e0] sm:$0xff]  ;;  %v2447_v60 = vpack.c.bf16 %v1997_v20, %v1995_v18  ;;  %v2183_v18 = vld [vmem:[%s4659_s5 + $0xe8] sm:$0xff] }
 0x3b0   :  { %v2449_v17 = vpack.c.bf16 %v1996_v35, %v1994_v2  ;;  %v2167_v35 = vld [vmem:[%s4659_s5 + $0x68] sm:$0xff] }
 0x3b2   :  { %2414 = vmatpush1.bf16.msra.mxu0 %v2413_v58  ;;  %v2171_v58 = vld [vmem:[%s4659_s5 + $0x88] sm:$0xff] }
 0x3b3   :  { %2416 = vmatprep.subr.bf16.mxu0 %v2415_v38  ;;  %v2451_v38 = vpack.c.bf16 %v2171_v58, %v2170_v4  ;;  %v2184_v4 = vld [vmem:[%s4659_s5 + $0xf0] sm:$0xff]  ;;  %v2185_v58 = vld [vmem:[%s4659_s5 + $0xf8] sm:$0xff] }
 0x3b5   :  { %2452 = vmatprep.subr.bf16.mxu1 %v2451_v38  ;;  %v2168_v38 = vld [vmem:[%s4659_s5 + $0x70] sm:$0xff] }
 0x3b6   :  { %2418 = vmatpush1.bf16.msra.mxu0 %v2417_v7  ;;  %v1707_v7 = vrot.slane %v1698_v13, %v1706_v45 }
 0x3b7   :  { %2420 = vmatprep.subr.bf16.mxu0 %v2419_v29 }
 0x3ba   :  { %2422 = vmatpush1.bf16.msra.mxu0 %v2421_v34  ;;  %v2155_v34 = vld [vmem:[%s4659_s5 + $0x8] sm:$0xff] }
 0x3bb   :  { %2424 = vmatprep.subr.bf16.mxu0 %v2423_v12 }
 0x3be   :  { %2426 = vmatpush1.bf16.msra.mxu0 %v2425_v27  ;;  %v2453_v27 = vpack.c.bf16 %v2155_v34, %v2154_v54 }
 0x3bf   :  { %2428 = vmatprep.subr.bf16.mxu0 %v2427_v41 }
 0x3c2   :  { %2430 = vmatpush1.bf16.msra.mxu0 %v2429_v48  ;;  %v1715_v48 = vrot.slane %v1698_v13, %v1714_v30  ;;  %v2479_v13 = vpack.c.bf16 %v2185_v58, %v2184_v4 }
 0x3c3   :  { %2432 = vmatprep.subr.bf16.mxu0 %v2431_v33  ;;  %v2174_v33 = vld [vmem:[%s4659_s5 + $0xa0] sm:$0xff] }
 0x3c6   :  { %2434 = vmatpush1.bf16.msra.mxu0 %v2433_v37 }
 0x3c7   :  { %2436 = vmatprep.subr.bf16.mxu0 %v2435_v59  ;;  %v2459_v59 = vpack.c.bf16 %v2175_v31, %v2174_v33 }
 0x3ca   :  { %2438 = vmatpush1.bf16.msra.mxu0 %v2437_v47 }
 0x3cb   :  { %2440 = vmatprep.subr.bf16.mxu0 %v2439_v56  ;;  %v2161_v56 = vld [vmem:[%s4659_s5 + $0x38] sm:$0xff] }
 0x3cc   :  { %v2465_v16 = vpack.c.bf16 %v2161_v56, %v2160_v46 }
 0x3ce   :  { %2442 = vmatpush1.bf16.msra.mxu0 %v2441_v50  ;;  %v2162_v50 = vld [vmem:[%s4659_s5 + $0x40] sm:$0xff] }
 0x3cf   :  { %2444 = vmatprep.subr.bf16.mxu0 %v2443_v28  ;;  %v2469_v62 = vpack.c.bf16 %v2163_v24, %v2162_v50  ;;  %v2164_v28 = vld [vmem:[%s4659_s5 + $0x50] sm:$0xff] }
 0x3d0   :  { %v2473_v20 = vpack.c.bf16 %v2165_v42, %v2164_v28 }
 0x3d2   :  { %2446 = vmatpush1.bf16.msra.mxu0 %v2445_v57  ;;  %v2182_v57 = vld [vmem:[%s4659_s5 + $0xe0] sm:$0xff] }
 0x3d3   :  { %2448 = vmatprep.subr.bf16.mxu0 %v2447_v60  ;;  %v2475_v2 = vpack.c.bf16 %v2183_v18, %v2182_v57  ;;  %v2166_v60 = vld [vmem:[%s4659_s5 + $0x60] sm:$0xff] }
 0x3d6   :  { %2450 = vmatpush1.bf16.msra.mxu0 %v2449_v17  ;;  %v2477_v17 = vpack.c.bf16 %v2167_v35, %v2166_v60 }
 0x464   :  { %v1790_v29 = vpop.f32.mrb[0].mxu0 }
 0x465   :  { %v1791_v8 = vadd.f32 %v1790_v29, %v1703_v61  ;;  %v1792_v10 = vpop.f32.mrb[1].mxu0  ;;  %v2169_v61 = vld [vmem:[%s4659_s5 + $0x78] sm:$0xff]  ;;  %v1998_v29 = vld [vmem:[%s4661_s4] sm:$0x3] }
 0x466   :  { %v1793_v12 = vadd.f32 %v1792_v10, %v1707_v7  ;;  %v2481_v7 = vpack.c.bf16 %v2169_v61, %v2168_v38  ;;  %v2003_v53 = vrot.slane %v1998_v29, %v1702_v23  ;;  %v2007_v54 = vrot.slane %v1998_v29, %v1706_v45 }
 0x467   :  { %v1866_v41 = vmax.f32 %v1791_v8, 0.0 }
 0x468   :  { %v1867_v1 = vmax.f32 %v1793_v12, 0.0 }
 0x46a   :  { %2074 = vmatprep.mubr.f32.mxu1 %v1867_v1 }
 0x46b   :  { %2075 = vmatmul.mubr.f32.vlgmr.msra.gmra.mrb[0].mxu1 %v1866_v41 }
 0x46c   :  { %v1861_v52 = vpop.f32.mrb[2].mxu0  ;;  %2454 = vmatpush3.bf16.msra.mxu1 %v2453_v27 }
 0x46d   :  { %v1862_v0 = vadd.f32 %v1861_v52, %v1711_v26  ;;  %v1863_v37 = vpop.f32.mrb[3].mxu0  ;;  %2456 = vmatprep.subr.bf16.mxu1 %v2455_v39  ;;  %v2271_v39 = vld [vmem:[%s4662_s6] ss:$0 sm:$0xff] }
 0x46e   :  { %v1864_v47 = vadd.f32 %v1863_v37, %v1715_v48 }
 0x46f   :  { %v1868_v11 = vmax.f32 %v1862_v0, 0.0 }
 0x470   :  { %v1869_v9 = vmax.f32 %v1864_v47, 0.0  ;;  %2458 = vmatpush3.bf16.msra.mxu1 %v2457_v40 }
 0x471   :  { %2460 = vmatprep.subr.bf16.mxu1 %v2459_v59 }
 0x472   :  { %2145 = vmatprep.mubr.f32.mxu0 %v1869_v9 }
 0x473   :  { %2146 = vmatmul.mubr.f32.vlgmr.msra.gmra.mrb[4].mxu0 %v1868_v11 }
 0x474   :  { %2462 = vmatpush3.bf16.msra.mxu1 %v2461_v3 }
 0x475   :  { %2464 = vmatprep.subr.bf16.mxu1 %v2463_v14 }
 0x478   :  { %2466 = vmatpush3.bf16.msra.mxu1 %v2465_v16 }
 0x479   :  { %2468 = vmatprep.subr.bf16.mxu1 %v2467_v51 }
 0x47c   :  { %2470 = vmatpush3.bf16.msra.mxu1 %v2469_v62 }
 0x47d   :  { %2472 = vmatprep.subr.bf16.mxu1 %v2471_v22 }
 0x480   :  { %2474 = vmatpush3.bf16.msra.mxu1 %v2473_v20 }
 0x481   :  { %2476 = vmatprep.subr.bf16.mxu1 %v2475_v2 }
 0x484   :  { %2478 = vmatpush3.bf16.msra.mxu1 %v2477_v17 }
 0x485   :  { %2480 = vmatprep.subr.bf16.mxu1 %v2479_v13 }
 0x488   :  { %2482 = vmatpush3.bf16.msra.mxu1 %v2481_v7 }
 0x53e   :  { %v2076_v8 = vpop.f32.mrb[0].mxu1 }
 0x53f   :  { %v2078_v10 = vpop.f32.mrb[1].mxu1  ;;  %v2077_v34 = vadd.f32 %v2076_v8, %v2003_v53 }
 0x540   :  { %v2079_v12 = vadd.f32 %v2078_v10, %v2007_v54 }
 0x546   :  { %v2147_v30 = vpop.f32.mrb[4].mxu0 }
 0x547   :  { %v2148_v32 = vadd.f32 %v2147_v30, %v2077_v34  ;;  %v2149_v43 = vpop.f32.mrb[5].mxu0 }
 0x548   :  { %v2150_v1 = vadd.f32 %v2149_v43, %v2079_v12 }
 0x549   :  { %v2152_v41 = vmax.f32 %v2148_v32, 0.0 }
 0x54a   :  { %v2153_v27 = vmax.f32 %v2150_v1, 0.0 }
 0x54c   :  { %2257 = vmatprep.mubr.f32.mxu1 %v2153_v27 }
 0x54d   :  { %2258 = vmatmul.mubr.f32.vlgmr.msra.gmra.mrb[2].mxu1 %v2152_v41 }
 0x620   :  { %v2304_v26 = vpop.f32.mrb[2].mxu1 }
 0x621   :  { %v2305_v5 = vpop.f32.mrb[3].mxu1 }
 0x622   :  { %v2306_v23 = vadd.f32 %v2305_v5, %v2304_v26 }
 0x624   :  { %v2260_v19 = vadd.f32 %v2306_v23, %v2271_v39 }
 0x626   :  { %2264 = vst.msk [vmem:[%s4663_s7] sm:$0x3] %vm2263_vm13, %v2260_v19 }

// kernel: net_forward.3
= control target key start
LH: loop header
LB: loop body
LE: loop exit
PB: predicated region body
PF: predicated region fallthrough
CT: control target
= control target key end

     0   :  { %s5920_s21 = smov 0   ;;  %s8060_s0 = inlined_call_operand.vmem [shape: f32[2,16,16], index: 0, kind: input, shape index: {}]   ;;  %s8061_s1 = inlined_call_operand.vmem [shape: f32[256,16], index: 1, kind: input, shape index: {}]   ;;  %s8062_s2 = inlined_call_operand.vmem [shape: f32[256,1], index: 2, kind: input, shape index: {}]   ;;  %s8063_s3 = inlined_call_operand.vmem [shape: f32[256,256], index: 3, kind: input, shape index: {}]   ;;  %s8064_s4 = inlined_call_operand.vmem [shape: f32[256,1], index: 4, kind: input, shape index: {}]   ;;  %s8065_s5 = inlined_call_operand.vmem [shape: f32[256,16], index: 5, kind: input, shape index: {}]   ;;  %s8066_s6 = inlined_call_operand.vmem [shape: f32[256,1], index: 6, kind: input, shape index: {}]   ;;  %s8067_s7 = inlined_call_operand.vmem [shape: f32[256,256], index: 7, kind: input, shape index: {}]   ;;  %s8068_s8 = inlined_call_operand.vmem [shape: f32[256,1], index: 8, kind: input, shape index: {}]   ;;  %s8069_s9 = inlined_call_operand.vmem [shape: f32[256,16], index: 9, kind: input, shape index: {}]   ;;  %s8070_s10 = inlined_call_operand.vmem [shape: f32[256,256], index: 10, kind: input, shape index: {}]   ;;  %s8071_s11 = inlined_call_operand.vmem [shape: f32[256,1], index: 11, kind: input, shape index: {}]   ;;  %s8072_s12 = inlined_call_operand.vmem [shape: f32[2,256,16], index: 12, kind: output, shape index: {}]  }
   0x1 LB: > { %s5038_s22 = sadd.s32 4294967295, %s5851_s21   ;;  %p5042_p0 = scmp.ge.s32.totalorder %s5851_s21, 1  ;;  %s5851_s21 = sphi %s5920_s21, %s22_s21  }
   0x2   : > { %p362_p1 = scmp.lt.s32.totalorder %s5851_s21, 3 }
   0x4   : > { %p363_p2 = pnand %p5042_p0, %p362_p1 }
   0x5   : > { %v1573_v0 = vld [vmem:[%s8066_s6 + $0x10] sm:$0xff] (!%p363_p2)  ;;  %v1571_v1 = vld [vmem:[%s8066_s6] sm:$0xff] (!%p363_p2)  ;;  %p404_p3 = scmp.lt.s32.totalorder (!%p363_p2), %s5038_s22, 1  ;;  %vm640_vm0 = vcmask (!%p363_p2), 130048   ;;  %v5853_v2 = vmov (!%p363_p2), 0   ;;  %v1574_v5 = vld [vmem:[%s8066_s6 + $0x18] sm:$0xff] (!%p363_p2) }
   0x6   : > { %366 = sbr.rel (%p363_p2) target bundleno = 1226 (0x4ca), region = 68  ;;  %5844 = vset.pattern.permute.xlu1 (!%p363_p2), %v5853_v2  ;;  %5843 = vset.pattern.permute.xlu0 (!%p363_p2), %v5853_v2  ;;  %v416_v3 = vld [vmem:[%s8061_s1] sm:$0xff] (!%p363_p2)  ;;  %v1572_v6 = vld [vmem:[%s8066_s6 + $0x8] sm:$0xff] (!%p363_p2)  ;;  %v418_v16 = vld [vmem:[%s8061_s1 + $0x10] sm:$0xff] (!%p363_p2) }
   0x7   : > { %1615 = vperm.xlu1 (!%p363_p2), %5844, %v1573_v0   ;;  %1605 = vperm.xlu0 (!%p363_p2), %5843, %v1571_v1   ;;  %v1539_v4 = vld [vmem:[%s8065_s5] sm:$0xff] (!%p363_p2)  ;;  %v449_v10 = vld [vmem:[%s8062_s2 + $0x8] sm:$0xff] (!%p363_p2)  ;;  %v1541_v17 = vld [vmem:[%s8065_s5 + $0x10] sm:$0xff] (!%p363_p2) }
   0x8   : > { %5349 = vmatprep.mubr.msk.f32.mxu1 (!%p363_p2), %vm640_vm0, %v416_v3  ;;  %5401 = vmatprep.mubr.msk.f32.mxu0 (!%p363_p2), %vm640_vm0, %v1539_v4  ;;  %v448_v11 = vld [vmem:[%s8062_s2] sm:$0xff] (!%p363_p2)  ;;  %v417_v12 = vld [vmem:[%s8061_s1 + $0x8] sm:$0xff] (!%p363_p2)  ;;  %v419_v18 = vld [vmem:[%s8061_s1 + $0x18] sm:$0xff] (!%p363_p2) }
   0x9   : > { %v1540_v13 = vld [vmem:[%s8065_s5 + $0x8] sm:$0xff] (!%p363_p2)  ;;  %v1575_v15 = vld [vmem:[%s8066_s6 + $0x20] sm:$0xff] (!%p363_p2)  ;;  %v1542_v19 = vld [vmem:[%s8065_s5 + $0x18] sm:$0xff] (!%p363_p2) }
   0xa   : > { %v1576_v14 = vld [vmem:[%s8066_s6 + $0x28] sm:$0xff] (!%p363_p2)  ;;  %v451_v20 = vld [vmem:[%s8062_s2 + $0x18] sm:$0xff] (!%p363_p2)  ;;  %v450_v21 = vld [vmem:[%s8062_s2 + $0x10] sm:$0xff] (!%p363_p2) }
   0xb   : > { %1620 = vperm.xlu1 (!%p363_p2), %5844, %v1574_v5   ;;  %1610 = vperm.xlu0 (!%p363_p2), %5843, %v1572_v6   ;;  %v420_v22 = vld [vmem:[%s8061_s1 + $0x20] sm:$0xff] (!%p363_p2)  ;;  %v421_v24 = vld [vmem:[%s8061_s1 + $0x28] sm:$0xff] (!%p363_p2)  ;;  %v1578_v26 = vld [vmem:[%s8066_s6 + $0x38] sm:$0xff] (!%p363_p2) }
   0xc   : > { %v1543_v23 = vld [vmem:[%s8065_s5 + $0x20] sm:$0xff] (!%p363_p2)  ;;  %v1544_v25 = vld [vmem:[%s8065_s5 + $0x28] sm:$0xff] (!%p363_p2)  ;;  %v1577_v27 = vld [vmem:[%s8066_s6 + $0x30] sm:$0xff] (!%p363_p2) }
   0xd   : > { %s8074_s22 = smov (!%p404_p3, %s5038_s22), 1  ;;  %v422_v28 = vld [vmem:[%s8061_s1 + $0x30] sm:$0xff]  ;;  %v423_v30 = vld [vmem:[%s8061_s1 + $0x38] sm:$0xff]  ;;  %v453_v32 = vld [vmem:[%s8062_s2 + $0x28] sm:$0xff] }
   0xe   : > { %s5177_s17 = sshll.u32 %s8074_s22, 4  ;;  %v1545_v29 = vld [vmem:[%s8065_s5 + $0x30] sm:$0xff]  ;;  %v1546_v31 = vld [vmem:[%s8065_s5 + $0x38] sm:$0xff]  ;;  %v452_v33 = vld [vmem:[%s8062_s2 + $0x20] sm:$0xff]  ;;  %s5178_s27 = sshll.u32 %s8074_s22, 8 }
   0xf   : > { %s408_s20 = scalar_lea.vmem %s8060_s0, %s5177_s17  ;;  %487 = vperm.xlu1 %5844, %v449_v10   ;;  %482 = vperm.xlu0 %5843, %v448_v11   ;;  %v424_v34 = vld [vmem:[%s8061_s1 + $0x40] sm:$0xff]  ;;  %v425_v36 = vld [vmem:[%s8061_s1 + $0x48] sm:$0xff]  ;;  %v426_v40 = vld [vmem:[%s8061_s1 + $0x50] sm:$0xff]  ;;  %s7960_s30 = scalar_lea.vmem %s8072_s12, %s5178_s27 }
  0x10   : > { %v414_v7 = vld [vmem:[%s408_s20] sm:$0xff]  ;;  %v415_v8 = vld [vmem:[%s408_s20 + $0x8] sm:$0xff]  ;;  %v1549_v41 = vld [vmem:[%s8065_s5 + $0x50] sm:$0xff] }
  0x11   : > { %v5954_v9 = vpack.c.bf16 %v415_v8, %v414_v7  ;;  %v1547_v35 = vld [vmem:[%s8065_s5 + $0x40] sm:$0xff]  ;;  %v1548_v37 = vld [vmem:[%s8065_s5 + $0x48] sm:$0xff]  ;;  %v427_v42 = vld [vmem:[%s8061_s1 + $0x58] sm:$0xff] }
  0x12   : > { %v1580_v38 = vld [vmem:[%s8066_s6 + $0x48] sm:$0xff]  ;;  %v1579_v39 = vld [vmem:[%s8066_s6 + $0x40] sm:$0xff]  ;;  %v1550_v43 = vld [vmem:[%s8065_s5 + $0x58] sm:$0xff] }
  0x13   : > { %5614 = vmatprep.subr.bf16.mxu1 %v5954_v9  ;;  %5666 = vmatprep.subr.bf16.mxu0 %v5954_v9  ;;  %v455_v44 = vld [vmem:[%s8062_s2 + $0x38] sm:$0xff]  ;;  %v454_v45 = vld [vmem:[%s8062_s2 + $0x30] sm:$0xff]  ;;  %v428_v46 = vld [vmem:[%s8061_s1 + $0x60] sm:$0xff] }
  0x14   : > { %5616 = vmatpush3.bf16.msra.mxu1 %v5954_v9  ;;  %5668 = vmatpush3.bf16.msra.mxu0 %v5954_v9  ;;  %v1551_v47 = vld [vmem:[%s8065_s5 + $0x60] sm:$0xff]  ;;  %v429_v48 = vld [vmem:[%s8061_s1 + $0x68] sm:$0xff]  ;;  %v1582_v50 = vld [vmem:[%s8066_s6 + $0x58] sm:$0xff] }
  0x15   : > { %1630 = vperm.xlu1 %5844, %v1576_v14   ;;  %1625 = vperm.xlu0 %5843, %v1575_v15   ;;  %v1552_v49 = vld [vmem:[%s8065_s5 + $0x68] sm:$0xff]  ;;  %v1581_v51 = vld [vmem:[%s8066_s6 + $0x50] sm:$0xff]  ;;  %v431_v54 = vld [vmem:[%s8061_s1 + $0x78] sm:$0xff] }
  0x16   : > { %v430_v52 = vld [vmem:[%s8061_s1 + $0x70] sm:$0xff]  ;;  %v1554_v55 = vld [vmem:[%s8065_s5 + $0x78] sm:$0xff]  ;;  %v457_v56 = vld [vmem:[%s8062_s2 + $0x48] sm:$0xff] }
  0x17   : > { %5350 = vmatmul.mubr.msk.f32.vlgmr.msra.gmra.mrb[0].mxu1 %vm640_vm0, %v417_v12  ;;  %5402 = vmatmul.mubr.msk.f32.vlgmr.msra.gmra.mrb[0].mxu0 %vm640_vm0, %v1540_v13  ;;  %v1553_v53 = vld [vmem:[%s8065_s5 + $0x70] sm:$0xff]  ;;  %v456_v57 = vld [vmem:[%s8062_s2 + $0x40] sm:$0xff]  ;;  %v433_v60 = vld [vmem:[%s8061_s1 + $0x88] sm:$0xff] }
  0x18   : > { %5352 = vmatprep.mubr.msk.f32.mxu1 %vm640_vm0, %v418_v16  ;;  %5404 = vmatprep.mubr.msk.f32.mxu0 %vm640_vm0, %v1541_v17  ;;  %v432_v58 = vld [vmem:[%s8061_s1 + $0x80] sm:$0xff]  ;;  %v1556_v61 = vld [vmem:[%s8065_s5 + $0x88] sm:$0xff]  ;;  %v434_v0 = vld [vmem:[%s8061_s1 + $0x90] sm:$0xff] }
  0x19   : > { %497 = vperm.xlu1 %5844, %v451_v20   ;;  %492 = vperm.xlu0 %5843, %v450_v21   ;;  %v1555_v59 = vld [vmem:[%s8065_s5 + $0x80] sm:$0xff]  ;;  %v1584_v62 = vld [vmem:[%s8066_s6 + $0x68] sm:$0xff]  ;;  %v1557_v1 = vld [vmem:[%s8065_s5 + $0x90] sm:$0xff] }
  0x1a   : > { %v1583_v63 = vld [vmem:[%s8066_s6 + $0x60] sm:$0xff]  ;;  %v435_v2 = vld [vmem:[%s8061_s1 + $0x98] sm:$0xff]  ;;  %v458_v5 = vld [vmem:[%s8062_s2 + $0x50] sm:$0xff] }
  0x1b   : > { %5353 = vmatmul.mubr.msk.f32.gmra.mrb[2].mxu1 %vm640_vm0, %v419_v18  ;;  %5405 = vmatmul.mubr.msk.f32.gmra.mrb[2].mxu0 %vm640_vm0, %v1542_v19  ;;  %v1558_v3 = vld [vmem:[%s8065_s5 + $0x98] sm:$0xff]  ;;  %v436_v6 = vld [vmem:[%s8061_s1 + $0xa0] sm:$0xff]  ;;  %v437_v8 = vld [vmem:[%s8061_s1 + $0xa8] sm:$0xff] }
  0x1c   : > { %5355 = vmatprep.mubr.msk.f32.mxu1 %vm640_vm0, %v420_v22  ;;  %5407 = vmatprep.mubr.msk.f32.mxu0 %vm640_vm0, %v1543_v23  ;;  %v459_v4 = vld [vmem:[%s8062_s2 + $0x58] sm:$0xff]  ;;  %v1559_v7 = vld [vmem:[%s8065_s5 + $0xa0] sm:$0xff]  ;;  %v1560_v10 = vld [vmem:[%s8065_s5 + $0xa8] sm:$0xff] }
  0x1d   : > { %1640 = vperm.xlu1 %5844, %v1578_v26   ;;  %1635 = vperm.xlu0 %5843, %v1577_v27   ;;  %v1586_v11 = vld [vmem:[%s8066_s6 + $0x78] sm:$0xff]  ;;  %v1585_v12 = vld [vmem:[%s8066_s6 + $0x70] sm:$0xff]  ;;  %v461_v17 = vld [vmem:[%s8062_s2 + $0x68] sm:$0xff] }
  0x1e   : > { %v438_v13 = vld [vmem:[%s8061_s1 + $0xb0] sm:$0xff]  ;;  %v439_v15 = vld [vmem:[%s8061_s1 + $0xb8] sm:$0xff]  ;;  %v460_v18 = vld [vmem:[%s8062_s2 + $0x60] sm:$0xff] }
  0x1f   : > { %5356 = vmatmul.mubr.msk.f32.gmra.mrb[4].mxu1 %vm640_vm0, %v421_v24  ;;  %5408 = vmatmul.mubr.msk.f32.gmra.mrb[4].mxu0 %vm640_vm0, %v1544_v25  ;;  %v1561_v14 = vld [vmem:[%s8065_s5 + $0xb0] sm:$0xff]  ;;  %v1562_v16 = vld [vmem:[%s8065_s5 + $0xb8] sm:$0xff]  ;;  %v440_v19 = vld [vmem:[%s8061_s1 + $0xc0] sm:$0xff] }
  0x20   : > { %5358 = vmatprep.mubr.msk.f32.mxu1 %vm640_vm0, %v422_v28  ;;  %5410 = vmatprep.mubr.msk.f32.mxu0 %vm640_vm0, %v1545_v29  ;;  %v1563_v20 = vld [vmem:[%s8065_s5 + $0xc0] sm:$0xff]  ;;  %v441_v21 = vld [vmem:[%s8061_s1 + $0xc8] sm:$0xff]  ;;  %v442_v25 = vld [vmem:[%s8061_s1 + $0xd0] sm:$0xff] }
  0x21   : > { %507 = vperm.xlu1 %5844, %v453_v32   ;;  %502 = vperm.xlu0 %5843, %v452_v33   ;;  %v1564_v22 = vld [vmem:[%s8065_s5 + $0xc8] sm:$0xff]  ;;  %v1587_v24 = vld [vmem:[%s8066_s6 + $0x80] sm:$0xff]  ;;  %v1565_v26 = vld [vmem:[%s8065_s5 + $0xd0] sm:$0xff] }
  0x22   : > { %v1588_v23 = vld [vmem:[%s8066_s6 + $0x88] sm:$0xff]  ;;  %v443_v27 = vld [vmem:[%s8061_s1 + $0xd8] sm:$0xff]  ;;  %v1567_v32 = vld [vmem:[%s8065_s5 + $0xe0] sm:$0xff] }
  0x23   : > { %5359 = vmatmul.mubr.msk.f32.gmra.mrb[6].mxu1 %vm640_vm0, %v423_v30  ;;  %5411 = vmatmul.mubr.msk.f32.gmra.mrb[6].mxu0 %vm640_vm0, %v1546_v31  ;;  %v1566_v28 = vld [vmem:[%s8065_s5 + $0xd8] sm:$0xff]  ;;  %v462_v30 = vld [vmem:[%s8062_s2 + $0x70] sm:$0xff]  ;;  %v444_v31 = vld [vmem:[%s8061_s1 + $0xe0] sm:$0xff] }
  0x24   : > { %5361 = vmatprep.mubr.msk.f32.mxu1 %vm640_vm0, %v424_v34  ;;  %5413 = vmatprep.mubr.msk.f32.mxu0 %vm640_vm0, %v1547_v35  ;;  %v463_v29 = vld [vmem:[%s8062_s2 + $0x78] sm:$0xff]  ;;  %v445_v33 = vld [vmem:[%s8061_s1 + $0xe8] sm:$0xff] }
  0x25   : > { %1650 = vperm.xlu1 %5844, %v1580_v38   ;;  %1645 = vperm.xlu0 %5843, %v1579_v39   ;;  %v1568_v34 = vld [vmem:[%s8065_s5 + $0xe8] sm:$0xff]  ;;  %v1590_v35 = vld [vmem:[%s8066_s6 + $0x98] sm:$0xff]  ;;  %v1569_v38 = vld [vmem:[%s8065_s5 + $0xf0] sm:$0xff] }
  0x26   : > { %v447_v39 = vld [vmem:[%s8061_s1 + $0xf8] sm:$0xff] }
  0x27   : > { %5362 = vmatmul.mubr.msk.f32.gmra.mrb[8].mxu1 %vm640_vm0, %v425_v36  ;;  %5414 = vmatmul.mubr.msk.f32.gmra.mrb[8].mxu0 %vm640_vm0, %v1548_v37  ;;  %v1589_v36 = vld [vmem:[%s8066_s6 + $0x90] sm:$0xff] }
  0x28   : > { %5364 = vmatprep.mubr.msk.f32.mxu1 %vm640_vm0, %v426_v40  ;;  %5416 = vmatprep.mubr.msk.f32.mxu0 %vm640_vm0, %v1549_v41  ;;  %v446_v37 = vld [vmem:[%s8061_s1 + $0xf0] sm:$0xff]  ;;  %v1570_v40 = vld [vmem:[%s8065_s5 + $0xf8] sm:$0xff]  ;;  %v465_v41 = vld [vmem:[%s8062_s2 + $0x88] sm:$0xff] }
  0x29   : > { %517 = vperm.xlu1 %5844, %v455_v44   ;;  %512 = vperm.xlu0 %5843, %v454_v45   ;;  %v1591_v44 = vld [vmem:[%s8066_s6 + $0xa0] sm:$0xff]  ;;  %v467_v45 = vld [vmem:[%s8062_s2 + $0x98] sm:$0xff] }
  0x2b   : > { %5365 = vmatmul.mubr.msk.f32.gmra.mrb[10].mxu1 %vm640_vm0, %v427_v42  ;;  %5417 = vmatmul.mubr.msk.f32.gmra.mrb[10].mxu0 %vm640_vm0, %v1550_v43  ;;  %v464_v42 = vld [vmem:[%s8062_s2 + $0x80] sm:$0xff]  ;;  %v1592_v43 = vld [vmem:[%s8066_s6 + $0xa8] sm:$0xff] }
  0x2c   : > { %5367 = vmatprep.mubr.msk.f32.mxu1 %vm640_vm0, %v428_v46  ;;  %5419 = vmatprep.mubr.msk.f32.mxu0 %vm640_vm0, %v1551_v47  ;;  %v466_v46 = vld [vmem:[%s8062_s2 + $0x90] sm:$0xff]  ;;  %v1594_v47 = vld [vmem:[%s8066_s6 + $0xb8] sm:$0xff] }
  0x2d   : > { %1660 = vperm.xlu1 %5844, %v1582_v50   ;;  %1655 = vperm.xlu0 %5843, %v1581_v51   ;;  %v468_v50 = vld [vmem:[%s8062_s2 + $0xa0] sm:$0xff]  ;;  %v1596_v51 = vld [vmem:[%s8066_s6 + $0xc8] sm:$0xff] }
  0x2f   : > { %5368 = vmatmul.mubr.msk.f32.gmra.mrb[12].mxu1 %vm640_vm0, %v429_v48  ;;  %5420 = vmatmul.mubr.msk.f32.gmra.mrb[12].mxu0 %vm640_vm0, %v1552_v49  ;;  %v1593_v48 = vld [vmem:[%s8066_s6 + $0xb0] sm:$0xff]  ;;  %v469_v49 = vld [vmem:[%s8062_s2 + $0xa8] sm:$0xff] }
  0x30   : > { %5370 = vmatprep.mubr.msk.f32.mxu1 %vm640_vm0, %v430_v52  ;;  %5422 = vmatprep.mubr.msk.f32.mxu0 %vm640_vm0, %v1553_v53  ;;  %v1595_v52 = vld [vmem:[%s8066_s6 + $0xc0] sm:$0xff]  ;;  %v471_v53 = vld [vmem:[%s8062_s2 + $0xb8] sm:$0xff] }
  0x31   : > { %527 = vperm.xlu1 %5844, %v457_v56   ;;  %522 = vperm.xlu0 %5843, %v456_v57   ;;  %v1597_v56 = vld [vmem:[%s8066_s6 + $0xd0] sm:$0xff]  ;;  %v473_v57 = vld [vmem:[%s8062_s2 + $0xc8] sm:$0xff] }
  0x33   : > { %5371 = vmatmul.mubr.msk.f32.gmra.mrb[14].mxu1 %vm640_vm0, %v431_v54  ;;  %5423 = vmatmul.mubr.msk.f32.gmra.mrb[14].mxu0 %vm640_vm0, %v1554_v55  ;;  %v470_v54 = vld [vmem:[%s8062_s2 + $0xb0] sm:$0xff]  ;;  %v1598_v55 = vld [vmem:[%s8066_s6 + $0xd8] sm:$0xff] }
  0x34   : > { %5373 = vmatprep.mubr.msk.f32.mxu1 %vm640_vm0, %v432_v58  ;;  %5425 = vmatprep.mubr.msk.f32.mxu0 %vm640_vm0, %v1555_v59  ;;  %v472_v58 = vld [vmem:[%s8062_s2 + $0xc0] sm:$0xff]  ;;  %v5854_v59 = vmov 0.0|0.0  }
  0x35   : > { %1670 = vperm.xlu1 %5844, %v1584_v62   ;;  %1665 = vperm.xlu0 %5843, %v1583_v63   ;;  %v475_v62 = vld [vmem:[%s8062_s2 + $0xd8] sm:$0xff]  ;;  %v474_v63 = vld [vmem:[%s8062_s2 + $0xd0] sm:$0xff] }
  0x36   : > { %5617 = vmatprep.subr.bf16.mxu1 %v5854_v59  ;;  %5669 = vmatprep.subr.bf16.mxu0 %v5854_v59 }
  0x37   : > { %5374 = vmatmul.mubr.msk.f32.gmra.mrb[16].mxu1 %vm640_vm0, %v433_v60  ;;  %5426 = vmatmul.mubr.msk.f32.gmra.mrb[16].mxu0 %vm640_vm0, %v1556_v61  ;;  %v1600_v60 = vld [vmem:[%s8066_s6 + $0xe8] sm:$0xff]  ;;  %v1599_v61 = vld [vmem:[%s8066_s6 + $0xe0] sm:$0xff] }
  0x38   : > { %5376 = vmatprep.mubr.msk.f32.mxu1 %vm640_vm0, %v434_v0  ;;  %5428 = vmatprep.mubr.msk.f32.mxu0 %vm640_vm0, %v1557_v1  ;;  %v1602_v0 = vld [vmem:[%s8066_s6 + $0xf8] sm:$0xff]  ;;  %v1601_v1 = vld [vmem:[%s8066_s6 + $0xf0] sm:$0xff] }
  0x39   : > { %537 = vperm.xlu1 %5844, %v459_v4   ;;  %532 = vperm.xlu0 %5843, %v458_v5   ;;  %v479_v4 = vld [vmem:[%s8062_s2 + $0xf8] sm:$0xff]  ;;  %v478_v5 = vld [vmem:[%s8062_s2 + $0xf0] sm:$0xff] }
  0x3b   : > { %5377 = vmatmul.mubr.msk.f32.gmra.mrb[18].mxu1 %vm640_vm0, %v435_v2  ;;  %5429 = vmatmul.mubr.msk.f32.gmra.mrb[18].mxu0 %vm640_vm0, %v1558_v3  ;;  %v477_v2 = vld [vmem:[%s8062_s2 + $0xe8] sm:$0xff]  ;;  %v476_v3 = vld [vmem:[%s8062_s2 + $0xe0] sm:$0xff] }
  0x3c   : > { %5379 = vmatprep.mubr.msk.f32.mxu1 %vm640_vm0, %v436_v6  ;;  %5431 = vmatprep.mubr.msk.f32.mxu0 %vm640_vm0, %v1559_v7  ;;  %v2181_v6 = vld [vmem:[%s8068_s8 + $0x8] sm:$0xff]  ;;  %v2180_v7 = vld [vmem:[%s8068_s8] sm:$0xff] }
  0x3d   : > { %1680 = vperm.xlu1 %5844, %v1586_v11   ;;  %1675 = vperm.xlu0 %5843, %v1585_v12   ;;  %v2183_v11 = vld [vmem:[%s8068_s8 + $0x18] sm:$0xff]  ;;  %v2182_v12 = vld [vmem:[%s8068_s8 + $0x10] sm:$0xff] }
  0x3f   : > { %5380 = vmatmul.mubr.msk.f32.gmra.mrb[20].mxu1 %vm640_vm0, %v437_v8  ;;  %5432 = vmatmul.mubr.msk.f32.gmra.mrb[20].mxu0 %vm640_vm0, %v1560_v10 }
  0x40   : > { %5382 = vmatprep.mubr.msk.f32.mxu1 %vm640_vm0, %v438_v13  ;;  %5434 = vmatprep.mubr.msk.f32.mxu0 %vm640_vm0, %v1561_v14 }
  0x41   : > { %547 = vperm.xlu1 %5844, %v461_v17   ;;  %542 = vperm.xlu0 %5843, %v460_v18  }
  0x43   : > { %5383 = vmatmul.mubr.msk.f32.gmra.mrb[22].mxu1 %vm640_vm0, %v439_v15  ;;  %5435 = vmatmul.mubr.msk.f32.gmra.mrb[22].mxu0 %vm640_vm0, %v1562_v16  ;;  %v1059_v15 = vld [vmem:[%s8064_s4 + $0x8] sm:$0xff]  ;;  %v1058_v16 = vld [vmem:[%s8064_s4] sm:$0xff] }
  0x44   : > { %5385 = vmatprep.mubr.msk.f32.mxu1 %vm640_vm0, %v440_v19  ;;  %5437 = vmatprep.mubr.msk.f32.mxu0 %vm640_vm0, %v1563_v20  ;;  %v2185_v19 = vld [vmem:[%s8068_s8 + $0x28] sm:$0xff]  ;;  %v2184_v20 = vld [vmem:[%s8068_s8 + $0x20] sm:$0xff] }
  0x45   : > { %1690 = vperm.xlu1 %5844, %v1588_v23   ;;  %1685 = vperm.xlu0 %5843, %v1587_v24   ;;  %v1061_v23 = vld [vmem:[%s8064_s4 + $0x18] sm:$0xff]  ;;  %v1060_v24 = vld [vmem:[%s8064_s4 + $0x10] sm:$0xff] }
  0x47   : > { %5386 = vmatmul.mubr.msk.f32.gmra.mrb[24].mxu1 %vm640_vm0, %v441_v21  ;;  %5438 = vmatmul.mubr.msk.f32.gmra.mrb[24].mxu0 %vm640_vm0, %v1564_v22 }
  0x48   : > { %5388 = vmatprep.mubr.msk.f32.mxu1 %vm640_vm0, %v442_v25  ;;  %5440 = vmatprep.mubr.msk.f32.mxu0 %vm640_vm0, %v1565_v26 }
  0x49   : > { %557 = vperm.xlu1 %5844, %v463_v29   ;;  %552 = vperm.xlu0 %5843, %v462_v30  }
  0x4b   : > { %5389 = vmatmul.mubr.msk.f32.gmra.mrb[26].mxu1 %vm640_vm0, %v443_v27  ;;  %5441 = vmatmul.mubr.msk.f32.gmra.mrb[26].mxu0 %vm640_vm0, %v1566_v28  ;;  %v2187_v27 = vld [vmem:[%s8068_s8 + $0x38] sm:$0xff]  ;;  %v2186_v28 = vld [vmem:[%s8068_s8 + $0x30] sm:$0xff] }
  0x4c   : > { %5391 = vmatprep.mubr.msk.f32.mxu1 %vm640_vm0, %v444_v31  ;;  %5443 = vmatprep.mubr.msk.f32.mxu0 %vm640_vm0, %v1567_v32  ;;  %v1063_v31 = vld [vmem:[%s8064_s4 + $0x28] sm:$0xff]  ;;  %v1062_v32 = vld [vmem:[%s8064_s4 + $0x20] sm:$0xff] }
  0x4d   : > { %1700 = vperm.xlu1 %5844, %v1590_v35   ;;  %1695 = vperm.xlu0 %5843, %v1589_v36   ;;  %v2189_v35 = vld [vmem:[%s8068_s8 + $0x48] sm:$0xff]  ;;  %v2188_v36 = vld [vmem:[%s8068_s8 + $0x40] sm:$0xff] }
  0x4f   : > { %5392 = vmatmul.mubr.msk.f32.gmra.mrb[28].mxu1 %vm640_vm0, %v445_v33  ;;  %5444 = vmatmul.mubr.msk.f32.gmra.mrb[28].mxu0 %vm640_vm0, %v1568_v34 }
  0x50   : > { %5394 = vmatprep.mubr.msk.f32.mxu1 %vm640_vm0, %v446_v37  ;;  %5446 = vmatprep.mubr.msk.f32.mxu0 %vm640_vm0, %v1569_v38 }
  0x51   : > { %567 = vperm.xlu1 %5844, %v465_v41   ;;  %562 = vperm.xlu0 %5843, %v464_v42  }
  0x53   : > { %5395 = vmatmul.mubr.msk.f32.gmra.mrb[30].mxu1 %vm640_vm0, %v447_v39  ;;  %5447 = vmatmul.mubr.msk.f32.gmra.mrb[30].mxu0 %vm640_vm0, %v1570_v40  ;;  %v1065_v39 = vld [vmem:[%s8064_s4 + $0x38] sm:$0xff]  ;;  %v1064_v40 = vld [vmem:[%s8064_s4 + $0x30] sm:$0xff] }
  0x55   : > { %1710 = vperm.xlu1 %5844, %v1592_v43   ;;  %1705 = vperm.xlu0 %5843, %v1591_v44   ;;  %v2191_v43 = vld [vmem:[%s8068_s8 + $0x58] sm:$0xff]  ;;  %v2190_v44 = vld [vmem:[%s8068_s8 + $0x50] sm:$0xff] }
  0x59   : > { %577 = vperm.xlu1 %5844, %v467_v45   ;;  %572 = vperm.xlu0 %5843, %v466_v46  }
  0x5d   : > { %1720 = vperm.xlu1 %5844, %v1594_v47   ;;  %1715 = vperm.xlu0 %5843, %v1593_v48   ;;  %v1067_v47 = vld [vmem:[%s8064_s4 + $0x48] sm:$0xff]  ;;  %v1066_v48 = vld [vmem:[%s8064_s4 + $0x40] sm:$0xff] }
  0x61   : > { %587 = vperm.xlu1 %5844, %v469_v49   ;;  %582 = vperm.xlu0 %5843, %v468_v50   ;;  %v995_v49 = vld [vmem:[%s8063_s3 + $0x8] sm:$0xff] }
  0x62   : > { %v2117_v50 = vld [vmem:[%s8067_s7 + $0x8] sm:$0xff]  ;;  %1314 = vmatprep.mubr.f32.mxu1 %v995_v49  ;;  %v2202_v49 = vld [vmem:[%s8068_s8 + $0xb0] sm:$0xff] }
  0x63   : > { %2436 = vmatprep.mubr.f32.mxu0 %v2117_v50 }
  0x65   : > { %1730 = vperm.xlu1 %5844, %v1596_v51   ;;  %1725 = vperm.xlu0 %5843, %v1595_v52  }
  0x69   : > { %597 = vperm.xlu1 %5844, %v471_v53   ;;  %592 = vperm.xlu0 %5843, %v470_v54   ;;  %v2193_v53 = vld [vmem:[%s8068_s8 + $0x68] sm:$0xff]  ;;  %v2192_v54 = vld [vmem:[%s8068_s8 + $0x60] sm:$0xff] }
  0x6d   : > { %1740 = vperm.xlu1 %5844, %v1598_v55   ;;  %1735 = vperm.xlu0 %5843, %v1597_v56  }
  0x71   : > { %607 = vperm.xlu1 %5844, %v473_v57   ;;  %602 = vperm.xlu0 %5843, %v472_v58   ;;  %v1069_v57 = vld [vmem:[%s8064_s4 + $0x58] sm:$0xff]  ;;  %v1068_v58 = vld [vmem:[%s8064_s4 + $0x50] sm:$0xff] }
  0x75   : > { %1750 = vperm.xlu1 %5844, %v1600_v60   ;;  %1745 = vperm.xlu0 %5843, %v1599_v61  }
  0x79   : > { %617 = vperm.xlu1 %5844, %v475_v62   ;;  %612 = vperm.xlu0 %5843, %v474_v63   ;;  %v2195_v62 = vld [vmem:[%s8068_s8 + $0x78] sm:$0xff]  ;;  %v2194_v63 = vld [vmem:[%s8068_s8 + $0x70] sm:$0xff] }
  0x7d   : > { %1760 = vperm.xlu1 %5844, %v1602_v0   ;;  %1755 = vperm.xlu0 %5843, %v1601_v1  }
  0x81   : > { %627 = vperm.xlu1 %5844, %v477_v2   ;;  %622 = vperm.xlu0 %5843, %v476_v3   ;;  %v1071_v2 = vld [vmem:[%s8064_s4 + $0x68] sm:$0xff]  ;;  %v1070_v3 = vld [vmem:[%s8064_s4 + $0x60] sm:$0xff] }
  0x85   : > { %637 = vperm.xlu1 %5844, %v479_v4   ;;  %632 = vperm.xlu0 %5843, %v478_v5  }
  0x86   : > { %v6396_v8 = vpop.permute.xlu1 %1615  ;;  %v6398_v10 = vpop.permute.xlu0 %1605 }
  0x89   : > { %2219 = vperm.xlu1 %5844, %v2181_v6   ;;  %2214 = vperm.xlu0 %5843, %v2180_v7   ;;  %v2197_v6 = vld [vmem:[%s8068_s8 + $0x88] sm:$0xff]  ;;  %v2196_v7 = vld [vmem:[%s8068_s8 + $0x80] sm:$0xff] }
  0x8a   : > { %v6406_v13 = vpop.permute.xlu1 %1620  ;;  %v6408_v14 = vpop.permute.xlu0 %1610 }
  0x8d   : > { %2229 = vperm.xlu1 %5844, %v2183_v11   ;;  %2224 = vperm.xlu0 %5843, %v2182_v12  }
  0x8e   : > { %v6416_v17 = vpop.permute.xlu1 %487  ;;  %v6418_v18 = vpop.permute.xlu0 %482 }
  0x91   : > { %1097 = vperm.xlu1 %5844, %v1059_v15   ;;  %1092 = vperm.xlu0 %5843, %v1058_v16   ;;  %v1073_v15 = vld [vmem:[%s8064_s4 + $0x78] sm:$0xff]  ;;  %v1072_v16 = vld [vmem:[%s8064_s4 + $0x70] sm:$0xff] }
  0x94   : > { %v6426_v21 = vpop.permute.xlu1 %1630  ;;  %v6428_v22 = vpop.permute.xlu0 %1625 }
  0x95   : > { %2239 = vperm.xlu1 %5844, %v2185_v19   ;;  %2234 = vperm.xlu0 %5843, %v2184_v20   ;;  %v2199_v20 = vld [vmem:[%s8068_s8 + $0x98] sm:$0xff] }
  0x98   : > { %v6436_v25 = vpop.permute.xlu1 %497  ;;  %v6438_v26 = vpop.permute.xlu0 %492 }
  0x99   : > { %1107 = vperm.xlu1 %5844, %v1061_v23   ;;  %1102 = vperm.xlu0 %5843, %v1060_v24   ;;  %v2198_v23 = vld [vmem:[%s8068_s8 + $0x90] sm:$0xff] }
  0x9c   : > { %v6446_v29 = vpop.permute.xlu1 %1640  ;;  %v6448_v30 = vpop.permute.xlu0 %1635 }
  0x9d   : > { %2249 = vperm.xlu1 %5844, %v2187_v27   ;;  %2244 = vperm.xlu0 %5843, %v2186_v28   ;;  %v1075_v28 = vld [vmem:[%s8064_s4 + $0x88] sm:$0xff] }
  0xa0   : > { %v6456_v33 = vpop.permute.xlu1 %507  ;;  %v6458_v34 = vpop.permute.xlu0 %502 }
  0xa1   : > { %1117 = vperm.xlu1 %5844, %v1063_v31   ;;  %1112 = vperm.xlu0 %5843, %v1062_v32   ;;  %v1074_v31 = vld [vmem:[%s8064_s4 + $0x80] sm:$0xff] }
  0xa4   : > { %v6466_v37 = vpop.permute.xlu1 %1650  ;;  %v6468_v38 = vpop.permute.xlu0 %1645 }
  0xa5   : > { %2259 = vperm.xlu1 %5844, %v2189_v35   ;;  %2254 = vperm.xlu0 %5843, %v2188_v36   ;;  %v2201_v35 = vld [vmem:[%s8068_s8 + $0xa8] sm:$0xff]  ;;  %v2200_v36 = vld [vmem:[%s8068_s8 + $0xa0] sm:$0xff] }
  0xa8   : > { %v6476_v41 = vpop.permute.xlu1 %517  ;;  %v6478_v42 = vpop.permute.xlu0 %512 }
  0xa9   : > { %1127 = vperm.xlu1 %5844, %v1065_v39   ;;  %1122 = vperm.xlu0 %5843, %v1064_v40   ;;  %v1077_v40 = vld [vmem:[%s8064_s4 + $0x98] sm:$0xff] }
  0xac   : > { %v6486_v45 = vpop.permute.xlu1 %1660  ;;  %v6488_v46 = vpop.permute.xlu0 %1655 }
  0xad   : > { %2269 = vperm.xlu1 %5844, %v2191_v43   ;;  %2264 = vperm.xlu0 %5843, %v2190_v44   ;;  %v1076_v43 = vld [vmem:[%s8064_s4 + $0x90] sm:$0xff] }
  0xb0   : > { %v6502_v51 = vpop.permute.xlu1 %527  ;;  %v6504_v52 = vpop.permute.xlu0 %522 }
  0xb1   : > { %1137 = vperm.xlu1 %5844, %v1067_v47   ;;  %1132 = vperm.xlu0 %5843, %v1066_v48   ;;  %v2203_v48 = vld [vmem:[%s8068_s8 + $0xb8] sm:$0xff] }
  0xb4   : > { %v6512_v55 = vpop.permute.xlu1 %1670  ;;  %v6514_v56 = vpop.permute.xlu0 %1665 }
  0xb5   : > { %2279 = vperm.xlu1 %5844, %v2193_v53   ;;  %2274 = vperm.xlu0 %5843, %v2192_v54   ;;  %v1079_v53 = vld [vmem:[%s8064_s4 + $0xa8] sm:$0xff]  ;;  %v1078_v54 = vld [vmem:[%s8064_s4 + $0xa0] sm:$0xff] }
  0xb8   : > { %v6522_v60 = vpop.permute.xlu1 %537  ;;  %v6524_v61 = vpop.permute.xlu0 %532 }
  0xb9   : > { %1147 = vperm.xlu1 %5844, %v1069_v57   ;;  %1142 = vperm.xlu0 %5843, %v1068_v58   ;;  %v2205_v58 = vld [vmem:[%s8068_s8 + $0xc8] sm:$0xff] }
  0xbc   : > { %v6532_v0 = vpop.permute.xlu1 %1680  ;;  %v6534_v1 = vpop.permute.xlu0 %1675 }
  0xbd   : > { %2289 = vperm.xlu1 %5844, %v2195_v62   ;;  %2284 = vperm.xlu0 %5843, %v2194_v63   ;;  %v2204_v62 = vld [vmem:[%s8068_s8 + $0xc0] sm:$0xff] }
  0xc0   : > { %v6542_v4 = vpop.permute.xlu1 %547  ;;  %v6544_v5 = vpop.permute.xlu0 %542 }
  0xc1   : > { %1157 = vperm.xlu1 %5844, %v1071_v2   ;;  %1152 = vperm.xlu0 %5843, %v1070_v3   ;;  %v1081_v3 = vld [vmem:[%s8064_s4 + $0xb8] sm:$0xff] }
  0xc4   : > { %v6552_v11 = vpop.permute.xlu1 %1690  ;;  %v6554_v12 = vpop.permute.xlu0 %1685 }
  0xc5   : > { %2299 = vperm.xlu1 %5844, %v2197_v6   ;;  %2294 = vperm.xlu0 %5843, %v2196_v7   ;;  %v1080_v6 = vld [vmem:[%s8064_s4 + $0xb0] sm:$0xff] }
  0xc8   : > { %v6562_v19 = vpop.permute.xlu1 %557  ;;  %v6570_v24 = vpop.permute.xlu0 %552 }
  0xc9   : > { %1167 = vperm.xlu1 %5844, %v1073_v15   ;;  %1162 = vperm.xlu0 %5843, %v1072_v16  }
  0xcc   : > { %v6572_v27 = vpop.permute.xlu1 %1700  ;;  %v6580_v32 = vpop.permute.xlu0 %1695 }
  0xcd   : > { %2309 = vperm.xlu1 %5844, %v2199_v20   ;;  %2304 = vperm.xlu0 %5843, %v2198_v23  }
  0xd0   : > { %v6588_v39 = vpop.permute.xlu1 %567  ;;  %v6596_v44 = vpop.permute.xlu0 %562 }
  0xd1   : > { %1177 = vperm.xlu1 %5844, %v1075_v28   ;;  %1172 = vperm.xlu0 %5843, %v1074_v31  }
  0xd4   : > { %v6598_v47 = vpop.permute.xlu1 %1710  ;;  %v6606_v50 = vpop.permute.xlu0 %1705 }
  0xd5   : > { %2319 = vperm.xlu1 %5844, %v2201_v35   ;;  %2314 = vperm.xlu0 %5843, %v2200_v36  }
  0xd8   : > { %v6614_v57 = vpop.permute.xlu1 %577  ;;  %v6622_v63 = vpop.permute.xlu0 %572 }
  0xd9   : > { %1187 = vperm.xlu1 %5844, %v1077_v40   ;;  %1182 = vperm.xlu0 %5843, %v1076_v43  }
  0xdc   : > { %v6624_v2 = vpop.permute.xlu1 %1720  ;;  %v6634_v31 = vpop.permute.xlu0 %1715 }
  0xdd   : > { %2329 = vperm.xlu1 %5844, %v2203_v48   ;;  %2324 = vperm.xlu0 %5843, %v2202_v49   ;;  %v2207_v48 = vld [vmem:[%s8068_s8 + $0xd8] sm:$0xff] }
  0xe1   : > { %1197 = vperm.xlu1 %5844, %v1079_v53   ;;  %1192 = vperm.xlu0 %5843, %v1078_v54   ;;  %v6644_v53 = vpop.permute.xlu1 %587 }
  0xe5   : > { %2339 = vperm.xlu1 %5844, %v2205_v58   ;;  %2334 = vperm.xlu0 %5843, %v2204_v62  }
  0xe9   : > { %1207 = vperm.xlu1 %5844, %v1081_v3   ;;  %1202 = vperm.xlu0 %5843, %v1080_v6  }
  0xea   : > { %v5351_v7 = vpop.f32.mrb[0].mxu1  ;;  %v5403_v15 = vpop.f32.mrb[0].mxu0 }
  0xeb   : > { %v809_v16 = vadd.f32 %v5351_v7, %v6416_v17  ;;  %v1931_v20 = vadd.f32 %v5403_v15, %v6408_v14  ;;  %v803_v23 = vpop.f32.mrb[1].mxu1  ;;  %v1925_v28 = vpop.f32.mrb[1].mxu0  ;;  %v2206_v14 = vld [vmem:[%s8068_s8 + $0xd0] sm:$0xff]  ;;  %v1083_v15 = vld [vmem:[%s8064_s4 + $0xc8] sm:$0xff] }
  0xec   : > { %v804_v40 = vadd.f32 %v803_v23, %v6418_v18  ;;  %v1926_v43 = vadd.f32 %v1925_v28, %v6398_v10 }
  0xed   : > { %v963_v35 = vmax.f32 %v809_v16, 0.0  ;;  %v2085_v36 = vmax.f32 %v1931_v20, 0.0  ;;  %2349 = vperm.xlu1 %5844, %v2207_v48   ;;  %2344 = vperm.xlu0 %5843, %v2206_v14   ;;  %v1082_v16 = vld [vmem:[%s8064_s4 + $0xc0] sm:$0xff] }
  0xee   : > { %v5354_v17 = vpop.f32.mrb[2].mxu1  ;;  %v5406_v49 = vpop.f32.mrb[2].mxu0  ;;  %v962_v54 = vmax.f32 %v804_v40, 0.0  ;;  %v2084_v58 = vmax.f32 %v1926_v43, 0.0 }
  0xef   : > { %v819_v62 = vadd.f32 %v5354_v17, %v6436_v25  ;;  %v1941_v18 = vadd.f32 %v5406_v49, %v6406_v13  ;;  %v813_v3 = vpop.f32.mrb[3].mxu1  ;;  %v1935_v10 = vpop.f32.mrb[3].mxu0 }
  0xf0   : > { %v5618_v6 = vpack.c.bf16 %v963_v35, %v962_v54  ;;  %v5670_v7 = vpack.c.bf16 %v2085_v36, %v2084_v58  ;;  %v814_v25 = vadd.f32 %v813_v3, %v6438_v26  ;;  %v1936_v13 = vadd.f32 %v1935_v10, %v6396_v8  ;;  %v6656_v43 = vpop.permute.xlu0 %582  ;;  %v6660_v54 = vpop.permute.xlu1 %1730  ;;  %v2209_v10 = vld [vmem:[%s8068_s8 + $0xe8] sm:$0xff] }
  0xf1   : > { %v965_v20 = vmax.f32 %v819_v62, 0.0  ;;  %v2087_v23 = vmax.f32 %v1941_v18, 0.0  ;;  %1217 = vperm.xlu1 %5844, %v1083_v15   ;;  %1212 = vperm.xlu0 %5843, %v1082_v16  }
  0xf2   : > { %v5357_v28 = vpop.f32.mrb[4].mxu1  ;;  %v5409_v40 = vpop.f32.mrb[4].mxu0  ;;  %5619 = vmatpush1.bf16.msra.mxu1 %v5618_v6  ;;  %5671 = vmatpush1.bf16.msra.mxu0 %v5670_v7  ;;  %v964_v48 = vmax.f32 %v814_v25, 0.0  ;;  %v2086_v14 = vmax.f32 %v1936_v13, 0.0  ;;  %v2208_v6 = vld [vmem:[%s8068_s8 + $0xe0] sm:$0xff] }
  0xf3   : > { %v829_v35 = vadd.f32 %v5357_v28, %v6456_v33  ;;  %v1951_v36 = vadd.f32 %v5409_v40, %v6426_v21  ;;  %v823_v17 = vpop.f32.mrb[5].mxu1  ;;  %v1945_v49 = vpop.f32.mrb[5].mxu0  ;;  %5620 = vmatprep.subr.bf16.mxu1 %v5854_v59  ;;  %5672 = vmatprep.subr.bf16.mxu0 %v5854_v59 }
  0xf4   : > { %v824_v58 = vadd.f32 %v823_v17, %v6458_v34  ;;  %v1946_v62 = vadd.f32 %v1945_v49, %v6428_v22  ;;  %v5621_v21 = vpack.c.bf16 %v965_v20, %v964_v48  ;;  %v5673_v33 = vpack.c.bf16 %v2087_v23, %v2086_v14  ;;  %v6674_v23 = vpop.permute.xlu0 %1725  ;;  %v1085_v48 = vld [vmem:[%s8064_s4 + $0xd8] sm:$0xff]  ;;  %v1084_v14 = vld [vmem:[%s8064_s4 + $0xd0] sm:$0xff]  ;;  %v6686_v17 = vpop.permute.xlu1 %597 }
  0xf5   : > { %v967_v26 = vmax.f32 %v829_v35, 0.0  ;;  %v2089_v8 = vmax.f32 %v1951_v36, 0.0  ;;  %2359 = vperm.xlu1 %5844, %v2209_v10   ;;  %2354 = vperm.xlu0 %5843, %v2208_v6   ;;  %v2211_v6 = vld [vmem:[%s8068_s8 + $0xf8] sm:$0xff] }
  0xf6   : > { %v5360_v18 = vpop.f32.mrb[6].mxu1  ;;  %v5412_v3 = vpop.f32.mrb[6].mxu0  ;;  %v966_v7 = vmax.f32 %v824_v58, 0.0  ;;  %v2088_v34 = vmax.f32 %v1946_v62, 0.0  ;;  %5622 = vmatpush1.bf16.msra.mxu1 %v5621_v21  ;;  %5674 = vmatpush1.bf16.msra.mxu0 %v5673_v33 }
  0xf7   : > { %v839_v22 = vadd.f32 %v5360_v18, %v6476_v41  ;;  %v1961_v15 = vadd.f32 %v5412_v3, %v6446_v29  ;;  %v833_v16 = vpop.f32.mrb[7].mxu1  ;;  %v1955_v20 = vpop.f32.mrb[7].mxu0  ;;  %5623 = vmatprep.subr.bf16.mxu1 %v5854_v59  ;;  %5675 = vmatprep.subr.bf16.mxu0 %v5854_v59 }
  0xf8   : > { %v5624_v25 = vpack.c.bf16 %v967_v26, %v966_v7  ;;  %v5676_v13 = vpack.c.bf16 %v2089_v8, %v2088_v34  ;;  %v834_v35 = vadd.f32 %v833_v16, %v6478_v42  ;;  %v1956_v36 = vadd.f32 %v1955_v20, %v6448_v30  ;;  %v6700_v7 = vpop.permute.xlu0 %592 }
  0xf9   : > { %v969_v28 = vmax.f32 %v839_v22, 0.0  ;;  %v2091_v40 = vmax.f32 %v1961_v15, 0.0  ;;  %1227 = vperm.xlu1 %5844, %v1085_v48   ;;  %1222 = vperm.xlu0 %5843, %v1084_v14   ;;  %v1086_v48 = vld [vmem:[%s8064_s4 + $0xe0] sm:$0xff] }
  0xfa   : > { %v5363_v29 = vpop.f32.mrb[8].mxu1  ;;  %v5415_v41 = vpop.f32.mrb[8].mxu0  ;;  %v968_v49 = vmax.f32 %v834_v35, 0.0  ;;  %v2090_v26 = vmax.f32 %v1956_v36, 0.0  ;;  %5625 = vmatpush1.bf16.msra.mxu1 %v5624_v25  ;;  %5677 = vmatpush1.bf16.msra.mxu0 %v5676_v13 }
  0xfb   : > { %v849_v42 = vadd.f32 %v5363_v29, %v6502_v51  ;;  %v1971_v30 = vadd.f32 %v5415_v41, %v6466_v37  ;;  %v843_v8 = vpop.f32.mrb[9].mxu1  ;;  %v1965_v58 = vpop.f32.mrb[9].mxu0  ;;  %5626 = vmatprep.subr.bf16.mxu1 %v5854_v59  ;;  %5678 = vmatprep.subr.bf16.mxu0 %v5854_v59  ;;  %v1087_v41 = vld [vmem:[%s8064_s4 + $0xe8] sm:$0xff] }
  0xfc   : > { %v844_v33 = vadd.f32 %v843_v8, %v6504_v52  ;;  %v1966_v18 = vadd.f32 %v1965_v58, %v6468_v38  ;;  %v5627_v3 = vpack.c.bf16 %v969_v28, %v968_v49  ;;  %v5679_v10 = vpack.c.bf16 %v2091_v40, %v2090_v26  ;;  %v2210_v52 = vld [vmem:[%s8068_s8 + $0xf0] sm:$0xff]  ;;  %v6704_v25 = vpop.permute.xlu1 %1740  ;;  %v6718_v26 = vpop.permute.xlu0 %1735 }
  0xfd   : > { %v971_v62 = vmax.f32 %v849_v42, 0.0  ;;  %v2093_v21 = vmax.f32 %v1971_v30, 0.0  ;;  %2369 = vperm.xlu1 %5844, %v2211_v6   ;;  %2364 = vperm.xlu0 %5843, %v2210_v52  }
  0xfe   : > { %v5366_v37 = vpop.f32.mrb[10].mxu1  ;;  %v5418_v51 = vpop.f32.mrb[10].mxu0  ;;  %v970_v38 = vmax.f32 %v844_v33, 0.0  ;;  %v2092_v34 = vmax.f32 %v1966_v18, 0.0  ;;  %5628 = vmatpush1.bf16.msra.mxu1 %v5627_v3  ;;  %5680 = vmatpush1.bf16.msra.mxu0 %v5679_v10  ;;  %v1089_v3 = vld [vmem:[%s8064_s4 + $0xf8] sm:$0xff] }
  0xff   : > { %v859_v22 = vadd.f32 %v5366_v37, %v6522_v60  ;;  %v1981_v15 = vadd.f32 %v5418_v51, %v6486_v45  ;;  %v853_v16 = vpop.f32.mrb[11].mxu1  ;;  %v1975_v20 = vpop.f32.mrb[11].mxu0  ;;  %5629 = vmatprep.subr.bf16.mxu1 %v5854_v59  ;;  %5681 = vmatprep.subr.bf16.mxu0 %v5854_v59 }
 0x100   : > { %v5630_v13 = vpack.c.bf16 %v971_v62, %v970_v38  ;;  %v5682_v28 = vpack.c.bf16 %v2093_v21, %v2092_v34  ;;  %v854_v36 = vadd.f32 %v853_v16, %v6524_v61  ;;  %v1976_v29 = vadd.f32 %v1975_v20, %v6488_v46  ;;  %v6730_v10 = vpop.permute.xlu1 %607 }
 0x101   : > { %v973_v40 = vmax.f32 %v859_v22, 0.0  ;;  %v2095_v35 = vmax.f32 %v1981_v15, 0.0  ;;  %1237 = vperm.xlu1 %5844, %v1087_v41   ;;  %1232 = vperm.xlu0 %5843, %v1086_v48  }
 0x102   : > { %v5369_v45 = vpop.f32.mrb[12].mxu1  ;;  %v5421_v60 = vpop.f32.mrb[12].mxu0  ;;  %v972_v42 = vmax.f32 %v854_v36, 0.0  ;;  %v2094_v46 = vmax.f32 %v1976_v29, 0.0  ;;  %5631 = vmatpush1.bf16.msra.mxu1 %v5630_v13  ;;  %5683 = vmatpush1.bf16.msra.mxu0 %v5682_v28  ;;  %v4728_v28 = vld [vmem:[%s8071_s11 + $0x8] sm:$0xff] }
 0x103   : > { %v869_v14 = vadd.f32 %v5369_v45, %v6542_v4  ;;  %v1991_v61 = vadd.f32 %v5421_v60, %v6512_v55  ;;  %v863_v30 = vpop.f32.mrb[13].mxu1  ;;  %v1985_v49 = vpop.f32.mrb[13].mxu0  ;;  %5632 = vmatprep.subr.bf16.mxu1 %v5854_v59  ;;  %5684 = vmatprep.subr.bf16.mxu0 %v5854_v59 }
 0x104   : > { %v864_v62 = vadd.f32 %v863_v30, %v6544_v5  ;;  %v1986_v21 = vadd.f32 %v1985_v49, %v6514_v56  ;;  %v5633_v33 = vpack.c.bf16 %v973_v40, %v972_v42  ;;  %v5685_v4 = vpack.c.bf16 %v2095_v35, %v2094_v46  ;;  %v1088_v5 = vld [vmem:[%s8064_s4 + $0xf0] sm:$0xff]  ;;  %v4727_v40 = vld [vmem:[%s8071_s11] sm:$0xff]  ;;  %v6744_v35 = vpop.permute.xlu0 %602  ;;  %v6748_v41 = vpop.permute.xlu1 %1750  ;;  %v4730_v49 = vld [vmem:[%s8071_s11 + $0x18] sm:$0xff] }
 0x105   : > { %v975_v8 = vmax.f32 %v869_v14, 0.0  ;;  %v2097_v58 = vmax.f32 %v1991_v61, 0.0  ;;  %1247 = vperm.xlu1 %5844, %v1089_v3   ;;  %1242 = vperm.xlu0 %5843, %v1088_v5  }
 0x106   : > { %v5372_v55 = vpop.f32.mrb[14].mxu1  ;;  %v5424_v18 = vpop.f32.mrb[14].mxu0  ;;  %v974_v56 = vmax.f32 %v864_v62, 0.0  ;;  %v2096_v37 = vmax.f32 %v1986_v21, 0.0  ;;  %5634 = vmatpush1.bf16.msra.mxu1 %v5633_v33  ;;  %5686 = vmatpush1.bf16.msra.mxu0 %v5685_v4 }
 0x107   : > { %v879_v51 = vadd.f32 %v5372_v55, %v6562_v19  ;;  %v2001_v6 = vadd.f32 %v5424_v18, %v6532_v0  ;;  %v873_v52 = vpop.f32.mrb[15].mxu1  ;;  %v1995_v38 = vpop.f32.mrb[15].mxu0  ;;  %5635 = vmatprep.subr.bf16.mxu1 %v5854_v59  ;;  %5687 = vmatprep.subr.bf16.mxu0 %v5854_v59 }
 0x108   : > { %v5636_v34 = vpack.c.bf16 %v975_v8, %v974_v56  ;;  %v5688_v22 = vpack.c.bf16 %v2097_v58, %v2096_v37  ;;  %v874_v20 = vadd.f32 %v873_v52, %v6570_v24  ;;  %v1996_v13 = vadd.f32 %v1995_v38, %v6534_v1  ;;  %v6762_v4 = vpop.permute.xlu0 %1745  ;;  %v6774_v52 = vpop.permute.xlu1 %617 }
 0x109   : > { %v977_v15 = vmax.f32 %v879_v51, 0.0  ;;  %v2099_v16 = vmax.f32 %v2001_v6, 0.0  ;;  %4766 = vperm.xlu1 %5844, %v4728_v28   ;;  %4761 = vperm.xlu0 %5843, %v4727_v40   ;;  %v4732_v51 = vld [vmem:[%s8071_s11 + $0x28] sm:$0xff]  ;;  %v4731_v6 = vld [vmem:[%s8071_s11 + $0x20] sm:$0xff]  ;;  %v4734_v40 = vld [vmem:[%s8071_s11 + $0x38] sm:$0xff] }
 0x10a   : > { %v5375_v19 = vpop.f32.mrb[16].mxu1  ;;  %v5427_v0 = vpop.f32.mrb[16].mxu0  ;;  %v976_v36 = vmax.f32 %v874_v20, 0.0  ;;  %v2098_v29 = vmax.f32 %v1996_v13, 0.0  ;;  %5637 = vmatpush1.bf16.msra.mxu1 %v5636_v34  ;;  %5689 = vmatpush1.bf16.msra.mxu0 %v5688_v22 }
 0x10b   : > { %v889_v24 = vadd.f32 %v5375_v19, %v6588_v39  ;;  %v2011_v1 = vadd.f32 %v5427_v0, %v6552_v11  ;;  %v883_v45 = vpop.f32.mrb[17].mxu1  ;;  %v2005_v60 = vpop.f32.mrb[17].mxu0  ;;  %5638 = vmatprep.subr.bf16.mxu1 %v5854_v59  ;;  %5690 = vmatprep.subr.bf16.mxu0 %v5854_v59 }
 0x10c   : > { %v884_v61 = vadd.f32 %v883_v45, %v6596_v44  ;;  %v2006_v42 = vadd.f32 %v2005_v60, %v6554_v12  ;;  %v5639_v46 = vpack.c.bf16 %v977_v15, %v976_v36  ;;  %v5691_v39 = vpack.c.bf16 %v2099_v16, %v2098_v29  ;;  %v4729_v44 = vld [vmem:[%s8071_s11 + $0x10] sm:$0xff] }
 0x10d   : > { %v979_v48 = vmax.f32 %v889_v24, 0.0  ;;  %v2101_v14 = vmax.f32 %v2011_v1, 0.0  ;;  %4776 = vperm.xlu1 %5844, %v4730_v49   ;;  %4771 = vperm.xlu0 %5843, %v4729_v44   ;;  %v613_v24 = vpop.permute.xlu0 %612  ;;  %v4735_v49 = vld [vmem:[%s8071_s11 + $0x40] sm:$0xff] }
 0x10e   : > { %v5378_v11 = vpop.f32.mrb[18].mxu1  ;;  %v5430_v30 = vpop.f32.mrb[18].mxu0  ;;  %v978_v8 = vmax.f32 %v884_v61, 0.0  ;;  %v2100_v12 = vmax.f32 %v2006_v42, 0.0  ;;  %5640 = vmatpush1.bf16.msra.mxu1 %v5639_v46  ;;  %5692 = vmatpush1.bf16.msra.mxu0 %v5691_v39 }
 0x10f   : > { %v899_v58 = vadd.f32 %v5378_v11, %v6614_v57  ;;  %v2021_v62 = vadd.f32 %v5430_v30, %v6572_v27  ;;  %v893_v21 = vpop.f32.mrb[19].mxu1  ;;  %v2015_v33 = vpop.f32.mrb[19].mxu0  ;;  %5641 = vmatprep.subr.bf16.mxu1 %v5854_v59  ;;  %5693 = vmatprep.subr.bf16.mxu0 %v5854_v59  ;;  %v4736_v30 = vld [vmem:[%s8071_s11 + $0x48] sm:$0xff] }
 0x110   : > { %v5642_v55 = vpack.c.bf16 %v979_v48, %v978_v8  ;;  %v5694_v18 = vpack.c.bf16 %v2101_v14, %v2100_v12  ;;  %v894_v56 = vadd.f32 %v893_v21, %v6622_v63  ;;  %v2016_v37 = vadd.f32 %v2015_v33, %v6580_v32  ;;  %v6790_v48 = vpop.permute.xlu1 %1760 }
 0x111   : > { %v981_v3 = vmax.f32 %v899_v58, 0.0  ;;  %v2103_v5 = vmax.f32 %v2021_v62, 0.0  ;;  %4786 = vperm.xlu1 %5844, %v4732_v51   ;;  %4781 = vperm.xlu0 %5843, %v4731_v6   ;;  %v6804_v62 = vpop.permute.xlu0 %1755 }
 0x112   : > { %v5381_v27 = vpop.f32.mrb[20].mxu1  ;;  %v5433_v57 = vpop.f32.mrb[20].mxu0  ;;  %v980_v38 = vmax.f32 %v894_v56, 0.0  ;;  %v2102_v34 = vmax.f32 %v2016_v37, 0.0  ;;  %5643 = vmatpush1.bf16.msra.mxu1 %v5642_v55  ;;  %5695 = vmatpush1.bf16.msra.mxu0 %v5694_v18  ;;  %v4738_v56 = vld [vmem:[%s8071_s11 + $0x58] sm:$0xff] }
 0x113   : > { %v909_v63 = vadd.f32 %v5381_v27, %v6644_v53  ;;  %v2031_v32 = vadd.f32 %v5433_v57, %v6598_v47  ;;  %v903_v22 = vpop.f32.mrb[21].mxu1  ;;  %v2025_v15 = vpop.f32.mrb[21].mxu0  ;;  %5644 = vmatprep.subr.bf16.mxu1 %v5854_v59  ;;  %5696 = vmatprep.subr.bf16.mxu0 %v5854_v59 }
 0x114   : > { %v904_v13 = vadd.f32 %v903_v22, %v6656_v43  ;;  %v2026_v19 = vadd.f32 %v2025_v15, %v6606_v50  ;;  %v5645_v0 = vpack.c.bf16 %v981_v3, %v980_v38  ;;  %v5697_v28 = vpack.c.bf16 %v2103_v5, %v2102_v34  ;;  %v4733_v43 = vld [vmem:[%s8071_s11 + $0x30] sm:$0xff]  ;;  %v628_v37 = vpop.permute.xlu1 %627 }
 0x115   : > { %v983_v16 = vmax.f32 %v909_v63, 0.0  ;;  %v2105_v20 = vmax.f32 %v2031_v32, 0.0  ;;  %4796 = vperm.xlu1 %5844, %v4734_v40   ;;  %4791 = vperm.xlu0 %5843, %v4733_v43  }
 0x116   : > { %v5384_v47 = vpop.f32.mrb[22].mxu1  ;;  %v5436_v53 = vpop.f32.mrb[22].mxu0  ;;  %v982_v50 = vmax.f32 %v904_v13, 0.0  ;;  %v2104_v1 = vmax.f32 %v2026_v19, 0.0  ;;  %5646 = vmatpush1.bf16.msra.mxu1 %v5645_v0  ;;  %5698 = vmatpush1.bf16.msra.mxu0 %v5697_v28  ;;  %v4739_v13 = vld [vmem:[%s8071_s11 + $0x60] sm:$0xff] }
 0x117   : > { %v919_v36 = vadd.f32 %v5384_v47, %v6686_v17  ;;  %v2041_v29 = vadd.f32 %v5436_v53, %v6624_v2  ;;  %v913_v45 = vpop.f32.mrb[23].mxu1  ;;  %v2035_v60 = vpop.f32.mrb[23].mxu0  ;;  %5647 = vmatprep.subr.bf16.mxu1 %v5854_v59  ;;  %5699 = vmatprep.subr.bf16.mxu0 %v5854_v59 }
 0x118   : > { %v5648_v14 = vpack.c.bf16 %v983_v16, %v982_v50  ;;  %v5700_v61 = vpack.c.bf16 %v2105_v20, %v2104_v1  ;;  %v914_v39 = vadd.f32 %v913_v45, %v6700_v7  ;;  %v2036_v11 = vadd.f32 %v2035_v60, %v6634_v31  ;;  %v623_v19 = vpop.permute.xlu0 %622  ;;  %v638_v43 = vpop.permute.xlu1 %637 }
 0x119   : > { %v985_v42 = vmax.f32 %v919_v36, 0.0  ;;  %v2107_v46 = vmax.f32 %v2041_v29, 0.0  ;;  %4806 = vperm.xlu1 %5844, %v4736_v30   ;;  %4801 = vperm.xlu0 %5843, %v4735_v49  }
 0x11a   : > { %v5387_v2 = vpop.f32.mrb[24].mxu1  ;;  %v5439_v17 = vpop.f32.mrb[24].mxu0  ;;  %v984_v8 = vmax.f32 %v914_v39, 0.0  ;;  %v2106_v31 = vmax.f32 %v2036_v11, 0.0  ;;  %5649 = vmatpush1.bf16.msra.mxu1 %v5648_v14  ;;  %5701 = vmatpush1.bf16.msra.mxu0 %v5700_v61  ;;  %v4742_v14 = vld [vmem:[%s8071_s11 + $0x78] sm:$0xff]  ;;  %v4741_v61 = vld [vmem:[%s8071_s11 + $0x70] sm:$0xff] }
 0x11b   : > { %v929_v44 = vadd.f32 %v5387_v2, %v6730_v10  ;;  %v2051_v7 = vadd.f32 %v5439_v17, %v6660_v54  ;;  %v923_v12 = vpop.f32.mrb[25].mxu1  ;;  %v2045_v58 = vpop.f32.mrb[25].mxu0  ;;  %5650 = vmatprep.subr.bf16.mxu1 %v5854_v59  ;;  %5702 = vmatprep.subr.bf16.mxu0 %v5854_v59 }
 0x11c   : > { %v924_v55 = vadd.f32 %v923_v12, %v6744_v35  ;;  %v2046_v18 = vadd.f32 %v2045_v58, %v6674_v23  ;;  %v5651_v3 = vpack.c.bf16 %v985_v42, %v984_v8  ;;  %v5703_v10 = vpack.c.bf16 %v2107_v46, %v2106_v31  ;;  %v4737_v35 = vld [vmem:[%s8071_s11 + $0x50] sm:$0xff]  ;;  %v633_v17 = vpop.permute.xlu0 %632  ;;  %v4743_v12 = vld [vmem:[%s8071_s11 + $0x80] sm:$0xff] }
 0x11d   : > { %v987_v21 = vmax.f32 %v929_v44, 0.0  ;;  %v2109_v33 = vmax.f32 %v2051_v7, 0.0  ;;  %4816 = vperm.xlu1 %5844, %v4738_v56   ;;  %4811 = vperm.xlu0 %5843, %v4737_v35   ;;  %v4748_v56 = vld [vmem:[%s8071_s11 + $0xa8] sm:$0xff]  ;;  %v4747_v35 = vld [vmem:[%s8071_s11 + $0xa0] sm:$0xff] }
 0x11e   : > { %v5390_v54 = vpop.f32.mrb[26].mxu1  ;;  %v5442_v5 = vpop.f32.mrb[26].mxu0  ;;  %v986_v23 = vmax.f32 %v924_v55, 0.0  ;;  %v2108_v27 = vmax.f32 %v2046_v18, 0.0  ;;  %5652 = vmatpush1.bf16.msra.mxu1 %v5651_v3  ;;  %5704 = vmatpush1.bf16.msra.mxu0 %v5703_v10  ;;  %v4746_v55 = vld [vmem:[%s8071_s11 + $0x98] sm:$0xff]  ;;  %v4745_v18 = vld [vmem:[%s8071_s11 + $0x90] sm:$0xff] }
 0x11f   : > { %v939_v57 = vadd.f32 %v5390_v54, %v6774_v52  ;;  %v2061_v51 = vadd.f32 %v5442_v5, %v6704_v25  ;;  %v933_v6 = vpop.f32.mrb[27].mxu1  ;;  %v2055_v63 = vpop.f32.mrb[27].mxu0  ;;  %5653 = vmatprep.subr.bf16.mxu1 %v5854_v59  ;;  %5705 = vmatprep.subr.bf16.mxu0 %v5854_v59  ;;  %v4740_v25 = vld [vmem:[%s8071_s11 + $0x68] sm:$0xff]  ;;  %v994_v3 = vld [vmem:[%s8063_s3] sm:$0xff]  ;;  %v997_v54 = vld [vmem:[%s8063_s3 + $0x18] sm:$0xff] }
 0x120   : > { %v5654_v32 = vpack.c.bf16 %v987_v21, %v986_v23  ;;  %v5706_v38 = vpack.c.bf16 %v2109_v33, %v2108_v27  ;;  %v934_v15 = vadd.f32 %v933_v6, %v613_v24  ;;  %v2056_v16 = vadd.f32 %v2055_v63, %v6718_v26  ;;  %v2116_v10 = vld [vmem:[%s8067_s7] sm:$0xff]  ;;  %v2119_v5 = vld [vmem:[%s8067_s7 + $0x18] sm:$0xff]  ;;  %v2118_v23 = vld [vmem:[%s8067_s7 + $0x10] sm:$0xff] }
 0x121   : > { %v989_v34 = vmax.f32 %v939_v57, 0.0  ;;  %v2111_v22 = vmax.f32 %v2061_v51, 0.0  ;;  %4826 = vperm.xlu1 %5844, %v4740_v25   ;;  %4821 = vperm.xlu0 %5843, %v4739_v13   ;;  %v999_v27 = vld [vmem:[%s8063_s3 + $0x28] sm:$0xff]  ;;  %v4750_v51 = vld [vmem:[%s8071_s11 + $0xb8] sm:$0xff]  ;;  %v4749_v6 = vld [vmem:[%s8071_s11 + $0xb0] sm:$0xff] }
 0x122   : > { %v5393_v52 = vpop.f32.mrb[28].mxu1  ;;  %v5445_v20 = vpop.f32.mrb[28].mxu0  ;;  %v988_v47 = vmax.f32 %v934_v15, 0.0  ;;  %v2110_v26 = vmax.f32 %v2056_v16, 0.0  ;;  %5655 = vmatpush1.bf16.msra.mxu1 %v5654_v32  ;;  %5707 = vmatpush1.bf16.msra.mxu0 %v5706_v38  ;;  %v2121_v57 = vld [vmem:[%s8067_s7 + $0x28] sm:$0xff]  ;;  %v998_v63 = vld [vmem:[%s8063_s3 + $0x20] sm:$0xff] }
 0x123   : > { %v949_v0 = vadd.f32 %v5393_v52, %v628_v37  ;;  %v2071_v28 = vadd.f32 %v5445_v20, %v6748_v41  ;;  %v943_v53 = vpop.f32.mrb[29].mxu1  ;;  %v2065_v40 = vpop.f32.mrb[29].mxu0  ;;  %5656 = vmatprep.subr.bf16.mxu1 %v5854_v59  ;;  %5708 = vmatprep.subr.bf16.mxu0 %v5854_v59  ;;  %v996_v37 = vld [vmem:[%s8063_s3 + $0x10] sm:$0xff]  ;;  %v2120_v32 = vld [vmem:[%s8067_s7 + $0x20] sm:$0xff]  ;;  %v1001_v38 = vld [vmem:[%s8063_s3 + $0x38] sm:$0xff] }
 0x124   : > { %v944_v1 = vadd.f32 %v943_v53, %v623_v19  ;;  %v2066_v36 = vadd.f32 %v2065_v40, %v6762_v4  ;;  %v5657_v29 = vpack.c.bf16 %v989_v34, %v988_v47  ;;  %v5709_v45 = vpack.c.bf16 %v2111_v22, %v2110_v26  ;;  %v2123_v34 = vld [vmem:[%s8067_s7 + $0x38] sm:$0xff]  ;;  %v4752_v22 = vld [vmem:[%s8071_s11 + $0xc8] sm:$0xff]  ;;  %v4751_v15 = vld [vmem:[%s8071_s11 + $0xc0] sm:$0xff] }
 0x125   : > { %v991_v24 = vmax.f32 %v949_v0, 0.0  ;;  %v2113_v50 = vmax.f32 %v2071_v28, 0.0  ;;  %4836 = vperm.xlu1 %5844, %v4742_v14   ;;  %4831 = vperm.xlu0 %5843, %v4741_v61   ;;  %v1000_v16 = vld [vmem:[%s8063_s3 + $0x30] sm:$0xff]  ;;  %v1003_v20 = vld [vmem:[%s8063_s3 + $0x48] sm:$0xff]  ;;  %v4754_v13 = vld [vmem:[%s8071_s11 + $0xd8] sm:$0xff] }
 0x126   : > { %v5396_v41 = vpop.f32.mrb[30].mxu1  ;;  %v5448_v60 = vpop.f32.mrb[30].mxu0  ;;  %v990_v42 = vmax.f32 %v944_v1, 0.0  ;;  %v2112_v4 = vmax.f32 %v2066_v36, 0.0  ;;  %5658 = vmatpush1.bf16.msra.mxu1 %v5657_v29  ;;  %5710 = vmatpush1.bf16.msra.mxu0 %v5709_v45  ;;  %v2122_v52 = vld [vmem:[%s8067_s7 + $0x30] sm:$0xff]  ;;  %v2125_v25 = vld [vmem:[%s8067_s7 + $0x48] sm:$0xff] }
 0x127   : > { %v959_v46 = vadd.f32 %v5396_v41, %v638_v43  ;;  %v2081_v39 = vadd.f32 %v5448_v60, %v6790_v48  ;;  %v953_v11 = vpop.f32.mrb[31].mxu1  ;;  %v2075_v2 = vpop.f32.mrb[31].mxu0  ;;  %5659 = vmatprep.subr.bf16.mxu1 %v5854_v59  ;;  %5711 = vmatprep.subr.bf16.mxu0 %v5854_v59  ;;  %v4744_v48 = vld [vmem:[%s8071_s11 + $0x88] sm:$0xff]  ;;  %v4753_v19 = vld [vmem:[%s8071_s11 + $0xd0] sm:$0xff]  ;;  %v1002_v0 = vld [vmem:[%s8063_s3 + $0x40] sm:$0xff] }
 0x128   : > { %v5660_v30 = vpack.c.bf16 %v991_v24, %v990_v42  ;;  %v5712_v49 = vpack.c.bf16 %v2113_v50, %v2112_v4  ;;  %v954_v8 = vadd.f32 %v953_v11, %v633_v17  ;;  %v2076_v31 = vadd.f32 %v2075_v2, %v6804_v62  ;;  %v2124_v28 = vld [vmem:[%s8067_s7 + $0x40] sm:$0xff]  ;;  %v1005_v47 = vld [vmem:[%s8063_s3 + $0x58] sm:$0xff]  ;;  %v4756_v53 = vld [vmem:[%s8071_s11 + $0xe8] sm:$0xff] }
 0x129   : > { %v993_v44 = vmax.f32 %v959_v46, 0.0  ;;  %v2115_v7 = vmax.f32 %v2081_v39, 0.0  ;;  %4846 = vperm.xlu1 %5844, %v4744_v48   ;;  %4841 = vperm.xlu0 %5843, %v4743_v12   ;;  %v2127_v26 = vld [vmem:[%s8067_s7 + $0x58] sm:$0xff]  ;;  %v4755_v40 = vld [vmem:[%s8071_s11 + $0xe0] sm:$0xff]  ;;  %v1004_v43 = vld [vmem:[%s8063_s3 + $0x50] sm:$0xff] }
 0x12a   : > { %v992_v58 = vmax.f32 %v954_v8, 0.0  ;;  %v2114_v21 = vmax.f32 %v2076_v31, 0.0  ;;  %5661 = vmatpush1.bf16.msra.mxu1 %v5660_v30  ;;  %5713 = vmatpush1.bf16.msra.mxu0 %v5712_v49  ;;  %v2126_v24 = vld [vmem:[%s8067_s7 + $0x50] sm:$0xff]  ;;  %v1007_v50 = vld [vmem:[%s8063_s3 + $0x68] sm:$0xff]  ;;  %v4758_v36 = vld [vmem:[%s8071_s11 + $0xf8] sm:$0xff] }
 0x12b   : > { %5662 = vmatprep.subr.bf16.mxu1 %v5854_v59  ;;  %5714 = vmatprep.subr.bf16.mxu0 %v5854_v59  ;;  %v2129_v1 = vld [vmem:[%s8067_s7 + $0x68] sm:$0xff]  ;;  %v4757_v29 = vld [vmem:[%s8071_s11 + $0xf0] sm:$0xff]  ;;  %v1006_v45 = vld [vmem:[%s8063_s3 + $0x60] sm:$0xff] }
 0x12c   : > { %v5663_v33 = vpack.c.bf16 %v993_v44, %v992_v58  ;;  %v5715_v62 = vpack.c.bf16 %v2115_v7, %v2114_v21  ;;  %v2128_v41 = vld [vmem:[%s8067_s7 + $0x60] sm:$0xff]  ;;  %v1009_v60 = vld [vmem:[%s8063_s3 + $0x78] sm:$0xff]  ;;  %v1008_v61 = vld [vmem:[%s8063_s3 + $0x70] sm:$0xff] }
 0x12d   : > { %4856 = vperm.xlu1 %5844, %v4746_v55   ;;  %4851 = vperm.xlu0 %5843, %v4745_v18   ;;  %v2131_v14 = vld [vmem:[%s8067_s7 + $0x78] sm:$0xff]  ;;  %v2130_v42 = vld [vmem:[%s8067_s7 + $0x70] sm:$0xff]  ;;  %v1011_v4 = vld [vmem:[%s8063_s3 + $0x88] sm:$0xff] }
 0x12e   : > { %5664 = vmatpush1.bf16.msra.mxu1 %v5663_v33  ;;  %5716 = vmatpush1.bf16.msra.mxu0 %v5715_v62  ;;  %v2133_v46 = vld [vmem:[%s8067_s7 + $0x88] sm:$0xff]  ;;  %v1010_v39 = vld [vmem:[%s8063_s3 + $0x80] sm:$0xff]  ;;  %v1013_v2 = vld [vmem:[%s8063_s3 + $0x98] sm:$0xff] }
 0x12f   : > { %5781 = vmatprep.subr.bf16.mxu0 %v5854_v59  ;;  %v2132_v11 = vld [vmem:[%s8067_s7 + $0x80] sm:$0xff]  ;;  %v2135_v17 = vld [vmem:[%s8067_s7 + $0x98] sm:$0xff]  ;;  %v1012_v30 = vld [vmem:[%s8063_s3 + $0x90] sm:$0xff] }
 0x130   : > { %v2134_v49 = vld [vmem:[%s8067_s7 + $0x90] sm:$0xff]  ;;  %v1015_v44 = vld [vmem:[%s8063_s3 + $0xa8] sm:$0xff]  ;;  %v1014_v8 = vld [vmem:[%s8063_s3 + $0xa0] sm:$0xff] }
 0x131   : > { %1315 = vmatmul.mubr.f32.vlgmr.msra.gmra.mrb[32].mxu1 %v994_v3  ;;  %2437 = vmatmul.mubr.f32.vlgmr.msra.gmra.mrb[32].mxu0 %v2116_v10  ;;  %v2137_v7 = vld [vmem:[%s8067_s7 + $0xa8] sm:$0xff]  ;;  %v2136_v31 = vld [vmem:[%s8067_s7 + $0xa0] sm:$0xff]  ;;  %v1017_v48 = vld [vmem:[%s8063_s3 + $0xb8] sm:$0xff] }
 0x132   : > { %1319 = vmatprep.mubr.f32.mxu1 %v997_v54  ;;  %2441 = vmatprep.mubr.f32.mxu0 %v2119_v5  ;;  %v2139_v12 = vld [vmem:[%s8067_s7 + $0xb8] sm:$0xff]  ;;  %v1016_v58 = vld [vmem:[%s8063_s3 + $0xb0] sm:$0xff]  ;;  %v1019_v33 = vld [vmem:[%s8063_s3 + $0xc8] sm:$0xff] }
 0x133   : > { %4866 = vperm.xlu1 %5844, %v4748_v56   ;;  %4861 = vperm.xlu0 %5843, %v4747_v35   ;;  %v2138_v21 = vld [vmem:[%s8067_s7 + $0xb0] sm:$0xff]  ;;  %v2141_v62 = vld [vmem:[%s8067_s7 + $0xc8] sm:$0xff]  ;;  %v1018_v55 = vld [vmem:[%s8063_s3 + $0xc0] sm:$0xff] }
 0x134   : > { %v2140_v18 = vld [vmem:[%s8067_s7 + $0xc0] sm:$0xff]  ;;  %v1021_v3 = vld [vmem:[%s8063_s3 + $0xd8] sm:$0xff]  ;;  %v1020_v54 = vld [vmem:[%s8063_s3 + $0xd0] sm:$0xff] }
 0x135   : > { %1320 = vmatmul.mubr.f32.gmra.mrb[34].mxu1 %v996_v37  ;;  %2442 = vmatmul.mubr.f32.gmra.mrb[34].mxu0 %v2118_v23  ;;  %v2143_v10 = vld [vmem:[%s8067_s7 + $0xd8] sm:$0xff]  ;;  %v2142_v5 = vld [vmem:[%s8067_s7 + $0xd0] sm:$0xff]  ;;  %v1023_v56 = vld [vmem:[%s8063_s3 + $0xe8] sm:$0xff] }
 0x136   : > { %1324 = vmatprep.mubr.f32.mxu1 %v999_v27  ;;  %2446 = vmatprep.mubr.f32.mxu0 %v2121_v57  ;;  %v2145_v35 = vld [vmem:[%s8067_s7 + $0xe8] sm:$0xff]  ;;  %v1022_v37 = vld [vmem:[%s8063_s3 + $0xe0] sm:$0xff]  ;;  %v1025_v27 = vld [vmem:[%s8063_s3 + $0xf8] sm:$0xff] }
 0x137   : > { %4876 = vperm.xlu1 %5844, %v4750_v51   ;;  %4871 = vperm.xlu0 %5843, %v4749_v6   ;;  %v2144_v23 = vld [vmem:[%s8067_s7 + $0xe0] sm:$0xff]  ;;  %v2147_v57 = vld [vmem:[%s8067_s7 + $0xf8] sm:$0xff]  ;;  %v1024_v51 = vld [vmem:[%s8063_s3 + $0xf0] sm:$0xff] }
 0x138   : > { %v2146_v6 = vld [vmem:[%s8067_s7 + $0xf0] sm:$0xff] }
 0x139   : > { %1325 = vmatmul.mubr.f32.gmra.mrb[36].mxu1 %v998_v63  ;;  %2447 = vmatmul.mubr.f32.gmra.mrb[36].mxu0 %v2120_v32  ;;  %v1027_v63 = vld [vmem:[%s8063_s3 + $0x108] sm:$0xff] }
 0x13a   : > { %1329 = vmatprep.mubr.f32.mxu1 %v1001_v38  ;;  %2451 = vmatprep.mubr.f32.mxu0 %v2123_v34  ;;  %v2149_v32 = vld [vmem:[%s8067_s7 + $0x108] sm:$0xff]  ;;  %v1026_v38 = vld [vmem:[%s8063_s3 + $0x100] sm:$0xff] }
 0x13b   : > { %4886 = vperm.xlu1 %5844, %v4752_v22   ;;  %4881 = vperm.xlu0 %5843, %v4751_v15   ;;  %v2148_v34 = vld [vmem:[%s8067_s7 + $0x100] sm:$0xff]  ;;  %v1029_v22 = vld [vmem:[%s8063_s3 + $0x118] sm:$0xff] }
 0x13c   : > { %v2151_v15 = vld [vmem:[%s8067_s7 + $0x118] sm:$0xff] }
 0x13d   : > { %1330 = vmatmul.mubr.f32.gmra.mrb[38].mxu1 %v1000_v16  ;;  %2452 = vmatmul.mubr.f32.gmra.mrb[38].mxu0 %v2122_v52  ;;  %v1028_v16 = vld [vmem:[%s8063_s3 + $0x110] sm:$0xff] }
 0x13e   : > { %1334 = vmatprep.mubr.f32.mxu1 %v1003_v20  ;;  %2456 = vmatprep.mubr.f32.mxu0 %v2125_v25  ;;  %v2150_v52 = vld [vmem:[%s8067_s7 + $0x110] sm:$0xff]  ;;  %v1031_v20 = vld [vmem:[%s8063_s3 + $0x128] sm:$0xff] }
 0x13f   : > { %4896 = vperm.xlu1 %5844, %v4754_v13   ;;  %4891 = vperm.xlu0 %5843, %v4753_v19   ;;  %v2153_v25 = vld [vmem:[%s8067_s7 + $0x128] sm:$0xff]  ;;  %v1030_v13 = vld [vmem:[%s8063_s3 + $0x120] sm:$0xff] }
 0x140   : > { %v2152_v19 = vld [vmem:[%s8067_s7 + $0x120] sm:$0xff] }
 0x141   : > { %1335 = vmatmul.mubr.f32.gmra.mrb[40].mxu1 %v1002_v0  ;;  %2457 = vmatmul.mubr.f32.gmra.mrb[40].mxu0 %v2124_v28  ;;  %v1033_v0 = vld [vmem:[%s8063_s3 + $0x138] sm:$0xff] }
 0x142   : > { %1339 = vmatprep.mubr.f32.mxu1 %v1005_v47  ;;  %2461 = vmatprep.mubr.f32.mxu0 %v2127_v26  ;;  %v2155_v28 = vld [vmem:[%s8067_s7 + $0x138] sm:$0xff]  ;;  %v1032_v47 = vld [vmem:[%s8063_s3 + $0x130] sm:$0xff] }
 0x143   : > { %4906 = vperm.xlu1 %5844, %v4756_v53   ;;  %4901 = vperm.xlu0 %5843, %v4755_v40   ;;  %v2154_v26 = vld [vmem:[%s8067_s7 + $0x130] sm:$0xff]  ;;  %v1035_v53 = vld [vmem:[%s8063_s3 + $0x148] sm:$0xff] }
 0x144   : > { %v2157_v40 = vld [vmem:[%s8067_s7 + $0x148] sm:$0xff] }
 0x145   : > { %1340 = vmatmul.mubr.f32.gmra.mrb[42].mxu1 %v1004_v43  ;;  %2462 = vmatmul.mubr.f32.gmra.mrb[42].mxu0 %v2126_v24  ;;  %v1034_v43 = vld [vmem:[%s8063_s3 + $0x140] sm:$0xff] }
 0x146   : > { %1344 = vmatprep.mubr.f32.mxu1 %v1007_v50  ;;  %2466 = vmatprep.mubr.f32.mxu0 %v2129_v1  ;;  %v2156_v24 = vld [vmem:[%s8067_s7 + $0x140] sm:$0xff]  ;;  %v1037_v50 = vld [vmem:[%s8063_s3 + $0x158] sm:$0xff] }
 0x147   : > { %4916 = vperm.xlu1 %5844, %v4758_v36   ;;  %4911 = vperm.xlu0 %5843, %v4757_v29   ;;  %v2159_v1 = vld [vmem:[%s8067_s7 + $0x158] sm:$0xff]  ;;  %v1036_v36 = vld [vmem:[%s8063_s3 + $0x150] sm:$0xff] }
 0x148   : > { %v2158_v29 = vld [vmem:[%s8067_s7 + $0x150] sm:$0xff] }
 0x149   : > { %1345 = vmatmul.mubr.f32.gmra.mrb[44].mxu1 %v1006_v45  ;;  %2467 = vmatmul.mubr.f32.gmra.mrb[44].mxu0 %v2128_v41  ;;  %v1039_v45 = vld [vmem:[%s8063_s3 + $0x168] sm:$0xff] }
 0x14a   : > { %1349 = vmatprep.mubr.f32.mxu1 %v1009_v60  ;;  %2471 = vmatprep.mubr.f32.mxu0 %v2131_v14  ;;  %v2161_v41 = vld [vmem:[%s8067_s7 + $0x168] sm:$0xff]  ;;  %v1038_v60 = vld [vmem:[%s8063_s3 + $0x160] sm:$0xff] }
 0x14b   : > { %v2160_v14 = vld [vmem:[%s8067_s7 + $0x160] sm:$0xff] }
 0x14d   : > { %1350 = vmatmul.mubr.f32.gmra.mrb[46].mxu1 %v1008_v61  ;;  %2472 = vmatmul.mubr.f32.gmra.mrb[46].mxu0 %v2130_v42  ;;  %v1041_v61 = vld [vmem:[%s8063_s3 + $0x178] sm:$0xff] }
 0x14e   : > { %1354 = vmatprep.mubr.f32.mxu1 %v1011_v4  ;;  %2476 = vmatprep.mubr.f32.mxu0 %v2133_v46  ;;  %v2163_v42 = vld [vmem:[%s8067_s7 + $0x178] sm:$0xff]  ;;  %v1040_v4 = vld [vmem:[%s8063_s3 + $0x170] sm:$0xff] }
 0x14f   : > { %v2162_v46 = vld [vmem:[%s8067_s7 + $0x170] sm:$0xff] }
 0x151   : > { %1355 = vmatmul.mubr.f32.gmra.mrb[48].mxu1 %v1010_v39  ;;  %2477 = vmatmul.mubr.f32.gmra.mrb[48].mxu0 %v2132_v11  ;;  %v1043_v39 = vld [vmem:[%s8063_s3 + $0x188] sm:$0xff] }
 0x152   : > { %1359 = vmatprep.mubr.f32.mxu1 %v1013_v2  ;;  %2481 = vmatprep.mubr.f32.mxu0 %v2135_v17  ;;  %v2165_v11 = vld [vmem:[%s8067_s7 + $0x188] sm:$0xff]  ;;  %v1042_v2 = vld [vmem:[%s8063_s3 + $0x180] sm:$0xff] }
 0x153   : > { %v2164_v17 = vld [vmem:[%s8067_s7 + $0x180] sm:$0xff] }
 0x155   : > { %1360 = vmatmul.mubr.f32.gmra.mrb[50].mxu1 %v1012_v30  ;;  %2482 = vmatmul.mubr.f32.gmra.mrb[50].mxu0 %v2134_v49  ;;  %v1045_v30 = vld [vmem:[%s8063_s3 + $0x198] sm:$0xff] }
 0x156   : > { %1364 = vmatprep.mubr.f32.mxu1 %v1015_v44  ;;  %2486 = vmatprep.mubr.f32.mxu0 %v2137_v7  ;;  %v2167_v49 = vld [vmem:[%s8067_s7 + $0x198] sm:$0xff]  ;;  %v1044_v44 = vld [vmem:[%s8063_s3 + $0x190] sm:$0xff] }
 0x157   : > { %v2166_v7 = vld [vmem:[%s8067_s7 + $0x190] sm:$0xff] }
 0x159   : > { %1365 = vmatmul.mubr.f32.gmra.mrb[52].mxu1 %v1014_v8  ;;  %2487 = vmatmul.mubr.f32.gmra.mrb[52].mxu0 %v2136_v31  ;;  %v1047_v8 = vld [vmem:[%s8063_s3 + $0x1a8] sm:$0xff] }
 0x15a   : > { %1369 = vmatprep.mubr.f32.mxu1 %v1017_v48  ;;  %2491 = vmatprep.mubr.f32.mxu0 %v2139_v12  ;;  %v2169_v31 = vld [vmem:[%s8067_s7 + $0x1a8] sm:$0xff]  ;;  %v1046_v48 = vld [vmem:[%s8063_s3 + $0x1a0] sm:$0xff] }
 0x15b   : > { %v2168_v12 = vld [vmem:[%s8067_s7 + $0x1a0] sm:$0xff] }
 0x15d   : > { %1370 = vmatmul.mubr.f32.gmra.mrb[54].mxu1 %v1016_v58  ;;  %2492 = vmatmul.mubr.f32.gmra.mrb[54].mxu0 %v2138_v21  ;;  %v1049_v58 = vld [vmem:[%s8063_s3 + $0x1b8] sm:$0xff] }
 0x15e   : > { %1374 = vmatprep.mubr.f32.mxu1 %v1019_v33  ;;  %2496 = vmatprep.mubr.f32.mxu0 %v2141_v62  ;;  %v2171_v21 = vld [vmem:[%s8067_s7 + $0x1b8] sm:$0xff]  ;;  %v1048_v33 = vld [vmem:[%s8063_s3 + $0x1b0] sm:$0xff] }
 0x15f   : > { %v2170_v62 = vld [vmem:[%s8067_s7 + $0x1b0] sm:$0xff] }
 0x161   : > { %1375 = vmatmul.mubr.f32.gmra.mrb[56].mxu1 %v1018_v55  ;;  %2497 = vmatmul.mubr.f32.gmra.mrb[56].mxu0 %v2140_v18  ;;  %v1051_v55 = vld [vmem:[%s8063_s3 + $0x1c8] sm:$0xff] }
 0x162   : > { %1379 = vmatprep.mubr.f32.mxu1 %v1021_v3  ;;  %2501 = vmatprep.mubr.f32.mxu0 %v2143_v10  ;;  %v2173_v18 = vld [vmem:[%s8067_s7 + $0x1c8] sm:$0xff]  ;;  %v1050_v3 = vld [vmem:[%s8063_s3 + $0x1c0] sm:$0xff] }
 0x163   : > { %v2172_v10 = vld [vmem:[%s8067_s7 + $0x1c0] sm:$0xff] }
 0x165   : > { %1380 = vmatmul.mubr.f32.gmra.mrb[58].mxu1 %v1020_v54  ;;  %2502 = vmatmul.mubr.f32.gmra.mrb[58].mxu0 %v2142_v5  ;;  %v1053_v54 = vld [vmem:[%s8063_s3 + $0x1d8] sm:$0xff] }
 0x166   : > { %1384 = vmatprep.mubr.f32.mxu1 %v1023_v56  ;;  %2506 = vmatprep.mubr.f32.mxu0 %v2145_v35  ;;  %v2175_v5 = vld [vmem:[%s8067_s7 + $0x1d8] sm:$0xff]  ;;  %v1052_v56 = vld [vmem:[%s8063_s3 + $0x1d0] sm:$0xff] }
 0x167   : > { %v2174_v35 = vld [vmem:[%s8067_s7 + $0x1d0] sm:$0xff] }
 0x169   : > { %1385 = vmatmul.mubr.f32.gmra.mrb[60].mxu1 %v1022_v37  ;;  %2507 = vmatmul.mubr.f32.gmra.mrb[60].mxu0 %v2144_v23  ;;  %v2215_v37 = vpop.permute.xlu0 %2214  ;;  %v1055_v23 = vld [vmem:[%s8063_s3 + $0x1e8] sm:$0xff] }
 0x16a   : > { %1389 = vmatprep.mubr.f32.mxu1 %v1025_v27  ;;  %2511 = vmatprep.mubr.f32.mxu0 %v2147_v57  ;;  %v2177_v27 = vld [vmem:[%s8067_s7 + $0x1e8] sm:$0xff]  ;;  %v1054_v57 = vld [vmem:[%s8063_s3 + $0x1e0] sm:$0xff] }
 0x16d   : > { %1390 = vmatmul.mubr.f32.gmra.mrb[62].mxu1 %v1024_v51  ;;  %2512 = vmatmul.mubr.f32.gmra.mrb[62].mxu0 %v2146_v6  ;;  %v2176_v51 = vld [vmem:[%s8067_s7 + $0x1e0] sm:$0xff]  ;;  %v2220_v6 = vpop.permute.xlu1 %2219 }
 0x16e   : > { %1394 = vmatprep.mubr.f32.mxu1 %v1027_v63  ;;  %2516 = vmatprep.mubr.f32.mxu0 %v2149_v32  ;;  %v1057_v63 = vld [vmem:[%s8063_s3 + $0x1f8] sm:$0xff] }
 0x16f   : > { %v2179_v32 = vld [vmem:[%s8067_s7 + $0x1f8] sm:$0xff] }
 0x171   : > { %1395 = vmatmul.mubr.f32.gmra.mrb[64].mxu1 %v1026_v38  ;;  %2517 = vmatmul.mubr.f32.gmra.mrb[64].mxu0 %v2148_v34  ;;  %v7264_v38 = vpop.permute.xlu0 %2224  ;;  %v1056_v34 = vld [vmem:[%s8063_s3 + $0x1f0] sm:$0xff] }
 0x172   : > { %1399 = vmatprep.mubr.f32.mxu1 %v1029_v22  ;;  %2521 = vmatprep.mubr.f32.mxu0 %v2151_v15  ;;  %v2178_v22 = vld [vmem:[%s8067_s7 + $0x1f0] sm:$0xff]  ;;  %v7272_v15 = vpop.permute.xlu1 %2229 }
 0x175   : > { %1400 = vmatmul.mubr.f32.gmra.mrb[66].mxu1 %v1028_v16  ;;  %2522 = vmatmul.mubr.f32.gmra.mrb[66].mxu0 %v2150_v52  ;;  %v1093_v16 = vpop.permute.xlu0 %1092 }
 0x176   : > { %1404 = vmatprep.mubr.f32.mxu1 %v1031_v20  ;;  %2526 = vmatprep.mubr.f32.mxu0 %v2153_v25  ;;  %v1098_v52 = vpop.permute.xlu1 %1097 }
 0x179   : > { %1405 = vmatmul.mubr.f32.gmra.mrb[68].mxu1 %v1030_v13  ;;  %2527 = vmatmul.mubr.f32.gmra.mrb[68].mxu0 %v2152_v19  ;;  %v7274_v20 = vpop.permute.xlu0 %2234 }
 0x17a   : > { %1409 = vmatprep.mubr.f32.mxu1 %v1033_v0  ;;  %2531 = vmatprep.mubr.f32.mxu0 %v2155_v28  ;;  %v7276_v25 = vpop.permute.xlu1 %2239 }
 0x17d   : > { %1410 = vmatmul.mubr.f32.gmra.mrb[70].mxu1 %v1032_v47  ;;  %2532 = vmatmul.mubr.f32.gmra.mrb[70].mxu0 %v2154_v26  ;;  %v1103_v13 = vpop.permute.xlu0 %1102 }
 0x17e   : > { %1414 = vmatprep.mubr.f32.mxu1 %v1035_v53  ;;  %2536 = vmatprep.mubr.f32.mxu0 %v2157_v40  ;;  %v1108_v19 = vpop.permute.xlu1 %1107 }
 0x181   : > { %1415 = vmatmul.mubr.f32.gmra.mrb[72].mxu1 %v1034_v43  ;;  %2537 = vmatmul.mubr.f32.gmra.mrb[72].mxu0 %v2156_v24  ;;  %v7278_v0 = vpop.permute.xlu0 %2244 }
 0x182   : > { %1419 = vmatprep.mubr.f32.mxu1 %v1037_v50  ;;  %2541 = vmatprep.mubr.f32.mxu0 %v2159_v1  ;;  %v7280_v28 = vpop.permute.xlu1 %2249 }
 0x185   : > { %1420 = vmatmul.mubr.f32.gmra.mrb[74].mxu1 %v1036_v36  ;;  %2542 = vmatmul.mubr.f32.gmra.mrb[74].mxu0 %v2158_v29  ;;  %v7282_v47 = vpop.permute.xlu0 %1112 }
 0x186   : > { %1424 = vmatprep.mubr.f32.mxu1 %v1039_v45  ;;  %2546 = vmatprep.mubr.f32.mxu0 %v2161_v41  ;;  %v7284_v26 = vpop.permute.xlu1 %1117 }
 0x189   : > { %1425 = vmatmul.mubr.f32.gmra.mrb[76].mxu1 %v1038_v60  ;;  %2547 = vmatmul.mubr.f32.gmra.mrb[76].mxu0 %v2160_v14  ;;  %v7286_v53 = vpop.permute.xlu0 %2254 }
 0x18a   : > { %1429 = vmatprep.mubr.f32.mxu1 %v1041_v61  ;;  %2551 = vmatprep.mubr.f32.mxu0 %v2163_v42  ;;  %v7288_v40 = vpop.permute.xlu1 %2259 }
 0x18d   : > { %1430 = vmatmul.mubr.f32.gmra.mrb[78].mxu1 %v1040_v4  ;;  %2552 = vmatmul.mubr.f32.gmra.mrb[78].mxu0 %v2162_v46  ;;  %v7290_v43 = vpop.permute.xlu0 %1122 }
 0x18e   : > { %1434 = vmatprep.mubr.f32.mxu1 %v1043_v39  ;;  %2556 = vmatprep.mubr.f32.mxu0 %v2165_v11  ;;  %v7292_v24 = vpop.permute.xlu1 %1127 }
 0x191   : > { %1435 = vmatmul.mubr.f32.gmra.mrb[80].mxu1 %v1042_v2  ;;  %2557 = vmatmul.mubr.f32.gmra.mrb[80].mxu0 %v2164_v17  ;;  %v7294_v50 = vpop.permute.xlu0 %2264 }
 0x192   : > { %1439 = vmatprep.mubr.f32.mxu1 %v1045_v30  ;;  %2561 = vmatprep.mubr.f32.mxu0 %v2167_v49  ;;  %v7296_v1 = vpop.permute.xlu1 %2269 }
 0x195   : > { %1440 = vmatmul.mubr.f32.gmra.mrb[82].mxu1 %v1044_v44  ;;  %2562 = vmatmul.mubr.f32.gmra.mrb[82].mxu0 %v2166_v7  ;;  %v7298_v36 = vpop.permute.xlu0 %1132 }
 0x196   : > { %1444 = vmatprep.mubr.f32.mxu1 %v1047_v8  ;;  %2566 = vmatprep.mubr.f32.mxu0 %v2169_v31  ;;  %v7300_v29 = vpop.permute.xlu1 %1137 }
 0x199   : > { %1445 = vmatmul.mubr.f32.gmra.mrb[84].mxu1 %v1046_v48  ;;  %2567 = vmatmul.mubr.f32.gmra.mrb[84].mxu0 %v2168_v12  ;;  %v7302_v45 = vpop.permute.xlu0 %2274 }
 0x19a   : > { %1449 = vmatprep.mubr.f32.mxu1 %v1049_v58  ;;  %2571 = vmatprep.mubr.f32.mxu0 %v2171_v21  ;;  %v7304_v41 = vpop.permute.xlu1 %2279 }
 0x19d   : > { %1450 = vmatmul.mubr.f32.gmra.mrb[86].mxu1 %v1048_v33  ;;  %2572 = vmatmul.mubr.f32.gmra.mrb[86].mxu0 %v2170_v62  ;;  %v7306_v60 = vpop.permute.xlu0 %1142 }
 0x19e   : > { %1454 = vmatprep.mubr.f32.mxu1 %v1051_v55  ;;  %2576 = vmatprep.mubr.f32.mxu0 %v2173_v18  ;;  %v7308_v14 = vpop.permute.xlu1 %1147 }
 0x1a1   : > { %1455 = vmatmul.mubr.f32.gmra.mrb[88].mxu1 %v1050_v3  ;;  %2577 = vmatmul.mubr.f32.gmra.mrb[88].mxu0 %v2172_v10  ;;  %v7310_v61 = vpop.permute.xlu0 %2284 }
 0x1a2   : > { %1459 = vmatprep.mubr.f32.mxu1 %v1053_v54  ;;  %2581 = vmatprep.mubr.f32.mxu0 %v2175_v5  ;;  %v7312_v42 = vpop.permute.xlu1 %2289 }
 0x1a5   : > { %1460 = vmatmul.mubr.f32.gmra.mrb[90].mxu1 %v1052_v56  ;;  %2582 = vmatmul.mubr.f32.gmra.mrb[90].mxu0 %v2174_v35  ;;  %v7314_v4 = vpop.permute.xlu0 %1152 }
 0x1a6   : > { %1464 = vmatprep.mubr.f32.mxu1 %v1055_v23  ;;  %2586 = vmatprep.mubr.f32.mxu0 %v2177_v27  ;;  %v7316_v46 = vpop.permute.xlu1 %1157 }
 0x1a9   : > { %1465 = vmatmul.mubr.f32.gmra.mrb[92].mxu1 %v1054_v57  ;;  %2587 = vmatmul.mubr.f32.gmra.mrb[92].mxu0 %v2176_v51  ;;  %v7318_v39 = vpop.permute.xlu0 %2294 }
 0x1aa   : > { %1469 = vmatprep.mubr.f32.mxu1 %v1057_v63  ;;  %2591 = vmatprep.mubr.f32.mxu0 %v2179_v32  ;;  %v7320_v11 = vpop.permute.xlu1 %2299 }
 0x1ad   : > { %1470 = vmatmul.mubr.f32.gmra.mrb[94].mxu1 %v1056_v34  ;;  %2592 = vmatmul.mubr.f32.gmra.mrb[94].mxu0 %v2178_v22  ;;  %v7322_v2 = vpop.permute.xlu0 %1162 }
 0x1ae   : > { %v7324_v31 = vpop.permute.xlu1 %1167 }
 0x1b1   : > { %v7328_v3 = vpop.permute.xlu0 %2304 }
 0x1b2   : > { %v7333_v57 = vpop.permute.xlu1 %2309 }
 0x204   : > { %v1316_v17 = vpop.f32.mrb[32].mxu1  ;;  %v2438_v30 = vpop.f32.mrb[32].mxu0 }
 0x205   : > { %v1317_v49 = vadd.f32 %v1316_v17, %v1093_v16  ;;  %v2439_v44 = vadd.f32 %v2438_v30, %v2215_v37  ;;  %v2440_v7 = vpop.f32.mrb[33].mxu0  ;;  %v1318_v8 = vpop.f32.mrb[33].mxu1 }
 0x207   : > { %v1475_v48 = vmax.f32 %v1317_v49, 0.0  ;;  %v2597_v12 = vmax.f32 %v2439_v44, 0.0 }
 0x208   : > { %v1321_v58 = vpop.f32.mrb[34].mxu1  ;;  %v2443_v21 = vpop.f32.mrb[34].mxu0 }
 0x209   : > { %1507 = vst.msk [vmem:[#allocation2] sm:$0xff] %vm640_vm0, %v1475_v48  ;;  %2629 = vst.msk [vmem:[#allocation3] sm:$0xff] %vm640_vm0, %v2597_v12  ;;  %v1322_v33 = vadd.f32 %v1321_v58, %v1098_v52  ;;  %v2444_v62 = vadd.f32 %v2443_v21, %v2220_v6  ;;  %v2445_v55 = vpop.f32.mrb[35].mxu0  ;;  %v1323_v18 = vpop.f32.mrb[35].mxu1 }
 0x20a   : > { %v7345_v21 = vpop.permute.xlu1 %1177 }
 0x20b   : > { %v1476_v10 = vmax.f32 %v1322_v33, 0.0  ;;  %v2598_v54 = vmax.f32 %v2444_v62, 0.0 }
 0x20c   : > { %v1326_v5 = vpop.f32.mrb[36].mxu1  ;;  %v2448_v56 = vpop.f32.mrb[36].mxu0 }
 0x20d   : > { %1508 = vst.msk [vmem:[#allocation2 + $0x8] sm:$0xff] %vm640_vm0, %v1476_v10  ;;  %2630 = vst.msk [vmem:[#allocation3 + $0x8] sm:$0xff] %vm640_vm0, %v2598_v54  ;;  %v1327_v35 = vadd.f32 %v1326_v5, %v1103_v13  ;;  %v2449_v37 = vadd.f32 %v2448_v56, %v7264_v38  ;;  %v1328_v23 = vpop.f32.mrb[37].mxu1  ;;  %v2450_v27 = vpop.f32.mrb[37].mxu0 }
 0x20e   : > { %v7339_v13 = vpop.permute.xlu0 %1172 }
 0x20f   : > { %v1477_v51 = vmax.f32 %v1327_v35, 0.0  ;;  %v2599_v6 = vmax.f32 %v2449_v37, 0.0 }
 0x210   : > { %v1331_v63 = vpop.f32.mrb[38].mxu1  ;;  %v2453_v32 = vpop.f32.mrb[38].mxu0  ;;  %v2661_v34 = vld [vmem:[#allocation2] sm:$0xff] }
 0x211   : > { %1509 = vst.msk [vmem:[#allocation2 + $0x10] sm:$0xff] %vm640_vm0, %v1477_v51  ;;  %2631 = vst.msk [vmem:[#allocation3 + $0x10] sm:$0xff] %vm640_vm0, %v2599_v6  ;;  %v1332_v22 = vadd.f32 %v1331_v63, %v1108_v19  ;;  %v2454_v16 = vadd.f32 %v2453_v32, %v7272_v15  ;;  %5453 = vmatprep.mubr.msk.f32.mxu1 %vm640_vm0, %v2661_v34  ;;  %v1333_v52 = vpop.f32.mrb[39].mxu1  ;;  %v2455_v38 = vpop.f32.mrb[39].mxu0  ;;  %v2663_v7 = vld [vmem:[#allocation3] sm:$0xff] }
 0x212   : > { %v7351_v56 = vpop.permute.xlu0 %2314 }
 0x213   : > { %v1478_v17 = vmax.f32 %v1332_v22, 0.0  ;;  %v2600_v30 = vmax.f32 %v2454_v16, 0.0  ;;  %v7359_v16 = vpop.permute.xlu1 %2319 }
 0x214   : > { %v1336_v49 = vpop.f32.mrb[40].mxu1  ;;  %v2458_v44 = vpop.f32.mrb[40].mxu0  ;;  %v2664_v8 = vld [vmem:[#allocation3 + $0x8] sm:$0xff] }
 0x215   : > { %1510 = vst.msk [vmem:[#allocation2 + $0x18] sm:$0xff] %vm640_vm0, %v1478_v17  ;;  %2632 = vst.msk [vmem:[#allocation3 + $0x18] sm:$0xff] %vm640_vm0, %v2600_v30  ;;  %v1337_v19 = vadd.f32 %v1336_v49, %v7282_v47  ;;  %v2459_v15 = vadd.f32 %v2458_v44, %v7274_v20  ;;  %v1338_v48 = vpop.f32.mrb[41].mxu1  ;;  %v2460_v12 = vpop.f32.mrb[41].mxu0  ;;  %v5717_v58 = vpack.c.bf16 %v2664_v8, %v2663_v7  ;;  %v2662_v5 = vld [vmem:[#allocation2 + $0x8] sm:$0xff] }
 0x216   : > { %v7365_v8 = vpop.permute.xlu0 %1182 }
 0x217   : > { %v1479_v33 = vmax.f32 %v1337_v19, 0.0  ;;  %v2601_v62 = vmax.f32 %v2459_v15, 0.0  ;;  %5718 = vmatprep.subr.bf16.mxu1 %v5717_v58 }
 0x218   : > { %v1341_v55 = vpop.f32.mrb[42].mxu1  ;;  %v2463_v18 = vpop.f32.mrb[42].mxu0  ;;  %5720 = vmatpush3.bf16.msra.mxu1 %v5717_v58  ;;  %v2748_v23 = vld [vmem:[#allocation2 + $0x10] sm:$0xff] }
 0x219   : > { %1511 = vst.msk [vmem:[#allocation2 + $0x20] sm:$0xff] %vm640_vm0, %v1479_v33  ;;  %2633 = vst.msk [vmem:[#allocation3 + $0x20] sm:$0xff] %vm640_vm0, %v2601_v62  ;;  %v1342_v10 = vadd.f32 %v1341_v55, %v7284_v26  ;;  %v2464_v47 = vadd.f32 %v2463_v18, %v7276_v25  ;;  %v1343_v20 = vpop.f32.mrb[43].mxu1  ;;  %v2465_v54 = vpop.f32.mrb[43].mxu0  ;;  %v2750_v6 = vld [vmem:[#allocation3 + $0x10] sm:$0xff] }
 0x21b   : > { %v1480_v35 = vmax.f32 %v1342_v10, 0.0  ;;  %v2602_v37 = vmax.f32 %v2464_v47, 0.0  ;;  %5454 = vmatmul.mubr.msk.f32.vlgmr.msra.gmra.mrb[96].mxu1 %vm640_vm0, %v2662_v5  ;;  %v7373_v47 = vpop.permute.xlu1 %1187 }
 0x21c   : > { %v1346_v27 = vpop.f32.mrb[44].mxu1  ;;  %v2468_v51 = vpop.f32.mrb[44].mxu0  ;;  %5460 = vmatprep.mubr.msk.f32.mxu1 %vm640_vm0, %v2748_v23  ;;  %v2751_v63 = vld [vmem:[#allocation3 + $0x18] sm:$0xff] }
 0x21d   : > { %1512 = vst.msk [vmem:[#allocation2 + $0x28] sm:$0xff] %vm640_vm0, %v1480_v35  ;;  %2634 = vst.msk [vmem:[#allocation3 + $0x28] sm:$0xff] %vm640_vm0, %v2602_v37  ;;  %v1347_v25 = vadd.f32 %v1346_v27, %v7290_v43  ;;  %v2469_v26 = vadd.f32 %v2468_v51, %v7278_v0  ;;  %v1348_v32 = vpop.f32.mrb[45].mxu1  ;;  %v2470_v34 = vpop.f32.mrb[45].mxu0  ;;  %v5721_v22 = vpack.c.bf16 %v2751_v63, %v2750_v6  ;;  %v2749_v7 = vld [vmem:[#allocation2 + $0x18] sm:$0xff] }
 0x21e   : > { %v7379_v51 = vpop.permute.xlu0 %2324 }
 0x21f   : > { %v1481_v52 = vmax.f32 %v1347_v25, 0.0  ;;  %v2603_v38 = vmax.f32 %v2469_v26, 0.0  ;;  %5722 = vmatprep.subr.bf16.mxu1 %v5721_v22 }
 0x220   : > { %v1351_v17 = vpop.f32.mrb[46].mxu1  ;;  %v2473_v30 = vpop.f32.mrb[46].mxu0  ;;  %5724 = vmatpush3.bf16.msra.mxu1 %v5721_v22  ;;  %v2835_v48 = vld [vmem:[#allocation2 + $0x20] sm:$0xff] }
 0x221   : > { %1513 = vst.msk [vmem:[#allocation2 + $0x30] sm:$0xff] %vm640_vm0, %v1481_v52  ;;  %2635 = vst.msk [vmem:[#allocation3 + $0x30] sm:$0xff] %vm640_vm0, %v2603_v38  ;;  %v1352_v49 = vadd.f32 %v1351_v17, %v7292_v24  ;;  %v2474_v43 = vadd.f32 %v2473_v30, %v7280_v28  ;;  %v1353_v0 = vpop.f32.mrb[47].mxu1  ;;  %v2475_v44 = vpop.f32.mrb[47].mxu0  ;;  %v2837_v33 = vld [vmem:[#allocation3 + $0x20] sm:$0xff] }
 0x222   : > { %v7387_v30 = vpop.permute.xlu1 %2329 }
 0x223   : > { %v1482_v19 = vmax.f32 %v1352_v49, 0.0  ;;  %v2604_v15 = vmax.f32 %v2474_v43, 0.0  ;;  %5461 = vmatmul.mubr.msk.f32.vlgmr.msra.gmra.mrb[98].mxu1 %vm640_vm0, %v2749_v7 }
 0x224   : > { %v1356_v12 = vpop.f32.mrb[48].mxu1  ;;  %v2478_v58 = vpop.f32.mrb[48].mxu0  ;;  %5467 = vmatprep.mubr.msk.f32.mxu1 %vm640_vm0, %v2835_v48  ;;  %v2838_v62 = vld [vmem:[#allocation3 + $0x28] sm:$0xff] }
 0x225   : > { %1514 = vst.msk [vmem:[#allocation2 + $0x38] sm:$0xff] %vm640_vm0, %v1482_v19  ;;  %2636 = vst.msk [vmem:[#allocation3 + $0x38] sm:$0xff] %vm640_vm0, %v2604_v15  ;;  %v1357_v28 = vadd.f32 %v1356_v12, %v7298_v36  ;;  %v2479_v24 = vadd.f32 %v2478_v58, %v7286_v53  ;;  %v1358_v55 = vpop.f32.mrb[49].mxu1  ;;  %v2480_v18 = vpop.f32.mrb[49].mxu0  ;;  %v5725_v10 = vpack.c.bf16 %v2838_v62, %v2837_v33  ;;  %v2836_v27 = vld [vmem:[#allocation2 + $0x28] sm:$0xff] }
 0x226   : > { %v7393_v48 = vpop.permute.xlu0 %1192 }
 0x227   : > { %v1483_v20 = vmax.f32 %v1357_v28, 0.0  ;;  %v2605_v54 = vmax.f32 %v2479_v24, 0.0  ;;  %5726 = vmatprep.subr.bf16.mxu1 %v5725_v10 }
 0x228   : > { %v1361_v5 = vpop.f32.mrb[50].mxu1  ;;  %v2483_v35 = vpop.f32.mrb[50].mxu0  ;;  %5728 = vmatpush3.bf16.msra.mxu1 %v5725_v10  ;;  %v2922_v25 = vld [vmem:[#allocation2 + $0x30] sm:$0xff] }
 0x229   : > { %1515 = vst.msk [vmem:[#allocation2 + $0x40] sm:$0xff] %vm640_vm0, %v1483_v20  ;;  %2637 = vst.msk [vmem:[#allocation3 + $0x40] sm:$0xff] %vm640_vm0, %v2605_v54  ;;  %v1362_v37 = vadd.f32 %v1361_v5, %v7300_v29  ;;  %v2484_v36 = vadd.f32 %v2483_v35, %v7288_v40  ;;  %v1363_v53 = vpop.f32.mrb[51].mxu1  ;;  %v2485_v23 = vpop.f32.mrb[51].mxu0  ;;  %v2924_v34 = vld [vmem:[#allocation3 + $0x30] sm:$0xff] }
 0x22a   : > { %v7401_v54 = vpop.permute.xlu1 %1197 }
 0x22b   : > { %v1484_v6 = vmax.f32 %v1362_v37, 0.0  ;;  %v2606_v63 = vmax.f32 %v2484_v36, 0.0  ;;  %5468 = vmatmul.mubr.msk.f32.vlgmr.msra.gmra.mrb[100].mxu1 %vm640_vm0, %v2836_v27 }
 0x22c   : > { %v1366_v26 = vpop.f32.mrb[52].mxu1  ;;  %v2488_v32 = vpop.f32.mrb[52].mxu0  ;;  %5474 = vmatprep.mubr.msk.f32.mxu1 %vm640_vm0, %v2922_v25  ;;  %v2925_v22 = vld [vmem:[#allocation3 + $0x38] sm:$0xff] }
 0x22d   : > { %1516 = vst.msk [vmem:[#allocation2 + $0x48] sm:$0xff] %vm640_vm0, %v1484_v6  ;;  %2638 = vst.msk [vmem:[#allocation3 + $0x48] sm:$0xff] %vm640_vm0, %v2606_v63  ;;  %v1367_v40 = vadd.f32 %v1366_v26, %v7306_v60  ;;  %v2489_v29 = vadd.f32 %v2488_v32, %v7294_v50  ;;  %v1368_v52 = vpop.f32.mrb[53].mxu1  ;;  %v2490_v38 = vpop.f32.mrb[53].mxu0  ;;  %v5729_v17 = vpack.c.bf16 %v2925_v22, %v2924_v34  ;;  %v2923_v15 = vld [vmem:[#allocation2 + $0x38] sm:$0xff] }
 0x22e   : > { %v7407_v6 = vpop.permute.xlu0 %2334 }
 0x22f   : > { %v1485_v49 = vmax.f32 %v1367_v40, 0.0  ;;  %v2607_v43 = vmax.f32 %v2489_v29, 0.0  ;;  %5730 = vmatprep.subr.bf16.mxu1 %v5729_v17 }
 0x230   : > { %v1371_v0 = vpop.f32.mrb[54].mxu1  ;;  %v2493_v44 = vpop.f32.mrb[54].mxu0  ;;  %5732 = vmatpush3.bf16.msra.mxu1 %v5729_v17  ;;  %v3009_v33 = vld [vmem:[#allocation2 + $0x40] sm:$0xff] }
 0x231   : > { %1517 = vst.msk [vmem:[#allocation2 + $0x50] sm:$0xff] %vm640_vm0, %v1485_v49  ;;  %2639 = vst.msk [vmem:[#allocation3 + $0x50] sm:$0xff] %vm640_vm0, %v2607_v43  ;;  %v1372_v7 = vadd.f32 %v1371_v0, %v7308_v14  ;;  %v2494_v60 = vadd.f32 %v2493_v44, %v7296_v1  ;;  %v1373_v50 = vpop.f32.mrb[55].mxu1  ;;  %v2495_v19 = vpop.f32.mrb[55].mxu0  ;;  %v3011_v24 = vld [vmem:[#allocation3 + $0x40] sm:$0xff] }
 0x232   : > { %v7415_v17 = vpop.permute.xlu1 %2339  ;;  %v7421_v19 = vpop.permute.xlu0 %1202 }
 0x233   : > { %v1486_v12 = vmax.f32 %v1372_v7, 0.0  ;;  %v2608_v58 = vmax.f32 %v2494_v60, 0.0  ;;  %5475 = vmatmul.mubr.msk.f32.vlgmr.msra.gmra.mrb[102].mxu1 %vm640_vm0, %v2923_v15 }
 0x234   : > { %v1376_v62 = vpop.f32.mrb[56].mxu1  ;;  %v2498_v28 = vpop.f32.mrb[56].mxu0  ;;  %5481 = vmatprep.mubr.msk.f32.mxu1 %vm640_vm0, %v3009_v33  ;;  %v3012_v55 = vld [vmem:[#allocation3 + $0x48] sm:$0xff] }
 0x235   : > { %1518 = vst.msk [vmem:[#allocation2 + $0x58] sm:$0xff] %vm640_vm0, %v1486_v12  ;;  %2640 = vst.msk [vmem:[#allocation3 + $0x58] sm:$0xff] %vm640_vm0, %v2608_v58  ;;  %v1377_v1 = vadd.f32 %v1376_v62, %v7314_v4  ;;  %v2499_v14 = vadd.f32 %v2498_v28, %v7302_v45  ;;  %v1378_v18 = vpop.f32.mrb[57].mxu1  ;;  %v2500_v10 = vpop.f32.mrb[57].mxu0  ;;  %v5733_v20 = vpack.c.bf16 %v3012_v55, %v3011_v24  ;;  %v3010_v27 = vld [vmem:[#allocation2 + $0x48] sm:$0xff] }
 0x236   : > { %v7429_v18 = vpop.permute.xlu1 %1207 }
 0x237   : > { %v1487_v5 = vmax.f32 %v1377_v1, 0.0  ;;  %v2609_v35 = vmax.f32 %v2499_v14, 0.0  ;;  %5734 = vmatprep.subr.bf16.mxu1 %v5733_v20 }
 0x238   : > { %v1381_v37 = vpop.f32.mrb[58].mxu1  ;;  %v2503_v36 = vpop.f32.mrb[58].mxu0  ;;  %5736 = vmatpush3.bf16.msra.mxu1 %v5733_v20  ;;  %v3096_v26 = vld [vmem:[#allocation2 + $0x50] sm:$0xff] }
 0x239   : > { %1519 = vst.msk [vmem:[#allocation2 + $0x60] sm:$0xff] %vm640_vm0, %v1487_v5  ;;  %2641 = vst.msk [vmem:[#allocation3 + $0x60] sm:$0xff] %vm640_vm0, %v2609_v35  ;;  %v1382_v53 = vadd.f32 %v1381_v37, %v7316_v46  ;;  %v2504_v4 = vadd.f32 %v2503_v36, %v7304_v41  ;;  %v1383_v45 = vpop.f32.mrb[59].mxu1  ;;  %v2505_v23 = vpop.f32.mrb[59].mxu0  ;;  %v3098_v22 = vld [vmem:[#allocation3 + $0x50] sm:$0xff] }
 0x23b   : > { %v1488_v63 = vmax.f32 %v1382_v53, 0.0  ;;  %v2610_v25 = vmax.f32 %v2504_v4, 0.0  ;;  %5482 = vmatmul.mubr.msk.f32.vlgmr.msra.gmra.mrb[104].mxu1 %vm640_vm0, %v3010_v27  ;;  %v7435_v4 = vpop.permute.xlu0 %2344 }
 0x23c   : > { %v1386_v32 = vpop.f32.mrb[60].mxu1  ;;  %v2508_v34 = vpop.f32.mrb[60].mxu0  ;;  %5488 = vmatprep.mubr.msk.f32.mxu1 %vm640_vm0, %v3096_v26  ;;  %v3099_v40 = vld [vmem:[#allocation3 + $0x58] sm:$0xff] }
 0x23d   : > { %1520 = vst.msk [vmem:[#allocation2 + $0x68] sm:$0xff] %vm640_vm0, %v1488_v63  ;;  %2642 = vst.msk [vmem:[#allocation3 + $0x68] sm:$0xff] %vm640_vm0, %v2610_v25  ;;  %v1387_v41 = vadd.f32 %v1386_v32, %v7322_v2  ;;  %v2509_v46 = vadd.f32 %v2508_v34, %v7310_v61  ;;  %v1388_v29 = vpop.f32.mrb[61].mxu1  ;;  %v2510_v52 = vpop.f32.mrb[61].mxu0  ;;  %v5737_v38 = vpack.c.bf16 %v3099_v40, %v3098_v22  ;;  %v3097_v50 = vld [vmem:[#allocation2 + $0x58] sm:$0xff] }
 0x23f   : > { %v1489_v49 = vmax.f32 %v1387_v41, 0.0  ;;  %v2611_v43 = vmax.f32 %v2509_v46, 0.0  ;;  %5738 = vmatprep.subr.bf16.mxu1 %v5737_v38  ;;  %v7443_v41 = vpop.permute.xlu1 %2349 }
 0x240   : > { %v1391_v0 = vpop.f32.mrb[62].mxu1  ;;  %v2513_v44 = vpop.f32.mrb[62].mxu0  ;;  %5740 = vmatpush3.bf16.msra.mxu1 %v5737_v38  ;;  %v3183_v58 = vld [vmem:[#allocation2 + $0x60] sm:$0xff] }
 0x241   : > { %1521 = vst.msk [vmem:[#allocation2 + $0x70] sm:$0xff] %vm640_vm0, %v1489_v49  ;;  %2643 = vst.msk [vmem:[#allocation3 + $0x70] sm:$0xff] %vm640_vm0, %v2611_v43  ;;  %v1392_v7 = vadd.f32 %v1391_v0, %v7324_v31  ;;  %v2514_v2 = vadd.f32 %v2513_v44, %v7312_v42  ;;  %v1393_v61 = vpop.f32.mrb[63].mxu1  ;;  %v2515_v60 = vpop.f32.mrb[63].mxu0  ;;  %v3185_v28 = vld [vmem:[#allocation3 + $0x60] sm:$0xff] }
 0x242   : > { %v7449_v44 = vpop.permute.xlu0 %1212 }
 0x243   : > { %v1490_v15 = vmax.f32 %v1392_v7, 0.0  ;;  %v2612_v12 = vmax.f32 %v2514_v2, 0.0  ;;  %5489 = vmatmul.mubr.msk.f32.vlgmr.msra.gmra.mrb[106].mxu1 %vm640_vm0, %v3097_v50 }
 0x244   : > { %v1396_v33 = vpop.f32.mrb[64].mxu1  ;;  %v2518_v62 = vpop.f32.mrb[64].mxu0  ;;  %5495 = vmatprep.mubr.msk.f32.mxu1 %vm640_vm0, %v3183_v58  ;;  %v3186_v24 = vld [vmem:[#allocation3 + $0x68] sm:$0xff] }
 0x245   : > { %1522 = vst.msk [vmem:[#allocation2 + $0x78] sm:$0xff] %vm640_vm0, %v1490_v15  ;;  %2644 = vst.msk [vmem:[#allocation3 + $0x78] sm:$0xff] %vm640_vm0, %v2612_v12  ;;  %v1397_v42 = vadd.f32 %v1396_v33, %v7339_v13  ;;  %v2519_v31 = vadd.f32 %v2518_v62, %v7318_v39  ;;  %v1398_v55 = vpop.f32.mrb[65].mxu1  ;;  %v2520_v1 = vpop.f32.mrb[65].mxu0  ;;  %v5741_v14 = vpack.c.bf16 %v3186_v24, %v3185_v28  ;;  %v3184_v53 = vld [vmem:[#allocation2 + $0x68] sm:$0xff] }
 0x246   : > { %v7457_v28 = vpop.permute.xlu1 %1217 }
 0x247   : > { %v1491_v10 = vmax.f32 %v1397_v42, 0.0  ;;  %v2613_v20 = vmax.f32 %v2519_v31, 0.0  ;;  %5742 = vmatprep.subr.bf16.mxu1 %v5741_v14 }
 0x248   : > { %v1401_v5 = vpop.f32.mrb[66].mxu1  ;;  %v2523_v35 = vpop.f32.mrb[66].mxu0  ;;  %5744 = vmatpush3.bf16.msra.mxu1 %v5741_v14  ;;  %v3270_v27 = vld [vmem:[#allocation2 + $0x70] sm:$0xff] }
 0x249   : > { %1523 = vst.msk [vmem:[#allocation2 + $0x80] sm:$0xff] %vm640_vm0, %v1491_v10  ;;  %2645 = vst.msk [vmem:[#allocation3 + $0x80] sm:$0xff] %vm640_vm0, %v2613_v20  ;;  %v1402_v37 = vadd.f32 %v1401_v5, %v7345_v21  ;;  %v2524_v13 = vadd.f32 %v2523_v35, %v7320_v11  ;;  %v1403_v39 = vpop.f32.mrb[67].mxu1  ;;  %v2525_v36 = vpop.f32.mrb[67].mxu0  ;;  %v3272_v26 = vld [vmem:[#allocation3 + $0x70] sm:$0xff] }
 0x24a   : > { %v7463_v20 = vpop.permute.xlu0 %2354 }
 0x24b   : > { %v1492_v45 = vmax.f32 %v1402_v37, 0.0  ;;  %v2614_v23 = vmax.f32 %v2524_v13, 0.0  ;;  %5496 = vmatmul.mubr.msk.f32.vlgmr.msra.gmra.mrb[108].mxu1 %vm640_vm0, %v3184_v53 }
 0x24c   : > { %v1406_v63 = vpop.f32.mrb[68].mxu1  ;;  %v2528_v25 = vpop.f32.mrb[68].mxu0  ;;  %5502 = vmatprep.mubr.msk.f32.mxu1 %vm640_vm0, %v3270_v27  ;;  %v3273_v32 = vld [vmem:[#allocation3 + $0x78] sm:$0xff] }
 0x24d   : > { %1524 = vst.msk [vmem:[#allocation2 + $0x88] sm:$0xff] %vm640_vm0, %v1492_v45  ;;  %2646 = vst.msk [vmem:[#allocation3 + $0x88] sm:$0xff] %vm640_vm0, %v2614_v23  ;;  %v1407_v11 = vadd.f32 %v1406_v63, %v7365_v8  ;;  %v2529_v21 = vadd.f32 %v2528_v25, %v7328_v3  ;;  %v1408_v34 = vpop.f32.mrb[69].mxu1  ;;  %v2530_v22 = vpop.f32.mrb[69].mxu0  ;;  %v5745_v40 = vpack.c.bf16 %v3273_v32, %v3272_v26  ;;  %v3271_v0 = vld [vmem:[#allocation2 + $0x78] sm:$0xff] }
 0x24e   : > { %v7471_v63 = vpop.permute.xlu1 %2359 }
 0x24f   : > { %v1493_v46 = vmax.f32 %v1407_v11, 0.0  ;;  %v2615_v29 = vmax.f32 %v2529_v21, 0.0  ;;  %5746 = vmatprep.subr.bf16.mxu1 %v5745_v40 }
 0x250   : > { %v1411_v52 = vpop.f32.mrb[70].mxu1  ;;  %v2533_v38 = vpop.f32.mrb[70].mxu0  ;;  %5748 = vmatpush3.bf16.msra.mxu1 %v5745_v40  ;;  %v3357_v61 = vld [vmem:[#allocation2 + $0x80] sm:$0xff] }
 0x251   : > { %1525 = vst.msk [vmem:[#allocation2 + $0x90] sm:$0xff] %vm640_vm0, %v1493_v46  ;;  %2647 = vst.msk [vmem:[#allocation3 + $0x90] sm:$0xff] %vm640_vm0, %v2615_v29  ;;  %v1412_v49 = vadd.f32 %v1411_v52, %v7373_v47  ;;  %v2534_v8 = vadd.f32 %v2533_v38, %v7333_v57  ;;  %v1413_v3 = vpop.f32.mrb[71].mxu1  ;;  %v2535_v43 = vpop.f32.mrb[71].mxu0  ;;  %v3359_v15 = vld [vmem:[#allocation3 + $0x80] sm:$0xff] }
 0x252   : > { %v1223_v40 = vpop.permute.xlu0 %1222 }
 0x253   : > { %v1494_v7 = vmax.f32 %v1412_v49, 0.0  ;;  %v2616_v2 = vmax.f32 %v2534_v8, 0.0  ;;  %5503 = vmatmul.mubr.msk.f32.vlgmr.msra.gmra.mrb[110].mxu1 %vm640_vm0, %v3271_v0 }
 0x254   : > { %v1416_v60 = vpop.f32.mrb[72].mxu1  ;;  %v2538_v50 = vpop.f32.mrb[72].mxu0  ;;  %5509 = vmatprep.mubr.msk.f32.mxu1 %vm640_vm0, %v3357_v61  ;;  %v3360_v12 = vld [vmem:[#allocation3 + $0x88] sm:$0xff] }
 0x255   : > { %1526 = vst.msk [vmem:[#allocation2 + $0x98] sm:$0xff] %vm640_vm0, %v1494_v7  ;;  %2648 = vst.msk [vmem:[#allocation3 + $0x98] sm:$0xff] %vm640_vm0, %v2616_v2  ;;  %v1417_v57 = vadd.f32 %v1416_v60, %v7393_v48  ;;  %v2539_v47 = vadd.f32 %v2538_v50, %v7351_v56  ;;  %v1418_v58 = vpop.f32.mrb[73].mxu1  ;;  %v2540_v33 = vpop.f32.mrb[73].mxu0  ;;  %v5749_v62 = vpack.c.bf16 %v3360_v12, %v3359_v15  ;;  %v3358_v10 = vld [vmem:[#allocation2 + $0x88] sm:$0xff] }
 0x256   : > { %v1228_v2 = vpop.permute.xlu1 %1227  ;;  %v7487_v58 = vpop.permute.xlu0 %2364 }
 0x257   : > { %v1495_v24 = vmax.f32 %v1417_v57, 0.0  ;;  %v2617_v42 = vmax.f32 %v2539_v47, 0.0  ;;  %5750 = vmatprep.subr.bf16.mxu1 %v5749_v62 }
 0x258   : > { %v1421_v31 = vpop.f32.mrb[74].mxu1  ;;  %v2543_v55 = vpop.f32.mrb[74].mxu0  ;;  %5752 = vmatpush3.bf16.msra.mxu1 %v5749_v62  ;;  %v3444_v37 = vld [vmem:[#allocation2 + $0x90] sm:$0xff] }
 0x259   : > { %1527 = vst.msk [vmem:[#allocation2 + $0xa0] sm:$0xff] %vm640_vm0, %v1495_v24  ;;  %2649 = vst.msk [vmem:[#allocation3 + $0xa0] sm:$0xff] %vm640_vm0, %v2617_v42  ;;  %v1422_v1 = vadd.f32 %v1421_v31, %v7401_v54  ;;  %v2544_v48 = vadd.f32 %v2543_v55, %v7359_v16  ;;  %v1423_v56 = vpop.f32.mrb[75].mxu1  ;;  %v2545_v14 = vpop.f32.mrb[75].mxu0  ;;  %v3446_v36 = vld [vmem:[#allocation3 + $0x90] sm:$0xff] }
 0x25b   : > { %v1496_v5 = vmax.f32 %v1422_v1, 0.0  ;;  %v2618_v35 = vmax.f32 %v2544_v48, 0.0  ;;  %5510 = vmatmul.mubr.msk.f32.vlgmr.msra.gmra.mrb[112].mxu1 %vm640_vm0, %v3358_v10  ;;  %v7494_v10 = vpop.permute.xlu1 %2369 }
 0x25c   : > { %v1426_v13 = vpop.f32.mrb[76].mxu1  ;;  %v2548_v39 = vpop.f32.mrb[76].mxu0  ;;  %5516 = vmatprep.mubr.msk.f32.mxu1 %vm640_vm0, %v3444_v37  ;;  %v3447_v53 = vld [vmem:[#allocation3 + $0x98] sm:$0xff] }
 0x25d   : > { %1528 = vst.msk [vmem:[#allocation2 + $0xa8] sm:$0xff] %vm640_vm0, %v1496_v5  ;;  %2650 = vst.msk [vmem:[#allocation3 + $0xa8] sm:$0xff] %vm640_vm0, %v2618_v35  ;;  %v1427_v16 = vadd.f32 %v1426_v13, %v7421_v19  ;;  %v2549_v54 = vadd.f32 %v2548_v39, %v7379_v51  ;;  %v1428_v45 = vpop.f32.mrb[77].mxu1  ;;  %v2550_v23 = vpop.f32.mrb[77].mxu0  ;;  %v5753_v27 = vpack.c.bf16 %v3447_v53, %v3446_v36  ;;  %v3445_v22 = vld [vmem:[#allocation2 + $0x98] sm:$0xff] }
 0x25f   : > { %v1497_v25 = vmax.f32 %v1427_v16, 0.0  ;;  %v2619_v26 = vmax.f32 %v2549_v54, 0.0  ;;  %5754 = vmatprep.subr.bf16.mxu1 %v5753_v27  ;;  %v1233_v54 = vpop.permute.xlu0 %1232 }
 0x260   : > { %v1431_v32 = vpop.f32.mrb[78].mxu1  ;;  %v2553_v11 = vpop.f32.mrb[78].mxu0  ;;  %5756 = vmatpush3.bf16.msra.mxu1 %v5753_v27  ;;  %v3531_v52 = vld [vmem:[#allocation2 + $0xa0] sm:$0xff] }
 0x261   : > { %1529 = vst.msk [vmem:[#allocation2 + $0xb0] sm:$0xff] %vm640_vm0, %v1497_v25  ;;  %2651 = vst.msk [vmem:[#allocation3 + $0xb0] sm:$0xff] %vm640_vm0, %v2619_v26  ;;  %v1432_v21 = vadd.f32 %v1431_v32, %v7429_v18  ;;  %v2554_v19 = vadd.f32 %v2553_v11, %v7387_v30  ;;  %v1433_v51 = vpop.f32.mrb[79].mxu1  ;;  %v2555_v34 = vpop.f32.mrb[79].mxu0  ;;  %v3533_v8 = vld [vmem:[#allocation3 + $0xa0] sm:$0xff] }
 0x263   : > { %v1498_v46 = vmax.f32 %v1432_v21, 0.0  ;;  %v2620_v29 = vmax.f32 %v2554_v19, 0.0  ;;  %5517 = vmatmul.mubr.msk.f32.vlgmr.msra.gmra.mrb[114].mxu1 %vm640_vm0, %v3445_v22  ;;  %v1238_v22 = vpop.permute.xlu1 %1237 }
 0x264   : > { %v1436_v38 = vpop.f32.mrb[80].mxu1  ;;  %v2558_v49 = vpop.f32.mrb[80].mxu0  ;;  %5523 = vmatprep.mubr.msk.f32.mxu1 %vm640_vm0, %v3531_v52  ;;  %v3534_v3 = vld [vmem:[#allocation3 + $0xa8] sm:$0xff] }
 0x265   : > { %1530 = vst.msk [vmem:[#allocation2 + $0xb8] sm:$0xff] %vm640_vm0, %v1498_v46  ;;  %2652 = vst.msk [vmem:[#allocation3 + $0xb8] sm:$0xff] %vm640_vm0, %v2620_v29  ;;  %v1437_v30 = vadd.f32 %v1436_v38, %v7449_v44  ;;  %v2559_v18 = vadd.f32 %v2558_v49, %v7407_v6  ;;  %v1438_v43 = vpop.f32.mrb[81].mxu1  ;;  %v2560_v0 = vpop.f32.mrb[81].mxu0  ;;  %v5757_v7 = vpack.c.bf16 %v3534_v3, %v3533_v8  ;;  %v3532_v47 = vld [vmem:[#allocation2 + $0xa8] sm:$0xff] }
 0x267   : > { %v1499_v61 = vmax.f32 %v1437_v30, 0.0  ;;  %v2621_v60 = vmax.f32 %v2559_v18, 0.0  ;;  %5758 = vmatprep.subr.bf16.mxu1 %v5757_v7  ;;  %v1243_v30 = vpop.permute.xlu0 %1242 }
 0x268   : > { %v1441_v50 = vpop.f32.mrb[82].mxu1  ;;  %v2563_v15 = vpop.f32.mrb[82].mxu0  ;;  %5760 = vmatpush3.bf16.msra.mxu1 %v5757_v7  ;;  %v3618_v24 = vld [vmem:[#allocation2 + $0xb0] sm:$0xff] }
 0x269   : > { %1531 = vst.msk [vmem:[#allocation2 + $0xc0] sm:$0xff] %vm640_vm0, %v1499_v61  ;;  %2653 = vst.msk [vmem:[#allocation3 + $0xc0] sm:$0xff] %vm640_vm0, %v2621_v60  ;;  %v1442_v12 = vadd.f32 %v1441_v50, %v7457_v28  ;;  %v2564_v44 = vadd.f32 %v2563_v15, %v7415_v17  ;;  %v1443_v57 = vpop.f32.mrb[83].mxu1  ;;  %v2565_v6 = vpop.f32.mrb[83].mxu0  ;;  %v3620_v55 = vld [vmem:[#allocation3 + $0xb0] sm:$0xff] }
 0x26a   : > { %v1248_v57 = vpop.permute.xlu1 %1247 }
 0x26b   : > { %v1500_v33 = vmax.f32 %v1442_v12, 0.0  ;;  %v2622_v62 = vmax.f32 %v2564_v44, 0.0  ;;  %5524 = vmatmul.mubr.msk.f32.vlgmr.msra.gmra.mrb[116].mxu1 %vm640_vm0, %v3532_v47 }
 0x26c   : > { %v1446_v42 = vpop.f32.mrb[84].mxu1  ;;  %v2568_v31 = vpop.f32.mrb[84].mxu0  ;;  %5530 = vmatprep.mubr.msk.f32.mxu1 %vm640_vm0, %v3618_v24  ;;  %v3621_v1 = vld [vmem:[#allocation3 + $0xb8] sm:$0xff] }
 0x26d   : > { %1532 = vst.msk [vmem:[#allocation2 + $0xc8] sm:$0xff] %vm640_vm0, %v1500_v33  ;;  %2654 = vst.msk [vmem:[#allocation3 + $0xc8] sm:$0xff] %vm640_vm0, %v2622_v62  ;;  %v1447_v17 = vadd.f32 %v1446_v42, %v1223_v40  ;;  %v2569_v28 = vadd.f32 %v2568_v31, %v7435_v4  ;;  %v1448_v48 = vpop.f32.mrb[85].mxu1  ;;  %v2570_v56 = vpop.f32.mrb[85].mxu0  ;;  %v5761_v14 = vpack.c.bf16 %v3621_v1, %v3620_v55  ;;  %v3619_v16 = vld [vmem:[#allocation2 + $0xb8] sm:$0xff] }
 0x26f   : > { %v1501_v5 = vmax.f32 %v1447_v17, 0.0  ;;  %v2623_v35 = vmax.f32 %v2569_v28, 0.0  ;;  %5762 = vmatprep.subr.bf16.mxu1 %v5761_v14 }
 0x270   : > { %v1451_v37 = vpop.f32.mrb[86].mxu1  ;;  %v2573_v13 = vpop.f32.mrb[86].mxu0  ;;  %5764 = vmatpush3.bf16.msra.mxu1 %v5761_v14  ;;  %v3705_v27 = vld [vmem:[#allocation2 + $0xc0] sm:$0xff] }
 0x271   : > { %1533 = vst.msk [vmem:[#allocation2 + $0xd0] sm:$0xff] %vm640_vm0, %v1501_v5  ;;  %2655 = vst.msk [vmem:[#allocation3 + $0xd0] sm:$0xff] %vm640_vm0, %v2623_v35  ;;  %v1452_v39 = vadd.f32 %v1451_v37, %v1228_v2  ;;  %v2574_v36 = vadd.f32 %v2573_v13, %v7443_v41  ;;  %v1453_v53 = vpop.f32.mrb[87].mxu1  ;;  %v2575_v4 = vpop.f32.mrb[87].mxu0  ;;  %v3707_v32 = vld [vmem:[#allocation3 + $0xc0] sm:$0xff] }
 0x272   : > { %v4053_v4 = vld [vmem:[%s8069_s9] sm:$0xff] }
 0x273   : > { %v1502_v45 = vmax.f32 %v1452_v39, 0.0  ;;  %v2624_v23 = vmax.f32 %v2574_v36, 0.0  ;;  %5531 = vmatmul.mubr.msk.f32.vlgmr.msra.gmra.mrb[118].mxu1 %vm640_vm0, %v3619_v16  ;;  %v4086_v16 = vld [vmem:[%s8070_s10 + $0x8] sm:$0xff] }
 0x274   : > { %v1456_v25 = vpop.f32.mrb[88].mxu1  ;;  %v2578_v26 = vpop.f32.mrb[88].mxu0  ;;  %5537 = vmatprep.mubr.msk.f32.mxu1 %vm640_vm0, %v3705_v27  ;;  %v3708_v11 = vld [vmem:[#allocation3 + $0xc8] sm:$0xff]  ;;  %4245 = vmatprep.mubr.f32.mxu0 %v4086_v16  ;;  %v4071_v16 = vld [vmem:[%s8069_s9 + $0x90] sm:$0xff] }
 0x275   : > { %1534 = vst.msk [vmem:[#allocation2 + $0xd8] sm:$0xff] %vm640_vm0, %v1502_v45  ;;  %2656 = vst.msk [vmem:[#allocation3 + $0xd8] sm:$0xff] %vm640_vm0, %v2624_v23  ;;  %v1457_v41 = vadd.f32 %v1456_v25, %v1233_v54  ;;  %v2579_v21 = vadd.f32 %v2578_v26, %v7463_v20  ;;  %v1458_v19 = vpop.f32.mrb[89].mxu1  ;;  %v2580_v51 = vpop.f32.mrb[89].mxu0  ;;  %v5765_v34 = vpack.c.bf16 %v3708_v11, %v3707_v32  ;;  %v3706_v20 = vld [vmem:[#allocation2 + $0xc8] sm:$0xff]  ;;  %v4055_v26 = vld [vmem:[%s8069_s9 + $0x10] sm:$0xff] }
 0x276   : > { %v4054_v54 = vld [vmem:[%s8069_s9 + $0x8] sm:$0xff]  ;;  %v4056_v32 = vld [vmem:[%s8069_s9 + $0x18] sm:$0xff] }
 0x277   : > { %v1503_v40 = vmax.f32 %v1457_v41, 0.0  ;;  %v2625_v46 = vmax.f32 %v2579_v21, 0.0  ;;  %5766 = vmatprep.subr.bf16.mxu1 %v5765_v34 }
 0x278   : > { %v1461_v29 = vpop.f32.mrb[90].mxu1  ;;  %v2583_v52 = vpop.f32.mrb[90].mxu0  ;;  %5768 = vmatpush3.bf16.msra.mxu1 %v5765_v34  ;;  %v3792_v0 = vld [vmem:[#allocation2 + $0xd0] sm:$0xff]  ;;  %v4057_v34 = vld [vmem:[%s8069_s9 + $0x20] sm:$0xff] }
 0x279   : > { %1535 = vst.msk [vmem:[#allocation2 + $0xe0] sm:$0xff] %vm640_vm0, %v1503_v40  ;;  %2657 = vst.msk [vmem:[#allocation3 + $0xe0] sm:$0xff] %vm640_vm0, %v2625_v46  ;;  %v1462_v38 = vadd.f32 %v1461_v29, %v1238_v22  ;;  %v2584_v49 = vadd.f32 %v2583_v52, %v7471_v63  ;;  %v1463_v8 = vpop.f32.mrb[91].mxu1  ;;  %v2585_v3 = vpop.f32.mrb[91].mxu0  ;;  %v3794_v61 = vld [vmem:[#allocation3 + $0xd0] sm:$0xff]  ;;  %v4058_v22 = vld [vmem:[%s8069_s9 + $0x28] sm:$0xff] }
 0x27a   : > { %v4060_v8 = vld [vmem:[%s8069_s9 + $0x38] sm:$0xff] }
 0x27b   : > { %v1504_v18 = vmax.f32 %v1462_v38, 0.0  ;;  %v2626_v43 = vmax.f32 %v2584_v49, 0.0  ;;  %5538 = vmatmul.mubr.msk.f32.vlgmr.msra.gmra.mrb[120].mxu1 %vm640_vm0, %v3706_v20  ;;  %v4059_v49 = vld [vmem:[%s8069_s9 + $0x30] sm:$0xff] }
 0x27c   : > { %v1466_v7 = vpop.f32.mrb[92].mxu1  ;;  %v2588_v2 = vpop.f32.mrb[92].mxu0  ;;  %5544 = vmatprep.mubr.msk.f32.mxu1 %vm640_vm0, %v3792_v0  ;;  %v3795_v60 = vld [vmem:[#allocation3 + $0xd8] sm:$0xff]  ;;  %v4061_v0 = vld [vmem:[%s8069_s9 + $0x40] sm:$0xff] }
 0x27d   : > { %1536 = vst.msk [vmem:[#allocation2 + $0xe8] sm:$0xff] %vm640_vm0, %v1504_v18  ;;  %2658 = vst.msk [vmem:[#allocation3 + $0xe8] sm:$0xff] %vm640_vm0, %v2626_v43  ;;  %v1467_v63 = vadd.f32 %v1466_v7, %v1243_v30  ;;  %v2589_v50 = vadd.f32 %v2588_v2, %v7487_v58  ;;  %v1468_v15 = vpop.f32.mrb[93].mxu1  ;;  %v2590_v12 = vpop.f32.mrb[93].mxu0  ;;  %v5769_v44 = vpack.c.bf16 %v3795_v60, %v3794_v61  ;;  %v3793_v58 = vld [vmem:[#allocation2 + $0xd8] sm:$0xff]  ;;  %v4062_v7 = vld [vmem:[%s8069_s9 + $0x48] sm:$0xff] }
 0x27e   : > { %v4063_v15 = vld [vmem:[%s8069_s9 + $0x50] sm:$0xff]  ;;  %v4064_v12 = vld [vmem:[%s8069_s9 + $0x58] sm:$0xff] }
 0x27f   : > { %v1505_v6 = vmax.f32 %v1467_v63, 0.0  ;;  %v2627_v47 = vmax.f32 %v2589_v50, 0.0  ;;  %5770 = vmatprep.subr.bf16.mxu1 %v5769_v44 }
 0x280   : > { %v1471_v33 = vpop.f32.mrb[94].mxu1  ;;  %v2593_v62 = vpop.f32.mrb[94].mxu0  ;;  %5772 = vmatpush3.bf16.msra.mxu1 %v5769_v44  ;;  %v3879_v28 = vld [vmem:[#allocation2 + $0xe0] sm:$0xff] }
 0x281   : > { %1537 = vst.msk [vmem:[#allocation2 + $0xf0] sm:$0xff] %vm640_vm0, %v1505_v6  ;;  %2659 = vst.msk [vmem:[#allocation3 + $0xf0] sm:$0xff] %vm640_vm0, %v2627_v47  ;;  %v1472_v24 = vadd.f32 %v1471_v33, %v1248_v57  ;;  %v2594_v42 = vadd.f32 %v2593_v62, %v7494_v10  ;;  %v2595_v31 = vpop.f32.mrb[95].mxu0  ;;  %v1473_v55 = vpop.f32.mrb[95].mxu1  ;;  %v3881_v48 = vld [vmem:[#allocation3 + $0xe0] sm:$0xff] }
 0x282   : > { %v4065_v62 = vld [vmem:[%s8069_s9 + $0x60] sm:$0xff] }
 0x283   : > { %v1506_v1 = vmax.f32 %v1472_v24, 0.0  ;;  %v2628_v17 = vmax.f32 %v2594_v42, 0.0  ;;  %5545 = vmatmul.mubr.msk.f32.vlgmr.msra.gmra.mrb[122].mxu1 %vm640_vm0, %v3793_v58  ;;  %v4066_v24 = vld [vmem:[%s8069_s9 + $0x68] sm:$0xff] }
 0x284   : > { %5551 = vmatprep.mubr.msk.f32.mxu1 %vm640_vm0, %v3879_v28  ;;  %v3882_v56 = vld [vmem:[#allocation3 + $0xe8] sm:$0xff]  ;;  %v4068_v28 = vld [vmem:[%s8069_s9 + $0x78] sm:$0xff] }
 0x285   : > { %1538 = vst.msk [vmem:[#allocation2 + $0xf8] sm:$0xff] %vm640_vm0, %v1506_v1  ;;  %2660 = vst.msk [vmem:[#allocation3 + $0xf8] sm:$0xff] %vm640_vm0, %v2628_v17  ;;  %v5773_v14 = vpack.c.bf16 %v3882_v56, %v3881_v48  ;;  %v3880_v10 = vld [vmem:[#allocation2 + $0xe8] sm:$0xff]  ;;  %v4067_v17 = vld [vmem:[%s8069_s9 + $0x70] sm:$0xff] }
 0x287   : > { %5774 = vmatprep.subr.bf16.mxu1 %v5773_v14 }
 0x288   : > { %5776 = vmatpush3.bf16.msra.mxu1 %v5773_v14  ;;  %v3966_v5 = vld [vmem:[#allocation2 + $0xf0] sm:$0xff] }
 0x289   : > { %v3968_v35 = vld [vmem:[#allocation3 + $0xf0] sm:$0xff] }
 0x28b   : > { %5552 = vmatmul.mubr.msk.f32.vlgmr.msra.gmra.mrb[124].mxu1 %vm640_vm0, %v3880_v10 }
 0x28c   : > { %5558 = vmatprep.mubr.msk.f32.mxu1 %vm640_vm0, %v3966_v5  ;;  %v3969_v37 = vld [vmem:[#allocation3 + $0xf8] sm:$0xff] }
 0x28d   : > { %v5777_v13 = vpack.c.bf16 %v3969_v37, %v3968_v35  ;;  %v3967_v39 = vld [vmem:[#allocation2 + $0xf8] sm:$0xff]  ;;  %v4069_v35 = vld [vmem:[%s8069_s9 + $0x80] sm:$0xff]  ;;  %v4070_v37 = vld [vmem:[%s8069_s9 + $0x88] sm:$0xff] }
 0x28f   : > { %5778 = vmatprep.subr.bf16.mxu1 %v5777_v13 }
 0x290   : > { %5780 = vmatpush3.bf16.msra.mxu1 %v5777_v13 }
 0x291   : > { %5830 = vmatprep.subr.bf16.mxu1 %v5954_v9 }
 0x293   : > { %5559 = vmatmul.mubr.msk.f32.vlgmr.msra.gmra.mrb[126].mxu1 %vm640_vm0, %v3967_v39 }
 0x294   : > { %5832 = vmatpush3.bf16.msra.mxu1 %v5954_v9  ;;  %5565 = vmatprep.mubr.msk.f32.mxu1 %vm640_vm0, %v4053_v4 }
 0x297   : > { %5566 = vmatmul.mubr.msk.f32.vlgmr.msra.gmra.mrb[128].mxu1 %vm640_vm0, %v4054_v54  ;;  %v4072_v54 = vld [vmem:[%s8069_s9 + $0x98] sm:$0xff] }
 0x298   : > { %5568 = vmatprep.mubr.msk.f32.mxu1 %vm640_vm0, %v4055_v26  ;;  %v4073_v26 = vld [vmem:[%s8069_s9 + $0xa0] sm:$0xff] }
 0x29b   : > { %5569 = vmatmul.mubr.msk.f32.gmra.mrb[130].mxu1 %vm640_vm0, %v4056_v32  ;;  %v4074_v32 = vld [vmem:[%s8069_s9 + $0xa8] sm:$0xff] }
 0x29c   : > { %5571 = vmatprep.mubr.msk.f32.mxu1 %vm640_vm0, %v4057_v34  ;;  %v4075_v34 = vld [vmem:[%s8069_s9 + $0xb0] sm:$0xff] }
 0x29f   : > { %5572 = vmatmul.mubr.msk.f32.gmra.mrb[132].mxu1 %vm640_vm0, %v4058_v22  ;;  %v4076_v22 = vld [vmem:[%s8069_s9 + $0xb8] sm:$0xff] }
 0x2a0   : > { %5574 = vmatprep.mubr.msk.f32.mxu1 %vm640_vm0, %v4059_v49  ;;  %v4077_v49 = vld [vmem:[%s8069_s9 + $0xc0] sm:$0xff] }
 0x2a3   : > { %5575 = vmatmul.mubr.msk.f32.gmra.mrb[134].mxu1 %vm640_vm0, %v4060_v8  ;;  %v4078_v8 = vld [vmem:[%s8069_s9 + $0xc8] sm:$0xff] }
 0x2a4   : > { %5577 = vmatprep.mubr.msk.f32.mxu1 %vm640_vm0, %v4061_v0  ;;  %v4079_v0 = vld [vmem:[%s8069_s9 + $0xd0] sm:$0xff] }
 0x2a7   : > { %5578 = vmatmul.mubr.msk.f32.gmra.mrb[136].mxu1 %vm640_vm0, %v4062_v7  ;;  %v4080_v7 = vld [vmem:[%s8069_s9 + $0xd8] sm:$0xff] }
 0x2a8   : > { %5580 = vmatprep.mubr.msk.f32.mxu1 %vm640_vm0, %v4063_v15  ;;  %v4081_v15 = vld [vmem:[%s8069_s9 + $0xe0] sm:$0xff] }
 0x2ab   : > { %5581 = vmatmul.mubr.msk.f32.gmra.mrb[138].mxu1 %vm640_vm0, %v4064_v12  ;;  %v4082_v12 = vld [vmem:[%s8069_s9 + $0xe8] sm:$0xff] }
 0x2ac   : > { %5583 = vmatprep.mubr.msk.f32.mxu1 %vm640_vm0, %v4065_v62  ;;  %v4083_v62 = vld [vmem:[%s8069_s9 + $0xf0] sm:$0xff] }
 0x2af   : > { %5584 = vmatmul.mubr.msk.f32.gmra.mrb[140].mxu1 %vm640_vm0, %v4066_v24  ;;  %v4084_v24 = vld [vmem:[%s8069_s9 + $0xf8] sm:$0xff] }
 0x2b0   : > { %5586 = vmatprep.mubr.msk.f32.mxu1 %vm640_vm0, %v4067_v17  ;;  %v4090_v17 = vld [vmem:[%s8070_s10 + $0x28] sm:$0xff] }
 0x2b3   : > { %5587 = vmatmul.mubr.msk.f32.gmra.mrb[142].mxu1 %vm640_vm0, %v4068_v28  ;;  %v4089_v28 = vld [vmem:[%s8070_s10 + $0x20] sm:$0xff] }
 0x2b4   : > { %5589 = vmatprep.mubr.msk.f32.mxu1 %vm640_vm0, %v4069_v35  ;;  %v4095_v35 = vld [vmem:[%s8070_s10 + $0x50] sm:$0xff] }
 0x2b7   : > { %5590 = vmatmul.mubr.msk.f32.gmra.mrb[144].mxu1 %vm640_vm0, %v4070_v37  ;;  %v4098_v37 = vld [vmem:[%s8070_s10 + $0x68] sm:$0xff] }
 0x2b8   : > { %5592 = vmatprep.mubr.msk.f32.mxu1 %vm640_vm0, %v4071_v16  ;;  %v4104_v16 = vld [vmem:[%s8070_s10 + $0x98] sm:$0xff] }
 0x2bb   : > { %5593 = vmatmul.mubr.msk.f32.gmra.mrb[146].mxu1 %vm640_vm0, %v4072_v54  ;;  %v4103_v54 = vld [vmem:[%s8070_s10 + $0x90] sm:$0xff] }
 0x2bc   : > { %5595 = vmatprep.mubr.msk.f32.mxu1 %vm640_vm0, %v4073_v26  ;;  %v4109_v26 = vld [vmem:[%s8070_s10 + $0xc0] sm:$0xff] }
 0x2bf   : > { %5596 = vmatmul.mubr.msk.f32.gmra.mrb[148].mxu1 %vm640_vm0, %v4074_v32  ;;  %v4112_v32 = vld [vmem:[%s8070_s10 + $0xd8] sm:$0xff] }
 0x2c0   : > { %5598 = vmatprep.mubr.msk.f32.mxu1 %vm640_vm0, %v4075_v34  ;;  %v4118_v34 = vld [vmem:[%s8070_s10 + $0x108] sm:$0xff] }
 0x2c3   : > { %5599 = vmatmul.mubr.msk.f32.gmra.mrb[150].mxu1 %vm640_vm0, %v4076_v22  ;;  %v4117_v22 = vld [vmem:[%s8070_s10 + $0x100] sm:$0xff] }
 0x2c4   : > { %5601 = vmatprep.mubr.msk.f32.mxu1 %vm640_vm0, %v4077_v49  ;;  %v4123_v49 = vld [vmem:[%s8070_s10 + $0x130] sm:$0xff] }
 0x2c7   : > { %5602 = vmatmul.mubr.msk.f32.gmra.mrb[152].mxu1 %vm640_vm0, %v4078_v8  ;;  %v4126_v8 = vld [vmem:[%s8070_s10 + $0x148] sm:$0xff] }
 0x2c8   : > { %5604 = vmatprep.mubr.msk.f32.mxu1 %vm640_vm0, %v4079_v0 }
 0x2cb   : > { %5605 = vmatmul.mubr.msk.f32.gmra.mrb[154].mxu1 %vm640_vm0, %v4080_v7  ;;  %v4129_v7 = vld [vmem:[%s8070_s10 + $0x160] sm:$0xff] }
 0x2cc   : > { %5607 = vmatprep.mubr.msk.f32.mxu1 %vm640_vm0, %v4081_v15  ;;  %v4133_v15 = vld [vmem:[%s8070_s10 + $0x180] sm:$0xff] }
 0x2cf   : > { %5608 = vmatmul.mubr.msk.f32.gmra.mrb[156].mxu1 %vm640_vm0, %v4082_v12  ;;  %v4136_v12 = vld [vmem:[%s8070_s10 + $0x198] sm:$0xff] }
 0x2d0   : > { %5610 = vmatprep.mubr.msk.f32.mxu1 %vm640_vm0, %v4083_v62  ;;  %v4140_v62 = vld [vmem:[%s8070_s10 + $0x1b8] sm:$0xff] }
 0x2d3   : > { %5611 = vmatmul.mubr.msk.f32.gmra.mrb[158].mxu1 %vm640_vm0, %v4084_v24  ;;  %v4139_v24 = vld [vmem:[%s8070_s10 + $0x1b0] sm:$0xff] }
 0x2ee   : > { %v5455_v36 = vpop.f32.mrb[96].mxu1 }
 0x2ef   : > { %2747 = vst.msk [vmem:[#allocation4 + $0x8] sm:$0xff] %vm640_vm0, %v5455_v36  ;;  %v2737_v53 = vpop.f32.mrb[97].mxu1 }
 0x2f0   : > { %2746 = vst.msk [vmem:[#allocation4] sm:$0xff] %vm640_vm0, %v2737_v53 }
 0x2f6   : > { %v5462_v9 = vpop.f32.mrb[98].mxu1  ;;  %v4150_v45 = vld [vmem:[#allocation4 + $0x8] sm:$0xff] }
 0x2f7   : > { %2834 = vst.msk [vmem:[#allocation4 + $0x18] sm:$0xff] %vm640_vm0, %v5462_v9  ;;  %v2824_v23 = vpop.f32.mrb[99].mxu1  ;;  %v4149_v27 = vld [vmem:[#allocation4] sm:$0xff] }
 0x2f8   : > { %2833 = vst.msk [vmem:[#allocation4 + $0x10] sm:$0xff] %vm640_vm0, %v2824_v23  ;;  %v5782_v25 = vpack.c.bf16 %v4150_v45, %v4149_v27 }
 0x2fa   : > { %5783 = vmatpush1.bf16.msra.mxu0 %v5782_v25 }
 0x2fb   : > { %5784 = vmatprep.subr.bf16.mxu0 %v5854_v59 }
 0x2fe   : > { %v5469_v11 = vpop.f32.mrb[100].mxu1  ;;  %v4152_v41 = vld [vmem:[#allocation4 + $0x18] sm:$0xff] }
 0x2ff   : > { %2921 = vst.msk [vmem:[#allocation4 + $0x28] sm:$0xff] %vm640_vm0, %v5469_v11  ;;  %v2911_v21 = vpop.f32.mrb[101].mxu1  ;;  %v4151_v19 = vld [vmem:[#allocation4 + $0x10] sm:$0xff] }
 0x300   : > { %2920 = vst.msk [vmem:[#allocation4 + $0x20] sm:$0xff] %vm640_vm0, %v2911_v21  ;;  %v5785_v51 = vpack.c.bf16 %v4152_v41, %v4151_v19 }
 0x302   : > { %5786 = vmatpush1.bf16.msra.mxu0 %v5785_v51 }
 0x303   : > { %5787 = vmatprep.subr.bf16.mxu0 %v5854_v59 }
 0x306   : > { %v5476_v40 = vpop.f32.mrb[102].mxu1  ;;  %v4154_v46 = vld [vmem:[#allocation4 + $0x28] sm:$0xff] }
 0x307   : > { %3008 = vst.msk [vmem:[#allocation4 + $0x38] sm:$0xff] %vm640_vm0, %v5476_v40  ;;  %v2998_v29 = vpop.f32.mrb[103].mxu1  ;;  %v4153_v52 = vld [vmem:[#allocation4 + $0x20] sm:$0xff] }
 0x308   : > { %3007 = vst.msk [vmem:[#allocation4 + $0x30] sm:$0xff] %vm640_vm0, %v2998_v29  ;;  %v5788_v38 = vpack.c.bf16 %v4154_v46, %v4153_v52 }
 0x30a   : > { %5789 = vmatpush1.bf16.msra.mxu0 %v5788_v38 }
 0x30b   : > { %5790 = vmatprep.subr.bf16.mxu0 %v5854_v59 }
 0x30e   : > { %v5483_v3 = vpop.f32.mrb[104].mxu1  ;;  %v4156_v20 = vld [vmem:[#allocation4 + $0x38] sm:$0xff] }
 0x30f   : > { %3095 = vst.msk [vmem:[#allocation4 + $0x48] sm:$0xff] %vm640_vm0, %v5483_v3  ;;  %v3085_v30 = vpop.f32.mrb[105].mxu1  ;;  %v4155_v18 = vld [vmem:[#allocation4 + $0x30] sm:$0xff] }
 0x310   : > { %3094 = vst.msk [vmem:[#allocation4 + $0x40] sm:$0xff] %vm640_vm0, %v3085_v30  ;;  %v5791_v43 = vpack.c.bf16 %v4156_v20, %v4155_v18 }
 0x312   : > { %5792 = vmatpush1.bf16.msra.mxu0 %v5791_v43 }
 0x313   : > { %5793 = vmatprep.subr.bf16.mxu0 %v5854_v59 }
 0x316   : > { %v5490_v2 = vpop.f32.mrb[106].mxu1  ;;  %v4158_v61 = vld [vmem:[#allocation4 + $0x48] sm:$0xff] }
 0x317   : > { %3182 = vst.msk [vmem:[#allocation4 + $0x58] sm:$0xff] %vm640_vm0, %v5490_v2  ;;  %v3172_v60 = vpop.f32.mrb[107].mxu1  ;;  %v4157_v63 = vld [vmem:[#allocation4 + $0x40] sm:$0xff] }
 0x318   : > { %3181 = vst.msk [vmem:[#allocation4 + $0x50] sm:$0xff] %vm640_vm0, %v3172_v60  ;;  %v5794_v50 = vpack.c.bf16 %v4158_v61, %v4157_v63 }
 0x31a   : > { %5795 = vmatpush1.bf16.msra.mxu0 %v5794_v50 }
 0x31b   : > { %5796 = vmatprep.subr.bf16.mxu0 %v5854_v59 }
 0x31e   : > { %v5497_v44 = vpop.f32.mrb[108].mxu1  ;;  %v4160_v57 = vld [vmem:[#allocation4 + $0x58] sm:$0xff] }
 0x31f   : > { %3269 = vst.msk [vmem:[#allocation4 + $0x68] sm:$0xff] %vm640_vm0, %v5497_v44  ;;  %v3259_v6 = vpop.f32.mrb[109].mxu1  ;;  %v4159_v47 = vld [vmem:[#allocation4 + $0x50] sm:$0xff] }
 0x320   : > { %3268 = vst.msk [vmem:[#allocation4 + $0x60] sm:$0xff] %vm640_vm0, %v3259_v6  ;;  %v5797_v33 = vpack.c.bf16 %v4160_v57, %v4159_v47 }
 0x322   : > { %5798 = vmatpush1.bf16.msra.mxu0 %v5797_v33 }
 0x323   : > { %5799 = vmatprep.subr.bf16.mxu0 %v5854_v59 }
 0x326   : > { %v5504_v42 = vpop.f32.mrb[110].mxu1  ;;  %v4162_v31 = vld [vmem:[#allocation4 + $0x68] sm:$0xff] }
 0x327   : > { %3356 = vst.msk [vmem:[#allocation4 + $0x78] sm:$0xff] %vm640_vm0, %v5504_v42  ;;  %v3346_v55 = vpop.f32.mrb[111].mxu1  ;;  %v4161_v58 = vld [vmem:[#allocation4 + $0x60] sm:$0xff] }
 0x328   : > { %3355 = vst.msk [vmem:[#allocation4 + $0x70] sm:$0xff] %vm640_vm0, %v3346_v55  ;;  %v5800_v1 = vpack.c.bf16 %v4162_v31, %v4161_v58  ;;  %v4085_v58 = vld [vmem:[%s8070_s10] sm:$0xff] }
 0x32a   : > { %5801 = vmatpush1.bf16.msra.mxu0 %v5800_v1  ;;  %v4088_v1 = vld [vmem:[%s8070_s10 + $0x18] sm:$0xff] }
 0x32b   : > { %5802 = vmatprep.subr.bf16.mxu0 %v5854_v59 }
 0x32e   : > { %v5511_v48 = vpop.f32.mrb[112].mxu1  ;;  %v4164_v56 = vld [vmem:[#allocation4 + $0x78] sm:$0xff] }
 0x32f   : > { %3443 = vst.msk [vmem:[#allocation4 + $0x88] sm:$0xff] %vm640_vm0, %v5511_v48  ;;  %v3433_v14 = vpop.f32.mrb[113].mxu1  ;;  %v4163_v10 = vld [vmem:[#allocation4 + $0x70] sm:$0xff]  ;;  %v4092_v48 = vld [vmem:[%s8070_s10 + $0x38] sm:$0xff] }
 0x330   : > { %3442 = vst.msk [vmem:[#allocation4 + $0x80] sm:$0xff] %vm640_vm0, %v3433_v14  ;;  %v5803_v5 = vpack.c.bf16 %v4164_v56, %v4163_v10  ;;  %v4091_v56 = vld [vmem:[%s8070_s10 + $0x30] sm:$0xff]  ;;  %v4094_v14 = vld [vmem:[%s8070_s10 + $0x48] sm:$0xff]  ;;  %v4093_v10 = vld [vmem:[%s8070_s10 + $0x40] sm:$0xff] }
 0x332   : > { %5804 = vmatpush1.bf16.msra.mxu0 %v5803_v5  ;;  %v4096_v5 = vld [vmem:[%s8070_s10 + $0x58] sm:$0xff] }
 0x333   : > { %5805 = vmatprep.subr.bf16.mxu0 %v5854_v59 }
 0x336   : > { %v5518_v13 = vpop.f32.mrb[114].mxu1  ;;  %v4166_v39 = vld [vmem:[#allocation4 + $0x88] sm:$0xff] }
 0x337   : > { %3530 = vst.msk [vmem:[#allocation4 + $0x98] sm:$0xff] %vm640_vm0, %v5518_v13  ;;  %v3520_v36 = vpop.f32.mrb[115].mxu1  ;;  %v4165_v53 = vld [vmem:[#allocation4 + $0x80] sm:$0xff] }
 0x338   : > { %3529 = vst.msk [vmem:[#allocation4 + $0x90] sm:$0xff] %vm640_vm0, %v3520_v36  ;;  %v5806_v4 = vpack.c.bf16 %v4166_v39, %v4165_v53  ;;  %v4097_v13 = vld [vmem:[%s8070_s10 + $0x60] sm:$0xff]  ;;  %v4100_v39 = vld [vmem:[%s8070_s10 + $0x78] sm:$0xff]  ;;  %v4099_v36 = vld [vmem:[%s8070_s10 + $0x70] sm:$0xff] }
 0x339   : > { %v4102_v53 = vld [vmem:[%s8070_s10 + $0x88] sm:$0xff] }
 0x33a   : > { %5807 = vmatpush1.bf16.msra.mxu0 %v5806_v4  ;;  %v4101_v4 = vld [vmem:[%s8070_s10 + $0x80] sm:$0xff] }
 0x33b   : > { %5808 = vmatprep.subr.bf16.mxu0 %v5854_v59 }
 0x33e   : > { %v5525_v9 = vpop.f32.mrb[116].mxu1  ;;  %v4168_v45 = vld [vmem:[#allocation4 + $0x98] sm:$0xff] }
 0x33f   : > { %3617 = vst.msk [vmem:[#allocation4 + $0xa8] sm:$0xff] %vm640_vm0, %v5525_v9  ;;  %v3607_v23 = vpop.f32.mrb[117].mxu1  ;;  %v4167_v27 = vld [vmem:[#allocation4 + $0x90] sm:$0xff]  ;;  %v4106_v9 = vld [vmem:[%s8070_s10 + $0xa8] sm:$0xff] }
 0x340   : > { %3616 = vst.msk [vmem:[#allocation4 + $0xa0] sm:$0xff] %vm640_vm0, %v3607_v23  ;;  %v5809_v25 = vpack.c.bf16 %v4168_v45, %v4167_v27  ;;  %v4105_v45 = vld [vmem:[%s8070_s10 + $0xa0] sm:$0xff]  ;;  %v4108_v23 = vld [vmem:[%s8070_s10 + $0xb8] sm:$0xff]  ;;  %v4107_v27 = vld [vmem:[%s8070_s10 + $0xb0] sm:$0xff] }
 0x342   : > { %5810 = vmatpush1.bf16.msra.mxu0 %v5809_v25  ;;  %v4110_v25 = vld [vmem:[%s8070_s10 + $0xc8] sm:$0xff] }
 0x343   : > { %5811 = vmatprep.subr.bf16.mxu0 %v5854_v59 }
 0x346   : > { %v5532_v11 = vpop.f32.mrb[118].mxu1  ;;  %v4170_v41 = vld [vmem:[#allocation4 + $0xa8] sm:$0xff] }
 0x347   : > { %3704 = vst.msk [vmem:[#allocation4 + $0xb8] sm:$0xff] %vm640_vm0, %v5532_v11  ;;  %v3694_v21 = vpop.f32.mrb[119].mxu1  ;;  %v4169_v19 = vld [vmem:[#allocation4 + $0xa0] sm:$0xff]  ;;  %v4111_v11 = vld [vmem:[%s8070_s10 + $0xd0] sm:$0xff] }
 0x348   : > { %3703 = vst.msk [vmem:[#allocation4 + $0xb0] sm:$0xff] %vm640_vm0, %v3694_v21  ;;  %v5812_v51 = vpack.c.bf16 %v4170_v41, %v4169_v19  ;;  %v4114_v41 = vld [vmem:[%s8070_s10 + $0xe8] sm:$0xff]  ;;  %v4113_v21 = vld [vmem:[%s8070_s10 + $0xe0] sm:$0xff]  ;;  %v4116_v19 = vld [vmem:[%s8070_s10 + $0xf8] sm:$0xff] }
 0x34a   : > { %5813 = vmatpush1.bf16.msra.mxu0 %v5812_v51  ;;  %v4115_v51 = vld [vmem:[%s8070_s10 + $0xf0] sm:$0xff] }
 0x34b   : > { %5814 = vmatprep.subr.bf16.mxu0 %v5854_v59 }
 0x34e   : > { %v5539_v40 = vpop.f32.mrb[120].mxu1  ;;  %v4172_v46 = vld [vmem:[#allocation4 + $0xb8] sm:$0xff] }
 0x34f   : > { %3791 = vst.msk [vmem:[#allocation4 + $0xc8] sm:$0xff] %vm640_vm0, %v5539_v40  ;;  %v3781_v29 = vpop.f32.mrb[121].mxu1  ;;  %v4171_v52 = vld [vmem:[#allocation4 + $0xb0] sm:$0xff]  ;;  %v4120_v40 = vld [vmem:[%s8070_s10 + $0x118] sm:$0xff] }
 0x350   : > { %3790 = vst.msk [vmem:[#allocation4 + $0xc0] sm:$0xff] %vm640_vm0, %v3781_v29  ;;  %v5815_v38 = vpack.c.bf16 %v4172_v46, %v4171_v52  ;;  %v4119_v46 = vld [vmem:[%s8070_s10 + $0x110] sm:$0xff]  ;;  %v4122_v29 = vld [vmem:[%s8070_s10 + $0x128] sm:$0xff]  ;;  %v4121_v52 = vld [vmem:[%s8070_s10 + $0x120] sm:$0xff] }
 0x352   : > { %5816 = vmatpush1.bf16.msra.mxu0 %v5815_v38  ;;  %v4124_v38 = vld [vmem:[%s8070_s10 + $0x138] sm:$0xff] }
 0x353   : > { %5817 = vmatprep.subr.bf16.mxu0 %v5854_v59 }
 0x356   : > { %v5546_v3 = vpop.f32.mrb[122].mxu1  ;;  %v4174_v20 = vld [vmem:[#allocation4 + $0xc8] sm:$0xff] }
 0x357   : > { %3878 = vst.msk [vmem:[#allocation4 + $0xd8] sm:$0xff] %vm640_vm0, %v5546_v3  ;;  %v3868_v30 = vpop.f32.mrb[123].mxu1  ;;  %v4173_v18 = vld [vmem:[#allocation4 + $0xc0] sm:$0xff] }
 0x358   : > { %3877 = vst.msk [vmem:[#allocation4 + $0xd0] sm:$0xff] %vm640_vm0, %v3868_v30  ;;  %v5818_v43 = vpack.c.bf16 %v4174_v20, %v4173_v18  ;;  %v4125_v3 = vld [vmem:[%s8070_s10 + $0x140] sm:$0xff]  ;;  %v4128_v20 = vld [vmem:[%s8070_s10 + $0x158] sm:$0xff]  ;;  %v4127_v30 = vld [vmem:[%s8070_s10 + $0x150] sm:$0xff] }
 0x359   : > { %v4130_v18 = vld [vmem:[%s8070_s10 + $0x168] sm:$0xff] }
 0x35a   : > { %5819 = vmatpush1.bf16.msra.mxu0 %v5818_v43 }
 0x35b   : > { %5820 = vmatprep.subr.bf16.mxu0 %v5854_v59 }
 0x35e   : > { %v5553_v2 = vpop.f32.mrb[124].mxu1  ;;  %v4176_v61 = vld [vmem:[#allocation4 + $0xd8] sm:$0xff] }
 0x35f   : > { %3965 = vst.msk [vmem:[#allocation4 + $0xe8] sm:$0xff] %vm640_vm0, %v5553_v2  ;;  %v3955_v60 = vpop.f32.mrb[125].mxu1  ;;  %v4175_v63 = vld [vmem:[#allocation4 + $0xd0] sm:$0xff]  ;;  %v4132_v2 = vld [vmem:[%s8070_s10 + $0x178] sm:$0xff] }
 0x360   : > { %3964 = vst.msk [vmem:[#allocation4 + $0xe0] sm:$0xff] %vm640_vm0, %v3955_v60  ;;  %v5821_v50 = vpack.c.bf16 %v4176_v61, %v4175_v63  ;;  %v4131_v61 = vld [vmem:[%s8070_s10 + $0x170] sm:$0xff]  ;;  %v4134_v60 = vld [vmem:[%s8070_s10 + $0x188] sm:$0xff] }
 0x362   : > { %5822 = vmatpush1.bf16.msra.mxu0 %v5821_v50 }
 0x363   : > { %5823 = vmatprep.subr.bf16.mxu0 %v5854_v59 }
 0x366   : > { %v5560_v44 = vpop.f32.mrb[126].mxu1  ;;  %v4178_v57 = vld [vmem:[#allocation4 + $0xe8] sm:$0xff] }
 0x367   : > { %4052 = vst.msk [vmem:[#allocation4 + $0xf8] sm:$0xff] %vm640_vm0, %v5560_v44  ;;  %v4042_v6 = vpop.f32.mrb[127].mxu1  ;;  %v4177_v47 = vld [vmem:[#allocation4 + $0xe0] sm:$0xff]  ;;  %v4135_v44 = vld [vmem:[%s8070_s10 + $0x190] sm:$0xff] }
 0x368   : > { %4051 = vst.msk [vmem:[#allocation4 + $0xf0] sm:$0xff] %vm640_vm0, %v4042_v6  ;;  %v5824_v33 = vpack.c.bf16 %v4178_v57, %v4177_v47  ;;  %v4138_v57 = vld [vmem:[%s8070_s10 + $0x1a8] sm:$0xff] }
 0x36a   : > { %5825 = vmatpush1.bf16.msra.mxu0 %v5824_v33  ;;  %v7834_v43 = vpop.f32.mrb[128].mxu1  ;;  %v4137_v33 = vld [vmem:[%s8070_s10 + $0x1a0] sm:$0xff] }
 0x36b   : > { %5826 = vmatprep.subr.bf16.mxu0 %v5854_v59  ;;  %v4087_v59 = vld [vmem:[%s8070_s10 + $0x10] sm:$0xff]  ;;  %v7836_v0 = vpop.f32.mrb[129].mxu1 }
 0x36e   : > { %v4180_v42 = vld [vmem:[#allocation4 + $0xf8] sm:$0xff]  ;;  %v7850_v63 = vpop.f32.mrb[130].mxu1 }
 0x36f   : > { %v4179_v31 = vld [vmem:[#allocation4 + $0xf0] sm:$0xff]  ;;  %v7852_v50 = vpop.f32.mrb[131].mxu1 }
 0x370   : > { %v5827_v55 = vpack.c.bf16 %v4180_v42, %v4179_v31  ;;  %v4142_v42 = vld [vmem:[%s8070_s10 + $0x1c8] sm:$0xff] }
 0x372   : > { %5828 = vmatpush1.bf16.msra.mxu0 %v5827_v55  ;;  %v7866_v6 = vpop.f32.mrb[132].mxu1 }
 0x373   : > { %v7868_v47 = vpop.f32.mrb[133].mxu1 }
 0x375   : > { %4246 = vmatmul.mubr.f32.vlgmr.msra.gmra.mrb[96].mxu0 %v4085_v58  ;;  %v4141_v58 = vld [vmem:[%s8070_s10 + $0x1c0] sm:$0xff] }
 0x376   : > { %4250 = vmatprep.mubr.f32.mxu0 %v4088_v1  ;;  %v7882_v31 = vpop.f32.mrb[134].mxu1  ;;  %v4144_v1 = vld [vmem:[%s8070_s10 + $0x1d8] sm:$0xff] }
 0x377   : > { %v7884_v55 = vpop.f32.mrb[135].mxu1 }
 0x379   : > { %4251 = vmatmul.mubr.f32.gmra.mrb[98].mxu0 %v4087_v59  ;;  %v4143_v59 = vld [vmem:[%s8070_s10 + $0x1d0] sm:$0xff] }
 0x37a   : > { %4255 = vmatprep.mubr.f32.mxu0 %v4090_v17  ;;  %v4146_v17 = vld [vmem:[%s8070_s10 + $0x1e8] sm:$0xff] }
 0x37d   : > { %4256 = vmatmul.mubr.f32.gmra.mrb[100].mxu0 %v4089_v28  ;;  %v7898_v28 = vpop.f32.mrb[136].mxu1 }
 0x37e   : > { %4260 = vmatprep.mubr.f32.mxu0 %v4092_v48  ;;  %v7900_v48 = vpop.f32.mrb[137].mxu1 }
 0x381   : > { %4261 = vmatmul.mubr.f32.gmra.mrb[102].mxu0 %v4091_v56  ;;  %v4145_v56 = vld [vmem:[%s8070_s10 + $0x1e0] sm:$0xff] }
 0x382   : > { %4265 = vmatprep.mubr.f32.mxu0 %v4094_v14  ;;  %v4148_v14 = vld [vmem:[%s8070_s10 + $0x1f8] sm:$0xff] }
 0x385   : > { %4266 = vmatmul.mubr.f32.gmra.mrb[104].mxu0 %v4093_v10  ;;  %v4147_v10 = vld [vmem:[%s8070_s10 + $0x1f0] sm:$0xff] }
 0x386   : > { %4270 = vmatprep.mubr.f32.mxu0 %v4096_v5  ;;  %v7911_v5 = vpop.f32.mrb[138].mxu1 }
 0x389   : > { %4271 = vmatmul.mubr.f32.gmra.mrb[106].mxu0 %v4095_v35  ;;  %v7913_v35 = vpop.f32.mrb[139].mxu1 }
 0x38a   : > { %4275 = vmatprep.mubr.f32.mxu0 %v4098_v37  ;;  %v7915_v37 = vpop.f32.mrb[140].mxu1 }
 0x38d   : > { %4276 = vmatmul.mubr.f32.gmra.mrb[108].mxu0 %v4097_v13  ;;  %v7917_v13 = vpop.f32.mrb[141].mxu1 }
 0x38e   : > { %4280 = vmatprep.mubr.f32.mxu0 %v4100_v39  ;;  %v7919_v39 = vpop.f32.mrb[142].mxu1 }
 0x391   : > { %4281 = vmatmul.mubr.f32.gmra.mrb[110].mxu0 %v4099_v36  ;;  %v7921_v36 = vpop.f32.mrb[143].mxu1 }
 0x392   : > { %4285 = vmatprep.mubr.f32.mxu0 %v4102_v53  ;;  %v7923_v53 = vpop.f32.mrb[144].mxu1 }
 0x395   : > { %4286 = vmatmul.mubr.f32.gmra.mrb[112].mxu0 %v4101_v4  ;;  %v7925_v4 = vpop.f32.mrb[145].mxu1 }
 0x396   : > { %4290 = vmatprep.mubr.f32.mxu0 %v4104_v16  ;;  %v7927_v16 = vpop.f32.mrb[146].mxu1 }
 0x399   : > { %4291 = vmatmul.mubr.f32.gmra.mrb[114].mxu0 %v4103_v54  ;;  %v7929_v54 = vpop.f32.mrb[147].mxu1 }
 0x39a   : > { %4295 = vmatprep.mubr.f32.mxu0 %v4106_v9  ;;  %v7931_v9 = vpop.f32.mrb[148].mxu1 }
 0x39d   : > { %4296 = vmatmul.mubr.f32.gmra.mrb[116].mxu0 %v4105_v45  ;;  %v7933_v45 = vpop.f32.mrb[149].mxu1 }
 0x39e   : > { %4300 = vmatprep.mubr.f32.mxu0 %v4108_v23  ;;  %v7935_v23 = vpop.f32.mrb[150].mxu1 }
 0x3a1   : > { %4301 = vmatmul.mubr.f32.gmra.mrb[118].mxu0 %v4107_v27  ;;  %v7937_v27 = vpop.f32.mrb[151].mxu1 }
 0x3a2   : > { %4305 = vmatprep.mubr.f32.mxu0 %v4110_v25  ;;  %v7939_v25 = vpop.f32.mrb[152].mxu1 }
 0x3a5   : > { %4306 = vmatmul.mubr.f32.gmra.mrb[120].mxu0 %v4109_v26  ;;  %v7941_v26 = vpop.f32.mrb[153].mxu1 }
 0x3a6   : > { %4310 = vmatprep.mubr.f32.mxu0 %v4112_v32  ;;  %v7943_v32 = vpop.f32.mrb[154].mxu1 }
 0x3a9   : > { %4311 = vmatmul.mubr.f32.gmra.mrb[122].mxu0 %v4111_v11  ;;  %v7945_v11 = vpop.f32.mrb[155].mxu1 }
 0x3aa   : > { %4315 = vmatprep.mubr.f32.mxu0 %v4114_v41  ;;  %v7947_v41 = vpop.f32.mrb[156].mxu1 }
 0x3ad   : > { %4316 = vmatmul.mubr.f32.gmra.mrb[124].mxu0 %v4113_v21  ;;  %v7949_v21 = vpop.f32.mrb[157].mxu1 }
 0x3ae   : > { %4320 = vmatprep.mubr.f32.mxu0 %v4116_v19  ;;  %v7951_v19 = vpop.f32.mrb[158].mxu1 }
 0x3b1   : > { %4321 = vmatmul.mubr.f32.gmra.mrb[126].mxu0 %v4115_v51  ;;  %v7953_v51 = vpop.f32.mrb[159].mxu1 }
 0x3b2   : > { %4325 = vmatprep.mubr.f32.mxu0 %v4118_v34 }
 0x3b5   : > { %4326 = vmatmul.mubr.f32.gmra.mrb[128].mxu0 %v4117_v22 }
 0x3b6   : > { %4330 = vmatprep.mubr.f32.mxu0 %v4120_v40 }
 0x3b9   : > { %4331 = vmatmul.mubr.f32.gmra.mrb[130].mxu0 %v4119_v46  ;;  %v4762_v46 = vpop.permute.xlu0 %4761 }
 0x3ba   : > { %4335 = vmatprep.mubr.f32.mxu0 %v4122_v29 }
 0x3bd   : > { %4336 = vmatmul.mubr.f32.gmra.mrb[132].mxu0 %v4121_v52 }
 0x3be   : > { %4340 = vmatprep.mubr.f32.mxu0 %v4124_v38 }
 0x3c1   : > { %4341 = vmatmul.mubr.f32.gmra.mrb[134].mxu0 %v4123_v49 }
 0x3c2   : > { %4345 = vmatprep.mubr.f32.mxu0 %v4126_v8  ;;  %v4767_v8 = vpop.permute.xlu1 %4766 }
 0x3c5   : > { %4346 = vmatmul.mubr.f32.gmra.mrb[136].mxu0 %v4125_v3 }
 0x3c6   : > { %4350 = vmatprep.mubr.f32.mxu0 %v4128_v20 }
 0x3c9   : > { %4351 = vmatmul.mubr.f32.gmra.mrb[138].mxu0 %v4127_v30 }
 0x3ca   : > { %4355 = vmatprep.mubr.f32.mxu0 %v4130_v18 }
 0x3cd   : > { %4356 = vmatmul.mubr.f32.gmra.mrb[140].mxu0 %v4129_v7 }
 0x3ce   : > { %4360 = vmatprep.mubr.f32.mxu0 %v4132_v2 }
 0x3d1   : > { %4361 = vmatmul.mubr.f32.gmra.mrb[142].mxu0 %v4131_v61 }
 0x3d2   : > { %4365 = vmatprep.mubr.f32.mxu0 %v4134_v60 }
 0x3d5   : > { %4366 = vmatmul.mubr.f32.gmra.mrb[144].mxu0 %v4133_v15 }
 0x3d6   : > { %4370 = vmatprep.mubr.f32.mxu0 %v4136_v12 }
 0x3d9   : > { %4371 = vmatmul.mubr.f32.gmra.mrb[146].mxu0 %v4135_v44 }
 0x3da   : > { %4375 = vmatprep.mubr.f32.mxu0 %v4138_v57 }
 0x3dd   : > { %4376 = vmatmul.mubr.f32.gmra.mrb[148].mxu0 %v4137_v33 }
 0x3de   : > { %4380 = vmatprep.mubr.f32.mxu0 %v4140_v62 }
 0x3e1   : > { %4381 = vmatmul.mubr.f32.gmra.mrb[150].mxu0 %v4139_v24 }
 0x3e2   : > { %4385 = vmatprep.mubr.f32.mxu0 %v4142_v42 }
 0x3e5   : > { %4386 = vmatmul.mubr.f32.gmra.mrb[152].mxu0 %v4141_v58 }
 0x3e6   : > { %4390 = vmatprep.mubr.f32.mxu0 %v4144_v1 }
 0x3e9   : > { %4391 = vmatmul.mubr.f32.gmra.mrb[154].mxu0 %v4143_v59 }
 0x3ea   : > { %4395 = vmatprep.mubr.f32.mxu0 %v4146_v17 }
 0x3ed   : > { %4396 = vmatmul.mubr.f32.gmra.mrb[156].mxu0 %v4145_v56 }
 0x3ee   : > { %4400 = vmatprep.mubr.f32.mxu0 %v4148_v14 }
 0x3f1   : > { %4401 = vmatmul.mubr.f32.gmra.mrb[158].mxu0 %v4147_v10 }
 0x448   : > { %v4247_v34 = vpop.f32.mrb[96].mxu0 }
 0x449   : > { %v4569_v22 = vadd.f32 %v7836_v0, %v4247_v34  ;;  %v4249_v40 = vpop.f32.mrb[97].mxu0  ;;  %v4772_v0 = vpop.permute.xlu0 %4771 }
 0x44b   : > { %v4919_v29 = vadd.f32 %v4762_v46, %v4569_v22 }
 0x44c   : > { %v4252_v52 = vpop.f32.mrb[98].mxu0 }
 0x44d   : > { %4951 = vst.msk [vmem:[%s7960_s30] sm:$0xff] %vm640_vm0, %v4919_v29  ;;  %v4574_v38 = vadd.f32 %v7834_v43, %v4252_v52  ;;  %v4254_v49 = vpop.f32.mrb[99].mxu0  ;;  %v4777_v43 = vpop.permute.xlu1 %4776 }
 0x44f   : > { %v4920_v3 = vadd.f32 %v4767_v8, %v4574_v38 }
 0x450   : > { %v4257_v20 = vpop.f32.mrb[100].mxu0 }
 0x451   : > { %4952 = vst.msk [vmem:[%s7960_s30 + $0x8] sm:$0xff] %vm640_vm0, %v4920_v3  ;;  %v4579_v30 = vadd.f32 %v7852_v50, %v4257_v20  ;;  %v4259_v18 = vpop.f32.mrb[101].mxu0  ;;  %v4782_v50 = vpop.permute.xlu0 %4781 }
 0x453   : > { %v4921_v7 = vadd.f32 %v4772_v0, %v4579_v30 }
 0x454   : > { %v4262_v2 = vpop.f32.mrb[102].mxu0 }
 0x455   : > { %4953 = vst.msk [vmem:[%s7960_s30 + $0x10] sm:$0xff] %vm640_vm0, %v4921_v7  ;;  %v4584_v61 = vadd.f32 %v7850_v63, %v4262_v2  ;;  %v4264_v60 = vpop.f32.mrb[103].mxu0  ;;  %v4787_v63 = vpop.permute.xlu1 %4786 }
 0x457   : > { %v4922_v15 = vadd.f32 %v4777_v43, %v4584_v61 }
 0x458   : > { %v4267_v12 = vpop.f32.mrb[104].mxu0 }
 0x459   : > { %4954 = vst.msk [vmem:[%s7960_s30 + $0x18] sm:$0xff] %vm640_vm0, %v4922_v15  ;;  %v4589_v44 = vadd.f32 %v7868_v47, %v4267_v12  ;;  %v4269_v57 = vpop.f32.mrb[105].mxu0  ;;  %v4792_v47 = vpop.permute.xlu0 %4791 }
 0x45b   : > { %v4923_v33 = vadd.f32 %v4782_v50, %v4589_v44 }
 0x45c   : > { %v4272_v62 = vpop.f32.mrb[106].mxu0 }
 0x45d   : > { %4955 = vst.msk [vmem:[%s7960_s30 + $0x20] sm:$0xff] %vm640_vm0, %v4923_v33  ;;  %v4594_v24 = vadd.f32 %v7866_v6, %v4272_v62  ;;  %v4274_v42 = vpop.f32.mrb[107].mxu0  ;;  %v4797_v6 = vpop.permute.xlu1 %4796 }
 0x45f   : > { %v4924_v58 = vadd.f32 %v4787_v63, %v4594_v24 }
 0x460   : > { %v4277_v1 = vpop.f32.mrb[108].mxu0 }
 0x461   : > { %4956 = vst.msk [vmem:[%s7960_s30 + $0x28] sm:$0xff] %vm640_vm0, %v4924_v58  ;;  %v4599_v59 = vadd.f32 %v7884_v55, %v4277_v1  ;;  %v4279_v17 = vpop.f32.mrb[109].mxu0  ;;  %v4802_v55 = vpop.permute.xlu0 %4801 }
 0x463   : > { %v4925_v56 = vadd.f32 %v4792_v47, %v4599_v59 }
 0x464   : > { %v4282_v14 = vpop.f32.mrb[110].mxu0 }
 0x465   : > { %4957 = vst.msk [vmem:[%s7960_s30 + $0x30] sm:$0xff] %vm640_vm0, %v4925_v56  ;;  %v4604_v10 = vadd.f32 %v7882_v31, %v4282_v14  ;;  %v4284_v34 = vpop.f32.mrb[111].mxu0  ;;  %v4807_v31 = vpop.permute.xlu1 %4806 }
 0x467   : > { %v4926_v22 = vadd.f32 %v4797_v6, %v4604_v10 }
 0x468   : > { %v4287_v40 = vpop.f32.mrb[112].mxu0 }
 0x469   : > { %4958 = vst.msk [vmem:[%s7960_s30 + $0x38] sm:$0xff] %vm640_vm0, %v4926_v22  ;;  %v4609_v46 = vadd.f32 %v7900_v48, %v4287_v40  ;;  %v4289_v29 = vpop.f32.mrb[113].mxu0  ;;  %v4812_v48 = vpop.permute.xlu0 %4811 }
 0x46b   : > { %v4927_v52 = vadd.f32 %v4802_v55, %v4609_v46 }
 0x46c   : > { %v4292_v38 = vpop.f32.mrb[114].mxu0 }
 0x46d   : > { %4959 = vst.msk [vmem:[%s7960_s30 + $0x40] sm:$0xff] %vm640_vm0, %v4927_v52  ;;  %v4614_v49 = vadd.f32 %v7898_v28, %v4292_v38  ;;  %v4294_v8 = vpop.f32.mrb[115].mxu0  ;;  %v4817_v28 = vpop.permute.xlu1 %4816 }
 0x46f   : > { %v4928_v3 = vadd.f32 %v4807_v31, %v4614_v49 }
 0x470   : > { %v4297_v20 = vpop.f32.mrb[116].mxu0 }
 0x471   : > { %4960 = vst.msk [vmem:[%s7960_s30 + $0x48] sm:$0xff] %vm640_vm0, %v4928_v3  ;;  %v4619_v30 = vadd.f32 %v7913_v35, %v4297_v20  ;;  %v4299_v18 = vpop.f32.mrb[117].mxu0  ;;  %v4822_v35 = vpop.permute.xlu0 %4821 }
 0x473   : > { %v4929_v0 = vadd.f32 %v4812_v48, %v4619_v30 }
 0x474   : > { %v4302_v7 = vpop.f32.mrb[118].mxu0 }
 0x475   : > { %4961 = vst.msk [vmem:[%s7960_s30 + $0x50] sm:$0xff] %vm640_vm0, %v4929_v0  ;;  %v4624_v2 = vadd.f32 %v7911_v5, %v4302_v7  ;;  %v4304_v61 = vpop.f32.mrb[119].mxu0  ;;  %v4827_v5 = vpop.permute.xlu1 %4826 }
 0x477   : > { %v4930_v60 = vadd.f32 %v4817_v28, %v4624_v2 }
 0x478   : > { %v4307_v43 = vpop.f32.mrb[120].mxu0 }
 0x479   : > { %4962 = vst.msk [vmem:[%s7960_s30 + $0x58] sm:$0xff] %vm640_vm0, %v4930_v60  ;;  %v4629_v15 = vadd.f32 %v7917_v13, %v4307_v43  ;;  %v4309_v12 = vpop.f32.mrb[121].mxu0  ;;  %v4832_v13 = vpop.permute.xlu0 %4831 }
 0x47b   : > { %v4931_v44 = vadd.f32 %v4822_v35, %v4629_v15 }
 0x47c   : > { %v4312_v57 = vpop.f32.mrb[122].mxu0 }
 0x47d   : > { %4963 = vst.msk [vmem:[%s7960_s30 + $0x60] sm:$0xff] %vm640_vm0, %v4931_v44  ;;  %v4634_v50 = vadd.f32 %v7915_v37, %v4312_v57  ;;  %v4314_v33 = vpop.f32.mrb[123].mxu0  ;;  %v4837_v37 = vpop.permute.xlu1 %4836 }
 0x47f   : > { %v4932_v62 = vadd.f32 %v4827_v5, %v4634_v50 }
 0x480   : > { %v4317_v24 = vpop.f32.mrb[124].mxu0 }
 0x481   : > { %4964 = vst.msk [vmem:[%s7960_s30 + $0x68] sm:$0xff] %vm640_vm0, %v4932_v62  ;;  %v4639_v42 = vadd.f32 %v7921_v36, %v4317_v24  ;;  %v4319_v63 = vpop.f32.mrb[125].mxu0  ;;  %v4842_v36 = vpop.permute.xlu0 %4841 }
 0x483   : > { %v4933_v58 = vadd.f32 %v4832_v13, %v4639_v42 }
 0x484   : > { %v4322_v1 = vpop.f32.mrb[126].mxu0 }
 0x485   : > { %4965 = vst.msk [vmem:[%s7960_s30 + $0x70] sm:$0xff] %vm640_vm0, %v4933_v58  ;;  %v4644_v59 = vadd.f32 %v7919_v39, %v4322_v1  ;;  %v4324_v17 = vpop.f32.mrb[127].mxu0  ;;  %v4847_v39 = vpop.permute.xlu1 %4846 }
 0x487   : > { %v4934_v47 = vadd.f32 %v4837_v37, %v4644_v59 }
 0x488   : > { %v4327_v56 = vpop.f32.mrb[128].mxu0 }
 0x489   : > { %4966 = vst.msk [vmem:[%s7960_s30 + $0x78] sm:$0xff] %vm640_vm0, %v4934_v47  ;;  %v4649_v14 = vadd.f32 %v7925_v4, %v4327_v56  ;;  %v4329_v10 = vpop.f32.mrb[129].mxu0  ;;  %v4852_v4 = vpop.permute.xlu0 %4851 }
 0x48b   : > { %v4935_v34 = vadd.f32 %v4842_v36, %v4649_v14 }
 0x48c   : > { %v4332_v6 = vpop.f32.mrb[130].mxu0 }
 0x48d   : > { %4967 = vst.msk [vmem:[%s7960_s30 + $0x80] sm:$0xff] %vm640_vm0, %v4935_v34  ;;  %v4654_v22 = vadd.f32 %v7923_v53, %v4332_v6  ;;  %v4334_v40 = vpop.f32.mrb[131].mxu0  ;;  %v4857_v53 = vpop.permute.xlu1 %4856 }
 0x48f   : > { %v4936_v46 = vadd.f32 %v4847_v39, %v4654_v22 }
 0x490   : > { %v4337_v29 = vpop.f32.mrb[132].mxu0 }
 0x491   : > { %4968 = vst.msk [vmem:[%s7960_s30 + $0x88] sm:$0xff] %vm640_vm0, %v4936_v46  ;;  %v4659_v55 = vadd.f32 %v7929_v54, %v4337_v29  ;;  %v4339_v52 = vpop.f32.mrb[133].mxu0  ;;  %v4862_v54 = vpop.permute.xlu0 %4861 }
 0x493   : > { %v4937_v38 = vadd.f32 %v4852_v4, %v4659_v55 }
 0x494   : > { %v4342_v49 = vpop.f32.mrb[134].mxu0 }
 0x495   : > { %4969 = vst.msk [vmem:[%s7960_s30 + $0x90] sm:$0xff] %vm640_vm0, %v4937_v38  ;;  %v4664_v8 = vadd.f32 %v7927_v16, %v4342_v49  ;;  %v4344_v31 = vpop.f32.mrb[135].mxu0  ;;  %v4867_v16 = vpop.permute.xlu1 %4866 }
 0x497   : > { %v4938_v3 = vadd.f32 %v4857_v53, %v4664_v8 }
 0x498   : > { %v4347_v20 = vpop.f32.mrb[136].mxu0 }
 0x499   : > { %4970 = vst.msk [vmem:[%s7960_s30 + $0x98] sm:$0xff] %vm640_vm0, %v4938_v3  ;;  %v4669_v30 = vadd.f32 %v7933_v45, %v4347_v20  ;;  %v4349_v18 = vpop.f32.mrb[137].mxu0  ;;  %v4872_v45 = vpop.permute.xlu0 %4871 }
 0x49b   : > { %v4939_v48 = vadd.f32 %v4862_v54, %v4669_v30 }
 0x49c   : > { %v4352_v0 = vpop.f32.mrb[138].mxu0 }
 0x49d   : > { %4971 = vst.msk [vmem:[%s7960_s30 + $0xa0] sm:$0xff] %vm640_vm0, %v4939_v48  ;;  %v4674_v7 = vadd.f32 %v7931_v9, %v4352_v0  ;;  %v4354_v2 = vpop.f32.mrb[139].mxu0  ;;  %v4877_v9 = vpop.permute.xlu1 %4876 }
 0x49f   : > { %v4940_v61 = vadd.f32 %v4867_v16, %v4674_v7 }
 0x4a0   : > { %v4357_v28 = vpop.f32.mrb[140].mxu0 }
 0x4a1   : > { %4972 = vst.msk [vmem:[%s7960_s30 + $0xa8] sm:$0xff] %vm640_vm0, %v4940_v61  ;;  %v4679_v60 = vadd.f32 %v7937_v27, %v4357_v28  ;;  %v4359_v43 = vpop.f32.mrb[141].mxu0  ;;  %v4882_v27 = vpop.permute.xlu0 %4881 }
 0x4a3   : > { %v4941_v15 = vadd.f32 %v4872_v45, %v4679_v60 }
 0x4a4   : > { %v4362_v12 = vpop.f32.mrb[142].mxu0 }
 0x4a5   : > { %4973 = vst.msk [vmem:[%s7960_s30 + $0xb0] sm:$0xff] %vm640_vm0, %v4941_v15  ;;  %v4684_v35 = vadd.f32 %v7935_v23, %v4362_v12  ;;  %v4364_v44 = vpop.f32.mrb[143].mxu0  ;;  %v4887_v23 = vpop.permute.xlu1 %4886 }
 0x4a7   : > { %v4942_v57 = vadd.f32 %v4877_v9, %v4684_v35 }
 0x4a8   : > { %v4367_v50 = vpop.f32.mrb[144].mxu0 }
 0x4a9   : > { %4974 = vst.msk [vmem:[%s7960_s30 + $0xb8] sm:$0xff] %vm640_vm0, %v4942_v57  ;;  %v4689_v33 = vadd.f32 %v7941_v26, %v4367_v50  ;;  %v4369_v5 = vpop.f32.mrb[145].mxu0  ;;  %v4892_v26 = vpop.permute.xlu0 %4891 }
 0x4ab   : > { %v4943_v62 = vadd.f32 %v4882_v27, %v4689_v33 }
 0x4ac   : > { %v4372_v24 = vpop.f32.mrb[146].mxu0 }
 0x4ad   : > { %4975 = vst.msk [vmem:[%s7960_s30 + $0xc0] sm:$0xff] %vm640_vm0, %v4943_v62  ;;  %v4694_v42 = vadd.f32 %v7939_v25, %v4372_v24  ;;  %v4374_v63 = vpop.f32.mrb[147].mxu0  ;;  %v4897_v25 = vpop.permute.xlu1 %4896 }
 0x4af   : > { %v4944_v13 = vadd.f32 %v4887_v23, %v4694_v42 }
 0x4b0   : > { %v4377_v58 = vpop.f32.mrb[148].mxu0 }
 0x4b1   : > { %4976 = vst.msk [vmem:[%s7960_s30 + $0xc8] sm:$0xff] %vm640_vm0, %v4944_v13  ;;  %v4699_v1 = vadd.f32 %v7945_v11, %v4377_v58  ;;  %v4379_v59 = vpop.f32.mrb[149].mxu0  ;;  %v4902_v11 = vpop.permute.xlu0 %4901 }
 0x4b2   : > { %v4907_v39 = vpop.permute.xlu1 %4906 }
 0x4b3   : > { %v4945_v17 = vadd.f32 %v4892_v26, %v4699_v1 }
 0x4b4   : > { %v4382_v37 = vpop.f32.mrb[150].mxu0 }
 0x4b5   : > { %4977 = vst.msk [vmem:[%s7960_s30 + $0xd0] sm:$0xff] %vm640_vm0, %v4945_v17  ;;  %v4704_v47 = vadd.f32 %v7943_v32, %v4382_v37  ;;  %v4384_v56 = vpop.f32.mrb[151].mxu0 }
 0x4b6   : > { %v4917_v31 = vpop.permute.xlu1 %4916 }
 0x4b7   : > { %v4946_v14 = vadd.f32 %v4897_v25, %v4704_v47 }
 0x4b8   : > { %v4387_v10 = vpop.f32.mrb[152].mxu0 }
 0x4b9   : > { %4978 = vst.msk [vmem:[%s7960_s30 + $0xd8] sm:$0xff] %vm640_vm0, %v4946_v14  ;;  %v4709_v36 = vadd.f32 %v7949_v21, %v4387_v10  ;;  %v4389_v34 = vpop.f32.mrb[153].mxu0  ;;  %v4912_v21 = vpop.permute.xlu0 %4911 }
 0x4bb   : > { %v4947_v6 = vadd.f32 %v4902_v11, %v4709_v36 }
 0x4bc   : > { %v4392_v22 = vpop.f32.mrb[154].mxu0 }
 0x4bd   : > { %4979 = vst.msk [vmem:[%s7960_s30 + $0xe0] sm:$0xff] %vm640_vm0, %v4947_v6  ;;  %v4714_v40 = vadd.f32 %v7947_v41, %v4392_v22  ;;  %v4394_v32 = vpop.f32.mrb[155].mxu0 }
 0x4bf   : > { %v4948_v46 = vadd.f32 %v4907_v39, %v4714_v40 }
 0x4c0   : > { %v4397_v29 = vpop.f32.mrb[156].mxu0 }
 0x4c1   : > { %4980 = vst.msk [vmem:[%s7960_s30 + $0xe8] sm:$0xff] %vm640_vm0, %v4948_v46  ;;  %v4719_v55 = vadd.f32 %v7953_v51, %v4397_v29  ;;  %v4399_v52 = vpop.f32.mrb[157].mxu0 }
 0x4c3   : > { %v4949_v4 = vadd.f32 %v4912_v21, %v4719_v55 }
 0x4c4   : > { %v4402_v38 = vpop.f32.mrb[158].mxu0 }
 0x4c5   : > { %4981 = vst.msk [vmem:[%s7960_s30 + $0xf0] sm:$0xff] %vm640_vm0, %v4949_v4  ;;  %v4724_v49 = vadd.f32 %v7951_v19, %v4402_v38  ;;  %v4404_v8 = vpop.f32.mrb[159].mxu0 }
 0x4c7   : > { %v4950_v41 = vadd.f32 %v4917_v31, %v4724_v49 }
 0x4c9   : > { %4982 = vst.msk [vmem:[%s7960_s30 + $0xf8] sm:$0xff] %vm640_vm0, %v4950_v41 }
 0x4ca PF: > { %s22_s21 = sadd.s32 1, %s5851_s21  }
 0x4cb   : > { %p19_p4 = scmp.ge.s32.totalorder %s22_s21, 4  }
 0x4cd   :  { %21 = sbr.rel (!%p19_p4) target bundleno = 1 (0x1), region = 98 }

// kernel: net_forward.4
= control target key start
LH: loop header
LB: loop body
LE: loop exit
PB: predicated region body
PF: predicated region fallthrough
CT: control target
= control target key end

     0   :  { %s5536_s21 = smov 0   ;;  %s8016_s0 = inlined_call_operand.vmem [shape: f32[2,256,16], index: 0, kind: input, shape index: {}]   ;;  %s8017_s1 = inlined_call_operand.vmem [shape: f32[256,256], index: 1, kind: input, shape index: {}]   ;;  %s8018_s2 = inlined_call_operand.vmem [shape: f32[256,1], index: 2, kind: input, shape index: {}]   ;;  %s8019_s3 = inlined_call_operand.vmem [shape: f32[256,256], index: 3, kind: input, shape index: {}]   ;;  %s8020_s4 = inlined_call_operand.vmem [shape: f32[256,1], index: 4, kind: input, shape index: {}]   ;;  %s8021_s5 = inlined_call_operand.vmem [shape: f32[256,256], index: 5, kind: input, shape index: {}]   ;;  %s8022_s6 = inlined_call_operand.vmem [shape: f32[256,1], index: 6, kind: input, shape index: {}]   ;;  %s8023_s7 = inlined_call_operand.vmem [shape: f32[256,256], index: 7, kind: input, shape index: {}]   ;;  %s8024_s8 = inlined_call_operand.vmem [shape: f32[256,1], index: 8, kind: input, shape index: {}]   ;;  %s8025_s9 = inlined_call_operand.vmem [shape: f32[256,256], index: 9, kind: input, shape index: {}]   ;;  %s8026_s10 = inlined_call_operand.vmem [shape: f32[256,256], index: 10, kind: input, shape index: {}]   ;;  %s8027_s11 = inlined_call_operand.vmem [shape: f32[256,1], index: 11, kind: input, shape index: {}]   ;;  %s8028_s12 = inlined_call_operand.vmem [shape: f32[2,256,16], index: 12, kind: output, shape index: {}]  }
   0x1 LB: > { %s4876_s22 = sadd.s32 4294967295, %s5467_s21   ;;  %p4880_p0 = scmp.ge.s32.totalorder %s5467_s21, 1  ;;  %s5467_s21 = sphi %s5536_s21, %s22_s21  }
   0x2   : > { %p362_p1 = scmp.lt.s32.totalorder %s5467_s21, 3 }
   0x4   : > { %p363_p2 = pnand %p4880_p0, %p362_p1 }
   0x6   : > { %366 = sbr.rel (%p363_p2) target bundleno = 1478 (0x5c6), region = 68 }
   0xd   : > { %v512_v0 = vld [vmem:[%s8018_s2 + $0x10] sm:$0xff]  ;;  %v510_v1 = vld [vmem:[%s8018_s2] sm:$0xff]  ;;  %p404_p3 = scmp.lt.s32.totalorder %s4876_s22, 1  ;;  %v5469_v2 = vmov 0   ;;  %v513_v3 = vld [vmem:[%s8018_s2 + $0x18] sm:$0xff]  ;;  %v8029_v5 = vmov 0.0|0.0  }
   0xe   : > { %5460 = vset.pattern.permute.xlu1 %v5469_v2  ;;  %5459 = vset.pattern.permute.xlu0 %v5469_v2  ;;  %v511_v4 = vld [vmem:[%s8018_s2 + $0x8] sm:$0xff]  ;;  %v514_v11 = vld [vmem:[%s8018_s2 + $0x20] sm:$0xff]  ;;  %v517_v16 = vld [vmem:[%s8018_s2 + $0x38] sm:$0xff]  ;;  %vm1472_vm0 = vcmask 130048  }
   0xf   : > { %554 = vperm.xlu1 %5460, %v512_v0   ;;  %544 = vperm.xlu0 %5459, %v510_v1   ;;  %s8093_s22 = smov (!%p404_p3, %s4876_s22), 1  ;;  %v515_v10 = vld [vmem:[%s8018_s2 + $0x28] sm:$0xff]  ;;  %v516_v17 = vld [vmem:[%s8018_s2 + $0x30] sm:$0xff]  ;;  %v518_v22 = vld [vmem:[%s8018_s2 + $0x40] sm:$0xff] }
  0x10   : > { %5097 = vmatprep.subr.bf16.mxu0 %v8029_v5  ;;  %5145 = vmatprep.subr.bf16.mxu1 %v8029_v5  ;;  %s4919_s13 = sshll.u32 %s8093_s22, 8  ;;  %v519_v21 = vld [vmem:[%s8018_s2 + $0x48] sm:$0xff]  ;;  %v521_v26 = vld [vmem:[%s8018_s2 + $0x58] sm:$0xff]  ;;  %v520_v27 = vld [vmem:[%s8018_s2 + $0x50] sm:$0xff] }
  0x11   : > { %s5566_s16 = scalar_lea.vmem %s8016_s0, %s4919_s13  ;;  %v447_v31 = vld [vmem:[%s8017_s1 + $0x8] sm:$0xff]  ;;  %v522_v33 = vld [vmem:[%s8018_s2 + $0x60] sm:$0xff]  ;;  %v525_v37 = vld [vmem:[%s8018_s2 + $0x78] sm:$0xff]  ;;  %s7916_s25 = scalar_lea.vmem %s8028_s12, %s4919_s13 }
  0x12   : > { %v414_v6 = vld [vmem:[%s5566_s16] sm:$0xff]  ;;  %v415_v7 = vld [vmem:[%s5566_s16 + $0x8] sm:$0xff]  ;;  %v416_v8 = vld [vmem:[%s5566_s16 + $0x10] sm:$0xff]  ;;  %766 = vmatprep.mubr.f32.mxu0 %v447_v31 }
  0x13   : > { %559 = vperm.xlu1 %5460, %v513_v3   ;;  %549 = vperm.xlu0 %5459, %v511_v4   ;;  %v5571_v9 = vpack.c.bf16 %v415_v7, %v414_v6  ;;  %v417_v12 = vld [vmem:[%s5566_s16 + $0x18] sm:$0xff]  ;;  %v418_v14 = vld [vmem:[%s5566_s16 + $0x20] sm:$0xff]  ;;  %v419_v15 = vld [vmem:[%s5566_s16 + $0x28] sm:$0xff] }
  0x14   : > { %v5581_v13 = vpack.c.bf16 %v417_v12, %v416_v8  ;;  %v5593_v18 = vpack.c.bf16 %v419_v15, %v418_v14  ;;  %v420_v19 = vld [vmem:[%s5566_s16 + $0x30] sm:$0xff]  ;;  %v421_v20 = vld [vmem:[%s5566_s16 + $0x38] sm:$0xff]  ;;  %v422_v24 = vld [vmem:[%s5566_s16 + $0x40] sm:$0xff] }
  0x15   : > { %8047 = vst [vmem:[#allocation5_spill] sm:$0xff] %v5571_v9  ;;  %5099 = vmatpush1.bf16.msra.mxu0 %v5571_v9  ;;  %v5605_v23 = vpack.c.bf16 %v421_v20, %v420_v19  ;;  %v423_v25 = vld [vmem:[%s5566_s16 + $0x48] sm:$0xff]  ;;  %v424_v29 = vld [vmem:[%s5566_s16 + $0x50] sm:$0xff]  ;;  %v425_v30 = vld [vmem:[%s5566_s16 + $0x58] sm:$0xff] }
  0x16   : > { %8048 = vst [vmem:[#allocation6_spill] sm:$0xff] %v5581_v13  ;;  %5100 = vmatprep.subr.bf16.mxu0 %v8029_v5  ;;  %8049 = vst [vmem:[#allocation7_spill] sm:$0xff] %v5593_v18  ;;  %v5617_v28 = vpack.c.bf16 %v423_v25, %v422_v24  ;;  %v523_v32 = vld [vmem:[%s8018_s2 + $0x68] sm:$0xff]  ;;  %v5632_v34 = vpack.c.bf16 %v425_v30, %v424_v29  ;;  %v426_v35 = vld [vmem:[%s5566_s16 + $0x60] sm:$0xff] }
  0x17   : > { %569 = vperm.xlu1 %5460, %v515_v10   ;;  %564 = vperm.xlu0 %5459, %v514_v11   ;;  %8050 = vst [vmem:[#allocation8_spill] sm:$0xff] %v5605_v23  ;;  %v427_v36 = vld [vmem:[%s5566_s16 + $0x68] sm:$0xff]  ;;  %v524_v38 = vld [vmem:[%s8018_s2 + $0x70] sm:$0xff]  ;;  %v429_v41 = vld [vmem:[%s5566_s16 + $0x78] sm:$0xff] }
  0x18   : > { %8051 = vst [vmem:[#allocation9_spill] sm:$0xff] %v5617_v28  ;;  %8052 = vst [vmem:[#allocation10_spill] sm:$0xff] %v5632_v34  ;;  %v5644_v39 = vpack.c.bf16 %v427_v36, %v426_v35  ;;  %v428_v40 = vld [vmem:[%s5566_s16 + $0x70] sm:$0xff]  ;;  %v527_v42 = vld [vmem:[%s8018_s2 + $0x88] sm:$0xff] }
  0x19   : > { %5102 = vmatpush1.bf16.msra.mxu0 %v5581_v13  ;;  %v526_v43 = vld [vmem:[%s8018_s2 + $0x80] sm:$0xff]  ;;  %v5656_v44 = vpack.c.bf16 %v429_v41, %v428_v40  ;;  %v431_v46 = vld [vmem:[%s5566_s16 + $0x88] sm:$0xff]  ;;  %v529_v47 = vld [vmem:[%s8018_s2 + $0x98] sm:$0xff] }
  0x1a   : > { %5103 = vmatprep.subr.bf16.mxu0 %v8029_v5  ;;  %8053 = vst [vmem:[#allocation11_spill] sm:$0xff] %v5644_v39  ;;  %v430_v45 = vld [vmem:[%s5566_s16 + $0x80] sm:$0xff]  ;;  %v528_v48 = vld [vmem:[%s8018_s2 + $0x90] sm:$0xff]  ;;  %v433_v51 = vld [vmem:[%s5566_s16 + $0x98] sm:$0xff] }
  0x1b   : > { %579 = vperm.xlu1 %5460, %v517_v16   ;;  %574 = vperm.xlu0 %5459, %v516_v17   ;;  %8054 = vst [vmem:[#allocation12_spill] sm:$0xff] %v5656_v44  ;;  %v5668_v49 = vpack.c.bf16 %v431_v46, %v430_v45  ;;  %v432_v50 = vld [vmem:[%s5566_s16 + $0x90] sm:$0xff]  ;;  %v531_v52 = vld [vmem:[%s8018_s2 + $0xa8] sm:$0xff]  ;;  %v530_v53 = vld [vmem:[%s8018_s2 + $0xa0] sm:$0xff] }
  0x1c   : > { %v5680_v54 = vpack.c.bf16 %v433_v51, %v432_v50  ;;  %v434_v55 = vld [vmem:[%s5566_s16 + $0xa0] sm:$0xff]  ;;  %v435_v56 = vld [vmem:[%s5566_s16 + $0xa8] sm:$0xff]  ;;  %v533_v57 = vld [vmem:[%s8018_s2 + $0xb8] sm:$0xff] }
  0x1d   : > { %5105 = vmatpush1.bf16.msra.mxu0 %v5593_v18  ;;  %8055 = vst [vmem:[#allocation13_spill] sm:$0xff] %v5668_v49  ;;  %v532_v58 = vld [vmem:[%s8018_s2 + $0xb0] sm:$0xff]  ;;  %v5692_v59 = vpack.c.bf16 %v435_v56, %v434_v55  ;;  %v437_v61 = vld [vmem:[%s5566_s16 + $0xb8] sm:$0xff]  ;;  %v535_v62 = vld [vmem:[%s8018_s2 + $0xc8] sm:$0xff] }
  0x1e   : > { %5106 = vmatprep.subr.bf16.mxu0 %v8029_v5  ;;  %8056 = vst [vmem:[#allocation14_spill] sm:$0xff] %v5680_v54  ;;  %v436_v60 = vld [vmem:[%s5566_s16 + $0xb0] sm:$0xff]  ;;  %v534_v63 = vld [vmem:[%s8018_s2 + $0xc0] sm:$0xff]  ;;  %v439_v2 = vld [vmem:[%s5566_s16 + $0xc8] sm:$0xff] }
  0x1f   : > { %589 = vperm.xlu1 %5460, %v519_v21   ;;  %584 = vperm.xlu0 %5459, %v518_v22   ;;  %8057 = vst [vmem:[#allocation15_spill] sm:$0xff] %v5692_v59  ;;  %v5704_v0 = vpack.c.bf16 %v437_v61, %v436_v60  ;;  %v438_v1 = vld [vmem:[%s5566_s16 + $0xc0] sm:$0xff]  ;;  %v537_v3 = vld [vmem:[%s8018_s2 + $0xd8] sm:$0xff]  ;;  %v536_v4 = vld [vmem:[%s8018_s2 + $0xd0] sm:$0xff] }
  0x20   : > { %v5716_v6 = vpack.c.bf16 %v439_v2, %v438_v1  ;;  %v440_v7 = vld [vmem:[%s5566_s16 + $0xd0] sm:$0xff]  ;;  %v441_v8 = vld [vmem:[%s5566_s16 + $0xd8] sm:$0xff]  ;;  %v539_v10 = vld [vmem:[%s8018_s2 + $0xe8] sm:$0xff] }
  0x21   : > { %5108 = vmatpush1.bf16.msra.mxu0 %v5605_v23  ;;  %8058 = vst [vmem:[#allocation16_spill] sm:$0xff] %v5704_v0  ;;  %v538_v11 = vld [vmem:[%s8018_s2 + $0xe0] sm:$0xff]  ;;  %v5728_v12 = vpack.c.bf16 %v441_v8, %v440_v7  ;;  %v443_v15 = vld [vmem:[%s5566_s16 + $0xe8] sm:$0xff]  ;;  %v541_v16 = vld [vmem:[%s8018_s2 + $0xf8] sm:$0xff] }
  0x22   : > { %5109 = vmatprep.subr.bf16.mxu0 %v8029_v5  ;;  %8059 = vst [vmem:[#allocation17_spill] sm:$0xff] %v5716_v6  ;;  %v442_v14 = vld [vmem:[%s5566_s16 + $0xe0] sm:$0xff]  ;;  %v540_v17 = vld [vmem:[%s8018_s2 + $0xf0] sm:$0xff]  ;;  %v445_v21 = vld [vmem:[%s5566_s16 + $0xf8] sm:$0xff] }
  0x23   : > { %599 = vperm.xlu1 %5460, %v521_v26   ;;  %594 = vperm.xlu0 %5459, %v520_v27   ;;  %8060 = vst [vmem:[#allocation18_spill] sm:$0xff] %v5728_v12  ;;  %v5740_v19 = vpack.c.bf16 %v443_v15, %v442_v14  ;;  %v444_v20 = vld [vmem:[%s5566_s16 + $0xf0] sm:$0xff]  ;;  %v1570_v22 = vld [vmem:[%s8022_s6 + $0x8] sm:$0xff]  ;;  %v1569_v24 = vld [vmem:[%s8022_s6] sm:$0xff] }
  0x24   : > { %v5752_v25 = vpack.c.bf16 %v445_v21, %v444_v20  ;;  %v1572_v26 = vld [vmem:[%s8022_s6 + $0x18] sm:$0xff]  ;;  %v1571_v27 = vld [vmem:[%s8022_s6 + $0x10] sm:$0xff]  ;;  %v446_v29 = vld [vmem:[%s8017_s1] sm:$0xff] }
  0x25   : > { %5111 = vmatpush1.bf16.msra.mxu0 %v5617_v28  ;;  %8061 = vst [vmem:[#allocation19_spill] sm:$0xff] %v5740_v19  ;;  %v449_v30 = vld [vmem:[%s8017_s1 + $0x18] sm:$0xff]  ;;  %v1574_v31 = vld [vmem:[%s8022_s6 + $0x28] sm:$0xff] }
  0x26   : > { %5112 = vmatprep.subr.bf16.mxu0 %v8029_v5  ;;  %8062 = vst [vmem:[#allocation20_spill] sm:$0xff] %v5752_v25  ;;  %v451_v35 = vld [vmem:[%s8017_s1 + $0x28] sm:$0xff]  ;;  %v1576_v36 = vld [vmem:[%s8022_s6 + $0x38] sm:$0xff] }
  0x27   : > { %609 = vperm.xlu1 %5460, %v523_v32   ;;  %604 = vperm.xlu0 %5459, %v522_v33   ;;  %v1573_v32 = vld [vmem:[%s8022_s6 + $0x20] sm:$0xff]  ;;  %v448_v33 = vld [vmem:[%s8017_s1 + $0x10] sm:$0xff]  ;;  %v453_v40 = vld [vmem:[%s8017_s1 + $0x38] sm:$0xff] }
  0x28   : > { %v1578_v41 = vld [vmem:[%s8022_s6 + $0x48] sm:$0xff]  ;;  %v1580_v46 = vld [vmem:[%s8022_s6 + $0x58] sm:$0xff] }
  0x29   : > { %5114 = vmatpush1.bf16.msra.mxu0 %v5632_v34  ;;  %v455_v45 = vld [vmem:[%s8017_s1 + $0x48] sm:$0xff]  ;;  %v457_v50 = vld [vmem:[%s8017_s1 + $0x58] sm:$0xff] }
  0x2a   : > { %5115 = vmatprep.subr.bf16.mxu0 %v8029_v5  ;;  %v1582_v51 = vld [vmem:[%s8022_s6 + $0x68] sm:$0xff]  ;;  %v1584_v56 = vld [vmem:[%s8022_s6 + $0x78] sm:$0xff] }
  0x2b   : > { %619 = vperm.xlu1 %5460, %v525_v37   ;;  %614 = vperm.xlu0 %5459, %v524_v38   ;;  %v1575_v37 = vld [vmem:[%s8022_s6 + $0x30] sm:$0xff]  ;;  %v450_v38 = vld [vmem:[%s8017_s1 + $0x20] sm:$0xff]  ;;  %v459_v55 = vld [vmem:[%s8017_s1 + $0x68] sm:$0xff] }
  0x2c   : > { %v461_v60 = vld [vmem:[%s8017_s1 + $0x78] sm:$0xff]  ;;  %v1586_v61 = vld [vmem:[%s8022_s6 + $0x88] sm:$0xff] }
  0x2d   : > { %5117 = vmatpush1.bf16.msra.mxu0 %v5644_v39  ;;  %v463_v1 = vld [vmem:[%s8017_s1 + $0x88] sm:$0xff]  ;;  %v1588_v2 = vld [vmem:[%s8022_s6 + $0x98] sm:$0xff] }
  0x2e   : > { %5118 = vmatprep.subr.bf16.mxu0 %v8029_v5  ;;  %v465_v7 = vld [vmem:[%s8017_s1 + $0x98] sm:$0xff]  ;;  %v1590_v8 = vld [vmem:[%s8022_s6 + $0xa8] sm:$0xff] }
  0x2f   : > { %629 = vperm.xlu1 %5460, %v527_v42   ;;  %624 = vperm.xlu0 %5459, %v526_v43   ;;  %v1577_v42 = vld [vmem:[%s8022_s6 + $0x40] sm:$0xff]  ;;  %v452_v43 = vld [vmem:[%s8017_s1 + $0x30] sm:$0xff]  ;;  %v467_v14 = vld [vmem:[%s8017_s1 + $0xa8] sm:$0xff] }
  0x30   : > { %v1592_v15 = vld [vmem:[%s8022_s6 + $0xb8] sm:$0xff]  ;;  %v1594_v21 = vld [vmem:[%s8022_s6 + $0xc8] sm:$0xff] }
  0x31   : > { %5120 = vmatpush1.bf16.msra.mxu0 %v5656_v44  ;;  %v469_v20 = vld [vmem:[%s8017_s1 + $0xb8] sm:$0xff] }
  0x32   : > { %5121 = vmatprep.subr.bf16.mxu0 %v8029_v5 }
  0x33   : > { %639 = vperm.xlu1 %5460, %v529_v47   ;;  %634 = vperm.xlu0 %5459, %v528_v48   ;;  %v1579_v47 = vld [vmem:[%s8022_s6 + $0x50] sm:$0xff]  ;;  %v454_v48 = vld [vmem:[%s8017_s1 + $0x40] sm:$0xff] }
  0x35   : > { %5123 = vmatpush1.bf16.msra.mxu0 %v5668_v49 }
  0x36   : > { %5124 = vmatprep.subr.bf16.mxu0 %v8029_v5 }
  0x37   : > { %649 = vperm.xlu1 %5460, %v531_v52   ;;  %644 = vperm.xlu0 %5459, %v530_v53   ;;  %v1581_v52 = vld [vmem:[%s8022_s6 + $0x60] sm:$0xff]  ;;  %v456_v53 = vld [vmem:[%s8017_s1 + $0x50] sm:$0xff] }
  0x39   : > { %5126 = vmatpush1.bf16.msra.mxu0 %v5680_v54 }
  0x3a   : > { %5127 = vmatprep.subr.bf16.mxu0 %v8029_v5 }
  0x3b   : > { %659 = vperm.xlu1 %5460, %v533_v57   ;;  %654 = vperm.xlu0 %5459, %v532_v58   ;;  %v1583_v57 = vld [vmem:[%s8022_s6 + $0x70] sm:$0xff]  ;;  %v458_v58 = vld [vmem:[%s8017_s1 + $0x60] sm:$0xff] }
  0x3d   : > { %5129 = vmatpush1.bf16.msra.mxu0 %v5692_v59 }
  0x3e   : > { %5130 = vmatprep.subr.bf16.mxu0 %v8029_v5 }
  0x3f   : > { %669 = vperm.xlu1 %5460, %v535_v62   ;;  %664 = vperm.xlu0 %5459, %v534_v63   ;;  %v1585_v62 = vld [vmem:[%s8022_s6 + $0x80] sm:$0xff]  ;;  %v460_v63 = vld [vmem:[%s8017_s1 + $0x70] sm:$0xff] }
  0x41   : > { %5132 = vmatpush1.bf16.msra.mxu0 %v5704_v0 }
  0x42   : > { %5133 = vmatprep.subr.bf16.mxu0 %v8029_v5 }
  0x43   : > { %679 = vperm.xlu1 %5460, %v537_v3   ;;  %674 = vperm.xlu0 %5459, %v536_v4   ;;  %v1587_v3 = vld [vmem:[%s8022_s6 + $0x90] sm:$0xff]  ;;  %v462_v4 = vld [vmem:[%s8017_s1 + $0x80] sm:$0xff] }
  0x45   : > { %5135 = vmatpush1.bf16.msra.mxu0 %v5716_v6 }
  0x46   : > { %5136 = vmatprep.subr.bf16.mxu0 %v8029_v5 }
  0x47   : > { %689 = vperm.xlu1 %5460, %v539_v10   ;;  %684 = vperm.xlu0 %5459, %v538_v11   ;;  %v1589_v10 = vld [vmem:[%s8022_s6 + $0xa0] sm:$0xff]  ;;  %v464_v11 = vld [vmem:[%s8017_s1 + $0x90] sm:$0xff] }
  0x49   : > { %5138 = vmatpush1.bf16.msra.mxu0 %v5728_v12 }
  0x4a   : > { %5139 = vmatprep.subr.bf16.mxu0 %v8029_v5 }
  0x4b   : > { %699 = vperm.xlu1 %5460, %v541_v16   ;;  %694 = vperm.xlu0 %5459, %v540_v17   ;;  %v1591_v16 = vld [vmem:[%s8022_s6 + $0xb0] sm:$0xff]  ;;  %v466_v17 = vld [vmem:[%s8017_s1 + $0xa0] sm:$0xff] }
  0x4d   : > { %5141 = vmatpush1.bf16.msra.mxu0 %v5740_v19 }
  0x4e   : > { %5142 = vmatprep.subr.bf16.mxu0 %v8029_v5 }
  0x4f   : > { %1608 = vperm.xlu1 %5460, %v1570_v22   ;;  %1603 = vperm.xlu0 %5459, %v1569_v24   ;;  %v1593_v22 = vld [vmem:[%s8022_s6 + $0xc0] sm:$0xff]  ;;  %v468_v24 = vld [vmem:[%s8017_s1 + $0xb0] sm:$0xff] }
  0x51   : > { %5144 = vmatpush1.bf16.msra.mxu0 %v5752_v25 }
  0x52   : > { %5193 = vmatprep.subr.bf16.mxu0 %v8029_v5 }
  0x53   : > { %1618 = vperm.xlu1 %5460, %v1572_v26   ;;  %1613 = vperm.xlu0 %5459, %v1571_v27   ;;  %v471_v26 = vld [vmem:[%s8017_s1 + $0xc8] sm:$0xff]  ;;  %v1596_v27 = vld [vmem:[%s8022_s6 + $0xd8] sm:$0xff] }
  0x54   : > { %767 = vmatmul.mubr.f32.vlgmr.msra.gmra.mrb[0].mxu0 %v446_v29  ;;  %v1595_v29 = vld [vmem:[%s8022_s6 + $0xd0] sm:$0xff] }
  0x55   : > { %771 = vmatprep.mubr.f32.mxu0 %v449_v30  ;;  %5195 = vmatpush1.bf16.msra.mxu0 %v5571_v9  ;;  %v470_v30 = vld [vmem:[%s8017_s1 + $0xc0] sm:$0xff]  ;;  %v1556_v9 = vld [vmem:[%s8021_s5 + $0x198] sm:$0xff] }
  0x56   : > { %5196 = vmatprep.subr.bf16.mxu0 %v8029_v5 }
  0x57   : > { %1628 = vperm.xlu1 %5460, %v1574_v31   ;;  %1623 = vperm.xlu0 %5459, %v1573_v32   ;;  %v473_v31 = vld [vmem:[%s8017_s1 + $0xd8] sm:$0xff]  ;;  %v1598_v32 = vld [vmem:[%s8022_s6 + $0xe8] sm:$0xff] }
  0x58   : > { %772 = vmatmul.mubr.f32.gmra.mrb[2].mxu0 %v448_v33  ;;  %v1597_v33 = vld [vmem:[%s8022_s6 + $0xe0] sm:$0xff] }
  0x59   : > { %776 = vmatprep.mubr.f32.mxu0 %v451_v35  ;;  %5198 = vmatpush1.bf16.msra.mxu0 %v5581_v13  ;;  %v472_v35 = vld [vmem:[%s8017_s1 + $0xd0] sm:$0xff] }
  0x5a   : > { %5199 = vmatprep.subr.bf16.mxu0 %v8029_v5 }
  0x5b   : > { %1638 = vperm.xlu1 %5460, %v1576_v36   ;;  %1633 = vperm.xlu0 %5459, %v1575_v37   ;;  %v475_v36 = vld [vmem:[%s8017_s1 + $0xe8] sm:$0xff]  ;;  %v1600_v37 = vld [vmem:[%s8022_s6 + $0xf8] sm:$0xff] }
  0x5c   : > { %777 = vmatmul.mubr.f32.gmra.mrb[4].mxu0 %v450_v38  ;;  %v1599_v38 = vld [vmem:[%s8022_s6 + $0xf0] sm:$0xff] }
  0x5d   : > { %781 = vmatprep.mubr.f32.mxu0 %v453_v40  ;;  %5201 = vmatpush1.bf16.msra.mxu0 %v5593_v18  ;;  %v474_v40 = vld [vmem:[%s8017_s1 + $0xe0] sm:$0xff] }
  0x5e   : > { %5202 = vmatprep.subr.bf16.mxu0 %v8029_v5 }
  0x5f   : > { %1648 = vperm.xlu1 %5460, %v1578_v41   ;;  %1643 = vperm.xlu0 %5459, %v1577_v42   ;;  %v477_v41 = vld [vmem:[%s8017_s1 + $0xf8] sm:$0xff]  ;;  %v2083_v42 = vld [vmem:[%s8024_s8 + $0x8] sm:$0xff] }
  0x60   : > { %782 = vmatmul.mubr.f32.gmra.mrb[6].mxu0 %v452_v43  ;;  %v2082_v43 = vld [vmem:[%s8024_s8] sm:$0xff] }
  0x61   : > { %786 = vmatprep.mubr.f32.mxu0 %v455_v45  ;;  %5204 = vmatpush1.bf16.msra.mxu0 %v5605_v23  ;;  %v476_v45 = vld [vmem:[%s8017_s1 + $0xf0] sm:$0xff] }
  0x62   : > { %5205 = vmatprep.subr.bf16.mxu0 %v8029_v5 }
  0x63   : > { %1658 = vperm.xlu1 %5460, %v1580_v46   ;;  %1653 = vperm.xlu0 %5459, %v1579_v47   ;;  %v479_v46 = vld [vmem:[%s8017_s1 + $0x108] sm:$0xff]  ;;  %v2085_v47 = vld [vmem:[%s8024_s8 + $0x18] sm:$0xff] }
  0x64   : > { %787 = vmatmul.mubr.f32.gmra.mrb[8].mxu0 %v454_v48  ;;  %v2084_v48 = vld [vmem:[%s8024_s8 + $0x10] sm:$0xff] }
  0x65   : > { %791 = vmatprep.mubr.f32.mxu0 %v457_v50  ;;  %5207 = vmatpush1.bf16.msra.mxu0 %v5617_v28  ;;  %v478_v50 = vld [vmem:[%s8017_s1 + $0x100] sm:$0xff] }
  0x66   : > { %5208 = vmatprep.subr.bf16.mxu0 %v8029_v5 }
  0x67   : > { %1668 = vperm.xlu1 %5460, %v1582_v51   ;;  %1663 = vperm.xlu0 %5459, %v1581_v52   ;;  %v481_v51 = vld [vmem:[%s8017_s1 + $0x118] sm:$0xff]  ;;  %v1024_v52 = vld [vmem:[%s8020_s4 + $0x8] sm:$0xff] }
  0x68   : > { %792 = vmatmul.mubr.f32.gmra.mrb[10].mxu0 %v456_v53  ;;  %v1023_v53 = vld [vmem:[%s8020_s4] sm:$0xff] }
  0x69   : > { %796 = vmatprep.mubr.f32.mxu0 %v459_v55  ;;  %5210 = vmatpush1.bf16.msra.mxu0 %v5632_v34  ;;  %v1552_v34 = vld [vmem:[%s8021_s5 + $0x178] sm:$0xff] }
  0x6a   : > { %5211 = vmatprep.subr.bf16.mxu0 %v8029_v5 }
  0x6b   : > { %1678 = vperm.xlu1 %5460, %v1584_v56   ;;  %1673 = vperm.xlu0 %5459, %v1583_v57   ;;  %v480_v56 = vld [vmem:[%s8017_s1 + $0x110] sm:$0xff] }
  0x6c   : > { %797 = vmatmul.mubr.f32.gmra.mrb[12].mxu0 %v458_v58  ;;  %v483_v58 = vld [vmem:[%s8017_s1 + $0x128] sm:$0xff] }
  0x6d   : > { %801 = vmatprep.mubr.f32.mxu0 %v461_v60  ;;  %5213 = vmatpush1.bf16.msra.mxu0 %v5644_v39  ;;  %v2087_v60 = vld [vmem:[%s8024_s8 + $0x28] sm:$0xff] }
  0x6e   : > { %5214 = vmatprep.subr.bf16.mxu0 %v8029_v5 }
  0x6f   : > { %1688 = vperm.xlu1 %5460, %v1586_v61   ;;  %1683 = vperm.xlu0 %5459, %v1585_v62   ;;  %v2086_v61 = vld [vmem:[%s8024_s8 + $0x20] sm:$0xff] }
  0x70   : > { %802 = vmatmul.mubr.f32.gmra.mrb[14].mxu0 %v460_v63  ;;  %v482_v62 = vld [vmem:[%s8017_s1 + $0x120] sm:$0xff]  ;;  %v485_v63 = vld [vmem:[%s8017_s1 + $0x138] sm:$0xff] }
  0x71   : > { %806 = vmatprep.mubr.f32.mxu0 %v463_v1  ;;  %5216 = vmatpush1.bf16.msra.mxu0 %v5656_v44 }
  0x72   : > { %5217 = vmatprep.subr.bf16.mxu0 %v8029_v5 }
  0x73   : > { %1698 = vperm.xlu1 %5460, %v1588_v2   ;;  %1693 = vperm.xlu0 %5459, %v1587_v3   ;;  %v1026_v2 = vld [vmem:[%s8020_s4 + $0x18] sm:$0xff]  ;;  %v1025_v3 = vld [vmem:[%s8020_s4 + $0x10] sm:$0xff] }
  0x74   : > { %807 = vmatmul.mubr.f32.gmra.mrb[16].mxu0 %v462_v4 }
  0x75   : > { %811 = vmatprep.mubr.f32.mxu0 %v465_v7  ;;  %5219 = vmatpush1.bf16.msra.mxu0 %v5668_v49  ;;  %v484_v7 = vld [vmem:[%s8017_s1 + $0x130] sm:$0xff]  ;;  %v4577_v49 = vld [vmem:[%s8027_s11 + $0x60] sm:$0xff] }
  0x76   : > { %5220 = vmatprep.subr.bf16.mxu0 %v8029_v5 }
  0x77   : > { %1708 = vperm.xlu1 %5460, %v1590_v8   ;;  %1703 = vperm.xlu0 %5459, %v1589_v10   ;;  %v487_v8 = vld [vmem:[%s8017_s1 + $0x148] sm:$0xff]  ;;  %v2089_v10 = vld [vmem:[%s8024_s8 + $0x38] sm:$0xff] }
  0x78   : > { %812 = vmatmul.mubr.f32.gmra.mrb[18].mxu0 %v464_v11  ;;  %v2088_v11 = vld [vmem:[%s8024_s8 + $0x30] sm:$0xff] }
  0x79   : > { %816 = vmatprep.mubr.f32.mxu0 %v467_v14  ;;  %5222 = vmatpush1.bf16.msra.mxu0 %v5680_v54  ;;  %v4578_v54 = vld [vmem:[%s8027_s11 + $0x68] sm:$0xff] }
  0x7a   : > { %5223 = vmatprep.subr.bf16.mxu0 %v8029_v5 }
  0x7b   : > { %1718 = vperm.xlu1 %5460, %v1592_v15   ;;  %1713 = vperm.xlu0 %5459, %v1591_v16   ;;  %v486_v15 = vld [vmem:[%s8017_s1 + $0x140] sm:$0xff] }
  0x7c   : > { %817 = vmatmul.mubr.f32.gmra.mrb[20].mxu0 %v466_v17  ;;  %v489_v17 = vld [vmem:[%s8017_s1 + $0x158] sm:$0xff] }
  0x7d   : > { %821 = vmatprep.mubr.f32.mxu0 %v469_v20  ;;  %5225 = vmatpush1.bf16.msra.mxu0 %v5692_v59  ;;  %v1028_v20 = vld [vmem:[%s8020_s4 + $0x28] sm:$0xff]  ;;  %v4576_v59 = vld [vmem:[%s8027_s11 + $0x58] sm:$0xff] }
  0x7e   : > { %5226 = vmatprep.subr.bf16.mxu0 %v8029_v5 }
  0x7f   : > { %1728 = vperm.xlu1 %5460, %v1594_v21   ;;  %1723 = vperm.xlu0 %5459, %v1593_v22   ;;  %v1027_v21 = vld [vmem:[%s8020_s4 + $0x20] sm:$0xff]  ;;  %v488_v22 = vld [vmem:[%s8017_s1 + $0x150] sm:$0xff] }
  0x80   : > { %822 = vmatmul.mubr.f32.gmra.mrb[22].mxu0 %v468_v24  ;;  %v491_v24 = vld [vmem:[%s8017_s1 + $0x168] sm:$0xff] }
  0x81   : > { %826 = vmatprep.mubr.f32.mxu0 %v471_v26  ;;  %5228 = vmatpush1.bf16.msra.mxu0 %v5704_v0  ;;  %v4574_v0 = vld [vmem:[%s8027_s11 + $0x48] sm:$0xff] }
  0x82   : > { %5229 = vmatprep.subr.bf16.mxu0 %v8029_v5 }
  0x83   : > { %1738 = vperm.xlu1 %5460, %v1596_v27   ;;  %1733 = vperm.xlu0 %5459, %v1595_v29   ;;  %v2091_v27 = vld [vmem:[%s8024_s8 + $0x48] sm:$0xff]  ;;  %v2090_v29 = vld [vmem:[%s8024_s8 + $0x40] sm:$0xff] }
  0x84   : > { %827 = vmatmul.mubr.f32.gmra.mrb[24].mxu0 %v470_v30 }
  0x85   : > { %831 = vmatprep.mubr.f32.mxu0 %v473_v31  ;;  %5231 = vmatpush1.bf16.msra.mxu0 %v5716_v6  ;;  %v490_v31 = vld [vmem:[%s8017_s1 + $0x160] sm:$0xff]  ;;  %v4571_v6 = vld [vmem:[%s8027_s11 + $0x30] sm:$0xff] }
  0x86   : > { %5232 = vmatprep.subr.bf16.mxu0 %v8029_v5 }
  0x87   : > { %1748 = vperm.xlu1 %5460, %v1598_v32   ;;  %1743 = vperm.xlu0 %5459, %v1597_v33   ;;  %v493_v32 = vld [vmem:[%s8017_s1 + $0x178] sm:$0xff] }
  0x88   : > { %832 = vmatmul.mubr.f32.gmra.mrb[26].mxu0 %v472_v35  ;;  %v1030_v33 = vld [vmem:[%s8020_s4 + $0x38] sm:$0xff]  ;;  %v1029_v35 = vld [vmem:[%s8020_s4 + $0x30] sm:$0xff] }
  0x89   : > { %836 = vmatprep.mubr.f32.mxu0 %v475_v36  ;;  %5234 = vmatpush1.bf16.msra.mxu0 %v5728_v12  ;;  %v4572_v12 = vld [vmem:[%s8027_s11 + $0x38] sm:$0xff] }
  0x8a   : > { %5235 = vmatprep.subr.bf16.mxu0 %v8029_v5 }
  0x8b   : > { %1758 = vperm.xlu1 %5460, %v1600_v37   ;;  %1753 = vperm.xlu0 %5459, %v1599_v38   ;;  %v492_v37 = vld [vmem:[%s8017_s1 + $0x170] sm:$0xff] }
  0x8c   : > { %837 = vmatmul.mubr.f32.gmra.mrb[28].mxu0 %v474_v40  ;;  %v495_v40 = vld [vmem:[%s8017_s1 + $0x188] sm:$0xff] }
  0x8d   : > { %841 = vmatprep.mubr.f32.mxu0 %v477_v41  ;;  %5237 = vmatpush1.bf16.msra.mxu0 %v5740_v19  ;;  %v2093_v41 = vld [vmem:[%s8024_s8 + $0x58] sm:$0xff]  ;;  %v4570_v19 = vld [vmem:[%s8027_s11 + $0x28] sm:$0xff] }
  0x8e   : > { %5238 = vmatprep.subr.bf16.mxu0 %v8029_v5  ;;  %v5998_v55 = vpop.permute.xlu1 %554  ;;  %v6003_v57 = vpop.permute.xlu0 %544  ;;  %v4565_v5 = vld [vmem:[%s8027_s11] sm:$0xff] }
  0x8f   : > { %2121 = vperm.xlu1 %5460, %v2083_v42   ;;  %2116 = vperm.xlu0 %5459, %v2082_v43   ;;  %v2092_v42 = vld [vmem:[%s8024_s8 + $0x50] sm:$0xff]  ;;  %v494_v43 = vld [vmem:[%s8017_s1 + $0x180] sm:$0xff] }
  0x90   : > { %842 = vmatmul.mubr.f32.gmra.mrb[30].mxu0 %v476_v45  ;;  %v497_v45 = vld [vmem:[%s8017_s1 + $0x198] sm:$0xff] }
  0x91   : > { %846 = vmatprep.mubr.f32.mxu0 %v479_v46  ;;  %5240 = vmatpush1.bf16.msra.mxu0 %v5752_v25  ;;  %v4568_v25 = vld [vmem:[%s8027_s11 + $0x18] sm:$0xff] }
  0x92   : > { %v6020_v1 = vpop.permute.xlu1 %559  ;;  %v6028_v4 = vpop.permute.xlu0 %549 }
  0x93   : > { %2131 = vperm.xlu1 %5460, %v2085_v47   ;;  %2126 = vperm.xlu0 %5459, %v2084_v48   ;;  %v1032_v47 = vld [vmem:[%s8020_s4 + $0x48] sm:$0xff]  ;;  %v1031_v48 = vld [vmem:[%s8020_s4 + $0x40] sm:$0xff] }
  0x94   : > { %847 = vmatmul.mubr.f32.gmra.mrb[32].mxu0 %v478_v50 }
  0x95   : > { %851 = vmatprep.mubr.f32.mxu0 %v481_v51  ;;  %v496_v51 = vld [vmem:[%s8017_s1 + $0x190] sm:$0xff] }
  0x96   : > { %v6042_v14 = vpop.permute.xlu1 %569  ;;  %v6047_v16 = vpop.permute.xlu0 %564 }
  0x97   : > { %1062 = vperm.xlu1 %5460, %v1024_v52   ;;  %1057 = vperm.xlu0 %5459, %v1023_v53   ;;  %v499_v52 = vld [vmem:[%s8017_s1 + $0x1a8] sm:$0xff] }
  0x98   : > { %852 = vmatmul.mubr.f32.gmra.mrb[34].mxu0 %v480_v56  ;;  %v2095_v53 = vld [vmem:[%s8024_s8 + $0x68] sm:$0xff]  ;;  %v2094_v56 = vld [vmem:[%s8024_s8 + $0x60] sm:$0xff] }
  0x99   : > { %856 = vmatprep.mubr.f32.mxu0 %v483_v58 }
  0x9a   : > { %v6064_v26 = vpop.permute.xlu1 %579  ;;  %v6072_v30 = vpop.permute.xlu0 %574 }
  0x9b   : > { %2141 = vperm.xlu1 %5460, %v2087_v60   ;;  %2136 = vperm.xlu0 %5459, %v2086_v61   ;;  %v498_v60 = vld [vmem:[%s8017_s1 + $0x1a0] sm:$0xff] }
  0x9c   : > { %857 = vmatmul.mubr.f32.gmra.mrb[36].mxu0 %v482_v62  ;;  %v501_v62 = vld [vmem:[%s8017_s1 + $0x1b8] sm:$0xff] }
  0x9d   : > { %861 = vmatprep.mubr.f32.mxu0 %v485_v63  ;;  %v1034_v63 = vld [vmem:[%s8020_s4 + $0x58] sm:$0xff] }
  0x9e   : > { %v6086_v36 = vpop.permute.xlu1 %589  ;;  %v6091_v38 = vpop.permute.xlu0 %584 }
  0x9f   : > { %1072 = vperm.xlu1 %5460, %v1026_v2   ;;  %1067 = vperm.xlu0 %5459, %v1025_v3   ;;  %v1033_v2 = vld [vmem:[%s8020_s4 + $0x50] sm:$0xff] }
  0xa0   : > { %862 = vmatmul.mubr.f32.gmra.mrb[38].mxu0 %v484_v7  ;;  %v500_v3 = vld [vmem:[%s8017_s1 + $0x1b0] sm:$0xff]  ;;  %v503_v7 = vld [vmem:[%s8017_s1 + $0x1c8] sm:$0xff] }
  0xa1   : > { %866 = vmatprep.mubr.f32.mxu0 %v487_v8 }
  0xa2   : > { %v6108_v46 = vpop.permute.xlu1 %599  ;;  %v6116_v50 = vpop.permute.xlu0 %594 }
  0xa3   : > { %2151 = vperm.xlu1 %5460, %v2089_v10   ;;  %2146 = vperm.xlu0 %5459, %v2088_v11   ;;  %v2097_v10 = vld [vmem:[%s8024_s8 + $0x78] sm:$0xff]  ;;  %v2096_v11 = vld [vmem:[%s8024_s8 + $0x70] sm:$0xff] }
  0xa4   : > { %867 = vmatmul.mubr.f32.gmra.mrb[40].mxu0 %v486_v15 }
  0xa5   : > { %871 = vmatprep.mubr.f32.mxu0 %v489_v17  ;;  %v502_v17 = vld [vmem:[%s8017_s1 + $0x1c0] sm:$0xff] }
  0xa6   : > { %v6130_v58 = vpop.permute.xlu1 %609  ;;  %v6135_v61 = vpop.permute.xlu0 %604 }
  0xa7   : > { %1082 = vperm.xlu1 %5460, %v1028_v20   ;;  %1077 = vperm.xlu0 %5459, %v1027_v21   ;;  %v505_v20 = vld [vmem:[%s8017_s1 + $0x1d8] sm:$0xff]  ;;  %v1036_v21 = vld [vmem:[%s8020_s4 + $0x68] sm:$0xff] }
  0xa8   : > { %872 = vmatmul.mubr.f32.gmra.mrb[42].mxu0 %v488_v22  ;;  %v1035_v22 = vld [vmem:[%s8020_s4 + $0x60] sm:$0xff] }
  0xa9   : > { %876 = vmatprep.mubr.f32.mxu0 %v491_v24 }
  0xaa   : > { %v6152_v8 = vpop.permute.xlu1 %619  ;;  %v6160_v15 = vpop.permute.xlu0 %614 }
  0xab   : > { %2161 = vperm.xlu1 %5460, %v2091_v27   ;;  %2156 = vperm.xlu0 %5459, %v2090_v29   ;;  %v504_v27 = vld [vmem:[%s8017_s1 + $0x1d0] sm:$0xff] }
  0xac   : > { %877 = vmatmul.mubr.f32.gmra.mrb[44].mxu0 %v490_v31  ;;  %v507_v31 = vld [vmem:[%s8017_s1 + $0x1e8] sm:$0xff] }
  0xad   : > { %881 = vmatprep.mubr.f32.mxu0 %v493_v32  ;;  %v2099_v32 = vld [vmem:[%s8024_s8 + $0x88] sm:$0xff] }
  0xae   : > { %v6174_v24 = vpop.permute.xlu1 %629  ;;  %v6179_v29 = vpop.permute.xlu0 %624 }
  0xaf   : > { %1092 = vperm.xlu1 %5460, %v1030_v33   ;;  %1087 = vperm.xlu0 %5459, %v1029_v35   ;;  %v2098_v33 = vld [vmem:[%s8024_s8 + $0x80] sm:$0xff] }
  0xb0   : > { %882 = vmatmul.mubr.f32.gmra.mrb[46].mxu0 %v492_v37  ;;  %v506_v35 = vld [vmem:[%s8017_s1 + $0x1e0] sm:$0xff]  ;;  %v509_v37 = vld [vmem:[%s8017_s1 + $0x1f8] sm:$0xff] }
  0xb1   : > { %886 = vmatprep.mubr.f32.mxu0 %v495_v40 }
  0xb2   : > { %v6196_v40 = vpop.permute.xlu1 %639 }
  0xb3   : > { %2171 = vperm.xlu1 %5460, %v2093_v41   ;;  %2166 = vperm.xlu0 %5459, %v2092_v42   ;;  %v1038_v41 = vld [vmem:[%s8020_s4 + $0x78] sm:$0xff]  ;;  %v1037_v42 = vld [vmem:[%s8020_s4 + $0x70] sm:$0xff] }
  0xb4   : > { %887 = vmatmul.mubr.f32.gmra.mrb[48].mxu0 %v494_v43  ;;  %v6204_v43 = vpop.permute.xlu0 %634 }
  0xb5   : > { %891 = vmatprep.mubr.f32.mxu0 %v497_v45  ;;  %v508_v45 = vld [vmem:[%s8017_s1 + $0x1f0] sm:$0xff] }
  0xb7   : > { %1102 = vperm.xlu1 %5460, %v1032_v47   ;;  %1097 = vperm.xlu0 %5459, %v1031_v48   ;;  %v1506_v47 = vld [vmem:[%s8021_s5 + $0x8] sm:$0xff]  ;;  %v2101_v48 = vld [vmem:[%s8024_s8 + $0x98] sm:$0xff] }
  0xb8   : > { %892 = vmatmul.mubr.f32.gmra.mrb[50].mxu0 %v496_v51  ;;  %v2100_v51 = vld [vmem:[%s8024_s8 + $0x90] sm:$0xff] }
  0xb9   : > { %896 = vmatprep.mubr.f32.mxu0 %v499_v52  ;;  %v6218_v52 = vpop.permute.xlu1 %649 }
  0xbb   : > { %2181 = vperm.xlu1 %5460, %v2095_v53   ;;  %2176 = vperm.xlu0 %5459, %v2094_v56   ;;  %v1505_v53 = vld [vmem:[%s8021_s5] sm:$0xff]  ;;  %v6223_v56 = vpop.permute.xlu0 %644 }
  0xbc   : > { %897 = vmatmul.mubr.f32.gmra.mrb[52].mxu0 %v498_v60  ;;  %v1508_v60 = vld [vmem:[%s8021_s5 + $0x18] sm:$0xff] }
  0xbd   : > { %901 = vmatprep.mubr.f32.mxu0 %v501_v62  ;;  %v1040_v62 = vld [vmem:[%s8020_s4 + $0x88] sm:$0xff] }
  0xbf   : > { %1112 = vperm.xlu1 %5460, %v1034_v63   ;;  %1107 = vperm.xlu0 %5459, %v1033_v2   ;;  %v1039_v63 = vld [vmem:[%s8020_s4 + $0x80] sm:$0xff]  ;;  %v1507_v2 = vld [vmem:[%s8021_s5 + $0x10] sm:$0xff] }
  0xc0   : > { %902 = vmatmul.mubr.f32.gmra.mrb[54].mxu0 %v500_v3  ;;  %v1510_v3 = vld [vmem:[%s8021_s5 + $0x28] sm:$0xff] }
  0xc1   : > { %906 = vmatprep.mubr.f32.mxu0 %v503_v7  ;;  %v6240_v7 = vpop.permute.xlu1 %659 }
  0xc3   : > { %2191 = vperm.xlu1 %5460, %v2097_v10   ;;  %2186 = vperm.xlu0 %5459, %v2096_v11   ;;  %v2103_v10 = vld [vmem:[%s8024_s8 + $0xa8] sm:$0xff]  ;;  %v2102_v11 = vld [vmem:[%s8024_s8 + $0xa0] sm:$0xff] }
  0xc4   : > { %907 = vmatmul.mubr.f32.gmra.mrb[56].mxu0 %v502_v17  ;;  %v6248_v17 = vpop.permute.xlu0 %654 }
  0xc5   : > { %911 = vmatprep.mubr.f32.mxu0 %v505_v20  ;;  %v1509_v20 = vld [vmem:[%s8021_s5 + $0x20] sm:$0xff] }
  0xc7   : > { %1122 = vperm.xlu1 %5460, %v1036_v21   ;;  %1117 = vperm.xlu0 %5459, %v1035_v22   ;;  %v1512_v21 = vld [vmem:[%s8021_s5 + $0x38] sm:$0xff] }
  0xc8   : > { %912 = vmatmul.mubr.f32.gmra.mrb[58].mxu0 %v504_v27  ;;  %v1042_v22 = vld [vmem:[%s8020_s4 + $0x98] sm:$0xff]  ;;  %v1041_v27 = vld [vmem:[%s8020_s4 + $0x90] sm:$0xff] }
  0xc9   : > { %916 = vmatprep.mubr.f32.mxu0 %v507_v31  ;;  %v6262_v31 = vpop.permute.xlu1 %669 }
  0xcb   : > { %2201 = vperm.xlu1 %5460, %v2099_v32   ;;  %2196 = vperm.xlu0 %5459, %v2098_v33   ;;  %v1511_v32 = vld [vmem:[%s8021_s5 + $0x30] sm:$0xff]  ;;  %v6267_v33 = vpop.permute.xlu0 %664 }
  0xcc   : > { %917 = vmatmul.mubr.f32.gmra.mrb[60].mxu0 %v506_v35  ;;  %v1514_v35 = vld [vmem:[%s8021_s5 + $0x48] sm:$0xff] }
  0xcd   : > { %921 = vmatprep.mubr.f32.mxu0 %v509_v37  ;;  %v2105_v37 = vld [vmem:[%s8024_s8 + $0xb8] sm:$0xff] }
  0xcf   : > { %1132 = vperm.xlu1 %5460, %v1038_v41   ;;  %1127 = vperm.xlu0 %5459, %v1037_v42   ;;  %v2104_v41 = vld [vmem:[%s8024_s8 + $0xb0] sm:$0xff]  ;;  %v1513_v42 = vld [vmem:[%s8021_s5 + $0x40] sm:$0xff] }
  0xd0   : > { %922 = vmatmul.mubr.f32.gmra.mrb[62].mxu0 %v508_v45  ;;  %v1516_v45 = vld [vmem:[%s8021_s5 + $0x58] sm:$0xff] }
  0xd1   : > { %1825 = vmatprep.mubr.f32.mxu0 %v1506_v47  ;;  %v6284_v47 = vpop.permute.xlu1 %679 }
  0xd3   : > { %2211 = vperm.xlu1 %5460, %v2101_v48   ;;  %2206 = vperm.xlu0 %5459, %v2100_v51   ;;  %v1044_v48 = vld [vmem:[%s8020_s4 + $0xa8] sm:$0xff]  ;;  %v1043_v51 = vld [vmem:[%s8020_s4 + $0xa0] sm:$0xff] }
  0xd4   : > { %1826 = vmatmul.mubr.f32.vlgmr.msra.gmra.mrb[64].mxu0 %v1505_v53  ;;  %v6292_v53 = vpop.permute.xlu0 %674 }
  0xd5   : > { %1830 = vmatprep.mubr.f32.mxu0 %v1508_v60  ;;  %v1515_v60 = vld [vmem:[%s8021_s5 + $0x50] sm:$0xff] }
  0xd7   : > { %1142 = vperm.xlu1 %5460, %v1040_v62   ;;  %1137 = vperm.xlu0 %5459, %v1039_v63   ;;  %v1518_v62 = vld [vmem:[%s8021_s5 + $0x68] sm:$0xff] }
  0xd8   : > { %1831 = vmatmul.mubr.f32.gmra.mrb[66].mxu0 %v1507_v2  ;;  %v2107_v63 = vld [vmem:[%s8024_s8 + $0xc8] sm:$0xff]  ;;  %v2106_v2 = vld [vmem:[%s8024_s8 + $0xc0] sm:$0xff] }
  0xd9   : > { %1835 = vmatprep.mubr.f32.mxu0 %v1510_v3  ;;  %v6306_v3 = vpop.permute.xlu1 %689 }
  0xdb   : > { %2221 = vperm.xlu1 %5460, %v2103_v10   ;;  %2216 = vperm.xlu0 %5459, %v2102_v11   ;;  %v1517_v10 = vld [vmem:[%s8021_s5 + $0x60] sm:$0xff]  ;;  %v6311_v11 = vpop.permute.xlu0 %684 }
  0xdc   : > { %1836 = vmatmul.mubr.f32.gmra.mrb[68].mxu0 %v1509_v20  ;;  %v1520_v20 = vld [vmem:[%s8021_s5 + $0x78] sm:$0xff] }
  0xdd   : > { %1840 = vmatprep.mubr.f32.mxu0 %v1512_v21  ;;  %v1046_v21 = vld [vmem:[%s8020_s4 + $0xb8] sm:$0xff] }
  0xdf   : > { %1152 = vperm.xlu1 %5460, %v1042_v22   ;;  %1147 = vperm.xlu0 %5459, %v1041_v27   ;;  %v1045_v22 = vld [vmem:[%s8020_s4 + $0xb0] sm:$0xff] }
  0xe0   : > { %1841 = vmatmul.mubr.f32.gmra.mrb[70].mxu0 %v1511_v32  ;;  %v1519_v27 = vld [vmem:[%s8021_s5 + $0x70] sm:$0xff]  ;;  %v1522_v32 = vld [vmem:[%s8021_s5 + $0x88] sm:$0xff] }
  0xe1   : > { %1845 = vmatprep.mubr.f32.mxu0 %v1514_v35  ;;  %v6328_v35 = vpop.permute.xlu1 %699 }
  0xe3   : > { %2231 = vperm.xlu1 %5460, %v2105_v37   ;;  %2226 = vperm.xlu0 %5459, %v2104_v41   ;;  %v2109_v37 = vld [vmem:[%s8024_s8 + $0xd8] sm:$0xff]  ;;  %v2108_v41 = vld [vmem:[%s8024_s8 + $0xd0] sm:$0xff] }
  0xe4   : > { %1846 = vmatmul.mubr.f32.gmra.mrb[72].mxu0 %v1513_v42  ;;  %v6336_v42 = vpop.permute.xlu0 %694 }
  0xe5   : > { %1850 = vmatprep.mubr.f32.mxu0 %v1516_v45  ;;  %v1521_v45 = vld [vmem:[%s8021_s5 + $0x80] sm:$0xff] }
  0xe7   : > { %1162 = vperm.xlu1 %5460, %v1044_v48   ;;  %1157 = vperm.xlu0 %5459, %v1043_v51   ;;  %v1524_v48 = vld [vmem:[%s8021_s5 + $0x98] sm:$0xff]  ;;  %v1048_v51 = vld [vmem:[%s8020_s4 + $0xc8] sm:$0xff] }
  0xe8   : > { %1851 = vmatmul.mubr.f32.gmra.mrb[74].mxu0 %v1515_v60  ;;  %v1047_v60 = vld [vmem:[%s8020_s4 + $0xc0] sm:$0xff] }
  0xe9   : > { %1855 = vmatprep.mubr.f32.mxu0 %v1518_v62  ;;  %v6350_v62 = vpop.permute.xlu1 %1608 }
  0xeb   : > { %2241 = vperm.xlu1 %5460, %v2107_v63   ;;  %2236 = vperm.xlu0 %5459, %v2106_v2   ;;  %v1523_v63 = vld [vmem:[%s8021_s5 + $0x90] sm:$0xff]  ;;  %v6355_v2 = vpop.permute.xlu0 %1603 }
  0xec   : > { %1856 = vmatmul.mubr.f32.gmra.mrb[76].mxu0 %v1517_v10  ;;  %v1526_v10 = vld [vmem:[%s8021_s5 + $0xa8] sm:$0xff] }
  0xed   : > { %1860 = vmatprep.mubr.f32.mxu0 %v1520_v20  ;;  %v2111_v20 = vld [vmem:[%s8024_s8 + $0xe8] sm:$0xff] }
  0xef   : > { %1172 = vperm.xlu1 %5460, %v1046_v21   ;;  %1167 = vperm.xlu0 %5459, %v1045_v22   ;;  %v2110_v21 = vld [vmem:[%s8024_s8 + $0xe0] sm:$0xff] }
  0xf0   : > { %1861 = vmatmul.mubr.f32.gmra.mrb[78].mxu0 %v1519_v27  ;;  %v1525_v22 = vld [vmem:[%s8021_s5 + $0xa0] sm:$0xff]  ;;  %v1528_v27 = vld [vmem:[%s8021_s5 + $0xb8] sm:$0xff] }
  0xf1   : > { %1865 = vmatprep.mubr.f32.mxu0 %v1522_v32  ;;  %v6372_v32 = vpop.permute.xlu1 %1618 }
  0xf3   : > { %2251 = vperm.xlu1 %5460, %v2109_v37   ;;  %2246 = vperm.xlu0 %5459, %v2108_v41   ;;  %v1050_v37 = vld [vmem:[%s8020_s4 + $0xd8] sm:$0xff]  ;;  %v1049_v41 = vld [vmem:[%s8020_s4 + $0xd0] sm:$0xff] }
  0xf4   : > { %1866 = vmatmul.mubr.f32.gmra.mrb[80].mxu0 %v1521_v45  ;;  %v6380_v45 = vpop.permute.xlu0 %1613 }
  0xf5   : > { %1870 = vmatprep.mubr.f32.mxu0 %v1524_v48  ;;  %v1527_v48 = vld [vmem:[%s8021_s5 + $0xb0] sm:$0xff] }
  0xf7   : > { %1182 = vperm.xlu1 %5460, %v1048_v51   ;;  %1177 = vperm.xlu0 %5459, %v1047_v60   ;;  %v1530_v51 = vld [vmem:[%s8021_s5 + $0xc8] sm:$0xff]  ;;  %v2113_v60 = vld [vmem:[%s8024_s8 + $0xf8] sm:$0xff] }
  0xf8   : > { %1871 = vmatmul.mubr.f32.gmra.mrb[82].mxu0 %v1523_v63  ;;  %v2112_v63 = vld [vmem:[%s8024_s8 + $0xf0] sm:$0xff] }
  0xf9   : > { %1875 = vmatprep.mubr.f32.mxu0 %v1526_v10  ;;  %v6394_v10 = vpop.permute.xlu1 %1628 }
  0xfb   : > { %2261 = vperm.xlu1 %5460, %v2111_v20   ;;  %2256 = vperm.xlu0 %5459, %v2110_v21   ;;  %v1529_v20 = vld [vmem:[%s8021_s5 + $0xc0] sm:$0xff]  ;;  %v6399_v21 = vpop.permute.xlu0 %1623 }
  0xfc   : > { %1876 = vmatmul.mubr.f32.gmra.mrb[84].mxu0 %v1525_v22  ;;  %v1532_v22 = vld [vmem:[%s8021_s5 + $0xd8] sm:$0xff] }
  0xfd   : > { %1880 = vmatprep.mubr.f32.mxu0 %v1528_v27  ;;  %v1052_v27 = vld [vmem:[%s8020_s4 + $0xe8] sm:$0xff] }
  0xff   : > { %1192 = vperm.xlu1 %5460, %v1050_v37   ;;  %1187 = vperm.xlu0 %5459, %v1049_v41   ;;  %v1051_v37 = vld [vmem:[%s8020_s4 + $0xe0] sm:$0xff]  ;;  %v1531_v41 = vld [vmem:[%s8021_s5 + $0xd0] sm:$0xff] }
 0x100   : > { %1881 = vmatmul.mubr.f32.gmra.mrb[86].mxu0 %v1527_v48  ;;  %v1534_v48 = vld [vmem:[%s8021_s5 + $0xe8] sm:$0xff] }
 0x101   : > { %1885 = vmatprep.mubr.f32.mxu0 %v1530_v51  ;;  %v6416_v51 = vpop.permute.xlu1 %1638 }
 0x103   : > { %2271 = vperm.xlu1 %5460, %v2113_v60   ;;  %2266 = vperm.xlu0 %5459, %v2112_v63   ;;  %v1054_v60 = vld [vmem:[%s8020_s4 + $0xf8] sm:$0xff]  ;;  %v1053_v63 = vld [vmem:[%s8020_s4 + $0xf0] sm:$0xff] }
 0x104   : > { %1886 = vmatmul.mubr.f32.gmra.mrb[88].mxu0 %v1529_v20  ;;  %v6424_v20 = vpop.permute.xlu0 %1633 }
 0x105   : > { %1890 = vmatprep.mubr.f32.mxu0 %v1532_v22  ;;  %v1533_v22 = vld [vmem:[%s8021_s5 + $0xe0] sm:$0xff] }
 0x107   : > { %1202 = vperm.xlu1 %5460, %v1052_v27   ;;  %1197 = vperm.xlu0 %5459, %v1051_v37   ;;  %v1536_v27 = vld [vmem:[%s8021_s5 + $0xf8] sm:$0xff]  ;;  %v4566_v37 = vld [vmem:[%s8027_s11 + $0x8] sm:$0xff] }
 0x108   : > { %1891 = vmatmul.mubr.f32.gmra.mrb[90].mxu0 %v1531_v41  ;;  %v6438_v41 = vpop.permute.xlu1 %1648 }
 0x109   : > { %1895 = vmatprep.mubr.f32.mxu0 %v1534_v48  ;;  %v1535_v48 = vld [vmem:[%s8021_s5 + $0xf0] sm:$0xff] }
 0x10b   : > { %1212 = vperm.xlu1 %5460, %v1054_v60   ;;  %1207 = vperm.xlu0 %5459, %v1053_v63   ;;  %v6443_v60 = vpop.permute.xlu0 %1643  ;;  %v1538_v63 = vld [vmem:[%s8021_s5 + $0x108] sm:$0xff] }
 0x10c   : > { %1896 = vmatmul.mubr.f32.gmra.mrb[92].mxu0 %v1533_v22  ;;  %v4567_v22 = vld [vmem:[%s8027_s11 + $0x10] sm:$0xff] }
 0x10d   : > { %1900 = vmatprep.mubr.f32.mxu0 %v1536_v27  ;;  %v1537_v27 = vld [vmem:[%s8021_s5 + $0x100] sm:$0xff] }
 0x10f   : > { %4604 = vperm.xlu1 %5460, %v4566_v37   ;;  %4599 = vperm.xlu0 %5459, %v4565_v5   ;;  %v1540_v5 = vld [vmem:[%s8021_s5 + $0x118] sm:$0xff]  ;;  %v6460_v37 = vpop.permute.xlu1 %1658 }
 0x110   : > { %1901 = vmatmul.mubr.f32.gmra.mrb[94].mxu0 %v1535_v48  ;;  %v4569_v48 = vld [vmem:[%s8027_s11 + $0x20] sm:$0xff] }
 0x111   : > { %1905 = vmatprep.mubr.f32.mxu0 %v1538_v63  ;;  %v6468_v63 = vpop.permute.xlu0 %1653 }
 0x113   : > { %4614 = vperm.xlu1 %5460, %v4568_v25   ;;  %4609 = vperm.xlu0 %5459, %v4567_v22   ;;  %v1539_v25 = vld [vmem:[%s8021_s5 + $0x110] sm:$0xff]  ;;  %v1542_v22 = vld [vmem:[%s8021_s5 + $0x128] sm:$0xff] }
 0x114   : > { %1906 = vmatmul.mubr.f32.gmra.mrb[96].mxu0 %v1537_v27  ;;  %v6482_v27 = vpop.permute.xlu1 %1668 }
 0x115   : > { %1910 = vmatprep.mubr.f32.mxu0 %v1540_v5  ;;  %v6487_v5 = vpop.permute.xlu0 %1663 }
 0x117   : > { %4624 = vperm.xlu1 %5460, %v4570_v19   ;;  %4619 = vperm.xlu0 %5459, %v4569_v48   ;;  %v1541_v19 = vld [vmem:[%s8021_s5 + $0x120] sm:$0xff]  ;;  %v1544_v48 = vld [vmem:[%s8021_s5 + $0x138] sm:$0xff] }
 0x118   : > { %1911 = vmatmul.mubr.f32.gmra.mrb[98].mxu0 %v1539_v25  ;;  %v4573_v25 = vld [vmem:[%s8027_s11 + $0x40] sm:$0xff] }
 0x119   : > { %1915 = vmatprep.mubr.f32.mxu0 %v1542_v22  ;;  %v1543_v22 = vld [vmem:[%s8021_s5 + $0x130] sm:$0xff] }
 0x11b   : > { %4634 = vperm.xlu1 %5460, %v4572_v12   ;;  %4629 = vperm.xlu0 %5459, %v4571_v6   ;;  %v1546_v6 = vld [vmem:[%s8021_s5 + $0x148] sm:$0xff]  ;;  %v6504_v12 = vpop.permute.xlu1 %1678 }
 0x11c   : > { %1916 = vmatmul.mubr.f32.gmra.mrb[100].mxu0 %v1541_v19  ;;  %v4575_v19 = vld [vmem:[%s8027_s11 + $0x50] sm:$0xff] }
 0x11d   : > { %1920 = vmatprep.mubr.f32.mxu0 %v1544_v48  ;;  %v6512_v48 = vpop.permute.xlu0 %1673 }
 0x11f   : > { %4644 = vperm.xlu1 %5460, %v4574_v0   ;;  %4639 = vperm.xlu0 %5459, %v4573_v25   ;;  %v1545_v0 = vld [vmem:[%s8021_s5 + $0x140] sm:$0xff]  ;;  %v1548_v25 = vld [vmem:[%s8021_s5 + $0x158] sm:$0xff] }
 0x120   : > { %1921 = vmatmul.mubr.f32.gmra.mrb[102].mxu0 %v1543_v22  ;;  %v6526_v22 = vpop.permute.xlu1 %1688 }
 0x121   : > { %1925 = vmatprep.mubr.f32.mxu0 %v1546_v6  ;;  %v6531_v6 = vpop.permute.xlu0 %1683 }
 0x123   : > { %4654 = vperm.xlu1 %5460, %v4576_v59   ;;  %4649 = vperm.xlu0 %5459, %v4575_v19   ;;  %v1547_v59 = vld [vmem:[%s8021_s5 + $0x150] sm:$0xff]  ;;  %v1550_v19 = vld [vmem:[%s8021_s5 + $0x168] sm:$0xff] }
 0x124   : > { %1926 = vmatmul.mubr.f32.gmra.mrb[104].mxu0 %v1545_v0  ;;  %v4580_v0 = vld [vmem:[%s8027_s11 + $0x78] sm:$0xff]  ;;  %v6549_v28 = vpop.permute.xlu1 %1698 }
 0x125   : > { %1930 = vmatprep.mubr.f32.mxu0 %v1548_v25  ;;  %v4579_v25 = vld [vmem:[%s8027_s11 + $0x70] sm:$0xff] }
 0x127   : > { %4664 = vperm.xlu1 %5460, %v4578_v54   ;;  %4659 = vperm.xlu0 %5459, %v4577_v49   ;;  %v768_v44 = vpop.f32.mrb[0].mxu0  ;;  %v1549_v49 = vld [vmem:[%s8021_s5 + $0x160] sm:$0xff] }
 0x128   : > { %v770_v39 = vpop.f32.mrb[1].mxu0  ;;  %1931 = vmatmul.mubr.f32.gmra.mrb[106].mxu0 %v1547_v59  ;;  %v769_v54 = vadd.f32 %v768_v44, %v6003_v57  ;;  %v4581_v59 = vld [vmem:[%s8027_s11 + $0x80] sm:$0xff] }
 0x129   : > { %1935 = vmatprep.mubr.f32.mxu0 %v1550_v19  ;;  %v4582_v39 = vld [vmem:[%s8027_s11 + $0x88] sm:$0xff]  ;;  %v6557_v19 = vpop.permute.xlu0 %1693 }
 0x12a   : > { %v927_v18 = vmax.f32 %v769_v54, 0.0  ;;  %v6575_v54 = vpop.permute.xlu1 %1708 }
 0x12b   : > { %4674 = vperm.xlu1 %5460, %v4580_v0   ;;  %4669 = vperm.xlu0 %5459, %v4579_v25   ;;  %v773_v23 = vpop.f32.mrb[2].mxu0  ;;  %v960_v0 = vld [vmem:[%s8019_s3 + $0x8] sm:$0xff]  ;;  %v1551_v25 = vld [vmem:[%s8021_s5 + $0x170] sm:$0xff]  ;;  %8063 = vst [vmem:[#allocation21_spill] sm:$0xff] %v6575_v54 }
 0x12c   : > { %v774_v44 = vadd.f32 %v773_v23, %v6028_v4  ;;  %v775_v57 = vpop.f32.mrb[3].mxu0  ;;  %1936 = vmatmul.mubr.f32.gmra.mrb[108].mxu0 %v1549_v49  ;;  %1279 = vmatprep.mubr.f32.mxu1 %v960_v0  ;;  %v1554_v23 = vld [vmem:[%s8021_s5 + $0x188] sm:$0xff]  ;;  %v4584_v49 = vld [vmem:[%s8027_s11 + $0x98] sm:$0xff] }
 0x12d   : > { %1940 = vmatprep.mubr.f32.mxu0 %v1552_v34  ;;  %v4583_v34 = vld [vmem:[%s8027_s11 + $0x90] sm:$0xff] }
 0x12e   : > { %v928_v13 = vmax.f32 %v774_v44, 0.0  ;;  %v6600_v54 = vpop.permute.xlu1 %1718 }
 0x12f   : > { %4684 = vperm.xlu1 %5460, %v4582_v39   ;;  %4679 = vperm.xlu0 %5459, %v4581_v59   ;;  %v778_v4 = vpop.f32.mrb[4].mxu0  ;;  %v1553_v39 = vld [vmem:[%s8021_s5 + $0x180] sm:$0xff]  ;;  %v6580_v59 = vpop.permute.xlu0 %1703  ;;  %8065 = vst [vmem:[#allocation22_spill] sm:$0xff] %v6600_v54 }
 0x130   : > { %v780_v57 = vpop.f32.mrb[5].mxu0  ;;  %1941 = vmatmul.mubr.f32.gmra.mrb[110].mxu0 %v1551_v25  ;;  %v5146_v0 = vpack.c.bf16 %v928_v13, %v927_v18  ;;  %v779_v44 = vadd.f32 %v778_v4, %v5998_v55  ;;  %v4586_v13 = vld [vmem:[%s8027_s11 + $0xa8] sm:$0xff]  ;;  %v4585_v18 = vld [vmem:[%s8027_s11 + $0xa0] sm:$0xff]  ;;  %v8064_v55 = vmov 0.0|0.0   ;;  %v1555_v4 = vld [vmem:[%s8021_s5 + $0x190] sm:$0xff] }
 0x131   : > { %1945 = vmatprep.mubr.f32.mxu0 %v1554_v23 }
 0x132   : > { %5147 = vmatpush1.bf16.msra.mxu1 %v5146_v0  ;;  %v1558_v0 = vld [vmem:[%s8021_s5 + $0x1a8] sm:$0xff] }
 0x133   : > { %4694 = vperm.xlu1 %5460, %v4584_v49   ;;  %4689 = vperm.xlu0 %5459, %v4583_v34   ;;  %v783_v25 = vpop.f32.mrb[6].mxu0  ;;  %v929_v49 = vmax.f32 %v779_v44, 0.0 }
 0x134   : > { %v784_v23 = vadd.f32 %v783_v25, %v6020_v1  ;;  %v785_v57 = vpop.f32.mrb[7].mxu0  ;;  %1946 = vmatmul.mubr.f32.gmra.mrb[112].mxu0 %v1553_v39  ;;  %5148 = vmatprep.subr.bf16.mxu1 %v8064_v55  ;;  %v4588_v39 = vld [vmem:[%s8027_s11 + $0xb8] sm:$0xff]  ;;  %v6608_v25 = vpop.permute.xlu0 %1713 }
 0x135   : > { %1950 = vmatprep.mubr.f32.mxu0 %v1556_v9  ;;  %v4587_v9 = vld [vmem:[%s8027_s11 + $0xb0] sm:$0xff]  ;;  %v1560_v57 = vld [vmem:[%s8021_s5 + $0x1b8] sm:$0xff] }
 0x136   : > { %v930_v34 = vmax.f32 %v784_v23, 0.0 }
 0x137   : > { %4704 = vperm.xlu1 %5460, %v4586_v13   ;;  %4699 = vperm.xlu0 %5459, %v4585_v18   ;;  %v788_v1 = vpop.f32.mrb[8].mxu0  ;;  %v1557_v18 = vld [vmem:[%s8021_s5 + $0x1a0] sm:$0xff] }
 0x138   : > { %v5149_v44 = vpack.c.bf16 %v930_v34, %v929_v49  ;;  %v790_v13 = vpop.f32.mrb[9].mxu0  ;;  %1951 = vmatmul.mubr.f32.gmra.mrb[114].mxu0 %v1555_v4  ;;  %v789_v23 = vadd.f32 %v788_v1, %v6047_v16  ;;  %v4590_v49 = vld [vmem:[%s8027_s11 + $0xc8] sm:$0xff]  ;;  %v4589_v4 = vld [vmem:[%s8027_s11 + $0xc0] sm:$0xff]  ;;  %v6625_v16 = vpop.permute.xlu1 %1728  ;;  %v1559_v1 = vld [vmem:[%s8021_s5 + $0x1b0] sm:$0xff] }
 0x139   : > { %1955 = vmatprep.mubr.f32.mxu0 %v1558_v0  ;;  %8066 = vst [vmem:[#allocation23_spill] sm:$0xff] %v6625_v16  ;;  %v4592_v13 = vld [vmem:[%s8027_s11 + $0xd8] sm:$0xff] }
 0x13a   : > { %5150 = vmatpush1.bf16.msra.mxu1 %v5149_v44 }
 0x13b   : > { %4714 = vperm.xlu1 %5460, %v4588_v39   ;;  %4709 = vperm.xlu0 %5459, %v4587_v9   ;;  %v793_v54 = vpop.f32.mrb[10].mxu0  ;;  %v6630_v39 = vpop.permute.xlu0 %1723  ;;  %v931_v9 = vmax.f32 %v789_v23, 0.0  ;;  %v1561_v23 = vld [vmem:[%s8021_s5 + $0x1c0] sm:$0xff] }
 0x13c   : > { %v794_v34 = vadd.f32 %v793_v54, %v6042_v14  ;;  %v795_v0 = vpop.f32.mrb[11].mxu0  ;;  %1956 = vmatmul.mubr.f32.gmra.mrb[116].mxu0 %v1557_v18  ;;  %5151 = vmatprep.subr.bf16.mxu1 %v8064_v55  ;;  %v1562_v14 = vld [vmem:[%s8021_s5 + $0x1c8] sm:$0xff]  ;;  %v4591_v18 = vld [vmem:[%s8027_s11 + $0xd0] sm:$0xff] }
 0x13d   : > { %1960 = vmatprep.mubr.f32.mxu0 %v1560_v57 }
 0x13e   : > { %v932_v44 = vmax.f32 %v794_v34, 0.0  ;;  %v6648_v34 = vpop.permute.xlu1 %1738 }
 0x13f   : > { %4724 = vperm.xlu1 %5460, %v4590_v49   ;;  %4719 = vperm.xlu0 %5459, %v4589_v4   ;;  %v798_v54 = vpop.f32.mrb[12].mxu0  ;;  %v1564_v4 = vld [vmem:[%s8021_s5 + $0x1d8] sm:$0xff]  ;;  %8067 = vst [vmem:[#allocation24_spill] sm:$0xff] %v6648_v34 }
 0x140   : > { %v5152_v57 = vpack.c.bf16 %v932_v44, %v931_v9  ;;  %v800_v0 = vpop.f32.mrb[13].mxu0  ;;  %1961 = vmatmul.mubr.f32.gmra.mrb[118].mxu0 %v1559_v1  ;;  %v799_v49 = vadd.f32 %v798_v54, %v6072_v30  ;;  %v4594_v1 = vld [vmem:[%s8027_s11 + $0xe8] sm:$0xff]  ;;  %v4593_v9 = vld [vmem:[%s8027_s11 + $0xe0] sm:$0xff]  ;;  %v6656_v44 = vpop.permute.xlu0 %1733  ;;  %v1563_v54 = vld [vmem:[%s8021_s5 + $0x1d0] sm:$0xff] }
 0x141   : > { %1965 = vmatprep.mubr.f32.mxu0 %v1562_v14 }
 0x142   : > { %5153 = vmatpush1.bf16.msra.mxu1 %v5152_v57  ;;  %v1566_v57 = vld [vmem:[%s8021_s5 + $0x1e8] sm:$0xff] }
 0x143   : > { %4734 = vperm.xlu1 %5460, %v4592_v13   ;;  %4729 = vperm.xlu0 %5459, %v4591_v18   ;;  %v803_v16 = vpop.f32.mrb[14].mxu0  ;;  %v933_v13 = vmax.f32 %v799_v49, 0.0  ;;  %v1565_v49 = vld [vmem:[%s8021_s5 + $0x1e0] sm:$0xff] }
 0x144   : > { %v804_v30 = vadd.f32 %v803_v16, %v6064_v26  ;;  %v805_v14 = vpop.f32.mrb[15].mxu0  ;;  %1966 = vmatmul.mubr.f32.gmra.mrb[120].mxu0 %v1561_v23  ;;  %5154 = vmatprep.subr.bf16.mxu1 %v8064_v55  ;;  %v4596_v26 = vld [vmem:[%s8027_s11 + $0xf8] sm:$0xff]  ;;  %v4595_v16 = vld [vmem:[%s8027_s11 + $0xf0] sm:$0xff] }
 0x145   : > { %1970 = vmatprep.mubr.f32.mxu0 %v1564_v4  ;;  %v1568_v14 = vld [vmem:[%s8021_s5 + $0x1f8] sm:$0xff] }
 0x146   : > { %v934_v18 = vmax.f32 %v804_v30, 0.0 }
 0x147   : > { %4744 = vperm.xlu1 %5460, %v4594_v1   ;;  %4739 = vperm.xlu0 %5459, %v4593_v9   ;;  %v808_v0 = vpop.f32.mrb[16].mxu0  ;;  %v6675_v1 = vpop.permute.xlu1 %1748 }
 0x148   : > { %v5155_v23 = vpack.c.bf16 %v934_v18, %v933_v13  ;;  %v810_v4 = vpop.f32.mrb[17].mxu0  ;;  %1971 = vmatmul.mubr.f32.gmra.mrb[122].mxu0 %v1563_v54  ;;  %8068 = vst [vmem:[#allocation25_spill] sm:$0xff] %v6675_v1  ;;  %v6677_v9 = vpop.permute.xlu0 %1743  ;;  %v809_v30 = vadd.f32 %v808_v0, %v6091_v38 }
 0x149   : > { %1975 = vmatprep.mubr.f32.mxu0 %v1566_v57  ;;  %8069 = vst [vmem:[#allocation26_spill] sm:$0xff] %v6677_v9  ;;  %v1567_v57 = vld [vmem:[%s8021_s5 + $0x1f0] sm:$0xff] }
 0x14a   : > { %5156 = vmatpush1.bf16.msra.mxu1 %v5155_v23  ;;  %v935_v38 = vmax.f32 %v809_v30, 0.0 }
 0x14b   : > { %4754 = vperm.xlu1 %5460, %v4596_v26   ;;  %4749 = vperm.xlu0 %5459, %v4595_v16   ;;  %v813_v13 = vpop.f32.mrb[18].mxu0 }
 0x14c   : > { %v814_v54 = vadd.f32 %v813_v13, %v6086_v36  ;;  %v815_v18 = vpop.f32.mrb[19].mxu0  ;;  %1976 = vmatmul.mubr.f32.gmra.mrb[124].mxu0 %v1565_v49  ;;  %5157 = vmatprep.subr.bf16.mxu1 %v8064_v55 }
 0x14d   : > { %1980 = vmatprep.mubr.f32.mxu0 %v1568_v14 }
 0x14e   : > { %v936_v0 = vmax.f32 %v814_v54, 0.0 }
 0x14f   : > { %v818_v26 = vpop.f32.mrb[20].mxu0 }
 0x150   : > { %v5158_v16 = vpack.c.bf16 %v936_v0, %v935_v38  ;;  %v820_v4 = vpop.f32.mrb[21].mxu0  ;;  %1981 = vmatmul.mubr.f32.gmra.mrb[126].mxu0 %v1567_v57  ;;  %v819_v23 = vadd.f32 %v818_v26, %v6116_v50 }
 0x152   : > { %5159 = vmatpush1.bf16.msra.mxu1 %v5158_v16  ;;  %v937_v14 = vmax.f32 %v819_v23, 0.0 }
 0x153   : > { %v823_v1 = vpop.f32.mrb[22].mxu0  ;;  %5160 = vmatprep.subr.bf16.mxu1 %v8064_v55 }
 0x154   : > { %v824_v36 = vadd.f32 %v823_v1, %v6108_v46  ;;  %v825_v49 = vpop.f32.mrb[23].mxu0 }
 0x156   : > { %v938_v13 = vmax.f32 %v824_v36, 0.0 }
 0x157   : > { %v828_v18 = vpop.f32.mrb[24].mxu0 }
 0x158   : > { %v5161_v9 = vpack.c.bf16 %v938_v13, %v937_v14  ;;  %v830_v34 = vpop.f32.mrb[25].mxu0  ;;  %v829_v30 = vadd.f32 %v828_v18, %v6135_v61 }
 0x15a   : > { %5162 = vmatpush1.bf16.msra.mxu1 %v5161_v9  ;;  %v939_v38 = vmax.f32 %v829_v30, 0.0 }
 0x15b   : > { %v833_v54 = vpop.f32.mrb[26].mxu0  ;;  %5163 = vmatprep.subr.bf16.mxu1 %v8064_v55 }
 0x15c   : > { %v834_v50 = vadd.f32 %v833_v54, %v6130_v58  ;;  %v835_v57 = vpop.f32.mrb[27].mxu0 }
 0x15e   : > { %v940_v0 = vmax.f32 %v834_v50, 0.0 }
 0x15f   : > { %v838_v26 = vpop.f32.mrb[28].mxu0 }
 0x160   : > { %v5164_v16 = vpack.c.bf16 %v940_v0, %v939_v38  ;;  %v840_v46 = vpop.f32.mrb[29].mxu0  ;;  %v839_v1 = vadd.f32 %v838_v26, %v6160_v15 }
 0x162   : > { %5165 = vmatpush1.bf16.msra.mxu1 %v5164_v16  ;;  %v941_v9 = vmax.f32 %v839_v1, 0.0 }
 0x163   : > { %v843_v4 = vpop.f32.mrb[30].mxu0  ;;  %5166 = vmatprep.subr.bf16.mxu1 %v8064_v55 }
 0x164   : > { %v844_v61 = vadd.f32 %v843_v4, %v6152_v8  ;;  %v845_v34 = vpop.f32.mrb[31].mxu0 }
 0x166   : > { %v942_v23 = vmax.f32 %v844_v61, 0.0 }
 0x167   : > { %v848_v36 = vpop.f32.mrb[32].mxu0 }
 0x168   : > { %v5167_v49 = vpack.c.bf16 %v942_v23, %v941_v9  ;;  %v850_v58 = vpop.f32.mrb[33].mxu0  ;;  %v849_v14 = vadd.f32 %v848_v36, %v6179_v29 }
 0x16a   : > { %5168 = vmatpush1.bf16.msra.mxu1 %v5167_v49  ;;  %v943_v30 = vmax.f32 %v849_v14, 0.0 }
 0x16b   : > { %v853_v13 = vpop.f32.mrb[34].mxu0  ;;  %5169 = vmatprep.subr.bf16.mxu1 %v8064_v55 }
 0x16c   : > { %v854_v15 = vadd.f32 %v853_v13, %v6174_v24  ;;  %v855_v18 = vpop.f32.mrb[35].mxu0 }
 0x16e   : > { %v944_v54 = vmax.f32 %v854_v15, 0.0 }
 0x16f   : > { %v858_v50 = vpop.f32.mrb[36].mxu0 }
 0x170   : > { %v5170_v57 = vpack.c.bf16 %v944_v54, %v943_v30  ;;  %v860_v8 = vpop.f32.mrb[37].mxu0  ;;  %v859_v38 = vadd.f32 %v858_v50, %v6204_v43 }
 0x172   : > { %5171 = vmatpush1.bf16.msra.mxu1 %v5170_v57  ;;  %v945_v16 = vmax.f32 %v859_v38, 0.0 }
 0x173   : > { %v863_v0 = vpop.f32.mrb[38].mxu0  ;;  %5172 = vmatprep.subr.bf16.mxu1 %v8064_v55 }
 0x174   : > { %v864_v29 = vadd.f32 %v863_v0, %v6196_v40  ;;  %v865_v26 = vpop.f32.mrb[39].mxu0 }
 0x176   : > { %v946_v46 = vmax.f32 %v864_v29, 0.0 }
 0x177   : > { %v868_v1 = vpop.f32.mrb[40].mxu0 }
 0x178   : > { %v5173_v4 = vpack.c.bf16 %v946_v46, %v945_v16  ;;  %v870_v24 = vpop.f32.mrb[41].mxu0  ;;  %v869_v61 = vadd.f32 %v868_v1, %v6223_v56 }
 0x17a   : > { %5174 = vmatpush1.bf16.msra.mxu1 %v5173_v4  ;;  %v947_v23 = vmax.f32 %v869_v61, 0.0 }
 0x17b   : > { %v873_v34 = vpop.f32.mrb[42].mxu0  ;;  %5175 = vmatprep.subr.bf16.mxu1 %v8064_v55 }
 0x17c   : > { %v874_v43 = vadd.f32 %v873_v34, %v6218_v52  ;;  %v875_v9 = vpop.f32.mrb[43].mxu0 }
 0x17e   : > { %v948_v36 = vmax.f32 %v874_v43, 0.0 }
 0x17f   : > { %v878_v49 = vpop.f32.mrb[44].mxu0 }
 0x180   : > { %v5176_v58 = vpack.c.bf16 %v948_v36, %v947_v23  ;;  %v880_v40 = vpop.f32.mrb[45].mxu0  ;;  %v879_v14 = vadd.f32 %v878_v49, %v6248_v17 }
 0x182   : > { %5177 = vmatpush1.bf16.msra.mxu1 %v5176_v58  ;;  %v949_v18 = vmax.f32 %v879_v14, 0.0 }
 0x183   : > { %v883_v13 = vpop.f32.mrb[46].mxu0  ;;  %5178 = vmatprep.subr.bf16.mxu1 %v8064_v55 }
 0x184   : > { %v884_v56 = vadd.f32 %v883_v13, %v6240_v7  ;;  %v885_v15 = vpop.f32.mrb[47].mxu0 }
 0x186   : > { %v950_v30 = vmax.f32 %v884_v56, 0.0 }
 0x187   : > { %v888_v54 = vpop.f32.mrb[48].mxu0 }
 0x188   : > { %v5179_v50 = vpack.c.bf16 %v950_v30, %v949_v18  ;;  %v890_v52 = vpop.f32.mrb[49].mxu0  ;;  %v889_v57 = vadd.f32 %v888_v54, %v6267_v33 }
 0x18a   : > { %5180 = vmatpush1.bf16.msra.mxu1 %v5179_v50  ;;  %v951_v0 = vmax.f32 %v889_v57, 0.0  ;;  %v959_v57 = vld [vmem:[%s8019_s3] sm:$0xff] }
 0x18b   : > { %v893_v8 = vpop.f32.mrb[50].mxu0  ;;  %5181 = vmatprep.subr.bf16.mxu1 %v8064_v55 }
 0x18c   : > { %v894_v17 = vadd.f32 %v893_v8, %v6262_v31  ;;  %v895_v38 = vpop.f32.mrb[51].mxu0  ;;  %v962_v8 = vld [vmem:[%s8019_s3 + $0x18] sm:$0xff] }
 0x18e   : > { %v952_v29 = vmax.f32 %v894_v17, 0.0 }
 0x18f   : > { %v898_v26 = vpop.f32.mrb[52].mxu0 }
 0x190   : > { %v5182_v16 = vpack.c.bf16 %v952_v29, %v951_v0  ;;  %v900_v7 = vpop.f32.mrb[53].mxu0  ;;  %v899_v46 = vadd.f32 %v898_v26, %v6292_v53  ;;  %v964_v26 = vld [vmem:[%s8019_s3 + $0x28] sm:$0xff] }
 0x192   : > { %5183 = vmatpush1.bf16.msra.mxu1 %v5182_v16  ;;  %v953_v24 = vmax.f32 %v899_v46, 0.0 }
 0x193   : > { %v903_v1 = vpop.f32.mrb[54].mxu0  ;;  %5184 = vmatprep.subr.bf16.mxu1 %v8064_v55 }
 0x194   : > { %v904_v33 = vadd.f32 %v903_v1, %v6284_v47  ;;  %v905_v4 = vpop.f32.mrb[55].mxu0 }
 0x196   : > { %v954_v61 = vmax.f32 %v904_v33, 0.0  ;;  %v966_v33 = vld [vmem:[%s8019_s3 + $0x38] sm:$0xff] }
 0x197   : > { %v908_v34 = vpop.f32.mrb[56].mxu0 }
 0x198   : > { %v5185_v43 = vpack.c.bf16 %v954_v61, %v953_v24  ;;  %v910_v31 = vpop.f32.mrb[57].mxu0  ;;  %v909_v9 = vadd.f32 %v908_v34, %v6311_v11 }
 0x199   : > { %v968_v31 = vld [vmem:[%s8019_s3 + $0x48] sm:$0xff] }
 0x19a   : > { %5186 = vmatpush1.bf16.msra.mxu1 %v5185_v43  ;;  %v955_v49 = vmax.f32 %v909_v9, 0.0 }
 0x19b   : > { %v913_v23 = vpop.f32.mrb[58].mxu0  ;;  %5187 = vmatprep.subr.bf16.mxu1 %v8064_v55 }
 0x19c   : > { %v914_v53 = vadd.f32 %v913_v23, %v6306_v3  ;;  %v915_v36 = vpop.f32.mrb[59].mxu0 }
 0x19e   : > { %v956_v58 = vmax.f32 %v914_v53, 0.0 }
 0x19f   : > { %v918_v40 = vpop.f32.mrb[60].mxu0 }
 0x1a0   : > { %v5188_v14 = vpack.c.bf16 %v956_v58, %v955_v49  ;;  %v920_v47 = vpop.f32.mrb[61].mxu0  ;;  %v919_v13 = vadd.f32 %v918_v40, %v6336_v42  ;;  %v970_v49 = vld [vmem:[%s8019_s3 + $0x58] sm:$0xff] }
 0x1a2   : > { %5189 = vmatpush1.bf16.msra.mxu1 %v5188_v14  ;;  %v957_v18 = vmax.f32 %v919_v13, 0.0 }
 0x1a3   : > { %v923_v56 = vpop.f32.mrb[62].mxu0  ;;  %5190 = vmatprep.subr.bf16.mxu1 %v8064_v55 }
 0x1a4   : > { %v924_v11 = vadd.f32 %v923_v56, %v6328_v35  ;;  %v925_v15 = vpop.f32.mrb[63].mxu0  ;;  %v972_v56 = vld [vmem:[%s8019_s3 + $0x68] sm:$0xff] }
 0x1a6   : > { %v958_v30 = vmax.f32 %v924_v11, 0.0 }
 0x1a7   : > { %v1827_v54 = vpop.f32.mrb[64].mxu0 }
 0x1a8   : > { %v5191_v50 = vpack.c.bf16 %v958_v30, %v957_v18  ;;  %v1829_v3 = vpop.f32.mrb[65].mxu0  ;;  %v1828_v52 = vadd.f32 %v1827_v54, %v6355_v2  ;;  %v961_v2 = vld [vmem:[%s8019_s3 + $0x10] sm:$0xff]  ;;  %v974_v54 = vld [vmem:[%s8019_s3 + $0x78] sm:$0xff] }
 0x1aa   : > { %5192 = vmatpush1.bf16.msra.mxu1 %v5191_v50  ;;  %v1986_v38 = vmax.f32 %v1828_v52, 0.0 }
 0x1ab   : > { %v1832_v42 = vpop.f32.mrb[66].mxu0  ;;  %5241 = vmatprep.subr.bf16.mxu1 %v8064_v55 }
 0x1ac   : > { %v1833_v35 = vadd.f32 %v1832_v42, %v6350_v62  ;;  %v1834_v17 = vpop.f32.mrb[67].mxu0  ;;  %v963_v62 = vld [vmem:[%s8019_s3 + $0x20] sm:$0xff] }
 0x1ad   : > { %1280 = vmatmul.mubr.f32.vlgmr.msra.gmra.mrb[0].mxu1 %v959_v57 }
 0x1ae   : > { %v1987_v0 = vmax.f32 %v1833_v35, 0.0  ;;  %1284 = vmatprep.mubr.f32.mxu1 %v962_v8  ;;  %v976_v8 = vld [vmem:[%s8019_s3 + $0x88] sm:$0xff] }
 0x1af   : > { %v1837_v29 = vpop.f32.mrb[68].mxu0 }
 0x1b0   : > { %v5242_v16 = vpack.c.bf16 %v1987_v0, %v1986_v38  ;;  %v1839_v7 = vpop.f32.mrb[69].mxu0  ;;  %v1838_v46 = vadd.f32 %v1837_v29, %v6380_v45  ;;  %v965_v45 = vld [vmem:[%s8019_s3 + $0x30] sm:$0xff] }
 0x1b1   : > { %1285 = vmatmul.mubr.f32.gmra.mrb[2].mxu1 %v961_v2  ;;  %v978_v2 = vld [vmem:[%s8019_s3 + $0x98] sm:$0xff] }
 0x1b2   : > { %5243 = vmatpush1.bf16.msra.mxu1 %v5242_v16  ;;  %1289 = vmatprep.mubr.f32.mxu1 %v964_v26  ;;  %v1988_v61 = vmax.f32 %v1838_v46, 0.0 }
 0x1b3   : > { %v1842_v1 = vpop.f32.mrb[70].mxu0  ;;  %5244 = vmatprep.subr.bf16.mxu1 %v8064_v55 }
 0x1b4   : > { %v1843_v4 = vadd.f32 %v1842_v1, %v6372_v32  ;;  %v1844_v24 = vpop.f32.mrb[71].mxu0  ;;  %v967_v32 = vld [vmem:[%s8019_s3 + $0x40] sm:$0xff] }
 0x1b5   : > { %1290 = vmatmul.mubr.f32.gmra.mrb[4].mxu1 %v963_v62  ;;  %v980_v62 = vld [vmem:[%s8019_s3 + $0xa8] sm:$0xff] }
 0x1b6   : > { %v1989_v34 = vmax.f32 %v1843_v4, 0.0  ;;  %1294 = vmatprep.mubr.f32.mxu1 %v966_v33 }
 0x1b7   : > { %v1847_v43 = vpop.f32.mrb[72].mxu0 }
 0x1b8   : > { %v5245_v9 = vpack.c.bf16 %v1989_v34, %v1988_v61  ;;  %v1849_v23 = vpop.f32.mrb[73].mxu0  ;;  %v1848_v53 = vadd.f32 %v1847_v43, %v6399_v21  ;;  %v969_v21 = vld [vmem:[%s8019_s3 + $0x50] sm:$0xff]  ;;  %v982_v61 = vld [vmem:[%s8019_s3 + $0xb8] sm:$0xff] }
 0x1b9   : > { %1295 = vmatmul.mubr.f32.gmra.mrb[6].mxu1 %v965_v45  ;;  %v984_v23 = vld [vmem:[%s8019_s3 + $0xc8] sm:$0xff] }
 0x1ba   : > { %5246 = vmatpush1.bf16.msra.mxu1 %v5245_v9  ;;  %1299 = vmatprep.mubr.f32.mxu1 %v968_v31  ;;  %v1990_v14 = vmax.f32 %v1848_v53, 0.0 }
 0x1bb   : > { %v1852_v36 = vpop.f32.mrb[74].mxu0  ;;  %5247 = vmatprep.subr.bf16.mxu1 %v8064_v55 }
 0x1bc   : > { %v1853_v58 = vadd.f32 %v1852_v36, %v6394_v10  ;;  %v1854_v40 = vpop.f32.mrb[75].mxu0  ;;  %v971_v10 = vld [vmem:[%s8019_s3 + $0x60] sm:$0xff] }
 0x1bd   : > { %1300 = vmatmul.mubr.f32.gmra.mrb[8].mxu1 %v967_v32 }
 0x1be   : > { %v1991_v47 = vmax.f32 %v1853_v58, 0.0  ;;  %1304 = vmatprep.mubr.f32.mxu1 %v970_v49  ;;  %v986_v58 = vld [vmem:[%s8019_s3 + $0xd8] sm:$0xff] }
 0x1bf   : > { %v1857_v13 = vpop.f32.mrb[76].mxu0 }
 0x1c0   : > { %v5248_v11 = vpack.c.bf16 %v1991_v47, %v1990_v14  ;;  %v1859_v15 = vpop.f32.mrb[77].mxu0  ;;  %v1858_v18 = vadd.f32 %v1857_v13, %v6424_v20  ;;  %v973_v20 = vld [vmem:[%s8019_s3 + $0x70] sm:$0xff] }
 0x1c1   : > { %1305 = vmatmul.mubr.f32.gmra.mrb[10].mxu1 %v969_v21 }
 0x1c2   : > { %5249 = vmatpush1.bf16.msra.mxu1 %v5248_v11  ;;  %1309 = vmatprep.mubr.f32.mxu1 %v972_v56  ;;  %v1992_v52 = vmax.f32 %v1858_v18, 0.0  ;;  %v988_v56 = vld [vmem:[%s8019_s3 + $0xe8] sm:$0xff] }
 0x1c3   : > { %v1862_v30 = vpop.f32.mrb[78].mxu0  ;;  %5250 = vmatprep.subr.bf16.mxu1 %v8064_v55 }
 0x1c4   : > { %v1863_v50 = vadd.f32 %v1862_v30, %v6416_v51  ;;  %v1864_v3 = vpop.f32.mrb[79].mxu0  ;;  %v975_v51 = vld [vmem:[%s8019_s3 + $0x80] sm:$0xff]  ;;  %v990_v30 = vld [vmem:[%s8019_s3 + $0xf8] sm:$0xff] }
 0x1c5   : > { %1310 = vmatmul.mubr.f32.gmra.mrb[12].mxu1 %v971_v10 }
 0x1c6   : > { %v1993_v57 = vmax.f32 %v1863_v50, 0.0  ;;  %1314 = vmatprep.mubr.f32.mxu1 %v974_v54 }
 0x1c7   : > { %v1867_v42 = vpop.f32.mrb[80].mxu0 }
 0x1c8   : > { %v5251_v35 = vpack.c.bf16 %v1993_v57, %v1992_v52  ;;  %v1869_v17 = vpop.f32.mrb[81].mxu0  ;;  %v1868_v38 = vadd.f32 %v1867_v42, %v6443_v60  ;;  %v977_v60 = vld [vmem:[%s8019_s3 + $0x90] sm:$0xff] }
 0x1c9   : > { %1315 = vmatmul.mubr.f32.gmra.mrb[14].mxu1 %v973_v20  ;;  %v992_v20 = vld [vmem:[%s8019_s3 + $0x108] sm:$0xff] }
 0x1ca   : > { %5252 = vmatpush1.bf16.msra.mxu1 %v5251_v35  ;;  %1319 = vmatprep.mubr.f32.mxu1 %v976_v8  ;;  %v1994_v16 = vmax.f32 %v1868_v38, 0.0  ;;  %v994_v38 = vld [vmem:[%s8019_s3 + $0x118] sm:$0xff] }
 0x1cb   : > { %v1872_v0 = vpop.f32.mrb[82].mxu0  ;;  %5253 = vmatprep.subr.bf16.mxu1 %v8064_v55 }
 0x1cc   : > { %v1873_v29 = vadd.f32 %v1872_v0, %v6438_v41  ;;  %v1874_v26 = vpop.f32.mrb[83].mxu0  ;;  %v979_v41 = vld [vmem:[%s8019_s3 + $0xa0] sm:$0xff] }
 0x1cd   : > { %1320 = vmatmul.mubr.f32.gmra.mrb[16].mxu1 %v975_v51 }
 0x1ce   : > { %v1995_v7 = vmax.f32 %v1873_v29, 0.0  ;;  %1324 = vmatprep.mubr.f32.mxu1 %v978_v2 }
 0x1cf   : > { %v1877_v46 = vpop.f32.mrb[84].mxu0 }
 0x1d0   : > { %v5254_v1 = vpack.c.bf16 %v1995_v7, %v1994_v16  ;;  %v1879_v33 = vpop.f32.mrb[85].mxu0  ;;  %v1878_v4 = vadd.f32 %v1877_v46, %v6468_v63  ;;  %v981_v63 = vld [vmem:[%s8019_s3 + $0xb0] sm:$0xff]  ;;  %v996_v16 = vld [vmem:[%s8019_s3 + $0x128] sm:$0xff] }
 0x1d1   : > { %1325 = vmatmul.mubr.f32.gmra.mrb[18].mxu1 %v977_v60 }
 0x1d2   : > { %5255 = vmatpush1.bf16.msra.mxu1 %v5254_v1  ;;  %1329 = vmatprep.mubr.f32.mxu1 %v980_v62  ;;  %v1996_v43 = vmax.f32 %v1878_v4, 0.0  ;;  %v998_v1 = vld [vmem:[%s8019_s3 + $0x138] sm:$0xff] }
 0x1d3   : > { %v1882_v24 = vpop.f32.mrb[86].mxu0  ;;  %5256 = vmatprep.subr.bf16.mxu1 %v8064_v55 }
 0x1d4   : > { %v1883_v34 = vadd.f32 %v1882_v24, %v6460_v37  ;;  %v1884_v45 = vpop.f32.mrb[87].mxu0  ;;  %v983_v37 = vld [vmem:[%s8019_s3 + $0xc0] sm:$0xff] }
 0x1d5   : > { %1330 = vmatmul.mubr.f32.gmra.mrb[20].mxu1 %v979_v41 }
 0x1d6   : > { %v1997_v31 = vmax.f32 %v1883_v34, 0.0  ;;  %1334 = vmatprep.mubr.f32.mxu1 %v982_v61  ;;  %v1000_v34 = vld [vmem:[%s8019_s3 + $0x148] sm:$0xff] }
 0x1d7   : > { %v1887_v9 = vpop.f32.mrb[88].mxu0 }
 0x1d8   : > { %v5257_v53 = vpack.c.bf16 %v1997_v31, %v1996_v43  ;;  %v1889_v32 = vpop.f32.mrb[89].mxu0  ;;  %v1888_v36 = vadd.f32 %v1887_v9, %v6487_v5  ;;  %v985_v5 = vld [vmem:[%s8019_s3 + $0xd0] sm:$0xff]  ;;  %v1002_v9 = vld [vmem:[%s8019_s3 + $0x158] sm:$0xff] }
 0x1d9   : > { %1335 = vmatmul.mubr.f32.gmra.mrb[22].mxu1 %v981_v63 }
 0x1da   : > { %5258 = vmatpush1.bf16.msra.mxu1 %v5257_v53  ;;  %1339 = vmatprep.mubr.f32.mxu1 %v984_v23  ;;  %v1998_v47 = vmax.f32 %v1888_v36, 0.0  ;;  %v8070_v23 = vld [vmem:[#allocation21_spill] sm:$0xff] }
 0x1db   : > { %v1892_v49 = vpop.f32.mrb[90].mxu0  ;;  %5259 = vmatprep.subr.bf16.mxu1 %v8064_v55 }
 0x1dc   : > { %v1893_v40 = vadd.f32 %v1892_v49, %v6482_v27  ;;  %v1894_v14 = vpop.f32.mrb[91].mxu0  ;;  %v987_v27 = vld [vmem:[%s8019_s3 + $0xe0] sm:$0xff] }
 0x1dd   : > { %1340 = vmatmul.mubr.f32.gmra.mrb[24].mxu1 %v983_v37 }
 0x1de   : > { %v1999_v21 = vmax.f32 %v1893_v40, 0.0  ;;  %1344 = vmatprep.mubr.f32.mxu1 %v986_v58  ;;  %v1004_v58 = vld [vmem:[%s8019_s3 + $0x168] sm:$0xff] }
 0x1df   : > { %v1897_v13 = vpop.f32.mrb[92].mxu0 }
 0x1e0   : > { %v5260_v11 = vpack.c.bf16 %v1999_v21, %v1998_v47  ;;  %v1899_v15 = vpop.f32.mrb[93].mxu0  ;;  %v1898_v18 = vadd.f32 %v1897_v13, %v6512_v48  ;;  %v989_v48 = vld [vmem:[%s8019_s3 + $0xf0] sm:$0xff]  ;;  %v1003_v21 = vld [vmem:[%s8019_s3 + $0x160] sm:$0xff]  ;;  %v1006_v13 = vld [vmem:[%s8019_s3 + $0x178] sm:$0xff] }
 0x1e1   : > { %1345 = vmatmul.mubr.f32.gmra.mrb[26].mxu1 %v985_v5 }
 0x1e2   : > { %5261 = vmatpush1.bf16.msra.mxu1 %v5260_v11  ;;  %1349 = vmatprep.mubr.f32.mxu1 %v988_v56  ;;  %v2000_v3 = vmax.f32 %v1898_v18, 0.0  ;;  %v8071_v56 = vld [vmem:[#allocation22_spill] sm:$0xff] }
 0x1e3   : > { %v1902_v10 = vpop.f32.mrb[94].mxu0  ;;  %5262 = vmatprep.subr.bf16.mxu1 %v8064_v55 }
 0x1e4   : > { %v1903_v54 = vadd.f32 %v1902_v10, %v6504_v12  ;;  %v1904_v50 = vpop.f32.mrb[95].mxu0  ;;  %v991_v12 = vld [vmem:[%s8019_s3 + $0x100] sm:$0xff] }
 0x1e5   : > { %1350 = vmatmul.mubr.f32.gmra.mrb[28].mxu1 %v987_v27 }
 0x1e6   : > { %v2001_v52 = vmax.f32 %v1903_v54, 0.0  ;;  %1354 = vmatprep.mubr.f32.mxu1 %v990_v30  ;;  %v1008_v30 = vld [vmem:[%s8019_s3 + $0x188] sm:$0xff] }
 0x1e7   : > { %v1907_v57 = vpop.f32.mrb[96].mxu0 }
 0x1e8   : > { %v5263_v42 = vpack.c.bf16 %v2001_v52, %v2000_v3  ;;  %v1909_v8 = vpop.f32.mrb[97].mxu0  ;;  %v1908_v35 = vadd.f32 %v1907_v57, %v6531_v6  ;;  %v993_v6 = vld [vmem:[%s8019_s3 + $0x110] sm:$0xff]  ;;  %v1007_v52 = vld [vmem:[%s8019_s3 + $0x180] sm:$0xff]  ;;  %v1010_v57 = vld [vmem:[%s8019_s3 + $0x198] sm:$0xff] }
 0x1e9   : > { %1355 = vmatmul.mubr.f32.gmra.mrb[30].mxu1 %v989_v48 }
 0x1ea   : > { %5264 = vmatpush1.bf16.msra.mxu1 %v5263_v42  ;;  %1359 = vmatprep.mubr.f32.mxu1 %v992_v20  ;;  %v2002_v2 = vmax.f32 %v1908_v35, 0.0  ;;  %v8072_v20 = vld [vmem:[#allocation23_spill] sm:$0xff] }
 0x1eb   : > { %v1912_v17 = vpop.f32.mrb[98].mxu0  ;;  %5265 = vmatprep.subr.bf16.mxu1 %v8064_v55 }
 0x1ec   : > { %v1913_v51 = vadd.f32 %v1912_v17, %v6526_v22  ;;  %v1914_v0 = vpop.f32.mrb[99].mxu0  ;;  %v995_v22 = vld [vmem:[%s8019_s3 + $0x120] sm:$0xff] }
 0x1ed   : > { %1360 = vmatmul.mubr.f32.gmra.mrb[32].mxu1 %v991_v12 }
 0x1ee   : > { %v2003_v29 = vmax.f32 %v1913_v51, 0.0  ;;  %1364 = vmatprep.mubr.f32.mxu1 %v994_v38  ;;  %v1012_v38 = vld [vmem:[%s8019_s3 + $0x1a8] sm:$0xff] }
 0x1ef   : > { %v1917_v26 = vpop.f32.mrb[100].mxu0 }
 0x1f0   : > { %v5266_v7 = vpack.c.bf16 %v2003_v29, %v2002_v2  ;;  %v1919_v60 = vpop.f32.mrb[101].mxu0  ;;  %v1918_v46 = vadd.f32 %v1917_v26, %v6557_v19  ;;  %v997_v19 = vld [vmem:[%s8019_s3 + $0x130] sm:$0xff]  ;;  %v1011_v29 = vld [vmem:[%s8019_s3 + $0x1a0] sm:$0xff]  ;;  %v1014_v26 = vld [vmem:[%s8019_s3 + $0x1b8] sm:$0xff] }
 0x1f1   : > { %1365 = vmatmul.mubr.f32.gmra.mrb[34].mxu1 %v993_v6 }
 0x1f2   : > { %5267 = vmatpush1.bf16.msra.mxu1 %v5266_v7  ;;  %1369 = vmatprep.mubr.f32.mxu1 %v996_v16  ;;  %v2004_v41 = vmax.f32 %v1918_v46, 0.0  ;;  %v8073_v16 = vld [vmem:[#allocation24_spill] sm:$0xff] }
 0x1f3   : > { %v1922_v62 = vpop.f32.mrb[102].mxu0  ;;  %5268 = vmatprep.subr.bf16.mxu1 %v8064_v55 }
 0x1f4   : > { %v1923_v33 = vadd.f32 %v1922_v62, %v6549_v28  ;;  %v1924_v4 = vpop.f32.mrb[103].mxu0  ;;  %v999_v28 = vld [vmem:[%s8019_s3 + $0x140] sm:$0xff] }
 0x1f5   : > { %1370 = vmatmul.mubr.f32.gmra.mrb[36].mxu1 %v995_v22 }
 0x1f6   : > { %v2005_v24 = vmax.f32 %v1923_v33, 0.0  ;;  %1374 = vmatprep.mubr.f32.mxu1 %v998_v1  ;;  %v1016_v1 = vld [vmem:[%s8019_s3 + $0x1c8] sm:$0xff] }
 0x1f7   : > { %v1927_v61 = vpop.f32.mrb[104].mxu0 }
 0x1f8   : > { %v5269_v45 = vpack.c.bf16 %v2005_v24, %v2004_v41  ;;  %v1929_v43 = vpop.f32.mrb[105].mxu0  ;;  %v1928_v31 = vadd.f32 %v1927_v61, %v6580_v59  ;;  %v1001_v59 = vld [vmem:[%s8019_s3 + $0x150] sm:$0xff]  ;;  %v8074_v41 = vld [vmem:[#allocation26_spill] sm:$0xff] }
 0x1f9   : > { %1375 = vmatmul.mubr.f32.gmra.mrb[38].mxu1 %v997_v19  ;;  %v1015_v19 = vld [vmem:[%s8019_s3 + $0x1c0] sm:$0xff] }
 0x1fa   : > { %5270 = vmatpush1.bf16.msra.mxu1 %v5269_v45  ;;  %1379 = vmatprep.mubr.f32.mxu1 %v1000_v34  ;;  %v2006_v36 = vmax.f32 %v1928_v31, 0.0  ;;  %v1018_v34 = vld [vmem:[%s8019_s3 + $0x1d8] sm:$0xff]  ;;  %v8075_v45 = vld [vmem:[#allocation25_spill] sm:$0xff] }
 0x1fb   : > { %v1932_v63 = vpop.f32.mrb[106].mxu0  ;;  %5271 = vmatprep.subr.bf16.mxu1 %v8064_v55 }
 0x1fc   : > { %v1933_v53 = vadd.f32 %v1932_v63, %v8070_v23  ;;  %v1934_v32 = vpop.f32.mrb[107].mxu0 }
 0x1fd   : > { %1380 = vmatmul.mubr.f32.gmra.mrb[40].mxu1 %v999_v28 }
 0x1fe   : > { %v2007_v37 = vmax.f32 %v1933_v53, 0.0  ;;  %1384 = vmatprep.mubr.f32.mxu1 %v1002_v9  ;;  %v1017_v9 = vld [vmem:[%s8019_s3 + $0x1d0] sm:$0xff]  ;;  %v1020_v53 = vld [vmem:[%s8019_s3 + $0x1e8] sm:$0xff] }
 0x1ff   : > { %v1937_v49 = vpop.f32.mrb[108].mxu0 }
 0x200   : > { %v5272_v40 = vpack.c.bf16 %v2007_v37, %v2006_v36  ;;  %v1939_v14 = vpop.f32.mrb[109].mxu0  ;;  %v1938_v47 = vadd.f32 %v1937_v49, %v6608_v25  ;;  %v1005_v25 = vld [vmem:[%s8019_s3 + $0x170] sm:$0xff]  ;;  %v1754_v37 = vpop.permute.xlu0 %1753  ;;  %v1019_v49 = vld [vmem:[%s8019_s3 + $0x1e0] sm:$0xff] }
 0x201   : > { %1385 = vmatmul.mubr.f32.gmra.mrb[42].mxu1 %v1001_v59  ;;  %v1022_v14 = vld [vmem:[%s8019_s3 + $0x1f8] sm:$0xff] }
 0x202   : > { %5273 = vmatpush1.bf16.msra.mxu1 %v5272_v40  ;;  %1389 = vmatprep.mubr.f32.mxu1 %v1004_v58  ;;  %v2008_v18 = vmax.f32 %v1938_v47, 0.0  ;;  %v1759_v58 = vpop.permute.xlu1 %1758 }
 0x203   : > { %v1942_v5 = vpop.f32.mrb[110].mxu0  ;;  %5274 = vmatprep.subr.bf16.mxu1 %v8064_v55 }
 0x204   : > { %v1943_v11 = vadd.f32 %v1942_v5, %v8071_v56  ;;  %v1944_v15 = vpop.f32.mrb[111].mxu0  ;;  %v1021_v56 = vld [vmem:[%s8019_s3 + $0x1f0] sm:$0xff] }
 0x205   : > { %1390 = vmatmul.mubr.f32.gmra.mrb[44].mxu1 %v1003_v21 }
 0x206   : > { %v2009_v27 = vmax.f32 %v1943_v11, 0.0  ;;  %1394 = vmatprep.mubr.f32.mxu1 %v1006_v13  ;;  %v2019_v11 = vld [vmem:[%s8023_s7 + $0x8] sm:$0xff] }
 0x207   : > { %v1947_v10 = vpop.f32.mrb[112].mxu0 }
 0x208   : > { %v5275_v54 = vpack.c.bf16 %v2009_v27, %v2008_v18  ;;  %v1949_v50 = vpop.f32.mrb[113].mxu0  ;;  %v1948_v3 = vadd.f32 %v1947_v10, %v6630_v39  ;;  %v1009_v39 = vld [vmem:[%s8019_s3 + $0x190] sm:$0xff]  ;;  %v2018_v18 = vld [vmem:[%s8023_s7] sm:$0xff]  ;;  %v2021_v27 = vld [vmem:[%s8023_s7 + $0x18] sm:$0xff] }
 0x209   : > { %1395 = vmatmul.mubr.f32.gmra.mrb[46].mxu1 %v1005_v25  ;;  %v2020_v25 = vld [vmem:[%s8023_s7 + $0x10] sm:$0xff]  ;;  %v2023_v10 = vld [vmem:[%s8023_s7 + $0x28] sm:$0xff] }
 0x20a   : > { %5276 = vmatpush1.bf16.msra.mxu1 %v5275_v54  ;;  %1399 = vmatprep.mubr.f32.mxu1 %v1008_v30  ;;  %v2010_v35 = vmax.f32 %v1948_v3, 0.0  ;;  %v2022_v30 = vld [vmem:[%s8023_s7 + $0x20] sm:$0xff]  ;;  %v2025_v54 = vld [vmem:[%s8023_s7 + $0x38] sm:$0xff]  ;;  %v2024_v50 = vld [vmem:[%s8023_s7 + $0x30] sm:$0xff] }
 0x20b   : > { %v1952_v48 = vpop.f32.mrb[114].mxu0  ;;  %5277 = vmatprep.subr.bf16.mxu1 %v8064_v55  ;;  %v2027_v3 = vld [vmem:[%s8023_s7 + $0x48] sm:$0xff] }
 0x20c   : > { %v1953_v42 = vadd.f32 %v1952_v48, %v8072_v20  ;;  %v1954_v8 = vpop.f32.mrb[115].mxu0  ;;  %v2029_v48 = vld [vmem:[%s8023_s7 + $0x58] sm:$0xff]  ;;  %v2028_v20 = vld [vmem:[%s8023_s7 + $0x50] sm:$0xff] }
 0x20d   : > { %1400 = vmatmul.mubr.f32.gmra.mrb[48].mxu1 %v1007_v52  ;;  %v2026_v52 = vld [vmem:[%s8023_s7 + $0x40] sm:$0xff]  ;;  %v6997_v8 = vpop.permute.xlu1 %2121 }
 0x20e   : > { %v2011_v12 = vmax.f32 %v1953_v42, 0.0  ;;  %1404 = vmatprep.mubr.f32.mxu1 %v1010_v57  ;;  %v6989_v57 = vpop.permute.xlu0 %2116  ;;  %v2031_v42 = vld [vmem:[%s8023_s7 + $0x68] sm:$0xff] }
 0x20f   : > { %v1957_v17 = vpop.f32.mrb[116].mxu0 }
 0x210   : > { %v5278_v51 = vpack.c.bf16 %v2011_v12, %v2010_v35  ;;  %v1959_v0 = vpop.f32.mrb[117].mxu0  ;;  %v1958_v2 = vadd.f32 %v1957_v17, %v6656_v44  ;;  %v1013_v44 = vld [vmem:[%s8019_s3 + $0x1b0] sm:$0xff]  ;;  %v2030_v12 = vld [vmem:[%s8023_s7 + $0x60] sm:$0xff] }
 0x211   : > { %1405 = vmatmul.mubr.f32.gmra.mrb[50].mxu1 %v1009_v39  ;;  %v2033_v39 = vld [vmem:[%s8023_s7 + $0x78] sm:$0xff]  ;;  %v7007_v17 = vpop.permute.xlu1 %2131 }
 0x212   : > { %5279 = vmatpush1.bf16.msra.mxu1 %v5278_v51  ;;  %1409 = vmatprep.mubr.f32.mxu1 %v1012_v38  ;;  %v2012_v46 = vmax.f32 %v1958_v2, 0.0  ;;  %v6999_v35 = vpop.permute.xlu0 %2126  ;;  %v2032_v38 = vld [vmem:[%s8023_s7 + $0x70] sm:$0xff]  ;;  %v2035_v51 = vld [vmem:[%s8023_s7 + $0x88] sm:$0xff]  ;;  %v2034_v2 = vld [vmem:[%s8023_s7 + $0x80] sm:$0xff] }
 0x213   : > { %v1962_v6 = vpop.f32.mrb[118].mxu0  ;;  %5280 = vmatprep.subr.bf16.mxu1 %v8064_v55 }
 0x214   : > { %v1963_v7 = vadd.f32 %v1962_v6, %v8073_v16  ;;  %v1964_v60 = vpop.f32.mrb[119].mxu0  ;;  %v2036_v16 = vld [vmem:[%s8023_s7 + $0x90] sm:$0xff] }
 0x215   : > { %1410 = vmatmul.mubr.f32.gmra.mrb[52].mxu1 %v1011_v29  ;;  %v2037_v29 = vld [vmem:[%s8023_s7 + $0x98] sm:$0xff]  ;;  %v7023_v6 = vpop.permute.xlu1 %1062 }
 0x216   : > { %v2013_v22 = vmax.f32 %v1963_v7, 0.0  ;;  %1414 = vmatprep.mubr.f32.mxu1 %v1014_v26  ;;  %v7015_v0 = vpop.permute.xlu0 %1057  ;;  %v2039_v7 = vld [vmem:[%s8023_s7 + $0xa8] sm:$0xff] }
 0x217   : > { %v1967_v62 = vpop.f32.mrb[120].mxu0 }
 0x218   : > { %v5281_v33 = vpack.c.bf16 %v2013_v22, %v2012_v46  ;;  %v1969_v4 = vpop.f32.mrb[121].mxu0  ;;  %v1968_v24 = vadd.f32 %v1967_v62, %v8074_v41  ;;  %v2038_v46 = vld [vmem:[%s8023_s7 + $0xa0] sm:$0xff]  ;;  %v2041_v22 = vld [vmem:[%s8023_s7 + $0xb8] sm:$0xff]  ;;  %v2040_v62 = vld [vmem:[%s8023_s7 + $0xb0] sm:$0xff] }
 0x219   : > { %1415 = vmatmul.mubr.f32.gmra.mrb[54].mxu1 %v1013_v44  ;;  %v7033_v60 = vpop.permute.xlu1 %2141  ;;  %v2042_v41 = vld [vmem:[%s8023_s7 + $0xc0] sm:$0xff] }
 0x21a   : > { %5282 = vmatpush1.bf16.msra.mxu1 %v5281_v33  ;;  %1419 = vmatprep.mubr.f32.mxu1 %v1016_v1  ;;  %v2014_v28 = vmax.f32 %v1968_v24, 0.0  ;;  %v7025_v26 = vpop.permute.xlu0 %2136  ;;  %v2043_v1 = vld [vmem:[%s8023_s7 + $0xc8] sm:$0xff]  ;;  %v2045_v24 = vld [vmem:[%s8023_s7 + $0xd8] sm:$0xff] }
 0x21b   : > { %v1972_v61 = vpop.f32.mrb[122].mxu0  ;;  %5283 = vmatprep.subr.bf16.mxu1 %v8064_v55 }
 0x21c   : > { %v1973_v43 = vadd.f32 %v1972_v61, %v8075_v45  ;;  %v1974_v31 = vpop.f32.mrb[123].mxu0  ;;  %v2044_v61 = vld [vmem:[%s8023_s7 + $0xd0] sm:$0xff] }
 0x21d   : > { %1420 = vmatmul.mubr.f32.gmra.mrb[56].mxu1 %v1015_v19  ;;  %v7049_v33 = vpop.permute.xlu1 %1072  ;;  %v2049_v31 = vld [vmem:[%s8023_s7 + $0xf8] sm:$0xff] }
 0x21e   : > { %v2015_v63 = vmax.f32 %v1973_v43, 0.0  ;;  %1424 = vmatprep.mubr.f32.mxu1 %v1018_v34  ;;  %v7041_v44 = vpop.permute.xlu0 %1067  ;;  %v2047_v34 = vld [vmem:[%s8023_s7 + $0xe8] sm:$0xff]  ;;  %v2046_v43 = vld [vmem:[%s8023_s7 + $0xe0] sm:$0xff] }
 0x21f   : > { %v1977_v23 = vpop.f32.mrb[124].mxu0 }
 0x220   : > { %v5284_v32 = vpack.c.bf16 %v2015_v63, %v2014_v28  ;;  %v1979_v36 = vpop.f32.mrb[125].mxu0  ;;  %v1978_v59 = vadd.f32 %v1977_v23, %v1754_v37  ;;  %v2051_v23 = vld [vmem:[%s8023_s7 + $0x108] sm:$0xff] }
 0x221   : > { %1425 = vmatmul.mubr.f32.gmra.mrb[58].mxu1 %v1017_v9  ;;  %v7059_v19 = vpop.permute.xlu1 %2151  ;;  %v2048_v9 = vld [vmem:[%s8023_s7 + $0xf0] sm:$0xff]  ;;  %v2053_v36 = vld [vmem:[%s8023_s7 + $0x118] sm:$0xff] }
 0x222   : > { %5285 = vmatpush1.bf16.msra.mxu1 %v5284_v32  ;;  %1429 = vmatprep.mubr.f32.mxu1 %v1020_v53  ;;  %v2016_v5 = vmax.f32 %v1978_v59, 0.0  ;;  %v7051_v4 = vpop.permute.xlu0 %2146  ;;  %v2050_v32 = vld [vmem:[%s8023_s7 + $0x100] sm:$0xff]  ;;  %v2052_v59 = vld [vmem:[%s8023_s7 + $0x110] sm:$0xff] }
 0x223   : > { %v1982_v40 = vpop.f32.mrb[126].mxu0  ;;  %5286 = vmatprep.subr.bf16.mxu1 %v8064_v55 }
 0x224   : > { %v1983_v47 = vadd.f32 %v1982_v40, %v1759_v58  ;;  %v1984_v21 = vpop.f32.mrb[127].mxu0 }
 0x225   : > { %1430 = vmatmul.mubr.f32.gmra.mrb[60].mxu1 %v1019_v49  ;;  %v7075_v28 = vpop.permute.xlu1 %1082  ;;  %v2055_v49 = vld [vmem:[%s8023_s7 + $0x128] sm:$0xff] }
 0x226   : > { %v2017_v13 = vmax.f32 %v1983_v47, 0.0  ;;  %1434 = vmatprep.mubr.f32.mxu1 %v1022_v14  ;;  %v7067_v45 = vpop.permute.xlu0 %1077  ;;  %v2054_v14 = vld [vmem:[%s8023_s7 + $0x120] sm:$0xff]  ;;  %v2057_v47 = vld [vmem:[%s8023_s7 + $0x138] sm:$0xff] }
 0x228   : > { %v5287_v15 = vpack.c.bf16 %v2017_v13, %v2016_v5  ;;  %v2056_v5 = vld [vmem:[%s8023_s7 + $0x130] sm:$0xff]  ;;  %v2059_v13 = vld [vmem:[%s8023_s7 + $0x148] sm:$0xff] }
 0x229   : > { %1435 = vmatmul.mubr.f32.gmra.mrb[62].mxu1 %v1021_v56  ;;  %v7085_v53 = vpop.permute.xlu1 %2161 }
 0x22a   : > { %5288 = vmatpush1.bf16.msra.mxu1 %v5287_v15  ;;  %2338 = vmatprep.mubr.f32.mxu1 %v2019_v11  ;;  %v7077_v63 = vpop.permute.xlu0 %2156  ;;  %v2058_v11 = vld [vmem:[%s8023_s7 + $0x140] sm:$0xff]  ;;  %v2061_v15 = vld [vmem:[%s8023_s7 + $0x158] sm:$0xff] }
 0x22d   : > { %2339 = vmatmul.mubr.f32.vlgmr.msra.gmra.mrb[64].mxu1 %v2018_v18  ;;  %v7101_v58 = vpop.permute.xlu1 %1092 }
 0x22e   : > { %2343 = vmatprep.mubr.f32.mxu1 %v2021_v27  ;;  %v7093_v37 = vpop.permute.xlu0 %1087 }
 0x231   : > { %2344 = vmatmul.mubr.f32.gmra.mrb[66].mxu1 %v2020_v25  ;;  %v7111_v21 = vpop.permute.xlu1 %2171  ;;  %v2060_v25 = vld [vmem:[%s8023_s7 + $0x150] sm:$0xff] }
 0x232   : > { %2348 = vmatprep.mubr.f32.mxu1 %v2023_v10  ;;  %v7103_v40 = vpop.permute.xlu0 %2166  ;;  %v2063_v10 = vld [vmem:[%s8023_s7 + $0x168] sm:$0xff] }
 0x235   : > { %2349 = vmatmul.mubr.f32.gmra.mrb[68].mxu1 %v2022_v30  ;;  %v7127_v18 = vpop.permute.xlu1 %1102 }
 0x236   : > { %2353 = vmatprep.mubr.f32.mxu1 %v2025_v54  ;;  %v7119_v56 = vpop.permute.xlu0 %1097 }
 0x239   : > { %2354 = vmatmul.mubr.f32.gmra.mrb[70].mxu1 %v2024_v50 }
 0x23a   : > { %2358 = vmatprep.mubr.f32.mxu1 %v2027_v3  ;;  %v7129_v27 = vpop.permute.xlu0 %2176  ;;  %v7138_v3 = vpop.permute.xlu1 %2181 }
 0x23d   : > { %2359 = vmatmul.mubr.f32.gmra.mrb[72].mxu1 %v2026_v52  ;;  %v2062_v52 = vld [vmem:[%s8023_s7 + $0x160] sm:$0xff] }
 0x23e   : > { %2363 = vmatprep.mubr.f32.mxu1 %v2029_v48 }
 0x241   : > { %2364 = vmatmul.mubr.f32.gmra.mrb[74].mxu1 %v2028_v20  ;;  %v2065_v20 = vld [vmem:[%s8023_s7 + $0x178] sm:$0xff] }
 0x242   : > { %2368 = vmatprep.mubr.f32.mxu1 %v2031_v42  ;;  %v7146_v42 = vpop.permute.xlu0 %1107 }
 0x245   : > { %2369 = vmatmul.mubr.f32.gmra.mrb[76].mxu1 %v2030_v12 }
 0x246   : > { %2373 = vmatprep.mubr.f32.mxu1 %v2033_v39 }
 0x249   : > { %2374 = vmatmul.mubr.f32.gmra.mrb[78].mxu1 %v2032_v38 }
 0x24a   : > { %2378 = vmatprep.mubr.f32.mxu1 %v2035_v51  ;;  %v2064_v51 = vld [vmem:[%s8023_s7 + $0x170] sm:$0xff] }
 0x24d   : > { %2379 = vmatmul.mubr.f32.gmra.mrb[80].mxu1 %v2034_v2  ;;  %v2067_v2 = vld [vmem:[%s8023_s7 + $0x188] sm:$0xff] }
 0x24e   : > { %2383 = vmatprep.mubr.f32.mxu1 %v2037_v29  ;;  %v7156_v29 = vpop.permute.xlu1 %1112 }
 0x251   : > { %2384 = vmatmul.mubr.f32.gmra.mrb[82].mxu1 %v2036_v16 }
 0x252   : > { %2388 = vmatprep.mubr.f32.mxu1 %v2039_v7 }
 0x255   : > { %2389 = vmatmul.mubr.f32.gmra.mrb[84].mxu1 %v2038_v46  ;;  %v7160_v46 = vpop.permute.xlu0 %2186 }
 0x256   : > { %2393 = vmatprep.mubr.f32.mxu1 %v2041_v22  ;;  %v2066_v22 = vld [vmem:[%s8023_s7 + $0x180] sm:$0xff] }
 0x259   : > { %2394 = vmatmul.mubr.f32.gmra.mrb[86].mxu1 %v2040_v62 }
 0x25a   : > { %2398 = vmatprep.mubr.f32.mxu1 %v2043_v1  ;;  %v2069_v1 = vld [vmem:[%s8023_s7 + $0x198] sm:$0xff] }
 0x25d   : > { %2399 = vmatmul.mubr.f32.gmra.mrb[88].mxu1 %v2042_v41 }
 0x25e   : > { %2403 = vmatprep.mubr.f32.mxu1 %v2045_v24 }
 0x261   : > { %2404 = vmatmul.mubr.f32.gmra.mrb[90].mxu1 %v2044_v61 }
 0x262   : > { %2408 = vmatprep.mubr.f32.mxu1 %v2047_v34  ;;  %v7171_v34 = vpop.permute.xlu1 %2191 }
 0x265   : > { %2409 = vmatmul.mubr.f32.gmra.mrb[92].mxu1 %v2046_v43  ;;  %v2068_v43 = vld [vmem:[%s8023_s7 + $0x190] sm:$0xff] }
 0x266   : > { %2413 = vmatprep.mubr.f32.mxu1 %v2049_v31 }
 0x269   : > { %2414 = vmatmul.mubr.f32.gmra.mrb[94].mxu1 %v2048_v9  ;;  %v2071_v9 = vld [vmem:[%s8023_s7 + $0x1a8] sm:$0xff] }
 0x26a   : > { %2418 = vmatprep.mubr.f32.mxu1 %v2051_v23  ;;  %v7179_v23 = vpop.permute.xlu0 %1117 }
 0x26d   : > { %2419 = vmatmul.mubr.f32.gmra.mrb[96].mxu1 %v2050_v32 }
 0x26e   : > { %2423 = vmatprep.mubr.f32.mxu1 %v2053_v36 }
 0x271   : > { %2424 = vmatmul.mubr.f32.gmra.mrb[98].mxu1 %v2052_v59  ;;  %v2070_v59 = vld [vmem:[%s8023_s7 + $0x1a0] sm:$0xff] }
 0x272   : > { %2428 = vmatprep.mubr.f32.mxu1 %v2055_v49 }
 0x275   : > { %2429 = vmatmul.mubr.f32.gmra.mrb[100].mxu1 %v2054_v14  ;;  %v2073_v14 = vld [vmem:[%s8023_s7 + $0x1b8] sm:$0xff] }
 0x276   : > { %2433 = vmatprep.mubr.f32.mxu1 %v2057_v47  ;;  %v7189_v47 = vpop.permute.xlu1 %1122 }
 0x279   : > { %2434 = vmatmul.mubr.f32.gmra.mrb[102].mxu1 %v2056_v5 }
 0x27a   : > { %2438 = vmatprep.mubr.f32.mxu1 %v2059_v13 }
 0x27d   : > { %2439 = vmatmul.mubr.f32.gmra.mrb[104].mxu1 %v2058_v11  ;;  %v7193_v11 = vpop.permute.xlu0 %2196 }
 0x27e   : > { %2443 = vmatprep.mubr.f32.mxu1 %v2061_v15  ;;  %v2072_v15 = vld [vmem:[%s8023_s7 + $0x1b0] sm:$0xff] }
 0x280   : > { %v1281_v30 = vpop.f32.mrb[0].mxu1 }
 0x281   : > { %v1282_v54 = vadd.f32 %v1281_v30, %v7015_v0  ;;  %v1283_v50 = vpop.f32.mrb[1].mxu1  ;;  %2444 = vmatmul.mubr.f32.gmra.mrb[106].mxu1 %v2060_v25 }
 0x282   : > { %2448 = vmatprep.mubr.f32.mxu1 %v2063_v10  ;;  %v2075_v10 = vld [vmem:[%s8023_s7 + $0x1c8] sm:$0xff]  ;;  %v7203_v50 = vpop.permute.xlu1 %2201 }
 0x283   : > { %v1440_v48 = vmax.f32 %v1282_v54, 0.0 }
 0x284   : > { %v1286_v12 = vpop.f32.mrb[2].mxu1 }
 0x285   : > { %1473 = vst.msk [vmem:[#allocation2] sm:$0xff] %vm1472_vm0, %v1440_v48  ;;  %v1287_v39 = vadd.f32 %v1286_v12, %v7023_v6  ;;  %v1288_v38 = vpop.f32.mrb[3].mxu1  ;;  %2449 = vmatmul.mubr.f32.gmra.mrb[108].mxu1 %v2062_v52  ;;  %v2074_v52 = vld [vmem:[%s8023_s7 + $0x1c0] sm:$0xff]  ;;  %v1128_v12 = vpop.permute.xlu0 %1127 }
 0x286   : > { %2453 = vmatprep.mubr.f32.mxu1 %v2065_v20  ;;  %v2077_v20 = vld [vmem:[%s8023_s7 + $0x1d8] sm:$0xff] }
 0x287   : > { %v1441_v0 = vmax.f32 %v1287_v39, 0.0 }
 0x288   : > { %v1291_v16 = vpop.f32.mrb[4].mxu1 }
 0x289   : > { %1474 = vst.msk [vmem:[#allocation2 + $0x8] sm:$0xff] %vm1472_vm0, %v1441_v0  ;;  %v1292_v7 = vadd.f32 %v1291_v16, %v7041_v44  ;;  %v1293_v6 = vpop.f32.mrb[5].mxu1  ;;  %2454 = vmatmul.mubr.f32.gmra.mrb[110].mxu1 %v2064_v51  ;;  %v2076_v51 = vld [vmem:[%s8023_s7 + $0x1d0] sm:$0xff]  ;;  %v1133_v16 = vpop.permute.xlu1 %1132 }
 0x28a   : > { %2458 = vmatprep.mubr.f32.mxu1 %v2067_v2  ;;  %v2079_v2 = vld [vmem:[%s8023_s7 + $0x1e8] sm:$0xff] }
 0x28b   : > { %v1442_v62 = vmax.f32 %v1292_v7, 0.0 }
 0x28c   : > { %v1296_v41 = vpop.f32.mrb[6].mxu1  ;;  %v2563_v24 = vld [vmem:[#allocation2] sm:$0xff] }
 0x28d   : > { %1475 = vst.msk [vmem:[#allocation2 + $0x10] sm:$0xff] %vm1472_vm0, %v1442_v62  ;;  %v1297_v44 = vadd.f32 %v1296_v41, %v7049_v33  ;;  %v1298_v61 = vpop.f32.mrb[7].mxu1  ;;  %2459 = vmatmul.mubr.f32.gmra.mrb[112].mxu1 %v2066_v22  ;;  %4989 = vmatprep.mubr.msk.f32.mxu0 %vm1472_vm0, %v2563_v24  ;;  %v2078_v62 = vld [vmem:[%s8023_s7 + $0x1e0] sm:$0xff]  ;;  %v2081_v41 = vld [vmem:[%s8023_s7 + $0x1f8] sm:$0xff] }
 0x28e   : > { %2463 = vmatprep.mubr.f32.mxu1 %v2069_v1  ;;  %v7231_v61 = vpop.permute.xlu1 %2211 }
 0x28f   : > { %v1443_v31 = vmax.f32 %v1297_v44, 0.0 }
 0x290   : > { %v1301_v32 = vpop.f32.mrb[8].mxu1 }
 0x291   : > { %1476 = vst.msk [vmem:[#allocation2 + $0x18] sm:$0xff] %vm1472_vm0, %v1443_v31  ;;  %v1302_v33 = vadd.f32 %v1301_v32, %v7067_v45  ;;  %v1303_v36 = vpop.f32.mrb[9].mxu1  ;;  %2464 = vmatmul.mubr.f32.gmra.mrb[114].mxu1 %v2068_v43  ;;  %v2080_v43 = vld [vmem:[%s8023_s7 + $0x1f0] sm:$0xff] }
 0x292   : > { %2468 = vmatprep.mubr.f32.mxu1 %v2071_v9 }
 0x293   : > { %v1444_v49 = vmax.f32 %v1302_v33, 0.0 }
 0x294   : > { %v1306_v5 = vpop.f32.mrb[10].mxu1 }
 0x295   : > { %1477 = vst.msk [vmem:[#allocation2 + $0x20] sm:$0xff] %vm1472_vm0, %v1444_v49  ;;  %v1307_v13 = vadd.f32 %v1306_v5, %v7075_v28  ;;  %v1308_v45 = vpop.f32.mrb[11].mxu1  ;;  %2469 = vmatmul.mubr.f32.gmra.mrb[116].mxu1 %v2070_v59  ;;  %v2650_v59 = vld [vmem:[#allocation2 + $0x10] sm:$0xff]  ;;  %v1143_v49 = vpop.permute.xlu1 %1142 }
 0x296   : > { %2473 = vmatprep.mubr.f32.mxu1 %v2073_v14 }
 0x297   : > { %v1445_v25 = vmax.f32 %v1307_v13, 0.0 }
 0x298   : > { %v1311_v30 = vpop.f32.mrb[12].mxu1 }
 0x299   : > { %1478 = vst.msk [vmem:[#allocation2 + $0x28] sm:$0xff] %vm1472_vm0, %v1445_v25  ;;  %v1312_v54 = vadd.f32 %v1311_v30, %v7093_v37  ;;  %v1313_v28 = vpop.f32.mrb[13].mxu1  ;;  %2474 = vmatmul.mubr.f32.gmra.mrb[118].mxu1 %v2072_v15  ;;  %v7245_v30 = vpop.permute.xlu1 %2221 }
 0x29a   : > { %2478 = vmatprep.mubr.f32.mxu1 %v2075_v10 }
 0x29b   : > { %v1446_v48 = vmax.f32 %v1312_v54, 0.0 }
 0x29c   : > { %v1316_v39 = vpop.f32.mrb[14].mxu1 }
 0x29d   : > { %1479 = vst.msk [vmem:[#allocation2 + $0x30] sm:$0xff] %vm1472_vm0, %v1446_v48  ;;  %v1317_v37 = vadd.f32 %v1316_v39, %v7101_v58  ;;  %v1318_v38 = vpop.f32.mrb[15].mxu1  ;;  %2479 = vmatmul.mubr.f32.gmra.mrb[120].mxu1 %v2074_v52  ;;  %v7221_v58 = vpop.permute.xlu0 %2206 }
 0x29e   : > { %2483 = vmatprep.mubr.f32.mxu1 %v2077_v20  ;;  %v1153_v39 = vpop.permute.xlu1 %1152 }
 0x29f   : > { %v1447_v0 = vmax.f32 %v1317_v37, 0.0 }
 0x2a0   : > { %v1321_v7 = vpop.f32.mrb[16].mxu1 }
 0x2a1   : > { %1480 = vst.msk [vmem:[#allocation2 + $0x38] sm:$0xff] %vm1472_vm0, %v1447_v0  ;;  %v1322_v6 = vadd.f32 %v1321_v7, %v7119_v56  ;;  %v1323_v22 = vpop.f32.mrb[17].mxu1  ;;  %2484 = vmatmul.mubr.f32.gmra.mrb[122].mxu1 %v2076_v51  ;;  %v1138_v9 = vpop.permute.xlu0 %1137 }
 0x2a2   : > { %2488 = vmatprep.mubr.f32.mxu1 %v2079_v2  ;;  %v7253_v22 = vpop.permute.xlu1 %2231 }
 0x2a3   : > { %v1448_v1 = vmax.f32 %v1322_v6, 0.0 }
 0x2a4   : > { %v1326_v24 = vpop.f32.mrb[18].mxu1 }
 0x2a5   : > { %1481 = vst.msk [vmem:[#allocation2 + $0x40] sm:$0xff] %vm1472_vm0, %v1448_v1  ;;  %v1327_v44 = vadd.f32 %v1326_v24, %v7127_v18  ;;  %v1328_v56 = vpop.f32.mrb[19].mxu1  ;;  %2489 = vmatmul.mubr.f32.gmra.mrb[124].mxu1 %v2078_v62  ;;  %v7241_v45 = vpop.permute.xlu0 %2216 }
 0x2a6   : > { %2493 = vmatprep.mubr.f32.mxu1 %v2081_v41 }
 0x2a7   : > { %v1449_v31 = vmax.f32 %v1327_v44, 0.0 }
 0x2a8   : > { %v1331_v32 = vpop.f32.mrb[20].mxu1 }
 0x2a9   : > { %1482 = vst.msk [vmem:[#allocation2 + $0x48] sm:$0xff] %vm1472_vm0, %v1449_v31  ;;  %v1332_v33 = vadd.f32 %v1331_v32, %v7146_v42  ;;  %v1333_v36 = vpop.f32.mrb[21].mxu1  ;;  %2494 = vmatmul.mubr.f32.gmra.mrb[126].mxu1 %v2080_v43  ;;  %v1148_v28 = vpop.permute.xlu0 %1147 }
 0x2aa   : > { %4996 = vmatprep.mubr.msk.f32.mxu1 %vm1472_vm0, %v2650_v59 }
 0x2ab   : > { %v1450_v18 = vmax.f32 %v1332_v33, 0.0 }
 0x2ac   : > { %v1336_v14 = vpop.f32.mrb[22].mxu1 }
 0x2ad   : > { %1483 = vst.msk [vmem:[#allocation2 + $0x50] sm:$0xff] %vm1472_vm0, %v1450_v18  ;;  %v1337_v5 = vadd.f32 %v1336_v14, %v7156_v29  ;;  %v1338_v13 = vpop.f32.mrb[23].mxu1  ;;  %v7250_v0 = vpop.permute.xlu0 %2226 }
 0x2af   : > { %v1451_v15 = vmax.f32 %v1337_v5, 0.0 }
 0x2b0   : > { %v1341_v25 = vpop.f32.mrb[24].mxu1 }
 0x2b1   : > { %1484 = vst.msk [vmem:[#allocation2 + $0x58] sm:$0xff] %vm1472_vm0, %v1451_v15  ;;  %v1342_v42 = vadd.f32 %v1341_v25, %v7179_v23  ;;  %v1343_v10 = vpop.f32.mrb[25].mxu1 }
 0x2b3   : > { %v1452_v54 = vmax.f32 %v1342_v42, 0.0 }
 0x2b4   : > { %v1346_v52 = vpop.f32.mrb[26].mxu1 }
 0x2b5   : > { %1485 = vst.msk [vmem:[#allocation2 + $0x60] sm:$0xff] %vm1472_vm0, %v1452_v54  ;;  %v1347_v48 = vadd.f32 %v1346_v52, %v7189_v47  ;;  %v1348_v29 = vpop.f32.mrb[27].mxu1  ;;  %v1158_v47 = vpop.permute.xlu0 %1157 }
 0x2b7   : > { %v1453_v20 = vmax.f32 %v1347_v48, 0.0 }
 0x2b8   : > { %v1351_v37 = vpop.f32.mrb[28].mxu1 }
 0x2b9   : > { %1486 = vst.msk [vmem:[#allocation2 + $0x68] sm:$0xff] %vm1472_vm0, %v1453_v20  ;;  %v1352_v38 = vadd.f32 %v1351_v37, %v1128_v12  ;;  %v1353_v51 = vpop.f32.mrb[29].mxu1  ;;  %v1163_v12 = vpop.permute.xlu1 %1162 }
 0x2ba   : > { %v7257_v32 = vpop.permute.xlu0 %2236 }
 0x2bb   : > { %v1454_v23 = vmax.f32 %v1352_v38, 0.0 }
 0x2bc   : > { %v1356_v2 = vpop.f32.mrb[30].mxu1 }
 0x2bd   : > { %1487 = vst.msk [vmem:[#allocation2 + $0x70] sm:$0xff] %vm1472_vm0, %v1454_v23  ;;  %v1357_v7 = vadd.f32 %v1356_v2, %v1133_v16  ;;  %v1358_v6 = vpop.f32.mrb[31].mxu1  ;;  %v7260_v18 = vpop.permute.xlu1 %2241 }
 0x2bf   : > { %v1455_v62 = vmax.f32 %v1357_v7, 0.0 }
 0x2c0   : > { %v1361_v1 = vpop.f32.mrb[32].mxu1 }
 0x2c1   : > { %1488 = vst.msk [vmem:[#allocation2 + $0x78] sm:$0xff] %vm1472_vm0, %v1455_v62  ;;  %v1362_v41 = vadd.f32 %v1361_v1, %v1138_v9  ;;  %v1363_v24 = vpop.f32.mrb[33].mxu1  ;;  %v1168_v9 = vpop.permute.xlu0 %1167 }
 0x2c3   : > { %v1456_v44 = vmax.f32 %v1362_v41, 0.0 }
 0x2c4   : > { %v1366_v56 = vpop.f32.mrb[34].mxu1 }
 0x2c5   : > { %1489 = vst.msk [vmem:[#allocation2 + $0x80] sm:$0xff] %vm1472_vm0, %v1456_v44  ;;  %v1367_v43 = vadd.f32 %v1366_v56, %v1143_v49  ;;  %v1368_v31 = vpop.f32.mrb[35].mxu1  ;;  %v1173_v49 = vpop.permute.xlu1 %1172 }
 0x2c6   : > { %v7264_v52 = vpop.permute.xlu0 %2246 }
 0x2c7   : > { %v1457_v16 = vmax.f32 %v1367_v43, 0.0 }
 0x2c8   : > { %v1371_v33 = vpop.f32.mrb[36].mxu1 }
 0x2c9   : > { %1490 = vst.msk [vmem:[#allocation2 + $0x88] sm:$0xff] %vm1472_vm0, %v1457_v16  ;;  %v1372_v36 = vadd.f32 %v1371_v33, %v1148_v28  ;;  %v1373_v59 = vpop.f32.mrb[37].mxu1  ;;  %v7267_v37 = vpop.permute.xlu1 %2251 }
 0x2cb   : > { %v1458_v14 = vmax.f32 %v1372_v36, 0.0 }
 0x2cc   : > { %v1376_v5 = vpop.f32.mrb[38].mxu1 }
 0x2cd   : > { %1491 = vst.msk [vmem:[#allocation2 + $0x90] sm:$0xff] %vm1472_vm0, %v1458_v14  ;;  %v1377_v13 = vadd.f32 %v1376_v5, %v1153_v39  ;;  %v1378_v15 = vpop.f32.mrb[39].mxu1  ;;  %v1178_v39 = vpop.permute.xlu0 %1177 }
 0x2ce   : > { %v1183_v6 = vpop.permute.xlu1 %1182 }
 0x2cf   : > { %v1459_v25 = vmax.f32 %v1377_v13, 0.0 }
 0x2d0   : > { %v1381_v42 = vpop.f32.mrb[40].mxu1 }
 0x2d1   : > { %1492 = vst.msk [vmem:[#allocation2 + $0x98] sm:$0xff] %vm1472_vm0, %v1459_v25  ;;  %v1382_v10 = vadd.f32 %v1381_v42, %v1158_v47  ;;  %v1383_v54 = vpop.f32.mrb[41].mxu1  ;;  %v7271_v41 = vpop.permute.xlu0 %2256 }
 0x2d2   : > { %v7274_v43 = vpop.permute.xlu1 %2261 }
 0x2d3   : > { %v1460_v28 = vmax.f32 %v1382_v10, 0.0 }
 0x2d4   : > { %v1386_v48 = vpop.f32.mrb[42].mxu1 }
 0x2d5   : > { %1493 = vst.msk [vmem:[#allocation2 + $0xa0] sm:$0xff] %vm1472_vm0, %v1460_v28  ;;  %v1387_v29 = vadd.f32 %v1386_v48, %v1163_v12  ;;  %v1388_v20 = vpop.f32.mrb[43].mxu1  ;;  %v1188_v16 = vpop.permute.xlu0 %1187 }
 0x2d7   : > { %v1461_v38 = vmax.f32 %v1387_v29, 0.0 }
 0x2d8   : > { %v1391_v51 = vpop.f32.mrb[44].mxu1 }
 0x2d9   : > { %1494 = vst.msk [vmem:[#allocation2 + $0xa8] sm:$0xff] %vm1472_vm0, %v1461_v38  ;;  %v1392_v23 = vadd.f32 %v1391_v51, %v1168_v9  ;;  %v1393_v2 = vpop.f32.mrb[45].mxu1  ;;  %v1193_v9 = vpop.permute.xlu1 %1192 }
 0x2da   : > { %v7278_v25 = vpop.permute.xlu0 %2266 }
 0x2db   : > { %v1462_v7 = vmax.f32 %v1392_v23, 0.0 }
 0x2dc   : > { %v1396_v62 = vpop.f32.mrb[46].mxu1 }
 0x2dd   : > { %1495 = vst.msk [vmem:[#allocation2 + $0xb0] sm:$0xff] %vm1472_vm0, %v1462_v7  ;;  %v1397_v47 = vadd.f32 %v1396_v62, %v1173_v49  ;;  %v1398_v1 = vpop.f32.mrb[47].mxu1  ;;  %v7281_v28 = vpop.permute.xlu1 %2271 }
 0x2de   : > { %v1198_v29 = vpop.permute.xlu0 %1197 }
 0x2df   : > { %v1463_v24 = vmax.f32 %v1397_v47, 0.0 }
 0x2e0   : > { %v1401_v44 = vpop.f32.mrb[48].mxu1 }
 0x2e1   : > { %1496 = vst.msk [vmem:[#allocation2 + $0xb8] sm:$0xff] %vm1472_vm0, %v1463_v24  ;;  %v1402_v12 = vadd.f32 %v1401_v44, %v1178_v39  ;;  %v1403_v56 = vpop.f32.mrb[49].mxu1  ;;  %v1203_v23 = vpop.permute.xlu1 %1202 }
 0x2e2   : > { %v1208_v47 = vpop.permute.xlu0 %1207 }
 0x2e3   : > { %v1464_v31 = vmax.f32 %v1402_v12, 0.0 }
 0x2e4   : > { %v1406_v33 = vpop.f32.mrb[50].mxu1 }
 0x2e5   : > { %1497 = vst.msk [vmem:[#allocation2 + $0xc0] sm:$0xff] %vm1472_vm0, %v1464_v31  ;;  %v1407_v36 = vadd.f32 %v1406_v33, %v1183_v6  ;;  %v1408_v59 = vpop.f32.mrb[51].mxu1  ;;  %v1213_v56 = vpop.permute.xlu1 %1212 }
 0x2e7   : > { %v1465_v14 = vmax.f32 %v1407_v36, 0.0 }
 0x2e8   : > { %v1411_v5 = vpop.f32.mrb[52].mxu1 }
 0x2e9   : > { %1498 = vst.msk [vmem:[#allocation2 + $0xc8] sm:$0xff] %vm1472_vm0, %v1465_v14  ;;  %v1412_v13 = vadd.f32 %v1411_v5, %v1188_v16  ;;  %v1413_v15 = vpop.f32.mrb[53].mxu1 }
 0x2eb   : > { %v1466_v49 = vmax.f32 %v1412_v13, 0.0 }
 0x2ec   : > { %v1416_v42 = vpop.f32.mrb[54].mxu1 }
 0x2ed   : > { %1499 = vst.msk [vmem:[#allocation2 + $0xd0] sm:$0xff] %vm1472_vm0, %v1466_v49  ;;  %v1417_v10 = vadd.f32 %v1416_v42, %v1193_v9  ;;  %v1418_v54 = vpop.f32.mrb[55].mxu1 }
 0x2ef   : > { %v1467_v48 = vmax.f32 %v1417_v10, 0.0 }
 0x2f0   : > { %v1421_v20 = vpop.f32.mrb[56].mxu1 }
 0x2f1   : > { %1500 = vst.msk [vmem:[#allocation2 + $0xd8] sm:$0xff] %vm1472_vm0, %v1467_v48  ;;  %v1422_v38 = vadd.f32 %v1421_v20, %v1198_v29  ;;  %v1423_v39 = vpop.f32.mrb[57].mxu1 }
 0x2f3   : > { %v1468_v51 = vmax.f32 %v1422_v38, 0.0 }
 0x2f4   : > { %v1426_v2 = vpop.f32.mrb[58].mxu1 }
 0x2f5   : > { %1501 = vst.msk [vmem:[#allocation2 + $0xe0] sm:$0xff] %vm1472_vm0, %v1468_v51  ;;  %v1427_v7 = vadd.f32 %v1426_v2, %v1203_v23  ;;  %v1428_v6 = vpop.f32.mrb[59].mxu1 }
 0x2f7   : > { %v1469_v62 = vmax.f32 %v1427_v7, 0.0 }
 0x2f8   : > { %v1431_v1 = vpop.f32.mrb[60].mxu1 }
 0x2f9   : > { %1502 = vst.msk [vmem:[#allocation2 + $0xe8] sm:$0xff] %vm1472_vm0, %v1469_v62  ;;  %v1432_v24 = vadd.f32 %v1431_v1, %v1208_v47  ;;  %v1433_v44 = vpop.f32.mrb[61].mxu1  ;;  %v2564_v1 = vld [vmem:[#allocation2 + $0x8] sm:$0xff] }
 0x2fa   : > { %v2737_v44 = vld [vmem:[#allocation2 + $0x20] sm:$0xff] }
 0x2fb   : > { %v1470_v12 = vmax.f32 %v1432_v24, 0.0 }
 0x2fc   : > { %v1436_v31 = vpop.f32.mrb[62].mxu1 }
 0x2fd   : > { %1503 = vst.msk [vmem:[#allocation2 + $0xf0] sm:$0xff] %vm1472_vm0, %v1470_v12  ;;  %v1437_v16 = vadd.f32 %v1436_v31, %v1213_v56  ;;  %v1438_v33 = vpop.f32.mrb[63].mxu1 }
 0x2ff   : > { %v1471_v36 = vmax.f32 %v1437_v16, 0.0 }
 0x300   : > { %v2340_v59 = vpop.f32.mrb[64].mxu1 }
 0x301   : > { %1504 = vst.msk [vmem:[#allocation2 + $0xf8] sm:$0xff] %vm1472_vm0, %v1471_v36  ;;  %v2341_v14 = vadd.f32 %v2340_v59, %v6989_v57  ;;  %v2342_v9 = vpop.f32.mrb[65].mxu1 }
 0x302   : > { %v2651_v9 = vld [vmem:[#allocation2 + $0x18] sm:$0xff] }
 0x303   : > { %v2499_v5 = vmax.f32 %v2341_v14, 0.0 }
 0x304   : > { %v2345_v13 = vpop.f32.mrb[66].mxu1 }
 0x305   : > { %2531 = vst.msk [vmem:[#allocation3] sm:$0xff] %vm1472_vm0, %v2499_v5  ;;  %v2346_v15 = vadd.f32 %v2345_v13, %v6997_v8  ;;  %v2347_v49 = vpop.f32.mrb[67].mxu1  ;;  %v2824_v13 = vld [vmem:[#allocation2 + $0x30] sm:$0xff] }
 0x307   : > { %v2500_v42 = vmax.f32 %v2346_v15, 0.0 }
 0x308   : > { %v2350_v10 = vpop.f32.mrb[68].mxu1 }
 0x309   : > { %2532 = vst.msk [vmem:[#allocation3 + $0x8] sm:$0xff] %vm1472_vm0, %v2500_v42  ;;  %v2351_v54 = vadd.f32 %v2350_v10, %v6999_v35  ;;  %v2352_v48 = vpop.f32.mrb[69].mxu1 }
 0x30b   : > { %v2501_v29 = vmax.f32 %v2351_v54, 0.0 }
 0x30c   : > { %v2355_v20 = vpop.f32.mrb[70].mxu1  ;;  %v2565_v23 = vld [vmem:[#allocation3] sm:$0xff] }
 0x30d   : > { %2533 = vst.msk [vmem:[#allocation3 + $0x10] sm:$0xff] %vm1472_vm0, %v2501_v29  ;;  %v2356_v57 = vadd.f32 %v2355_v20, %v7007_v17  ;;  %v2357_v38 = vpop.f32.mrb[71].mxu1 }
 0x30f   : > { %v2502_v39 = vmax.f32 %v2356_v57, 0.0  ;;  %v2738_v57 = vld [vmem:[#allocation2 + $0x28] sm:$0xff] }
 0x310   : > { %v2360_v51 = vpop.f32.mrb[72].mxu1  ;;  %v2566_v2 = vld [vmem:[#allocation3 + $0x8] sm:$0xff] }
 0x311   : > { %2534 = vst.msk [vmem:[#allocation3 + $0x18] sm:$0xff] %vm1472_vm0, %v2502_v39  ;;  %v2361_v8 = vadd.f32 %v2360_v51, %v7025_v26  ;;  %v2362_v7 = vpop.f32.mrb[73].mxu1  ;;  %v5289_v6 = vpack.c.bf16 %v2566_v2, %v2565_v23  ;;  %v2911_v39 = vld [vmem:[#allocation2 + $0x40] sm:$0xff] }
 0x313   : > { %v2503_v62 = vmax.f32 %v2361_v8, 0.0  ;;  %5290 = vmatprep.subr.bf16.mxu0 %v5289_v6 }
 0x314   : > { %v2365_v35 = vpop.f32.mrb[74].mxu1  ;;  %5292 = vmatpush3.bf16.msra.mxu0 %v5289_v6  ;;  %v2652_v26 = vld [vmem:[#allocation3 + $0x10] sm:$0xff] }
 0x315   : > { %2535 = vst.msk [vmem:[#allocation3 + $0x20] sm:$0xff] %vm1472_vm0, %v2503_v62  ;;  %v2366_v47 = vadd.f32 %v2365_v35, %v7033_v60  ;;  %v2367_v17 = vpop.f32.mrb[75].mxu1 }
 0x317   : > { %v2504_v24 = vmax.f32 %v2366_v47, 0.0  ;;  %4990 = vmatmul.mubr.msk.f32.vlgmr.msra.gmra.mrb[128].mxu0 %vm1472_vm0, %v2564_v1  ;;  %v2825_v47 = vld [vmem:[#allocation2 + $0x38] sm:$0xff]  ;;  %v2998_v1 = vld [vmem:[#allocation2 + $0x50] sm:$0xff] }
 0x318   : > { %v2370_v12 = vpop.f32.mrb[76].mxu1  ;;  %5003 = vmatprep.mubr.msk.f32.mxu0 %vm1472_vm0, %v2737_v44  ;;  %v2653_v56 = vld [vmem:[#allocation3 + $0x18] sm:$0xff] }
 0x319   : > { %2536 = vst.msk [vmem:[#allocation3 + $0x28] sm:$0xff] %vm1472_vm0, %v2504_v24  ;;  %v2371_v31 = vadd.f32 %v2370_v12, %v7051_v4  ;;  %v2372_v16 = vpop.f32.mrb[77].mxu1  ;;  %v5293_v33 = vpack.c.bf16 %v2653_v56, %v2652_v26 }
 0x31b   : > { %v2505_v36 = vmax.f32 %v2371_v31, 0.0  ;;  %5294 = vmatprep.subr.bf16.mxu1 %v5293_v33 }
 0x31c   : > { %v2375_v60 = vpop.f32.mrb[78].mxu1  ;;  %5296 = vmatpush3.bf16.msra.mxu1 %v5293_v33  ;;  %v2739_v4 = vld [vmem:[#allocation3 + $0x20] sm:$0xff] }
 0x31d   : > { %2537 = vst.msk [vmem:[#allocation3 + $0x30] sm:$0xff] %vm1472_vm0, %v2505_v36  ;;  %v2376_v59 = vadd.f32 %v2375_v60, %v7059_v19  ;;  %v2377_v14 = vpop.f32.mrb[79].mxu1  ;;  %v2912_v36 = vld [vmem:[#allocation2 + $0x48] sm:$0xff] }
 0x31f   : > { %v2506_v5 = vmax.f32 %v2376_v59, 0.0  ;;  %4997 = vmatmul.mubr.msk.f32.vlgmr.msra.gmra.mrb[128].mxu1 %vm1472_vm0, %v2651_v9  ;;  %v3085_v59 = vld [vmem:[#allocation2 + $0x60] sm:$0xff] }
 0x320   : > { %v2380_v15 = vpop.f32.mrb[80].mxu1  ;;  %5010 = vmatprep.mubr.msk.f32.mxu1 %vm1472_vm0, %v2824_v13  ;;  %v2740_v49 = vld [vmem:[#allocation3 + $0x28] sm:$0xff] }
 0x321   : > { %2538 = vst.msk [vmem:[#allocation3 + $0x38] sm:$0xff] %vm1472_vm0, %v2506_v5  ;;  %v2381_v42 = vadd.f32 %v2380_v15, %v7077_v63  ;;  %v2382_v10 = vpop.f32.mrb[81].mxu1  ;;  %v5297_v54 = vpack.c.bf16 %v2740_v49, %v2739_v4 }
 0x322   : > { %v2999_v10 = vld [vmem:[#allocation2 + $0x58] sm:$0xff] }
 0x323   : > { %v2507_v48 = vmax.f32 %v2381_v42, 0.0  ;;  %5298 = vmatprep.subr.bf16.mxu0 %v5297_v54 }
 0x324   : > { %v2385_v19 = vpop.f32.mrb[82].mxu1  ;;  %5300 = vmatpush3.bf16.msra.mxu0 %v5297_v54  ;;  %v2826_v63 = vld [vmem:[#allocation3 + $0x30] sm:$0xff] }
 0x325   : > { %2539 = vst.msk [vmem:[#allocation3 + $0x40] sm:$0xff] %vm1472_vm0, %v2507_v48  ;;  %v2386_v29 = vadd.f32 %v2385_v19, %v7085_v53  ;;  %v2387_v20 = vpop.f32.mrb[83].mxu1  ;;  %v3172_v48 = vld [vmem:[#allocation2 + $0x70] sm:$0xff] }
 0x327   : > { %v2508_v38 = vmax.f32 %v2386_v29, 0.0  ;;  %5004 = vmatmul.mubr.msk.f32.vlgmr.msra.gmra.mrb[130].mxu0 %vm1472_vm0, %v2738_v57 }
 0x328   : > { %v2390_v51 = vpop.f32.mrb[84].mxu1  ;;  %5017 = vmatprep.mubr.msk.f32.mxu0 %vm1472_vm0, %v2911_v39  ;;  %v2827_v23 = vld [vmem:[#allocation3 + $0x38] sm:$0xff] }
 0x329   : > { %2540 = vst.msk [vmem:[#allocation3 + $0x48] sm:$0xff] %vm1472_vm0, %v2508_v38  ;;  %v2391_v2 = vadd.f32 %v2390_v51, %v7103_v40  ;;  %v2392_v8 = vpop.f32.mrb[85].mxu1  ;;  %v5301_v7 = vpack.c.bf16 %v2827_v23, %v2826_v63  ;;  %v3086_v23 = vld [vmem:[#allocation2 + $0x68] sm:$0xff] }
 0x32a   : > { %v3259_v8 = vld [vmem:[#allocation2 + $0x80] sm:$0xff] }
 0x32b   : > { %v2509_v6 = vmax.f32 %v2391_v2, 0.0  ;;  %5302 = vmatprep.subr.bf16.mxu1 %v5301_v7 }
 0x32c   : > { %v2395_v53 = vpop.f32.mrb[86].mxu1  ;;  %5304 = vmatpush3.bf16.msra.mxu1 %v5301_v7  ;;  %v2913_v40 = vld [vmem:[#allocation3 + $0x40] sm:$0xff] }
 0x32d   : > { %2541 = vst.msk [vmem:[#allocation3 + $0x50] sm:$0xff] %vm1472_vm0, %v2509_v6  ;;  %v2396_v62 = vadd.f32 %v2395_v53, %v7111_v21  ;;  %v2397_v35 = vpop.f32.mrb[87].mxu1 }
 0x32f   : > { %v2510_v17 = vmax.f32 %v2396_v62, 0.0  ;;  %5011 = vmatmul.mubr.msk.f32.vlgmr.msra.gmra.mrb[130].mxu1 %vm1472_vm0, %v2825_v47 }
 0x330   : > { %v2400_v24 = vpop.f32.mrb[88].mxu1  ;;  %5024 = vmatprep.mubr.msk.f32.mxu1 %vm1472_vm0, %v2998_v1  ;;  %v2914_v44 = vld [vmem:[#allocation3 + $0x48] sm:$0xff] }
 0x331   : > { %2542 = vst.msk [vmem:[#allocation3 + $0x58] sm:$0xff] %vm1472_vm0, %v2510_v17  ;;  %v2401_v12 = vadd.f32 %v2400_v24, %v7129_v27  ;;  %v2402_v26 = vpop.f32.mrb[89].mxu1  ;;  %v5305_v56 = vpack.c.bf16 %v2914_v44, %v2913_v40  ;;  %v3173_v24 = vld [vmem:[#allocation2 + $0x78] sm:$0xff]  ;;  %v3346_v44 = vld [vmem:[#allocation2 + $0x90] sm:$0xff] }
 0x333   : > { %v2511_v31 = vmax.f32 %v2401_v12, 0.0  ;;  %5306 = vmatprep.subr.bf16.mxu0 %v5305_v56 }
 0x334   : > { %v2405_v21 = vpop.f32.mrb[90].mxu1  ;;  %5308 = vmatpush3.bf16.msra.mxu0 %v5305_v56  ;;  %v3000_v27 = vld [vmem:[#allocation3 + $0x50] sm:$0xff] }
 0x335   : > { %2543 = vst.msk [vmem:[#allocation3 + $0x60] sm:$0xff] %vm1472_vm0, %v2511_v31  ;;  %v2406_v16 = vadd.f32 %v2405_v21, %v7138_v3  ;;  %v2407_v33 = vpop.f32.mrb[91].mxu1 }
 0x337   : > { %v2512_v60 = vmax.f32 %v2406_v16, 0.0  ;;  %5018 = vmatmul.mubr.msk.f32.vlgmr.msra.gmra.mrb[132].mxu0 %vm1472_vm0, %v2912_v36 }
 0x338   : > { %v2410_v14 = vpop.f32.mrb[92].mxu1  ;;  %5031 = vmatprep.mubr.msk.f32.mxu0 %vm1472_vm0, %v3085_v59  ;;  %v3001_v9 = vld [vmem:[#allocation3 + $0x58] sm:$0xff] }
 0x339   : > { %2544 = vst.msk [vmem:[#allocation3 + $0x68] sm:$0xff] %vm1472_vm0, %v2512_v60  ;;  %v2411_v5 = vadd.f32 %v2410_v14, %v7160_v46  ;;  %v2412_v13 = vpop.f32.mrb[93].mxu1  ;;  %v5309_v15 = vpack.c.bf16 %v3001_v9, %v3000_v27  ;;  %v3260_v60 = vld [vmem:[#allocation2 + $0x88] sm:$0xff]  ;;  %v3433_v14 = vld [vmem:[#allocation2 + $0xa0] sm:$0xff] }
 0x33b   : > { %v2513_v4 = vmax.f32 %v2411_v5, 0.0  ;;  %5310 = vmatprep.subr.bf16.mxu1 %v5309_v15 }
 0x33c   : > { %v2415_v3 = vpop.f32.mrb[94].mxu1  ;;  %5312 = vmatpush3.bf16.msra.mxu1 %v5309_v15  ;;  %v3087_v46 = vld [vmem:[#allocation3 + $0x60] sm:$0xff] }
 0x33d   : > { %2545 = vst.msk [vmem:[#allocation3 + $0x70] sm:$0xff] %vm1472_vm0, %v2513_v4  ;;  %v2416_v49 = vadd.f32 %v2415_v3, %v7171_v34  ;;  %v2417_v42 = vpop.f32.mrb[95].mxu1 }
 0x33e   : > { %v3347_v42 = vld [vmem:[#allocation2 + $0x98] sm:$0xff] }
 0x33f   : > { %v2514_v54 = vmax.f32 %v2416_v49, 0.0  ;;  %5025 = vmatmul.mubr.msk.f32.vlgmr.msra.gmra.mrb[132].mxu1 %vm1472_vm0, %v2999_v10 }
 0x340   : > { %v2420_v19 = vpop.f32.mrb[96].mxu1  ;;  %5038 = vmatprep.mubr.msk.f32.mxu1 %vm1472_vm0, %v3172_v48  ;;  %v3088_v29 = vld [vmem:[#allocation3 + $0x68] sm:$0xff] }
 0x341   : > { %2546 = vst.msk [vmem:[#allocation3 + $0x78] sm:$0xff] %vm1472_vm0, %v2514_v54  ;;  %v2421_v20 = vadd.f32 %v2420_v19, %v7193_v11  ;;  %v2422_v57 = vpop.f32.mrb[97].mxu1  ;;  %v5313_v38 = vpack.c.bf16 %v3088_v29, %v3087_v46  ;;  %v3520_v54 = vld [vmem:[#allocation2 + $0xb0] sm:$0xff] }
 0x343   : > { %v2515_v39 = vmax.f32 %v2421_v20, 0.0  ;;  %5314 = vmatprep.subr.bf16.mxu0 %v5313_v38 }
 0x344   : > { %v2425_v34 = vpop.f32.mrb[98].mxu1  ;;  %5316 = vmatpush3.bf16.msra.mxu0 %v5313_v38  ;;  %v3174_v11 = vld [vmem:[#allocation3 + $0x70] sm:$0xff] }
 0x345   : > { %2547 = vst.msk [vmem:[#allocation3 + $0x80] sm:$0xff] %vm1472_vm0, %v2515_v39  ;;  %v2426_v51 = vadd.f32 %v2425_v34, %v7203_v50  ;;  %v2427_v63 = vpop.f32.mrb[99].mxu1  ;;  %v3434_v34 = vld [vmem:[#allocation2 + $0xa8] sm:$0xff] }
 0x346   : > { %v3607_v63 = vld [vmem:[#allocation2 + $0xc0] sm:$0xff] }
 0x347   : > { %v2516_v2 = vmax.f32 %v2426_v51, 0.0  ;;  %5032 = vmatmul.mubr.msk.f32.vlgmr.msra.gmra.mrb[134].mxu0 %vm1472_vm0, %v3086_v23 }
 0x348   : > { %v2430_v7 = vpop.f32.mrb[100].mxu1  ;;  %5045 = vmatprep.mubr.msk.f32.mxu0 %vm1472_vm0, %v3259_v8  ;;  %v3175_v6 = vld [vmem:[#allocation3 + $0x78] sm:$0xff] }
 0x349   : > { %2548 = vst.msk [vmem:[#allocation3 + $0x88] sm:$0xff] %vm1472_vm0, %v2516_v2  ;;  %v2431_v53 = vadd.f32 %v2430_v7, %v7221_v58  ;;  %v2432_v62 = vpop.f32.mrb[101].mxu1  ;;  %v5317_v35 = vpack.c.bf16 %v3175_v6, %v3174_v11 }
 0x34b   : > { %v2517_v47 = vmax.f32 %v2431_v53, 0.0  ;;  %5318 = vmatprep.subr.bf16.mxu1 %v5317_v35 }
 0x34c   : > { %v2435_v50 = vpop.f32.mrb[102].mxu1  ;;  %5320 = vmatpush3.bf16.msra.mxu1 %v5317_v35  ;;  %v3261_v58 = vld [vmem:[#allocation3 + $0x80] sm:$0xff]  ;;  %v3521_v35 = vld [vmem:[#allocation2 + $0xb8] sm:$0xff] }
 0x34d   : > { %2549 = vst.msk [vmem:[#allocation3 + $0x90] sm:$0xff] %vm1472_vm0, %v2517_v47  ;;  %v2436_v17 = vadd.f32 %v2435_v50, %v7231_v61  ;;  %v2437_v1 = vpop.f32.mrb[103].mxu1  ;;  %v3694_v50 = vld [vmem:[#allocation2 + $0xd0] sm:$0xff] }
 0x34f   : > { %v2518_v40 = vmax.f32 %v2436_v17, 0.0  ;;  %5039 = vmatmul.mubr.msk.f32.vlgmr.msra.gmra.mrb[134].mxu1 %vm1472_vm0, %v3173_v24 }
 0x350   : > { %v2440_v12 = vpop.f32.mrb[104].mxu1  ;;  %5052 = vmatprep.mubr.msk.f32.mxu1 %vm1472_vm0, %v3346_v44  ;;  %v3262_v26 = vld [vmem:[#allocation3 + $0x88] sm:$0xff] }
 0x351   : > { %2550 = vst.msk [vmem:[#allocation3 + $0x98] sm:$0xff] %vm1472_vm0, %v2518_v40  ;;  %v2441_v56 = vadd.f32 %v2440_v12, %v7241_v45  ;;  %v2442_v31 = vpop.f32.mrb[105].mxu1  ;;  %v5321_v21 = vpack.c.bf16 %v3262_v26, %v3261_v58 }
 0x353   : > { %v2519_v16 = vmax.f32 %v2441_v56, 0.0  ;;  %5322 = vmatprep.subr.bf16.mxu0 %v5321_v21  ;;  %v3608_v56 = vld [vmem:[#allocation2 + $0xc8] sm:$0xff] }
 0x354   : > { %v2445_v61 = vpop.f32.mrb[106].mxu1  ;;  %5324 = vmatpush3.bf16.msra.mxu0 %v5321_v21  ;;  %v3348_v45 = vld [vmem:[#allocation3 + $0x90] sm:$0xff]  ;;  %v3781_v21 = vld [vmem:[#allocation2 + $0xe0] sm:$0xff] }
 0x355   : > { %2551 = vst.msk [vmem:[#allocation3 + $0xa0] sm:$0xff] %vm1472_vm0, %v2519_v16  ;;  %v2446_v33 = vadd.f32 %v2445_v61, %v7245_v30  ;;  %v2447_v36 = vpop.f32.mrb[107].mxu1 }
 0x357   : > { %v2520_v59 = vmax.f32 %v2446_v33, 0.0  ;;  %5046 = vmatmul.mubr.msk.f32.vlgmr.msra.gmra.mrb[136].mxu0 %vm1472_vm0, %v3260_v60 }
 0x358   : > { %v2450_v27 = vpop.f32.mrb[108].mxu1  ;;  %5059 = vmatprep.mubr.msk.f32.mxu0 %vm1472_vm0, %v3433_v14  ;;  %v3349_v9 = vld [vmem:[#allocation3 + $0x98] sm:$0xff] }
 0x359   : > { %2552 = vst.msk [vmem:[#allocation3 + $0xa8] sm:$0xff] %vm1472_vm0, %v2520_v59  ;;  %v2451_v5 = vadd.f32 %v2450_v27, %v7250_v0  ;;  %v2452_v13 = vpop.f32.mrb[109].mxu1  ;;  %v5325_v15 = vpack.c.bf16 %v3349_v9, %v3348_v45  ;;  %v3695_v45 = vld [vmem:[#allocation2 + $0xd8] sm:$0xff] }
 0x35b   : > { %v2521_v4 = vmax.f32 %v2451_v5, 0.0  ;;  %5326 = vmatprep.subr.bf16.mxu1 %v5325_v15  ;;  %v3868_v5 = vld [vmem:[#allocation2 + $0xf0] sm:$0xff] }
 0x35c   : > { %v2455_v30 = vpop.f32.mrb[110].mxu1  ;;  %5328 = vmatpush3.bf16.msra.mxu1 %v5325_v15  ;;  %v3435_v0 = vld [vmem:[#allocation3 + $0xa0] sm:$0xff] }
 0x35d   : > { %2553 = vst.msk [vmem:[#allocation3 + $0xb0] sm:$0xff] %vm1472_vm0, %v2521_v4  ;;  %v2456_v3 = vadd.f32 %v2455_v30, %v7253_v22  ;;  %v2457_v49 = vpop.f32.mrb[111].mxu1  ;;  %v3782_v4 = vld [vmem:[#allocation2 + $0xe8] sm:$0xff] }
 0x35e   : > { %v3869_v49 = vld [vmem:[#allocation2 + $0xf8] sm:$0xff] }
 0x35f   : > { %v2522_v10 = vmax.f32 %v2456_v3, 0.0  ;;  %5053 = vmatmul.mubr.msk.f32.vlgmr.msra.gmra.mrb[136].mxu1 %vm1472_vm0, %v3347_v42  ;;  %v8076_v42 = vld [vmem:[#allocation5_spill] sm:$0xff] }
 0x360   : > { %v2460_v48 = vpop.f32.mrb[112].mxu1  ;;  %5066 = vmatprep.mubr.msk.f32.mxu1 %vm1472_vm0, %v3520_v54  ;;  %v3436_v19 = vld [vmem:[#allocation3 + $0xa8] sm:$0xff]  ;;  %v8078_v54 = vld [vmem:[#allocation7_spill] sm:$0xff] }
 0x361   : > { %2554 = vst.msk [vmem:[#allocation3 + $0xb8] sm:$0xff] %vm1472_vm0, %v2522_v10  ;;  %v2461_v46 = vadd.f32 %v2460_v48, %v7257_v32  ;;  %v2462_v29 = vpop.f32.mrb[113].mxu1  ;;  %v5329_v20 = vpack.c.bf16 %v3436_v19, %v3435_v0  ;;  %v8077_v10 = vld [vmem:[#allocation6_spill] sm:$0xff]  ;;  %v8079_v48 = vld [vmem:[#allocation8_spill] sm:$0xff]  ;;  %v8080_v0 = vld [vmem:[#allocation9_spill] sm:$0xff] }
 0x362   : > { %v8081_v19 = vld [vmem:[#allocation10_spill] sm:$0xff]  ;;  %v8083_v29 = vld [vmem:[#allocation12_spill] sm:$0xff] }
 0x363   : > { %v2523_v57 = vmax.f32 %v2461_v46, 0.0  ;;  %5330 = vmatprep.subr.bf16.mxu0 %v5329_v20  ;;  %v8082_v46 = vld [vmem:[#allocation11_spill] sm:$0xff] }
 0x364   : > { %v2465_v22 = vpop.f32.mrb[114].mxu1  ;;  %5332 = vmatpush3.bf16.msra.mxu0 %v5329_v20  ;;  %v3522_v32 = vld [vmem:[#allocation3 + $0xb0] sm:$0xff]  ;;  %v8084_v20 = vld [vmem:[#allocation13_spill] sm:$0xff] }
 0x365   : > { %2555 = vst.msk [vmem:[#allocation3 + $0xc0] sm:$0xff] %vm1472_vm0, %v2523_v57  ;;  %v2466_v38 = vadd.f32 %v2465_v22, %v7260_v18  ;;  %v2467_v39 = vpop.f32.mrb[115].mxu1  ;;  %v8085_v57 = vld [vmem:[#allocation14_spill] sm:$0xff]  ;;  %v8086_v22 = vld [vmem:[#allocation15_spill] sm:$0xff] }
 0x366   : > { %v8088_v39 = vld [vmem:[#allocation17_spill] sm:$0xff] }
 0x367   : > { %v2524_v51 = vmax.f32 %v2466_v38, 0.0  ;;  %5060 = vmatmul.mubr.msk.f32.vlgmr.msra.gmra.mrb[138].mxu0 %vm1472_vm0, %v3434_v34  ;;  %v8087_v38 = vld [vmem:[#allocation16_spill] sm:$0xff]  ;;  %v8089_v34 = vld [vmem:[#allocation18_spill] sm:$0xff] }
 0x368   : > { %v2470_v23 = vpop.f32.mrb[116].mxu1  ;;  %5073 = vmatprep.mubr.msk.f32.mxu0 %vm1472_vm0, %v3607_v63  ;;  %v3523_v2 = vld [vmem:[#allocation3 + $0xb8] sm:$0xff] }
 0x369   : > { %2556 = vst.msk [vmem:[#allocation3 + $0xc8] sm:$0xff] %vm1472_vm0, %v2524_v51  ;;  %v2471_v8 = vadd.f32 %v2470_v23, %v7264_v52  ;;  %v2472_v7 = vpop.f32.mrb[117].mxu1  ;;  %v5333_v11 = vpack.c.bf16 %v3523_v2, %v3522_v32  ;;  %v8090_v51 = vld [vmem:[#allocation19_spill] sm:$0xff]  ;;  %v8091_v63 = vld [vmem:[#allocation20_spill] sm:$0xff]  ;;  %v4020_v2 = vld [vmem:[%s8026_s10 + $0x8] sm:$0xff] }
 0x36a   : > { %v3955_v7 = vld [vmem:[%s8025_s9] sm:$0xff] }
 0x36b   : > { %v2525_v6 = vmax.f32 %v2471_v8, 0.0  ;;  %5334 = vmatprep.subr.bf16.mxu1 %v5333_v11  ;;  %v3956_v8 = vld [vmem:[%s8025_s9 + $0x8] sm:$0xff] }
 0x36c   : > { %v2475_v18 = vpop.f32.mrb[118].mxu1  ;;  %5336 = vmatpush3.bf16.msra.mxu1 %v5333_v11  ;;  %v3609_v52 = vld [vmem:[#allocation3 + $0xc0] sm:$0xff] }
 0x36d   : > { %2557 = vst.msk [vmem:[#allocation3 + $0xd0] sm:$0xff] %vm1472_vm0, %v2525_v6  ;;  %v2476_v53 = vadd.f32 %v2475_v18, %v7267_v37  ;;  %v2477_v62 = vpop.f32.mrb[119].mxu1  ;;  %v3958_v18 = vld [vmem:[%s8025_s9 + $0x18] sm:$0xff] }
 0x36f   : > { %v2526_v47 = vmax.f32 %v2476_v53, 0.0  ;;  %5067 = vmatmul.mubr.msk.f32.vlgmr.msra.gmra.mrb[138].mxu1 %vm1472_vm0, %v3521_v35 }
 0x370   : > { %v2480_v17 = vpop.f32.mrb[120].mxu1  ;;  %5080 = vmatprep.mubr.msk.f32.mxu1 %vm1472_vm0, %v3694_v50  ;;  %v3610_v1 = vld [vmem:[#allocation3 + $0xc8] sm:$0xff] }
 0x371   : > { %2558 = vst.msk [vmem:[#allocation3 + $0xd8] sm:$0xff] %vm1472_vm0, %v2526_v47  ;;  %v2481_v24 = vadd.f32 %v2480_v17, %v7271_v41  ;;  %v2482_v40 = vpop.f32.mrb[121].mxu1  ;;  %v5337_v44 = vpack.c.bf16 %v3610_v1, %v3609_v52  ;;  %v3957_v47 = vld [vmem:[%s8025_s9 + $0x10] sm:$0xff]  ;;  %v3960_v50 = vld [vmem:[%s8025_s9 + $0x28] sm:$0xff]  ;;  %v3959_v17 = vld [vmem:[%s8025_s9 + $0x20] sm:$0xff] }
 0x373   : > { %v2527_v12 = vmax.f32 %v2481_v24, 0.0  ;;  %5338 = vmatprep.subr.bf16.mxu0 %v5337_v44  ;;  %v3962_v24 = vld [vmem:[%s8025_s9 + $0x38] sm:$0xff] }
 0x374   : > { %v2485_v37 = vpop.f32.mrb[122].mxu1  ;;  %5340 = vmatpush3.bf16.msra.mxu0 %v5337_v44  ;;  %v3696_v41 = vld [vmem:[#allocation3 + $0xd0] sm:$0xff] }
 0x375   : > { %2559 = vst.msk [vmem:[#allocation3 + $0xe0] sm:$0xff] %vm1472_vm0, %v2527_v12  ;;  %v2486_v58 = vadd.f32 %v2485_v37, %v7274_v43  ;;  %v2487_v26 = vpop.f32.mrb[123].mxu1  ;;  %v3961_v37 = vld [vmem:[%s8025_s9 + $0x30] sm:$0xff] }
 0x376   : > { %v3963_v26 = vld [vmem:[%s8025_s9 + $0x40] sm:$0xff] }
 0x377   : > { %v2528_v31 = vmax.f32 %v2486_v58, 0.0  ;;  %5074 = vmatmul.mubr.msk.f32.vlgmr.msra.gmra.mrb[140].mxu0 %vm1472_vm0, %v3608_v56  ;;  %v3964_v58 = vld [vmem:[%s8025_s9 + $0x48] sm:$0xff] }
 0x378   : > { %v2490_v16 = vpop.f32.mrb[124].mxu1  ;;  %5087 = vmatprep.mubr.msk.f32.mxu0 %vm1472_vm0, %v3781_v21  ;;  %v3697_v61 = vld [vmem:[#allocation3 + $0xd8] sm:$0xff] }
 0x379   : > { %2560 = vst.msk [vmem:[#allocation3 + $0xe8] sm:$0xff] %vm1472_vm0, %v2528_v31  ;;  %v2491_v33 = vadd.f32 %v2490_v16, %v7278_v25  ;;  %v2492_v36 = vpop.f32.mrb[125].mxu1  ;;  %v5341_v60 = vpack.c.bf16 %v3697_v61, %v3696_v41  ;;  %v3966_v21 = vld [vmem:[%s8025_s9 + $0x58] sm:$0xff] }
 0x37a   : > { %v3968_v36 = vld [vmem:[%s8025_s9 + $0x68] sm:$0xff] }
 0x37b   : > { %v2529_v59 = vmax.f32 %v2491_v33, 0.0  ;;  %5342 = vmatprep.subr.bf16.mxu1 %v5341_v60  ;;  %v3965_v33 = vld [vmem:[%s8025_s9 + $0x50] sm:$0xff] }
 0x37c   : > { %v2495_v43 = vpop.f32.mrb[126].mxu1  ;;  %5344 = vmatpush3.bf16.msra.mxu1 %v5341_v60  ;;  %v3783_v13 = vld [vmem:[#allocation3 + $0xe0] sm:$0xff] }
 0x37d   : > { %2561 = vst.msk [vmem:[#allocation3 + $0xf0] sm:$0xff] %vm1472_vm0, %v2529_v59  ;;  %v2496_v14 = vadd.f32 %v2495_v43, %v7281_v28  ;;  %v2497_v27 = vpop.f32.mrb[127].mxu1  ;;  %v3967_v60 = vld [vmem:[%s8025_s9 + $0x60] sm:$0xff] }
 0x37f   : > { %v2530_v9 = vmax.f32 %v2496_v14, 0.0  ;;  %5081 = vmatmul.mubr.msk.f32.vlgmr.msra.gmra.mrb[140].mxu1 %vm1472_vm0, %v3695_v45  ;;  %v3970_v14 = vld [vmem:[%s8025_s9 + $0x78] sm:$0xff] }
 0x380   : > { %5094 = vmatprep.mubr.msk.f32.mxu1 %vm1472_vm0, %v3868_v5  ;;  %v3784_v25 = vld [vmem:[#allocation3 + $0xe8] sm:$0xff]  ;;  %v3969_v5 = vld [vmem:[%s8025_s9 + $0x70] sm:$0xff] }
 0x381   : > { %2562 = vst.msk [vmem:[#allocation3 + $0xf8] sm:$0xff] %vm1472_vm0, %v2530_v9  ;;  %v5345_v15 = vpack.c.bf16 %v3784_v25, %v3783_v13  ;;  %v3972_v13 = vld [vmem:[%s8025_s9 + $0x88] sm:$0xff]  ;;  %v3971_v25 = vld [vmem:[%s8025_s9 + $0x80] sm:$0xff] }
 0x383   : > { %5346 = vmatprep.subr.bf16.mxu0 %v5345_v15 }
 0x384   : > { %5348 = vmatpush3.bf16.msra.mxu0 %v5345_v15  ;;  %v3870_v28 = vld [vmem:[#allocation3 + $0xf0] sm:$0xff] }
 0x385   : > { %5353 = vmatprep.subr.bf16.mxu0 %v8064_v55 }
 0x387   : > { %5088 = vmatmul.mubr.msk.f32.vlgmr.msra.gmra.mrb[142].mxu0 %vm1472_vm0, %v3782_v4 }
 0x388   : > { %v3871_v30 = vld [vmem:[#allocation3 + $0xf8] sm:$0xff]  ;;  %4179 = vmatprep.mubr.f32.mxu0 %v4020_v2  ;;  %v3981_v2 = vld [vmem:[%s8025_s9 + $0xd0] sm:$0xff] }
 0x389   : > { %v5349_v3 = vpack.c.bf16 %v3871_v30, %v3870_v28  ;;  %v3974_v28 = vld [vmem:[%s8025_s9 + $0x98] sm:$0xff] }
 0x38b   : > { %5350 = vmatprep.subr.bf16.mxu1 %v5349_v3 }
 0x38c   : > { %5352 = vmatpush3.bf16.msra.mxu1 %v5349_v3 }
 0x38d   : > { %5401 = vmatprep.subr.bf16.mxu1 %v8064_v55 }
 0x38f   : > { %5095 = vmatmul.mubr.msk.f32.vlgmr.msra.gmra.mrb[142].mxu1 %vm1472_vm0, %v3869_v49 }
 0x390   : > { %5403 = vmatpush1.bf16.msra.mxu1 %v8076_v42  ;;  %4404 = vmatprep.mubr.f32.mxu1 %v3956_v8  ;;  %v3973_v42 = vld [vmem:[%s8025_s9 + $0x90] sm:$0xff]  ;;  %v3984_v8 = vld [vmem:[%s8025_s9 + $0xe8] sm:$0xff] }
 0x391   : > { %5404 = vmatprep.subr.bf16.mxu1 %v8064_v55 }
 0x394   : > { %5406 = vmatpush1.bf16.msra.mxu1 %v8077_v10  ;;  %v3976_v10 = vld [vmem:[%s8025_s9 + $0xa8] sm:$0xff] }
 0x395   : > { %5407 = vmatprep.subr.bf16.mxu1 %v8064_v55 }
 0x398   : > { %5409 = vmatpush1.bf16.msra.mxu1 %v8078_v54  ;;  %v3975_v54 = vld [vmem:[%s8025_s9 + $0xa0] sm:$0xff] }
 0x399   : > { %5410 = vmatprep.subr.bf16.mxu1 %v8064_v55 }
 0x39c   : > { %5412 = vmatpush1.bf16.msra.mxu1 %v8079_v48 }
 0x39d   : > { %5413 = vmatprep.subr.bf16.mxu1 %v8064_v55 }
 0x3a0   : > { %5415 = vmatpush1.bf16.msra.mxu1 %v8080_v0 }
 0x3a1   : > { %5416 = vmatprep.subr.bf16.mxu1 %v8064_v55 }
 0x3a4   : > { %5418 = vmatpush1.bf16.msra.mxu1 %v8081_v19  ;;  %v3978_v19 = vld [vmem:[%s8025_s9 + $0xb8] sm:$0xff] }
 0x3a5   : > { %5419 = vmatprep.subr.bf16.mxu1 %v8064_v55 }
 0x3a8   : > { %5421 = vmatpush1.bf16.msra.mxu1 %v8082_v46 }
 0x3a9   : > { %5422 = vmatprep.subr.bf16.mxu1 %v8064_v55 }
 0x3ac   : > { %5424 = vmatpush1.bf16.msra.mxu1 %v8083_v29 }
 0x3ad   : > { %5425 = vmatprep.subr.bf16.mxu1 %v8064_v55 }
 0x3b0   : > { %5427 = vmatpush1.bf16.msra.mxu1 %v8084_v20 }
 0x3b1   : > { %5428 = vmatprep.subr.bf16.mxu1 %v8064_v55 }
 0x3b4   : > { %5430 = vmatpush1.bf16.msra.mxu1 %v8085_v57  ;;  %v3977_v57 = vld [vmem:[%s8025_s9 + $0xb0] sm:$0xff] }
 0x3b5   : > { %5431 = vmatprep.subr.bf16.mxu1 %v8064_v55 }
 0x3b8   : > { %5433 = vmatpush1.bf16.msra.mxu1 %v8086_v22  ;;  %v3980_v22 = vld [vmem:[%s8025_s9 + $0xc8] sm:$0xff] }
 0x3b9   : > { %5434 = vmatprep.subr.bf16.mxu1 %v8064_v55 }
 0x3bc   : > { %5436 = vmatpush1.bf16.msra.mxu1 %v8087_v38  ;;  %v3979_v38 = vld [vmem:[%s8025_s9 + $0xc0] sm:$0xff] }
 0x3bd   : > { %5437 = vmatprep.subr.bf16.mxu1 %v8064_v55 }
 0x3c0   : > { %5439 = vmatpush1.bf16.msra.mxu1 %v8088_v39 }
 0x3c1   : > { %5440 = vmatprep.subr.bf16.mxu1 %v8064_v55 }
 0x3c4   : > { %5442 = vmatpush1.bf16.msra.mxu1 %v8089_v34 }
 0x3c5   : > { %5443 = vmatprep.subr.bf16.mxu1 %v8064_v55 }
 0x3c8   : > { %5445 = vmatpush1.bf16.msra.mxu1 %v8090_v51  ;;  %v3982_v51 = vld [vmem:[%s8025_s9 + $0xd8] sm:$0xff] }
 0x3c9   : > { %5446 = vmatprep.subr.bf16.mxu1 %v8064_v55 }
 0x3cc   : > { %5448 = vmatpush1.bf16.msra.mxu1 %v8091_v63 }
 0x3cf   : > { %4405 = vmatmul.mubr.f32.vlgmr.msra.gmra.mrb[144].mxu1 %v3955_v7  ;;  %v3983_v7 = vld [vmem:[%s8025_s9 + $0xe0] sm:$0xff] }
 0x3d0   : > { %4409 = vmatprep.mubr.f32.mxu1 %v3958_v18  ;;  %v3986_v18 = vld [vmem:[%s8025_s9 + $0xf8] sm:$0xff] }
 0x3d3   : > { %4410 = vmatmul.mubr.f32.gmra.mrb[146].mxu1 %v3957_v47  ;;  %v3985_v47 = vld [vmem:[%s8025_s9 + $0xf0] sm:$0xff] }
 0x3d4   : > { %4414 = vmatprep.mubr.f32.mxu1 %v3960_v50  ;;  %v3988_v50 = vld [vmem:[%s8025_s9 + $0x108] sm:$0xff] }
 0x3d7   : > { %4415 = vmatmul.mubr.f32.gmra.mrb[148].mxu1 %v3959_v17  ;;  %v3987_v17 = vld [vmem:[%s8025_s9 + $0x100] sm:$0xff] }
 0x3d8   : > { %4419 = vmatprep.mubr.f32.mxu1 %v3962_v24  ;;  %v3990_v24 = vld [vmem:[%s8025_s9 + $0x118] sm:$0xff] }
 0x3db   : > { %4420 = vmatmul.mubr.f32.gmra.mrb[150].mxu1 %v3961_v37  ;;  %v3989_v37 = vld [vmem:[%s8025_s9 + $0x110] sm:$0xff] }
 0x3dc   : > { %4424 = vmatprep.mubr.f32.mxu1 %v3964_v58  ;;  %v3992_v58 = vld [vmem:[%s8025_s9 + $0x128] sm:$0xff] }
 0x3df   : > { %4425 = vmatmul.mubr.f32.gmra.mrb[152].mxu1 %v3963_v26  ;;  %v3991_v26 = vld [vmem:[%s8025_s9 + $0x120] sm:$0xff] }
 0x3e0   : > { %4429 = vmatprep.mubr.f32.mxu1 %v3966_v21  ;;  %v3994_v21 = vld [vmem:[%s8025_s9 + $0x138] sm:$0xff] }
 0x3e3   : > { %4430 = vmatmul.mubr.f32.gmra.mrb[154].mxu1 %v3965_v33  ;;  %v3993_v33 = vld [vmem:[%s8025_s9 + $0x130] sm:$0xff] }
 0x3e4   : > { %4434 = vmatprep.mubr.f32.mxu1 %v3968_v36  ;;  %v3996_v36 = vld [vmem:[%s8025_s9 + $0x148] sm:$0xff] }
 0x3e7   : > { %4435 = vmatmul.mubr.f32.gmra.mrb[156].mxu1 %v3967_v60  ;;  %v3995_v60 = vld [vmem:[%s8025_s9 + $0x140] sm:$0xff] }
 0x3e8   : > { %4439 = vmatprep.mubr.f32.mxu1 %v3970_v14  ;;  %v3998_v14 = vld [vmem:[%s8025_s9 + $0x158] sm:$0xff] }
 0x3ea   : > { %v4991_v23 = vpop.f32.mrb[128].mxu0 }
 0x3eb   : > { %2649 = vst.msk [vmem:[#allocation4 + $0x8] sm:$0xff] %vm1472_vm0, %v4991_v23  ;;  %v2639_v32 = vpop.f32.mrb[129].mxu0  ;;  %4440 = vmatmul.mubr.f32.gmra.mrb[158].mxu1 %v3969_v5  ;;  %v3997_v5 = vld [vmem:[%s8025_s9 + $0x150] sm:$0xff] }
 0x3ec   : > { %2648 = vst.msk [vmem:[#allocation4] sm:$0xff] %vm1472_vm0, %v2639_v32  ;;  %4444 = vmatprep.mubr.f32.mxu1 %v3972_v13  ;;  %v4000_v13 = vld [vmem:[%s8025_s9 + $0x168] sm:$0xff] }
 0x3ef   : > { %4445 = vmatmul.mubr.f32.gmra.mrb[160].mxu1 %v3971_v25  ;;  %v3999_v25 = vld [vmem:[%s8025_s9 + $0x160] sm:$0xff] }
 0x3f0   : > { %4449 = vmatprep.mubr.f32.mxu1 %v3974_v28  ;;  %v4002_v28 = vld [vmem:[%s8025_s9 + $0x178] sm:$0xff] }
 0x3f2   : > { %v4998_v11 = vpop.f32.mrb[128].mxu1  ;;  %v4084_v6 = vld [vmem:[#allocation4 + $0x8] sm:$0xff] }
 0x3f3   : > { %2736 = vst.msk [vmem:[#allocation4 + $0x18] sm:$0xff] %vm1472_vm0, %v4998_v11  ;;  %v2726_v53 = vpop.f32.mrb[129].mxu1  ;;  %v4083_v62 = vld [vmem:[#allocation4] sm:$0xff]  ;;  %4450 = vmatmul.mubr.f32.gmra.mrb[162].mxu1 %v3973_v42  ;;  %v4001_v42 = vld [vmem:[%s8025_s9 + $0x170] sm:$0xff] }
 0x3f4   : > { %2735 = vst.msk [vmem:[#allocation4 + $0x10] sm:$0xff] %vm1472_vm0, %v2726_v53  ;;  %v5354_v35 = vpack.c.bf16 %v4084_v6, %v4083_v62  ;;  %4454 = vmatprep.mubr.f32.mxu1 %v3976_v10  ;;  %v4004_v10 = vld [vmem:[%s8025_s9 + $0x188] sm:$0xff] }
 0x3f6   : > { %5355 = vmatpush1.bf16.msra.mxu0 %v5354_v35 }
 0x3f7   : > { %5356 = vmatprep.subr.bf16.mxu0 %v8064_v55  ;;  %4455 = vmatmul.mubr.f32.gmra.mrb[164].mxu1 %v3975_v54  ;;  %v4003_v54 = vld [vmem:[%s8025_s9 + $0x180] sm:$0xff] }
 0x3f8   : > { %4459 = vmatprep.mubr.f32.mxu1 %v3978_v19  ;;  %v4006_v19 = vld [vmem:[%s8025_s9 + $0x198] sm:$0xff] }
 0x3fa   : > { %v5005_v52 = vpop.f32.mrb[130].mxu0  ;;  %v4086_v1 = vld [vmem:[#allocation4 + $0x18] sm:$0xff] }
 0x3fb   : > { %2823 = vst.msk [vmem:[#allocation4 + $0x28] sm:$0xff] %vm1472_vm0, %v5005_v52  ;;  %v2813_v40 = vpop.f32.mrb[131].mxu0  ;;  %v4085_v44 = vld [vmem:[#allocation4 + $0x10] sm:$0xff]  ;;  %4460 = vmatmul.mubr.f32.gmra.mrb[166].mxu1 %v3977_v57 }
 0x3fc   : > { %2822 = vst.msk [vmem:[#allocation4 + $0x20] sm:$0xff] %vm1472_vm0, %v2813_v40  ;;  %v5357_v12 = vpack.c.bf16 %v4086_v1, %v4085_v44  ;;  %4464 = vmatprep.mubr.f32.mxu1 %v3980_v22  ;;  %v4005_v57 = vld [vmem:[%s8025_s9 + $0x190] sm:$0xff]  ;;  %v4008_v22 = vld [vmem:[%s8025_s9 + $0x1a8] sm:$0xff] }
 0x3fe   : > { %5358 = vmatpush1.bf16.msra.mxu0 %v5357_v12 }
 0x3ff   : > { %5359 = vmatprep.subr.bf16.mxu0 %v8064_v55  ;;  %4465 = vmatmul.mubr.f32.gmra.mrb[168].mxu1 %v3979_v38  ;;  %v4007_v38 = vld [vmem:[%s8025_s9 + $0x1a0] sm:$0xff] }
 0x400   : > { %4469 = vmatprep.mubr.f32.mxu1 %v3982_v51  ;;  %v4010_v51 = vld [vmem:[%s8025_s9 + $0x1b8] sm:$0xff] }
 0x402   : > { %v5012_v56 = vpop.f32.mrb[130].mxu1  ;;  %v4088_v31 = vld [vmem:[#allocation4 + $0x28] sm:$0xff] }
 0x403   : > { %2910 = vst.msk [vmem:[#allocation4 + $0x38] sm:$0xff] %vm1472_vm0, %v5012_v56  ;;  %v2900_v16 = vpop.f32.mrb[131].mxu1  ;;  %v4087_v41 = vld [vmem:[#allocation4 + $0x20] sm:$0xff]  ;;  %4470 = vmatmul.mubr.f32.gmra.mrb[170].mxu1 %v3981_v2  ;;  %v4009_v2 = vld [vmem:[%s8025_s9 + $0x1b0] sm:$0xff] }
 0x404   : > { %2909 = vst.msk [vmem:[#allocation4 + $0x30] sm:$0xff] %vm1472_vm0, %v2900_v16  ;;  %v5360_v61 = vpack.c.bf16 %v4088_v31, %v4087_v41  ;;  %4474 = vmatprep.mubr.f32.mxu1 %v3984_v8  ;;  %v4012_v8 = vld [vmem:[%s8025_s9 + $0x1c8] sm:$0xff] }
 0x406   : > { %5361 = vmatpush1.bf16.msra.mxu0 %v5360_v61 }
 0x407   : > { %5362 = vmatprep.subr.bf16.mxu0 %v8064_v55  ;;  %4475 = vmatmul.mubr.f32.gmra.mrb[172].mxu1 %v3983_v7  ;;  %v4011_v7 = vld [vmem:[%s8025_s9 + $0x1c0] sm:$0xff] }
 0x408   : > { %4479 = vmatprep.mubr.f32.mxu1 %v3986_v18  ;;  %v4014_v18 = vld [vmem:[%s8025_s9 + $0x1d8] sm:$0xff] }
 0x40a   : > { %v5019_v59 = vpop.f32.mrb[132].mxu0  ;;  %v4090_v43 = vld [vmem:[#allocation4 + $0x38] sm:$0xff] }
 0x40b   : > { %2997 = vst.msk [vmem:[#allocation4 + $0x48] sm:$0xff] %vm1472_vm0, %v5019_v59  ;;  %v2987_v27 = vpop.f32.mrb[133].mxu0  ;;  %v4089_v45 = vld [vmem:[#allocation4 + $0x30] sm:$0xff]  ;;  %4480 = vmatmul.mubr.f32.gmra.mrb[174].mxu1 %v3985_v47 }
 0x40c   : > { %2996 = vst.msk [vmem:[#allocation4 + $0x40] sm:$0xff] %vm1472_vm0, %v2987_v27  ;;  %v5363_v9 = vpack.c.bf16 %v4090_v43, %v4089_v45  ;;  %4484 = vmatprep.mubr.f32.mxu1 %v3988_v50  ;;  %v4013_v47 = vld [vmem:[%s8025_s9 + $0x1d0] sm:$0xff]  ;;  %v4016_v50 = vld [vmem:[%s8025_s9 + $0x1e8] sm:$0xff] }
 0x40e   : > { %5364 = vmatpush1.bf16.msra.mxu0 %v5363_v9 }
 0x40f   : > { %5365 = vmatprep.subr.bf16.mxu0 %v8064_v55  ;;  %4485 = vmatmul.mubr.f32.gmra.mrb[176].mxu1 %v3987_v17  ;;  %v4015_v17 = vld [vmem:[%s8025_s9 + $0x1e0] sm:$0xff] }
 0x410   : > { %4489 = vmatprep.mubr.f32.mxu1 %v3990_v24 }
 0x412   : > { %v5026_v15 = vpop.f32.mrb[132].mxu1  ;;  %v4092_v4 = vld [vmem:[#allocation4 + $0x48] sm:$0xff] }
 0x413   : > { %3084 = vst.msk [vmem:[#allocation4 + $0x58] sm:$0xff] %vm1472_vm0, %v5026_v15  ;;  %v3074_v30 = vpop.f32.mrb[133].mxu1  ;;  %v4091_v3 = vld [vmem:[#allocation4 + $0x40] sm:$0xff]  ;;  %4490 = vmatmul.mubr.f32.gmra.mrb[178].mxu1 %v3989_v37  ;;  %v4021_v37 = vld [vmem:[%s8026_s10 + $0x10] sm:$0xff] }
 0x414   : > { %3083 = vst.msk [vmem:[#allocation4 + $0x50] sm:$0xff] %vm1472_vm0, %v3074_v30  ;;  %v5366_v49 = vpack.c.bf16 %v4092_v4, %v4091_v3  ;;  %4494 = vmatprep.mubr.f32.mxu1 %v3992_v58  ;;  %v4024_v58 = vld [vmem:[%s8026_s10 + $0x28] sm:$0xff] }
 0x416   : > { %5367 = vmatpush1.bf16.msra.mxu0 %v5366_v49 }
 0x417   : > { %5368 = vmatprep.subr.bf16.mxu0 %v8064_v55  ;;  %4495 = vmatmul.mubr.f32.gmra.mrb[180].mxu1 %v3991_v26  ;;  %v4023_v26 = vld [vmem:[%s8026_s10 + $0x20] sm:$0xff] }
 0x418   : > { %4499 = vmatprep.mubr.f32.mxu1 %v3994_v21  ;;  %v4028_v21 = vld [vmem:[%s8026_s10 + $0x48] sm:$0xff] }
 0x41a   : > { %v5033_v48 = vpop.f32.mrb[134].mxu0  ;;  %v4094_v0 = vld [vmem:[#allocation4 + $0x58] sm:$0xff] }
 0x41b   : > { %3171 = vst.msk [vmem:[#allocation4 + $0x68] sm:$0xff] %vm1472_vm0, %v5033_v48  ;;  %v3161_v46 = vpop.f32.mrb[135].mxu0  ;;  %v4093_v29 = vld [vmem:[#allocation4 + $0x50] sm:$0xff]  ;;  %4500 = vmatmul.mubr.f32.gmra.mrb[182].mxu1 %v3993_v33  ;;  %v4032_v33 = vld [vmem:[%s8026_s10 + $0x68] sm:$0xff] }
 0x41c   : > { %3170 = vst.msk [vmem:[#allocation4 + $0x60] sm:$0xff] %vm1472_vm0, %v3161_v46  ;;  %v5369_v20 = vpack.c.bf16 %v4094_v0, %v4093_v29  ;;  %4504 = vmatprep.mubr.f32.mxu1 %v3996_v36  ;;  %v4031_v36 = vld [vmem:[%s8026_s10 + $0x60] sm:$0xff] }
 0x41e   : > { %5370 = vmatpush1.bf16.msra.mxu0 %v5369_v20 }
 0x41f   : > { %5371 = vmatprep.subr.bf16.mxu0 %v8064_v55  ;;  %4505 = vmatmul.mubr.f32.gmra.mrb[184].mxu1 %v3995_v60  ;;  %v4034_v60 = vld [vmem:[%s8026_s10 + $0x78] sm:$0xff] }
 0x420   : > { %4509 = vmatprep.mubr.f32.mxu1 %v3998_v14  ;;  %v4035_v14 = vld [vmem:[%s8026_s10 + $0x80] sm:$0xff] }
 0x422   : > { %v5040_v39 = vpop.f32.mrb[134].mxu1  ;;  %v4096_v34 = vld [vmem:[#allocation4 + $0x68] sm:$0xff] }
 0x423   : > { %3258 = vst.msk [vmem:[#allocation4 + $0x78] sm:$0xff] %vm1472_vm0, %v5040_v39  ;;  %v3248_v63 = vpop.f32.mrb[135].mxu1  ;;  %v4095_v23 = vld [vmem:[#allocation4 + $0x60] sm:$0xff]  ;;  %4510 = vmatmul.mubr.f32.gmra.mrb[186].mxu1 %v3997_v5 }
 0x424   : > { %3257 = vst.msk [vmem:[#allocation4 + $0x70] sm:$0xff] %vm1472_vm0, %v3248_v63  ;;  %v5372_v32 = vpack.c.bf16 %v4096_v34, %v4095_v23  ;;  %4514 = vmatprep.mubr.f32.mxu1 %v4000_v13  ;;  %v4039_v5 = vld [vmem:[%s8026_s10 + $0xa0] sm:$0xff]  ;;  %v4042_v13 = vld [vmem:[%s8026_s10 + $0xb8] sm:$0xff] }
 0x426   : > { %5373 = vmatpush1.bf16.msra.mxu0 %v5372_v32 }
 0x427   : > { %5374 = vmatprep.subr.bf16.mxu0 %v8064_v55  ;;  %4515 = vmatmul.mubr.f32.gmra.mrb[188].mxu1 %v3999_v25  ;;  %v4041_v25 = vld [vmem:[%s8026_s10 + $0xb0] sm:$0xff] }
 0x428   : > { %4519 = vmatprep.mubr.f32.mxu1 %v4002_v28  ;;  %v4046_v28 = vld [vmem:[%s8026_s10 + $0xd8] sm:$0xff] }
 0x42a   : > { %v5047_v11 = vpop.f32.mrb[136].mxu0  ;;  %v4098_v6 = vld [vmem:[#allocation4 + $0x78] sm:$0xff] }
 0x42b   : > { %3345 = vst.msk [vmem:[#allocation4 + $0x88] sm:$0xff] %vm1472_vm0, %v5047_v11  ;;  %v3335_v53 = vpop.f32.mrb[137].mxu0  ;;  %v4097_v62 = vld [vmem:[#allocation4 + $0x70] sm:$0xff]  ;;  %4520 = vmatmul.mubr.f32.gmra.mrb[190].mxu1 %v4001_v42  ;;  %v4050_v42 = vld [vmem:[%s8026_s10 + $0xf8] sm:$0xff] }
 0x42c   : > { %3344 = vst.msk [vmem:[#allocation4 + $0x80] sm:$0xff] %vm1472_vm0, %v3335_v53  ;;  %v5375_v35 = vpack.c.bf16 %v4098_v6, %v4097_v62  ;;  %4524 = vmatprep.mubr.f32.mxu1 %v4004_v10  ;;  %v4049_v10 = vld [vmem:[%s8026_s10 + $0xf0] sm:$0xff] }
 0x42e   : > { %5376 = vmatpush1.bf16.msra.mxu0 %v5375_v35 }
 0x42f   : > { %5377 = vmatprep.subr.bf16.mxu0 %v8064_v55  ;;  %4525 = vmatmul.mubr.f32.gmra.mrb[192].mxu1 %v4003_v54  ;;  %v4052_v54 = vld [vmem:[%s8026_s10 + $0x108] sm:$0xff] }
 0x430   : > { %4529 = vmatprep.mubr.f32.mxu1 %v4006_v19  ;;  %v4053_v19 = vld [vmem:[%s8026_s10 + $0x110] sm:$0xff] }
 0x432   : > { %v5054_v52 = vpop.f32.mrb[136].mxu1  ;;  %v4100_v1 = vld [vmem:[#allocation4 + $0x88] sm:$0xff] }
 0x433   : > { %3432 = vst.msk [vmem:[#allocation4 + $0x98] sm:$0xff] %vm1472_vm0, %v5054_v52  ;;  %v3422_v40 = vpop.f32.mrb[137].mxu1  ;;  %v4099_v44 = vld [vmem:[#allocation4 + $0x80] sm:$0xff]  ;;  %4530 = vmatmul.mubr.f32.gmra.mrb[194].mxu1 %v4005_v57  ;;  %v4057_v57 = vld [vmem:[%s8026_s10 + $0x130] sm:$0xff] }
 0x434   : > { %3431 = vst.msk [vmem:[#allocation4 + $0x90] sm:$0xff] %vm1472_vm0, %v3422_v40  ;;  %v5378_v12 = vpack.c.bf16 %v4100_v1, %v4099_v44  ;;  %4534 = vmatprep.mubr.f32.mxu1 %v4008_v22  ;;  %v4018_v1 = vld [vmem:[%s8025_s9 + $0x1f8] sm:$0xff]  ;;  %v4017_v44 = vld [vmem:[%s8025_s9 + $0x1f0] sm:$0xff]  ;;  %v4060_v22 = vld [vmem:[%s8026_s10 + $0x148] sm:$0xff] }
 0x436   : > { %5379 = vmatpush1.bf16.msra.mxu0 %v5378_v12  ;;  %v4022_v12 = vld [vmem:[%s8026_s10 + $0x18] sm:$0xff] }
 0x437   : > { %5380 = vmatprep.subr.bf16.mxu0 %v8064_v55  ;;  %4535 = vmatmul.mubr.f32.gmra.mrb[196].mxu1 %v4007_v38  ;;  %v4059_v38 = vld [vmem:[%s8026_s10 + $0x140] sm:$0xff] }
 0x438   : > { %4539 = vmatprep.mubr.f32.mxu1 %v4010_v51  ;;  %v4064_v51 = vld [vmem:[%s8026_s10 + $0x168] sm:$0xff] }
 0x43a   : > { %v5061_v56 = vpop.f32.mrb[138].mxu0  ;;  %v4102_v31 = vld [vmem:[#allocation4 + $0x98] sm:$0xff] }
 0x43b   : > { %3519 = vst.msk [vmem:[#allocation4 + $0xa8] sm:$0xff] %vm1472_vm0, %v5061_v56  ;;  %v3509_v16 = vpop.f32.mrb[139].mxu0  ;;  %v4101_v41 = vld [vmem:[#allocation4 + $0x90] sm:$0xff]  ;;  %4540 = vmatmul.mubr.f32.gmra.mrb[198].mxu1 %v4009_v2  ;;  %v4026_v56 = vld [vmem:[%s8026_s10 + $0x38] sm:$0xff] }
 0x43c   : > { %3518 = vst.msk [vmem:[#allocation4 + $0xa0] sm:$0xff] %vm1472_vm0, %v3509_v16  ;;  %v5381_v61 = vpack.c.bf16 %v4102_v31, %v4101_v41  ;;  %4544 = vmatprep.mubr.f32.mxu1 %v4012_v8  ;;  %v4025_v31 = vld [vmem:[%s8026_s10 + $0x30] sm:$0xff]  ;;  %v4027_v16 = vld [vmem:[%s8026_s10 + $0x40] sm:$0xff]  ;;  %v4030_v41 = vld [vmem:[%s8026_s10 + $0x58] sm:$0xff] }
 0x43d   : > { %v4066_v2 = vld [vmem:[%s8026_s10 + $0x178] sm:$0xff] }
 0x43e   : > { %5382 = vmatpush1.bf16.msra.mxu0 %v5381_v61  ;;  %v4029_v61 = vld [vmem:[%s8026_s10 + $0x50] sm:$0xff] }
 0x43f   : > { %5383 = vmatprep.subr.bf16.mxu0 %v8064_v55  ;;  %4545 = vmatmul.mubr.f32.gmra.mrb[200].mxu1 %v4011_v7 }
 0x440   : > { %4549 = vmatprep.mubr.f32.mxu1 %v4014_v18 }
 0x442   : > { %v5068_v59 = vpop.f32.mrb[138].mxu1  ;;  %v4104_v43 = vld [vmem:[#allocation4 + $0xa8] sm:$0xff] }
 0x443   : > { %3606 = vst.msk [vmem:[#allocation4 + $0xb8] sm:$0xff] %vm1472_vm0, %v5068_v59  ;;  %v3596_v27 = vpop.f32.mrb[139].mxu1  ;;  %v4103_v45 = vld [vmem:[#allocation4 + $0xa0] sm:$0xff]  ;;  %4550 = vmatmul.mubr.f32.gmra.mrb[202].mxu1 %v4013_v47  ;;  %v4033_v59 = vld [vmem:[%s8026_s10 + $0x70] sm:$0xff] }
 0x444   : > { %3605 = vst.msk [vmem:[#allocation4 + $0xb0] sm:$0xff] %vm1472_vm0, %v3596_v27  ;;  %v5384_v9 = vpack.c.bf16 %v4104_v43, %v4103_v45  ;;  %4554 = vmatprep.mubr.f32.mxu1 %v4016_v50  ;;  %v4036_v43 = vld [vmem:[%s8026_s10 + $0x88] sm:$0xff]  ;;  %v4038_v27 = vld [vmem:[%s8026_s10 + $0x98] sm:$0xff]  ;;  %v4037_v45 = vld [vmem:[%s8026_s10 + $0x90] sm:$0xff] }
 0x446   : > { %5385 = vmatpush1.bf16.msra.mxu0 %v5384_v9  ;;  %v4040_v9 = vld [vmem:[%s8026_s10 + $0xa8] sm:$0xff] }
 0x447   : > { %5386 = vmatprep.subr.bf16.mxu0 %v8064_v55  ;;  %4555 = vmatmul.mubr.f32.gmra.mrb[204].mxu1 %v4015_v17  ;;  %v4069_v17 = vld [vmem:[%s8026_s10 + $0x190] sm:$0xff] }
 0x448   : > { %4559 = vmatprep.mubr.f32.mxu1 %v4018_v1 }
 0x44a   : > { %v5075_v15 = vpop.f32.mrb[140].mxu0  ;;  %v4106_v4 = vld [vmem:[#allocation4 + $0xb8] sm:$0xff] }
 0x44b   : > { %3693 = vst.msk [vmem:[#allocation4 + $0xc8] sm:$0xff] %vm1472_vm0, %v5075_v15  ;;  %v3683_v30 = vpop.f32.mrb[141].mxu0  ;;  %v4105_v3 = vld [vmem:[#allocation4 + $0xb0] sm:$0xff]  ;;  %4560 = vmatmul.mubr.f32.gmra.mrb[206].mxu1 %v4017_v44  ;;  %v4044_v15 = vld [vmem:[%s8026_s10 + $0xc8] sm:$0xff]  ;;  %v4074_v44 = vld [vmem:[%s8026_s10 + $0x1b8] sm:$0xff] }
 0x44c   : > { %3692 = vst.msk [vmem:[#allocation4 + $0xc0] sm:$0xff] %vm1472_vm0, %v3683_v30  ;;  %v5387_v49 = vpack.c.bf16 %v4106_v4, %v4105_v3  ;;  %v4043_v4 = vld [vmem:[%s8026_s10 + $0xc0] sm:$0xff]  ;;  %v4045_v30 = vld [vmem:[%s8026_s10 + $0xd0] sm:$0xff]  ;;  %v4048_v3 = vld [vmem:[%s8026_s10 + $0xe8] sm:$0xff] }
 0x44e   : > { %5388 = vmatpush1.bf16.msra.mxu0 %v5387_v49  ;;  %v4047_v49 = vld [vmem:[%s8026_s10 + $0xe0] sm:$0xff] }
 0x44f   : > { %5389 = vmatprep.subr.bf16.mxu0 %v8064_v55 }
 0x452   : > { %v5082_v48 = vpop.f32.mrb[140].mxu1  ;;  %v4108_v0 = vld [vmem:[#allocation4 + $0xc8] sm:$0xff] }
 0x453   : > { %3780 = vst.msk [vmem:[#allocation4 + $0xd8] sm:$0xff] %vm1472_vm0, %v5082_v48  ;;  %v3770_v46 = vpop.f32.mrb[141].mxu1  ;;  %v4107_v29 = vld [vmem:[#allocation4 + $0xc0] sm:$0xff] }
 0x454   : > { %3779 = vst.msk [vmem:[#allocation4 + $0xd0] sm:$0xff] %vm1472_vm0, %v3770_v46  ;;  %v5390_v20 = vpack.c.bf16 %v4108_v0, %v4107_v29  ;;  %v4051_v48 = vld [vmem:[%s8026_s10 + $0x100] sm:$0xff]  ;;  %v4054_v0 = vld [vmem:[%s8026_s10 + $0x118] sm:$0xff]  ;;  %v4056_v46 = vld [vmem:[%s8026_s10 + $0x128] sm:$0xff] }
 0x455   : > { %v4055_v29 = vld [vmem:[%s8026_s10 + $0x120] sm:$0xff] }
 0x456   : > { %5391 = vmatpush1.bf16.msra.mxu0 %v5390_v20  ;;  %v4058_v20 = vld [vmem:[%s8026_s10 + $0x138] sm:$0xff] }
 0x457   : > { %5392 = vmatprep.subr.bf16.mxu0 %v8064_v55 }
 0x45a   : > { %v5089_v39 = vpop.f32.mrb[142].mxu0  ;;  %v4110_v34 = vld [vmem:[#allocation4 + $0xd8] sm:$0xff] }
 0x45b   : > { %3867 = vst.msk [vmem:[#allocation4 + $0xe8] sm:$0xff] %vm1472_vm0, %v5089_v39  ;;  %v3857_v63 = vpop.f32.mrb[143].mxu0  ;;  %v4109_v23 = vld [vmem:[#allocation4 + $0xd0] sm:$0xff]  ;;  %v4062_v39 = vld [vmem:[%s8026_s10 + $0x158] sm:$0xff] }
 0x45c   : > { %3866 = vst.msk [vmem:[#allocation4 + $0xe0] sm:$0xff] %vm1472_vm0, %v3857_v63  ;;  %v5393_v32 = vpack.c.bf16 %v4110_v34, %v4109_v23  ;;  %v4061_v34 = vld [vmem:[%s8026_s10 + $0x150] sm:$0xff] }
 0x45e   : > { %5394 = vmatpush1.bf16.msra.mxu0 %v5393_v32  ;;  %v4063_v32 = vld [vmem:[%s8026_s10 + $0x160] sm:$0xff] }
 0x45f   : > { %5395 = vmatprep.subr.bf16.mxu0 %v8064_v55 }
 0x462   : > { %v5096_v11 = vpop.f32.mrb[142].mxu1  ;;  %v4112_v6 = vld [vmem:[#allocation4 + $0xe8] sm:$0xff] }
 0x463   : > { %3954 = vst.msk [vmem:[#allocation4 + $0xf8] sm:$0xff] %vm1472_vm0, %v5096_v11  ;;  %v3944_v53 = vpop.f32.mrb[143].mxu1  ;;  %v4111_v62 = vld [vmem:[#allocation4 + $0xe0] sm:$0xff]  ;;  %v4065_v11 = vld [vmem:[%s8026_s10 + $0x170] sm:$0xff] }
 0x464   : > { %3953 = vst.msk [vmem:[#allocation4 + $0xf0] sm:$0xff] %vm1472_vm0, %v3944_v53  ;;  %v5396_v35 = vpack.c.bf16 %v4112_v6, %v4111_v62  ;;  %v4068_v6 = vld [vmem:[%s8026_s10 + $0x188] sm:$0xff]  ;;  %v4067_v62 = vld [vmem:[%s8026_s10 + $0x180] sm:$0xff] }
 0x466   : > { %5397 = vmatpush1.bf16.msra.mxu0 %v5396_v35  ;;  %v4070_v35 = vld [vmem:[%s8026_s10 + $0x198] sm:$0xff] }
 0x467   : > { %5398 = vmatprep.subr.bf16.mxu0 %v8064_v55  ;;  %v4019_v55 = vld [vmem:[%s8026_s10] sm:$0xff] }
 0x46a   : > { %v4114_v52 = vld [vmem:[#allocation4 + $0xf8] sm:$0xff] }
 0x46b   : > { %v4113_v24 = vld [vmem:[#allocation4 + $0xf0] sm:$0xff] }
 0x46c   : > { %v5399_v40 = vpack.c.bf16 %v4114_v52, %v4113_v24  ;;  %v4072_v52 = vld [vmem:[%s8026_s10 + $0x1a8] sm:$0xff] }
 0x46e   : > { %5400 = vmatpush1.bf16.msra.mxu0 %v5399_v40  ;;  %v4071_v40 = vld [vmem:[%s8026_s10 + $0x1a0] sm:$0xff] }
 0x471   : > { %4180 = vmatmul.mubr.f32.vlgmr.msra.gmra.mrb[144].mxu0 %v4019_v55 }
 0x472   : > { %4184 = vmatprep.mubr.f32.mxu0 %v4022_v12 }
 0x475   : > { %4185 = vmatmul.mubr.f32.gmra.mrb[146].mxu0 %v4021_v37  ;;  %v4073_v37 = vld [vmem:[%s8026_s10 + $0x1b0] sm:$0xff] }
 0x476   : > { %4189 = vmatprep.mubr.f32.mxu0 %v4024_v58  ;;  %v4076_v58 = vld [vmem:[%s8026_s10 + $0x1c8] sm:$0xff] }
 0x479   : > { %4190 = vmatmul.mubr.f32.gmra.mrb[148].mxu0 %v4023_v26 }
 0x47a   : > { %4194 = vmatprep.mubr.f32.mxu0 %v4026_v56 }
 0x47d   : > { %4195 = vmatmul.mubr.f32.gmra.mrb[150].mxu0 %v4025_v31  ;;  %v4075_v31 = vld [vmem:[%s8026_s10 + $0x1c0] sm:$0xff] }
 0x47e   : > { %4199 = vmatprep.mubr.f32.mxu0 %v4028_v21  ;;  %v4078_v21 = vld [vmem:[%s8026_s10 + $0x1d8] sm:$0xff] }
 0x481   : > { %4200 = vmatmul.mubr.f32.gmra.mrb[152].mxu0 %v4027_v16 }
 0x482   : > { %4204 = vmatprep.mubr.f32.mxu0 %v4030_v41 }
 0x485   : > { %4205 = vmatmul.mubr.f32.gmra.mrb[154].mxu0 %v4029_v61  ;;  %v4077_v61 = vld [vmem:[%s8026_s10 + $0x1d0] sm:$0xff] }
 0x486   : > { %4209 = vmatprep.mubr.f32.mxu0 %v4032_v33  ;;  %v4080_v33 = vld [vmem:[%s8026_s10 + $0x1e8] sm:$0xff] }
 0x489   : > { %4210 = vmatmul.mubr.f32.gmra.mrb[156].mxu0 %v4031_v36 }
 0x48a   : > { %4214 = vmatprep.mubr.f32.mxu0 %v4034_v60 }
 0x48d   : > { %4215 = vmatmul.mubr.f32.gmra.mrb[158].mxu0 %v4033_v59  ;;  %v4079_v59 = vld [vmem:[%s8026_s10 + $0x1e0] sm:$0xff] }
 0x48e   : > { %4219 = vmatprep.mubr.f32.mxu0 %v4036_v43  ;;  %v4082_v43 = vld [vmem:[%s8026_s10 + $0x1f8] sm:$0xff] }
 0x491   : > { %4220 = vmatmul.mubr.f32.gmra.mrb[160].mxu0 %v4035_v14 }
 0x492   : > { %4224 = vmatprep.mubr.f32.mxu0 %v4038_v27 }
 0x495   : > { %4225 = vmatmul.mubr.f32.gmra.mrb[162].mxu0 %v4037_v45  ;;  %v4081_v45 = vld [vmem:[%s8026_s10 + $0x1f0] sm:$0xff] }
 0x496   : > { %4229 = vmatprep.mubr.f32.mxu0 %v4040_v9 }
 0x499   : > { %4230 = vmatmul.mubr.f32.gmra.mrb[164].mxu0 %v4039_v5 }
 0x49a   : > { %4234 = vmatprep.mubr.f32.mxu0 %v4042_v13 }
 0x49d   : > { %4235 = vmatmul.mubr.f32.gmra.mrb[166].mxu0 %v4041_v25 }
 0x49e   : > { %4239 = vmatprep.mubr.f32.mxu0 %v4044_v15 }
 0x4a1   : > { %4240 = vmatmul.mubr.f32.gmra.mrb[168].mxu0 %v4043_v4 }
 0x4a2   : > { %4244 = vmatprep.mubr.f32.mxu0 %v4046_v28  ;;  %v7789_v63 = vpop.f32.mrb[144].mxu1 }
 0x4a3   : > { %v4408_v23 = vpop.f32.mrb[145].mxu1 }
 0x4a5   : > { %4245 = vmatmul.mubr.f32.gmra.mrb[170].mxu0 %v4045_v30 }
 0x4a6   : > { %4249 = vmatprep.mubr.f32.mxu0 %v4048_v3  ;;  %v7797_v8 = vpop.f32.mrb[146].mxu1 }
 0x4a7   : > { %v4413_v7 = vpop.f32.mrb[147].mxu1 }
 0x4a9   : > { %4250 = vmatmul.mubr.f32.gmra.mrb[172].mxu0 %v4047_v49 }
 0x4aa   : > { %4254 = vmatprep.mubr.f32.mxu0 %v4050_v42  ;;  %v7805_v18 = vpop.f32.mrb[148].mxu1 }
 0x4ab   : > { %v4418_v53 = vpop.f32.mrb[149].mxu1 }
 0x4ad   : > { %4255 = vmatmul.mubr.f32.gmra.mrb[174].mxu0 %v4049_v10 }
 0x4ae   : > { %4259 = vmatprep.mubr.f32.mxu0 %v4052_v54  ;;  %v7813_v47 = vpop.f32.mrb[150].mxu1 }
 0x4af   : > { %v4423_v50 = vpop.f32.mrb[151].mxu1 }
 0x4b1   : > { %4260 = vmatmul.mubr.f32.gmra.mrb[176].mxu0 %v4051_v48 }
 0x4b2   : > { %4264 = vmatprep.mubr.f32.mxu0 %v4054_v0  ;;  %v7821_v1 = vpop.f32.mrb[152].mxu1 }
 0x4b3   : > { %v4428_v24 = vpop.f32.mrb[153].mxu1 }
 0x4b5   : > { %4265 = vmatmul.mubr.f32.gmra.mrb[178].mxu0 %v4053_v19 }
 0x4b6   : > { %4269 = vmatprep.mubr.f32.mxu0 %v4056_v46  ;;  %v7829_v55 = vpop.f32.mrb[154].mxu1 }
 0x4b7   : > { %v4433_v12 = vpop.f32.mrb[155].mxu1 }
 0x4b9   : > { %4270 = vmatmul.mubr.f32.gmra.mrb[180].mxu0 %v4055_v29 }
 0x4ba   : > { %4274 = vmatprep.mubr.f32.mxu0 %v4058_v20  ;;  %v7837_v26 = vpop.f32.mrb[156].mxu1 }
 0x4bb   : > { %v4438_v56 = vpop.f32.mrb[157].mxu1 }
 0x4bd   : > { %4275 = vmatmul.mubr.f32.gmra.mrb[182].mxu0 %v4057_v57 }
 0x4be   : > { %4279 = vmatprep.mubr.f32.mxu0 %v4060_v22  ;;  %v7845_v16 = vpop.f32.mrb[158].mxu1 }
 0x4bf   : > { %v4443_v41 = vpop.f32.mrb[159].mxu1 }
 0x4c1   : > { %4280 = vmatmul.mubr.f32.gmra.mrb[184].mxu0 %v4059_v38 }
 0x4c2   : > { %4284 = vmatprep.mubr.f32.mxu0 %v4062_v39  ;;  %v7853_v36 = vpop.f32.mrb[160].mxu1 }
 0x4c3   : > { %v4448_v60 = vpop.f32.mrb[161].mxu1 }
 0x4c5   : > { %4285 = vmatmul.mubr.f32.gmra.mrb[186].mxu0 %v4061_v34 }
 0x4c6   : > { %4289 = vmatprep.mubr.f32.mxu0 %v4064_v51  ;;  %v7861_v14 = vpop.f32.mrb[162].mxu1 }
 0x4c7   : > { %v4453_v27 = vpop.f32.mrb[163].mxu1 }
 0x4c9   : > { %4290 = vmatmul.mubr.f32.gmra.mrb[188].mxu0 %v4063_v32 }
 0x4ca   : > { %4294 = vmatprep.mubr.f32.mxu0 %v4066_v2  ;;  %v7866_v9 = vpop.f32.mrb[164].mxu1 }
 0x4cb   : > { %v4458_v5 = vpop.f32.mrb[165].mxu1 }
 0x4cd   : > { %4295 = vmatmul.mubr.f32.gmra.mrb[190].mxu0 %v4065_v11 }
 0x4ce   : > { %4299 = vmatprep.mubr.f32.mxu0 %v4068_v6  ;;  %v7868_v13 = vpop.f32.mrb[166].mxu1 }
 0x4cf   : > { %v4463_v25 = vpop.f32.mrb[167].mxu1 }
 0x4d1   : > { %4300 = vmatmul.mubr.f32.gmra.mrb[192].mxu0 %v4067_v62 }
 0x4d2   : > { %4304 = vmatprep.mubr.f32.mxu0 %v4070_v35  ;;  %v7870_v15 = vpop.f32.mrb[168].mxu1 }
 0x4d3   : > { %v4468_v4 = vpop.f32.mrb[169].mxu1 }
 0x4d5   : > { %4305 = vmatmul.mubr.f32.gmra.mrb[194].mxu0 %v4069_v17 }
 0x4d6   : > { %4309 = vmatprep.mubr.f32.mxu0 %v4072_v52  ;;  %v7872_v28 = vpop.f32.mrb[170].mxu1 }
 0x4d7   : > { %v4473_v30 = vpop.f32.mrb[171].mxu1 }
 0x4d9   : > { %4310 = vmatmul.mubr.f32.gmra.mrb[196].mxu0 %v4071_v40 }
 0x4da   : > { %4314 = vmatprep.mubr.f32.mxu0 %v4074_v44  ;;  %v7874_v3 = vpop.f32.mrb[172].mxu1 }
 0x4db   : > { %v4478_v49 = vpop.f32.mrb[173].mxu1 }
 0x4dd   : > { %4315 = vmatmul.mubr.f32.gmra.mrb[198].mxu0 %v4073_v37 }
 0x4de   : > { %4319 = vmatprep.mubr.f32.mxu0 %v4076_v58  ;;  %v7876_v42 = vpop.f32.mrb[174].mxu1 }
 0x4df   : > { %v4483_v10 = vpop.f32.mrb[175].mxu1 }
 0x4e1   : > { %4320 = vmatmul.mubr.f32.gmra.mrb[200].mxu0 %v4075_v31 }
 0x4e2   : > { %4324 = vmatprep.mubr.f32.mxu0 %v4078_v21  ;;  %v7878_v54 = vpop.f32.mrb[176].mxu1 }
 0x4e3   : > { %v4488_v48 = vpop.f32.mrb[177].mxu1 }
 0x4e5   : > { %4325 = vmatmul.mubr.f32.gmra.mrb[202].mxu0 %v4077_v61  ;;  %v4600_v61 = vpop.permute.xlu0 %4599 }
 0x4e6   : > { %4329 = vmatprep.mubr.f32.mxu0 %v4080_v33  ;;  %v7880_v0 = vpop.f32.mrb[178].mxu1 }
 0x4e7   : > { %v4493_v19 = vpop.f32.mrb[179].mxu1 }
 0x4e9   : > { %4330 = vmatmul.mubr.f32.gmra.mrb[204].mxu0 %v4079_v59  ;;  %v4610_v4 = vpop.permute.xlu0 %4609 }
 0x4ea   : > { %4334 = vmatprep.mubr.f32.mxu0 %v4082_v43  ;;  %v7882_v46 = vpop.f32.mrb[180].mxu1 }
 0x4eb   : > { %v4498_v29 = vpop.f32.mrb[181].mxu1 }
 0x4ed   : > { %4335 = vmatmul.mubr.f32.gmra.mrb[206].mxu0 %v4081_v45 }
 0x4ee   : > { %v7884_v20 = vpop.f32.mrb[182].mxu1 }
 0x4ef   : > { %v4503_v57 = vpop.f32.mrb[183].mxu1 }
 0x4f2   : > { %v7886_v22 = vpop.f32.mrb[184].mxu1 }
 0x4f3   : > { %v4508_v38 = vpop.f32.mrb[185].mxu1 }
 0x4f6   : > { %v7888_v39 = vpop.f32.mrb[186].mxu1 }
 0x4f7   : > { %v4513_v34 = vpop.f32.mrb[187].mxu1 }
 0x4fa   : > { %v7890_v51 = vpop.f32.mrb[188].mxu1 }
 0x4fb   : > { %v4518_v23 = vpop.f32.mrb[189].mxu1 }
 0x4fe   : > { %v7892_v32 = vpop.f32.mrb[190].mxu1 }
 0x4ff   : > { %v4523_v2 = vpop.f32.mrb[191].mxu1 }
 0x502   : > { %v7894_v7 = vpop.f32.mrb[192].mxu1 }
 0x503   : > { %v4528_v11 = vpop.f32.mrb[193].mxu1 }
 0x506   : > { %v7896_v6 = vpop.f32.mrb[194].mxu1 }
 0x507   : > { %v4533_v53 = vpop.f32.mrb[195].mxu1 }
 0x50a   : > { %v7898_v62 = vpop.f32.mrb[196].mxu1 }
 0x50b   : > { %v4538_v35 = vpop.f32.mrb[197].mxu1 }
 0x50e   : > { %v7900_v50 = vpop.f32.mrb[198].mxu1 }
 0x50f   : > { %v4543_v17 = vpop.f32.mrb[199].mxu1 }
 0x512   : > { %v7902_v52 = vpop.f32.mrb[200].mxu1 }
 0x513   : > { %v4548_v24 = vpop.f32.mrb[201].mxu1 }
 0x516   : > { %v7904_v40 = vpop.f32.mrb[202].mxu1 }
 0x517   : > { %v4553_v44 = vpop.f32.mrb[203].mxu1 }
 0x51a   : > { %v7906_v12 = vpop.f32.mrb[204].mxu1 }
 0x51b   : > { %v4558_v37 = vpop.f32.mrb[205].mxu1 }
 0x51e   : > { %v7908_v58 = vpop.f32.mrb[206].mxu1 }
 0x51f   : > { %v4563_v56 = vpop.f32.mrb[207].mxu1 }
 0x544   : > { %v4181_v31 = vpop.f32.mrb[144].mxu0 }
 0x545   : > { %v4407_v21 = vadd.f32 %v7789_v63, %v4181_v31  ;;  %v4183_v41 = vpop.f32.mrb[145].mxu0  ;;  %v4605_v63 = vpop.permute.xlu1 %4604 }
 0x547   : > { %v4757_v33 = vadd.f32 %v4600_v61, %v4407_v21 }
 0x548   : > { %v4186_v60 = vpop.f32.mrb[146].mxu0 }
 0x549   : > { %4789 = vst.msk [vmem:[%s7916_s25] sm:$0xff] %vm1472_vm0, %v4757_v33  ;;  %v4412_v59 = vadd.f32 %v7797_v8, %v4186_v60  ;;  %v4188_v43 = vpop.f32.mrb[147].mxu0  ;;  %v4615_v8 = vpop.permute.xlu1 %4614 }
 0x54b   : > { %v4758_v27 = vadd.f32 %v4605_v63, %v4412_v59 }
 0x54c   : > { %v4191_v45 = vpop.f32.mrb[148].mxu0 }
 0x54d   : > { %4790 = vst.msk [vmem:[%s7916_s25 + $0x8] sm:$0xff] %vm1472_vm0, %v4758_v27  ;;  %v4417_v5 = vadd.f32 %v7805_v18, %v4191_v45  ;;  %v4193_v25 = vpop.f32.mrb[149].mxu0  ;;  %v4620_v18 = vpop.permute.xlu0 %4619 }
 0x54f   : > { %v4759_v30 = vadd.f32 %v4610_v4, %v4417_v5 }
 0x550   : > { %v4196_v49 = vpop.f32.mrb[150].mxu0 }
 0x551   : > { %4791 = vst.msk [vmem:[%s7916_s25 + $0x10] sm:$0xff] %vm1472_vm0, %v4759_v30  ;;  %v4422_v10 = vadd.f32 %v7813_v47, %v4196_v49  ;;  %v4198_v48 = vpop.f32.mrb[151].mxu0  ;;  %v4625_v47 = vpop.permute.xlu1 %4624 }
 0x553   : > { %v4760_v19 = vadd.f32 %v4615_v8, %v4422_v10 }
 0x554   : > { %v4201_v29 = vpop.f32.mrb[152].mxu0 }
 0x555   : > { %4792 = vst.msk [vmem:[%s7916_s25 + $0x18] sm:$0xff] %vm1472_vm0, %v4760_v19  ;;  %v4427_v57 = vadd.f32 %v7821_v1, %v4201_v29  ;;  %v4203_v38 = vpop.f32.mrb[153].mxu0  ;;  %v4630_v1 = vpop.permute.xlu0 %4629 }
 0x557   : > { %v4761_v34 = vadd.f32 %v4620_v18, %v4427_v57 }
 0x558   : > { %v4206_v23 = vpop.f32.mrb[154].mxu0 }
 0x559   : > { %4793 = vst.msk [vmem:[%s7916_s25 + $0x20] sm:$0xff] %vm1472_vm0, %v4761_v34  ;;  %v4432_v2 = vadd.f32 %v7829_v55, %v4206_v23  ;;  %v4208_v11 = vpop.f32.mrb[155].mxu0  ;;  %v4635_v55 = vpop.permute.xlu1 %4634 }
 0x55b   : > { %v4762_v53 = vadd.f32 %v4625_v47, %v4432_v2 }
 0x55c   : > { %v4211_v35 = vpop.f32.mrb[156].mxu0 }
 0x55d   : > { %4794 = vst.msk [vmem:[%s7916_s25 + $0x28] sm:$0xff] %vm1472_vm0, %v4762_v53  ;;  %v4437_v17 = vadd.f32 %v7837_v26, %v4211_v35  ;;  %v4213_v24 = vpop.f32.mrb[157].mxu0  ;;  %v4640_v26 = vpop.permute.xlu0 %4639 }
 0x55f   : > { %v4763_v44 = vadd.f32 %v4630_v1, %v4437_v17 }
 0x560   : > { %v4216_v37 = vpop.f32.mrb[158].mxu0 }
 0x561   : > { %4795 = vst.msk [vmem:[%s7916_s25 + $0x30] sm:$0xff] %vm1472_vm0, %v4763_v44  ;;  %v4442_v56 = vadd.f32 %v7845_v16, %v4216_v37  ;;  %v4218_v31 = vpop.f32.mrb[159].mxu0  ;;  %v4645_v16 = vpop.permute.xlu1 %4644 }
 0x563   : > { %v4764_v21 = vadd.f32 %v4635_v55, %v4442_v56 }
 0x564   : > { %v4221_v41 = vpop.f32.mrb[160].mxu0 }
 0x565   : > { %4796 = vst.msk [vmem:[%s7916_s25 + $0x38] sm:$0xff] %vm1472_vm0, %v4764_v21  ;;  %v4447_v61 = vadd.f32 %v7853_v36, %v4221_v41  ;;  %v4223_v33 = vpop.f32.mrb[161].mxu0  ;;  %v4650_v36 = vpop.permute.xlu0 %4649 }
 0x567   : > { %v4765_v60 = vadd.f32 %v4640_v26, %v4447_v61 }
 0x568   : > { %v4226_v59 = vpop.f32.mrb[162].mxu0 }
 0x569   : > { %4797 = vst.msk [vmem:[%s7916_s25 + $0x40] sm:$0xff] %vm1472_vm0, %v4765_v60  ;;  %v4452_v43 = vadd.f32 %v7861_v14, %v4226_v59  ;;  %v4228_v63 = vpop.f32.mrb[163].mxu0  ;;  %v4655_v14 = vpop.permute.xlu1 %4654 }
 0x56b   : > { %v4766_v27 = vadd.f32 %v4645_v16, %v4452_v43 }
 0x56c   : > { %v4231_v45 = vpop.f32.mrb[164].mxu0 }
 0x56d   : > { %4798 = vst.msk [vmem:[%s7916_s25 + $0x48] sm:$0xff] %vm1472_vm0, %v4766_v27  ;;  %v4457_v5 = vadd.f32 %v7866_v9, %v4231_v45  ;;  %v4233_v25 = vpop.f32.mrb[165].mxu0  ;;  %v4660_v9 = vpop.permute.xlu0 %4659 }
 0x56f   : > { %v4767_v4 = vadd.f32 %v4650_v36, %v4457_v5 }
 0x570   : > { %v4236_v30 = vpop.f32.mrb[166].mxu0 }
 0x571   : > { %4799 = vst.msk [vmem:[%s7916_s25 + $0x50] sm:$0xff] %vm1472_vm0, %v4767_v4  ;;  %v4462_v49 = vadd.f32 %v7868_v13, %v4236_v30  ;;  %v4238_v10 = vpop.f32.mrb[167].mxu0  ;;  %v4665_v13 = vpop.permute.xlu1 %4664 }
 0x573   : > { %v4768_v48 = vadd.f32 %v4655_v14, %v4462_v49 }
 0x574   : > { %v4241_v8 = vpop.f32.mrb[168].mxu0 }
 0x575   : > { %4800 = vst.msk [vmem:[%s7916_s25 + $0x58] sm:$0xff] %vm1472_vm0, %v4768_v48  ;;  %v4467_v19 = vadd.f32 %v7870_v15, %v4241_v8  ;;  %v4243_v29 = vpop.f32.mrb[169].mxu0  ;;  %v4670_v15 = vpop.permute.xlu0 %4669 }
 0x577   : > { %v4769_v57 = vadd.f32 %v4660_v9, %v4467_v19 }
 0x578   : > { %v4246_v38 = vpop.f32.mrb[170].mxu0 }
 0x579   : > { %4801 = vst.msk [vmem:[%s7916_s25 + $0x60] sm:$0xff] %vm1472_vm0, %v4769_v57  ;;  %v4472_v18 = vadd.f32 %v7872_v28, %v4246_v38  ;;  %v4248_v34 = vpop.f32.mrb[171].mxu0  ;;  %v4675_v28 = vpop.permute.xlu1 %4674 }
 0x57b   : > { %v4770_v23 = vadd.f32 %v4665_v13, %v4472_v18 }
 0x57c   : > { %v4251_v2 = vpop.f32.mrb[172].mxu0 }
 0x57d   : > { %4802 = vst.msk [vmem:[%s7916_s25 + $0x68] sm:$0xff] %vm1472_vm0, %v4770_v23  ;;  %v4477_v11 = vadd.f32 %v7874_v3, %v4251_v2  ;;  %v4253_v47 = vpop.f32.mrb[173].mxu0  ;;  %v4680_v3 = vpop.permute.xlu0 %4679 }
 0x57f   : > { %v4771_v53 = vadd.f32 %v4670_v15, %v4477_v11 }
 0x580   : > { %v4256_v35 = vpop.f32.mrb[174].mxu0 }
 0x581   : > { %4803 = vst.msk [vmem:[%s7916_s25 + $0x70] sm:$0xff] %vm1472_vm0, %v4771_v53  ;;  %v4482_v17 = vadd.f32 %v7876_v42, %v4256_v35  ;;  %v4258_v24 = vpop.f32.mrb[175].mxu0  ;;  %v4685_v42 = vpop.permute.xlu1 %4684 }
 0x583   : > { %v4772_v1 = vadd.f32 %v4675_v28, %v4482_v17 }
 0x584   : > { %v4261_v44 = vpop.f32.mrb[176].mxu0 }
 0x585   : > { %4804 = vst.msk [vmem:[%s7916_s25 + $0x78] sm:$0xff] %vm1472_vm0, %v4772_v1  ;;  %v4487_v37 = vadd.f32 %v7878_v54, %v4261_v44  ;;  %v4263_v56 = vpop.f32.mrb[177].mxu0  ;;  %v4690_v54 = vpop.permute.xlu0 %4689 }
 0x587   : > { %v4773_v31 = vadd.f32 %v4680_v3, %v4487_v37 }
 0x588   : > { %v4266_v55 = vpop.f32.mrb[178].mxu0 }
 0x589   : > { %4805 = vst.msk [vmem:[%s7916_s25 + $0x80] sm:$0xff] %vm1472_vm0, %v4773_v31  ;;  %v4492_v21 = vadd.f32 %v7880_v0, %v4266_v55  ;;  %v4268_v41 = vpop.f32.mrb[179].mxu0  ;;  %v4695_v0 = vpop.permute.xlu1 %4694 }
 0x58b   : > { %v4774_v61 = vadd.f32 %v4685_v42, %v4492_v21 }
 0x58c   : > { %v4271_v33 = vpop.f32.mrb[180].mxu0 }
 0x58d   : > { %4806 = vst.msk [vmem:[%s7916_s25 + $0x88] sm:$0xff] %vm1472_vm0, %v4774_v61  ;;  %v4497_v26 = vadd.f32 %v7882_v46, %v4271_v33  ;;  %v4273_v60 = vpop.f32.mrb[181].mxu0  ;;  %v4700_v46 = vpop.permute.xlu0 %4699 }
 0x58f   : > { %v4775_v59 = vadd.f32 %v4690_v54, %v4497_v26 }
 0x590   : > { %v4276_v43 = vpop.f32.mrb[182].mxu0 }
 0x591   : > { %4807 = vst.msk [vmem:[%s7916_s25 + $0x90] sm:$0xff] %vm1472_vm0, %v4775_v59  ;;  %v4502_v63 = vadd.f32 %v7884_v20, %v4276_v43  ;;  %v4278_v16 = vpop.f32.mrb[183].mxu0  ;;  %v4705_v20 = vpop.permute.xlu1 %4704 }
 0x593   : > { %v4776_v27 = vadd.f32 %v4695_v0, %v4502_v63 }
 0x594   : > { %v4281_v45 = vpop.f32.mrb[184].mxu0 }
 0x595   : > { %4808 = vst.msk [vmem:[%s7916_s25 + $0x98] sm:$0xff] %vm1472_vm0, %v4776_v27  ;;  %v4507_v5 = vadd.f32 %v7886_v22, %v4281_v45  ;;  %v4283_v25 = vpop.f32.mrb[185].mxu0  ;;  %v4710_v22 = vpop.permute.xlu0 %4709 }
 0x597   : > { %v4777_v36 = vadd.f32 %v4700_v46, %v4507_v5 }
 0x598   : > { %v4286_v4 = vpop.f32.mrb[186].mxu0 }
 0x599   : > { %4809 = vst.msk [vmem:[%s7916_s25 + $0xa0] sm:$0xff] %vm1472_vm0, %v4777_v36  ;;  %v4512_v30 = vadd.f32 %v7888_v39, %v4286_v4  ;;  %v4288_v49 = vpop.f32.mrb[187].mxu0  ;;  %v4715_v39 = vpop.permute.xlu1 %4714 }
 0x59b   : > { %v4778_v10 = vadd.f32 %v4705_v20, %v4512_v30 }
 0x59c   : > { %v4291_v14 = vpop.f32.mrb[188].mxu0 }
 0x59d   : > { %4810 = vst.msk [vmem:[%s7916_s25 + $0xa8] sm:$0xff] %vm1472_vm0, %v4778_v10  ;;  %v4517_v48 = vadd.f32 %v7890_v51, %v4291_v14  ;;  %v4293_v8 = vpop.f32.mrb[189].mxu0  ;;  %v4720_v51 = vpop.permute.xlu0 %4719 }
 0x59f   : > { %v4779_v19 = vadd.f32 %v4710_v22, %v4517_v48 }
 0x5a0   : > { %v4296_v29 = vpop.f32.mrb[190].mxu0 }
 0x5a1   : > { %4811 = vst.msk [vmem:[%s7916_s25 + $0xb0] sm:$0xff] %vm1472_vm0, %v4779_v19  ;;  %v4522_v9 = vadd.f32 %v7892_v32, %v4296_v29  ;;  %v4298_v57 = vpop.f32.mrb[191].mxu0  ;;  %v4725_v32 = vpop.permute.xlu1 %4724 }
 0x5a3   : > { %v4780_v38 = vadd.f32 %v4715_v39, %v4522_v9 }
 0x5a4   : > { %v4301_v18 = vpop.f32.mrb[192].mxu0 }
 0x5a5   : > { %4812 = vst.msk [vmem:[%s7916_s25 + $0xb8] sm:$0xff] %vm1472_vm0, %v4780_v38  ;;  %v4527_v34 = vadd.f32 %v7894_v7, %v4301_v18  ;;  %v4303_v13 = vpop.f32.mrb[193].mxu0  ;;  %v4730_v7 = vpop.permute.xlu0 %4729 }
 0x5a7   : > { %v4781_v23 = vadd.f32 %v4720_v51, %v4527_v34 }
 0x5a8   : > { %v4306_v2 = vpop.f32.mrb[194].mxu0 }
 0x5a9   : > { %4813 = vst.msk [vmem:[%s7916_s25 + $0xc0] sm:$0xff] %vm1472_vm0, %v4781_v23  ;;  %v4532_v11 = vadd.f32 %v7896_v6, %v4306_v2  ;;  %v4308_v47 = vpop.f32.mrb[195].mxu0  ;;  %v4735_v6 = vpop.permute.xlu1 %4734 }
 0x5ab   : > { %v4782_v15 = vadd.f32 %v4725_v32, %v4532_v11 }
 0x5ac   : > { %v4311_v53 = vpop.f32.mrb[196].mxu0 }
 0x5ad   : > { %4814 = vst.msk [vmem:[%s7916_s25 + $0xc8] sm:$0xff] %vm1472_vm0, %v4782_v15  ;;  %v4537_v35 = vadd.f32 %v7898_v62, %v4311_v53  ;;  %v4313_v17 = vpop.f32.mrb[197].mxu0  ;;  %v4740_v62 = vpop.permute.xlu0 %4739 }
 0x5ae   : > { %v4745_v42 = vpop.permute.xlu1 %4744 }
 0x5af   : > { %v4783_v24 = vadd.f32 %v4730_v7, %v4537_v35 }
 0x5b0   : > { %v4316_v28 = vpop.f32.mrb[198].mxu0 }
 0x5b1   : > { %4815 = vst.msk [vmem:[%s7916_s25 + $0xd0] sm:$0xff] %vm1472_vm0, %v4783_v24  ;;  %v4542_v1 = vadd.f32 %v7900_v50, %v4316_v28  ;;  %v4318_v44 = vpop.f32.mrb[199].mxu0 }
 0x5b2   : > { %v4755_v16 = vpop.permute.xlu1 %4754 }
 0x5b3   : > { %v4784_v37 = vadd.f32 %v4735_v6, %v4542_v1 }
 0x5b4   : > { %v4321_v56 = vpop.f32.mrb[200].mxu0 }
 0x5b5   : > { %4816 = vst.msk [vmem:[%s7916_s25 + $0xd8] sm:$0xff] %vm1472_vm0, %v4784_v37  ;;  %v4547_v3 = vadd.f32 %v7902_v52, %v4321_v56  ;;  %v4323_v31 = vpop.f32.mrb[201].mxu0  ;;  %v4750_v52 = vpop.permute.xlu0 %4749 }
 0x5b7   : > { %v4785_v55 = vadd.f32 %v4740_v62, %v4547_v3 }
 0x5b8   : > { %v4326_v21 = vpop.f32.mrb[202].mxu0 }
 0x5b9   : > { %4817 = vst.msk [vmem:[%s7916_s25 + $0xe0] sm:$0xff] %vm1472_vm0, %v4785_v55  ;;  %v4552_v41 = vadd.f32 %v7904_v40, %v4326_v21  ;;  %v4328_v50 = vpop.f32.mrb[203].mxu0 }
 0x5bb   : > { %v4786_v61 = vadd.f32 %v4745_v42, %v4552_v41 }
 0x5bc   : > { %v4331_v33 = vpop.f32.mrb[204].mxu0 }
 0x5bd   : > { %4818 = vst.msk [vmem:[%s7916_s25 + $0xe8] sm:$0xff] %vm1472_vm0, %v4786_v61  ;;  %v4557_v26 = vadd.f32 %v7906_v12, %v4331_v33  ;;  %v4333_v60 = vpop.f32.mrb[205].mxu0 }
 0x5bf   : > { %v4787_v54 = vadd.f32 %v4750_v52, %v4557_v26 }
 0x5c0   : > { %v4336_v59 = vpop.f32.mrb[206].mxu0 }
 0x5c1   : > { %4819 = vst.msk [vmem:[%s7916_s25 + $0xf0] sm:$0xff] %vm1472_vm0, %v4787_v54  ;;  %v4562_v43 = vadd.f32 %v7908_v58, %v4336_v59  ;;  %v4338_v63 = vpop.f32.mrb[207].mxu0 }
 0x5c3   : > { %v4788_v40 = vadd.f32 %v4755_v16, %v4562_v43 }
 0x5c5   : > { %4820 = vst.msk [vmem:[%s7916_s25 + $0xf8] sm:$0xff] %vm1472_vm0, %v4788_v40 }
 0x5c6 PF: > { %s22_s21 = sadd.s32 1, %s5467_s21  }
 0x5c7   : > { %p19_p4 = scmp.ge.s32.totalorder %s22_s21, 4  }
 0x5c9   :  { %21 = sbr.rel (!%p19_p4) target bundleno = 1 (0x1), region = 98 }

</bundles_post_ra>
